<compile_context>
chip_gen: v5e
topology: v5e:2x2
jax: 0.10.0
libtpu: 0.0.40
codegen_flags: <defaults>
</compile_context>

<pallas_src>
import functools

import jax
import jax.numpy as jnp
from jax import lax
from jax.experimental import pallas as pl
from jax.experimental.pallas import tpu as pltpu


def _round_up(x: int, m: int) -> int:
    return (x + m - 1) // m * m


_VMEM_LIMIT = 48 * 1024 * 1024   # <= 48 MiB: headroom on v7x (64 MiB physical)


# ---------------------------------------------------------------------------
# Pallas kernels
# ---------------------------------------------------------------------------
def _matmul_bias_kernel(x_ref, w_ref, b_ref, o_ref, *, relu: bool):
    """out = x @ w + b (+ optional ReLU), f32 accumulation on the MXU."""
    acc = jnp.dot(x_ref[...], w_ref[...], preferred_element_type=jnp.float32)
    acc = acc + b_ref[...]                     # (1, N) broadcast over rows
    if relu:
        acc = jnp.maximum(acc, 0.0)
    o_ref[...] = acc.astype(o_ref.dtype)


def _fc_stack_kernel(x_ref, w1_ref, b1_ref, w2_ref, b2_ref, w3_ref, b3_ref, o_ref):
    """Fused fc1(+ReLU) -> fc2 -> fc3; activation never leaves VMEM."""
    h = jnp.dot(x_ref[...], w1_ref[...], preferred_element_type=jnp.float32) + b1_ref[...]
    h = jnp.maximum(h, 0.0)                                            # fc1 + ReLU
    h = jnp.dot(h, w2_ref[...], preferred_element_type=jnp.float32) + b2_ref[...]   # fc2 (no ReLU)
    o_ref[...] = (jnp.dot(h, w3_ref[...], preferred_element_type=jnp.float32)
                  + b3_ref[...]).astype(o_ref.dtype)                   # fc3 (no ReLU)


# ---------------------------------------------------------------------------
# Wrappers
# ---------------------------------------------------------------------------
def _pallas_matmul_bias(x, w_pad, b_pad, *, relu, m_blocks):
    """x: (M, K) unpadded. w_pad: (Kp, Np), b_pad: (1, Np) pre-padded."""
    M, K = x.shape
    Kp, Np = w_pad.shape
    tm = _round_up(pl.cdiv(M, m_blocks), 8)
    Mp = tm * m_blocks
    xp = jnp.pad(x, ((0, Mp - M), (0, Kp - K)))    # fuses into im2col under jit

    out = pl.pallas_call(
        functools.partial(_matmul_bias_kernel, relu=relu),
        out_shape=jax.ShapeDtypeStruct((Mp, Np), jnp.float32),
        grid=(m_blocks,),
        in_specs=[
            pl.BlockSpec((tm, Kp), lambda i: (i, 0)),
            pl.BlockSpec((Kp, Np), lambda i: (0, 0)),
            pl.BlockSpec((1, Np), lambda i: (0, 0)),
        ],
        out_specs=pl.BlockSpec((tm, Np), lambda i: (i, 0)),
        compiler_params=pltpu.CompilerParams(
            dimension_semantics=("parallel",),     # lets v7x use both TCs
            vmem_limit_bytes=_VMEM_LIMIT,
        ),
    )(xp, w_pad, b_pad)
    return out, Mp


def _im2col_nhwc(x, kh, kw, stride):
    """x: (B, H, W, C) -> patches (B*OH*OW, KH*KW*C), feature order (kh, kw, c).

    Pure lane-axis concat of strided taps -- no large transposes.
    """
    B, H, W, C = x.shape
    oh = (H - kh) // stride + 1
    ow = (W - kw) // stride + 1
    taps = []
    for i in range(kh):
        for j in range(kw):
            taps.append(x[:, i:i + stride * oh:stride, j:j + stride * ow:stride, :])
    p = jnp.concatenate(taps, axis=-1)             # (B, OH, OW, KH*KW*C)
    return p.reshape(B * oh * ow, kh * kw * C), oh, ow


def _conv2d_relu_nhwc(x, w_pad, b_pad, kh, kw, stride, out_ch):
    """NHWC conv (valid padding) as im2col + fused Pallas matmul+bias+ReLU."""
    B = x.shape[0]
    patches, oh, ow = _im2col_nhwc(x, kh, kw, stride)
    M = patches.shape[0]
    m_blocks = 2 if M >= 256 else 1                # split only the big conv1 tile
    out, _ = _pallas_matmul_bias(patches, w_pad, b_pad, relu=True, m_blocks=m_blocks)
    return out[:M, :out_ch].reshape(B, oh, ow, out_ch)   # stays NHWC


def _fc_stack(x, w1, b1, w2, b2, w3, b3, num_actions):
    """Fused fc1(+ReLU)->fc2->fc3 in one pallas_call. x: (B, 3136)."""
    M, K = x.shape
    Mp = _round_up(M, 8)
    K1p, H1 = w1.shape
    H2 = w2.shape[1]
    Ap = w3.shape[1]
    xp = jnp.pad(x, ((0, Mp - M), (0, K1p - K)))

    out = pl.pallas_call(
        _fc_stack_kernel,
        out_shape=jax.ShapeDtypeStruct((Mp, Ap), jnp.float32),
        grid=(1,),
        in_specs=[
            pl.BlockSpec((Mp, K1p), lambda i: (0, 0)),
            pl.BlockSpec((K1p, H1), lambda i: (0, 0)),
            pl.BlockSpec((1, H1), lambda i: (0, 0)),
            pl.BlockSpec((H1, H2), lambda i: (0, 0)),
            pl.BlockSpec((1, H2), lambda i: (0, 0)),
            pl.BlockSpec((H2, Ap), lambda i: (0, 0)),
            pl.BlockSpec((1, Ap), lambda i: (0, 0)),
        ],
        out_specs=pl.BlockSpec((Mp, Ap), lambda i: (0, 0)),
        compiler_params=pltpu.CompilerParams(
            dimension_semantics=("arbitrary",),
            vmem_limit_bytes=_VMEM_LIMIT,          # resident weights ~8 MB f32
        ),
    )(xp, w1, b1, w2, b2, w3, b3)
    return out[:M, :num_actions]


# ---------------------------------------------------------------------------
# One-time parameter preparation (permute for NHWC, pad to (8,128) alignment)
# ---------------------------------------------------------------------------
_CONV_CFG = ((8, 8, 4, 32), (4, 4, 2, 64), (3, 3, 1, 64))   # (kh, kw, stride, out_ch)
_FC_C, _FC_H, _FC_W = 64, 7, 7                               # conv3 output (NCHW view)


def prepare_params(params):
    prep = {}
    for li in (1, 2, 3):
        w = params[f"c{li}_w"]                     # OIHW (PyTorch layout)
        b = params[f"c{li}_b"]
        O, C, KH, KW = w.shape
        K = KH * KW * C
        Kp, Np = _round_up(K, 128), _round_up(O, 128)
        # rows ordered (kh, kw, c) to match the NHWC im2col feature order
        wm = jnp.transpose(w, (2, 3, 1, 0)).reshape(K, O)
        prep[f"c{li}_w"] = jnp.pad(wm, ((0, Kp - K), (0, Np - O)))
        prep[f"c{li}_b"] = jnp.pad(b, ((0, Np - O),)).reshape(1, Np)

    # fc1: re-permute rows from NCHW-flatten (c,h,w) to NHWC-flatten (h,w,c)
    K1 = _FC_C * _FC_H * _FC_W
    H1 = params["fc1_w"].shape[1]
    w1 = params["fc1_w"].reshape(_FC_C, _FC_H, _FC_W, H1)
    w1 = jnp.transpose(w1, (1, 2, 0, 3)).reshape(K1, H1)
    K1p = _round_up(K1, 128)
    prep["fc1_w"] = jnp.pad(w1, ((0, K1p - K1), (0, 0)))
    prep["fc1_b"] = params["fc1_b"].reshape(1, H1)

    prep["fc2_w"] = params["fc2_w"]
    prep["fc2_b"] = params["fc2_b"].reshape(1, params["fc2_w"].shape[1])

    A = params["fc3_w"].shape[1]
    Ap = _round_up(A, 128)
    prep["fc3_w"] = jnp.pad(params["fc3_w"], ((0, 0), (0, Ap - A)))
    prep["fc3_b"] = jnp.pad(params["fc3_b"], ((0, Ap - A),)).reshape(1, Ap)
    return prep


# ---------------------------------------------------------------------------
# DQN forward (jitted)
# ---------------------------------------------------------------------------
def build_forward(num_actions):
    @jax.jit
    def fwd(prep, x):
        x = jnp.transpose(x, (0, 2, 3, 1))         # NCHW -> NHWC, once at entry
        for li, (kh, kw, stride, out_ch) in enumerate(_CONV_CFG, start=1):
            x = _conv2d_relu_nhwc(x, prep[f"c{li}_w"], prep[f"c{li}_b"],
                                  kh, kw, stride, out_ch)
        x = x.reshape(x.shape[0], -1)              # (H,W,C) flatten, matches fc1 permute
        return _fc_stack(x, prep["fc1_w"], prep["fc1_b"],
                         prep["fc2_w"], prep["fc2_b"],
                         prep["fc3_w"], prep["fc3_b"], num_actions)
    return fwd


# ---------------------------------------------------------------------------
# Pure-JAX reference (mirrors the PyTorch module exactly, NCHW)
# ---------------------------------------------------------------------------
def ref_forward(params, x):
    def conv(x, w, b, s):
        y = lax.conv_general_dilated(
            x, w, (s, s), "VALID", dimension_numbers=("NCHW", "OIHW", "NCHW"))
        return jax.nn.relu(y + b[None, :, None, None])
    x = conv(x, params["c1_w"], params["c1_b"], 4)
    x = conv(x, params["c2_w"], params["c2_b"], 2)
    x = conv(x, params["c3_w"], params["c3_b"], 1)
    x = x.reshape(x.shape[0], -1)
    x = jax.nn.relu(x @ params["fc1_w"] + params["fc1_b"])
    x = x @ params["fc2_w"] + params["fc2_b"]       # no ReLU (matches Sequential)
    x = x @ params["fc3_w"] + params["fc3_b"]
    return x


def init_params(key, in_channels, num_actions):
    def u(k, shape, fan_in):
        bound = 1.0 / float(fan_in) ** 0.5
        return jax.random.uniform(k, shape, jnp.float32, -bound, bound)

    ks = jax.random.split(key, 12)
    p = {}
    p["c1_w"] = u(ks[0], (32, in_channels, 8, 8), in_channels * 8 * 8)
    p["c1_b"] = u(ks[1], (32,), in_channels * 8 * 8)
    p["c2_w"] = u(ks[2], (64, 32, 4, 4), 32 * 4 * 4)
    p["c2_b"] = u(ks[3], (64,), 32 * 4 * 4)
    p["c3_w"] = u(ks[4], (64, 64, 3, 3), 64 * 3 * 3)
    p["c3_b"] = u(ks[5], (64,), 64 * 3 * 3)
    p["fc1_w"] = u(ks[6], (64 * 7 * 7, 512), 64 * 7 * 7)   # stored (in, out)
    p["fc1_b"] = u(ks[7], (512,), 64 * 7 * 7)
    p["fc2_w"] = u(ks[8], (512, 512), 512)
    p["fc2_b"] = u(ks[9], (512,), 512)
    p["fc3_w"] = u(ks[10], (512, num_actions), 512)
    p["fc3_b"] = u(ks[11], (num_actions,), 512)
    return p


if __name__ == "__main__":
    # 64*7*7 in fc1 forces an 84x84 spatial input (classic Atari DQN).
    batch, in_channels, spatial, num_actions = 2, 4, 84, 6

    key = jax.random.PRNGKey(0)
    k_params, k_x = jax.random.split(key)
    params = init_params(k_params, in_channels, num_actions)
    x = jax.random.uniform(k_x, (batch, in_channels, spatial, spatial), jnp.float32)

    prep = prepare_params(params)                  # one-time permute/pad
    dqn_forward = build_forward(num_actions)

    out = jax.block_until_ready(dqn_forward(prep, x))
    assert out.shape == (batch, num_actions), out.shape

    ref = jax.block_until_ready(ref_forward(params, x))
    assert jnp.allclose(out, ref, rtol=1e-3, atol=1e-3), "mismatch vs reference"

    print("KERNEL_OK")
</pallas_src>

<mosaic_0001>
module attributes {stable_mosaic.version = 11 : i64} {
  func.func @_matmul_bias_kernel(%arg0: i32, %arg1: memref<400x256xf32, #tpu.memory_space<vmem>>, %arg2: memref<256x128xf32, #tpu.memory_space<vmem>>, %arg3: memref<1x128xf32, #tpu.memory_space<vmem>>, %arg4: memref<400x128xf32, #tpu.memory_space<vmem>>) attributes {dimension_semantics = [#tpu.dimension_semantics<parallel>], iteration_bounds = array<i64: 2>, scalar_prefetch = 0 : i64, scratch_operands = 0 : i64, tpu.core_type = #tpu.core_type<tc>, window_params = [{transform_indices = @transform_0, window_bounds = array<i64: 400, 256>}, {pipeline_mode = #tpu.pipeline_mode<synchronous>, transform_indices = @transform_1, window_bounds = array<i64: 256, 128>}, {pipeline_mode = #tpu.pipeline_mode<synchronous>, transform_indices = @transform_2, window_bounds = array<i64: 1, 128>}, {transform_indices = @transform_3, window_bounds = array<i64: 400, 128>}]} {
    %c0 = arith.constant 0 : index
    %c0_0 = arith.constant 0 : index
    %0 = vector.load %arg1[%c0, %c0_0] : memref<400x256xf32, #tpu.memory_space<vmem>>, vector<400x256xf32>
    %c0_1 = arith.constant 0 : index
    %c0_2 = arith.constant 0 : index
    %1 = vector.load %arg2[%c0_1, %c0_2] : memref<256x128xf32, #tpu.memory_space<vmem>>, vector<256x128xf32>
    %cst = arith.constant dense<0.000000e+00> : vector<400x128xf32>
    %2 = tpu.matmul %0, %1, %cst {dimension_numbers = #tpu.dot_dimension_numbers<[1], [0], [0], [1], [0, 0, 1, 1], [], []>} : vector<400x256xf32>, vector<256x128xf32>, vector<400x128xf32> -> vector<400x128xf32>
    %c0_3 = arith.constant 0 : index
    %c0_4 = arith.constant 0 : index
    %3 = vector.load %arg3[%c0_3, %c0_4] : memref<1x128xf32, #tpu.memory_space<vmem>>, vector<1x128xf32>
    %4 = vector.broadcast %3 : vector<1x128xf32> to vector<400x128xf32>
    %5 = arith.addf %2, %4 : vector<400x128xf32>
    %cst_5 = arith.constant 0.000000e+00 : f32
    %6 = vector.broadcast %cst_5 : f32 to vector<400x128xf32>
    %7 = arith.maximumf %5, %6 : vector<400x128xf32>
    %c0_6 = arith.constant 0 : index
    %c0_7 = arith.constant 0 : index
    %8 = vector.load %arg4[%c0_6, %c0_7] : memref<400x128xf32, #tpu.memory_space<vmem>>, vector<400x128xf32>
    tpu.vector_store %arg4[%c0_6, %c0_7], %7 {strides = array<i32>} : memref<400x128xf32, #tpu.memory_space<vmem>>, vector<400x128xf32>,
    return
  }
  func.func @transform_0(%arg0: i32) -> (i32, i32) {
    %c0_i32 = arith.constant 0 : i32
    %c0_i32_0 = arith.constant 0 : i32
    return %arg0, %c0_i32 : i32, i32
  }
  func.func @transform_1(%arg0: i32) -> (i32, i32) {
    %c0_i32 = arith.constant 0 : i32
    %c0_i32_0 = arith.constant 0 : i32
    %c0_i32_1 = arith.constant 0 : i32
    return %c0_i32, %c0_i32_0 : i32, i32
  }
  func.func @transform_2(%arg0: i32) -> (i32, i32) {
    %c0_i32 = arith.constant 0 : i32
    %c0_i32_0 = arith.constant 0 : i32
    %c0_i32_1 = arith.constant 0 : i32
    return %c0_i32, %c0_i32_0 : i32, i32
  }
  func.func @transform_3(%arg0: i32) -> (i32, i32) {
    %c0_i32 = arith.constant 0 : i32
    %c0_i32_0 = arith.constant 0 : i32
    return %arg0, %c0_i32 : i32, i32
  }
}

module attributes {stable_mosaic.version = 11 : i64} {
  func.func @_matmul_bias_kernel(%arg0: i32, %arg1: memref<168x512xf32, #tpu.memory_space<vmem>>, %arg2: memref<512x128xf32, #tpu.memory_space<vmem>>, %arg3: memref<1x128xf32, #tpu.memory_space<vmem>>, %arg4: memref<168x128xf32, #tpu.memory_space<vmem>>) attributes {dimension_semantics = [#tpu.dimension_semantics<parallel>], iteration_bounds = array<i64: 1>, scalar_prefetch = 0 : i64, scratch_operands = 0 : i64, tpu.core_type = #tpu.core_type<tc>, window_params = [{transform_indices = @transform_0, window_bounds = array<i64: 168, 512>}, {pipeline_mode = #tpu.pipeline_mode<synchronous>, transform_indices = @transform_1, window_bounds = array<i64: 512, 128>}, {pipeline_mode = #tpu.pipeline_mode<synchronous>, transform_indices = @transform_2, window_bounds = array<i64: 1, 128>}, {transform_indices = @transform_3, window_bounds = array<i64: 168, 128>}]} {
    %c0 = arith.constant 0 : index
    %c0_0 = arith.constant 0 : index
    %0 = vector.load %arg1[%c0, %c0_0] : memref<168x512xf32, #tpu.memory_space<vmem>>, vector<168x512xf32>
    %c0_1 = arith.constant 0 : index
    %c0_2 = arith.constant 0 : index
    %1 = vector.load %arg2[%c0_1, %c0_2] : memref<512x128xf32, #tpu.memory_space<vmem>>, vector<512x128xf32>
    %cst = arith.constant dense<0.000000e+00> : vector<168x128xf32>
    %2 = tpu.matmul %0, %1, %cst {dimension_numbers = #tpu.dot_dimension_numbers<[1], [0], [0], [1], [0, 0, 1, 1], [], []>} : vector<168x512xf32>, vector<512x128xf32>, vector<168x128xf32> -> vector<168x128xf32>
    %c0_3 = arith.constant 0 : index
    %c0_4 = arith.constant 0 : index
    %3 = vector.load %arg3[%c0_3, %c0_4] : memref<1x128xf32, #tpu.memory_space<vmem>>, vector<1x128xf32>
    %4 = vector.broadcast %3 : vector<1x128xf32> to vector<168x128xf32>
    %5 = arith.addf %2, %4 : vector<168x128xf32>
    %cst_5 = arith.constant 0.000000e+00 : f32
    %6 = vector.broadcast %cst_5 : f32 to vector<168x128xf32>
    %7 = arith.maximumf %5, %6 : vector<168x128xf32>
    %c0_6 = arith.constant 0 : index
    %c0_7 = arith.constant 0 : index
    %8 = vector.load %arg4[%c0_6, %c0_7] : memref<168x128xf32, #tpu.memory_space<vmem>>, vector<168x128xf32>
    tpu.vector_store %arg4[%c0_6, %c0_7], %7 {strides = array<i32>} : memref<168x128xf32, #tpu.memory_space<vmem>>, vector<168x128xf32>,
    return
  }
  func.func @transform_0(%arg0: i32) -> (i32, i32) {
    %c0_i32 = arith.constant 0 : i32
    %c0_i32_0 = arith.constant 0 : i32
    return %arg0, %c0_i32 : i32, i32
  }
  func.func @transform_1(%arg0: i32) -> (i32, i32) {
    %c0_i32 = arith.constant 0 : i32
    %c0_i32_0 = arith.constant 0 : i32
    %c0_i32_1 = arith.constant 0 : i32
    return %c0_i32, %c0_i32_0 : i32, i32
  }
  func.func @transform_2(%arg0: i32) -> (i32, i32) {
    %c0_i32 = arith.constant 0 : i32
    %c0_i32_0 = arith.constant 0 : i32
    %c0_i32_1 = arith.constant 0 : i32
    return %c0_i32, %c0_i32_0 : i32, i32
  }
  func.func @transform_3(%arg0: i32) -> (i32, i32) {
    %c0_i32 = arith.constant 0 : i32
    %c0_i32_0 = arith.constant 0 : i32
    return %arg0, %c0_i32 : i32, i32
  }
}

module attributes {stable_mosaic.version = 11 : i64} {
  func.func @_matmul_bias_kernel(%arg0: i32, %arg1: memref<104x640xf32, #tpu.memory_space<vmem>>, %arg2: memref<640x128xf32, #tpu.memory_space<vmem>>, %arg3: memref<1x128xf32, #tpu.memory_space<vmem>>, %arg4: memref<104x128xf32, #tpu.memory_space<vmem>>) attributes {dimension_semantics = [#tpu.dimension_semantics<parallel>], iteration_bounds = array<i64: 1>, scalar_prefetch = 0 : i64, scratch_operands = 0 : i64, tpu.core_type = #tpu.core_type<tc>, window_params = [{transform_indices = @transform_0, window_bounds = array<i64: 104, 640>}, {pipeline_mode = #tpu.pipeline_mode<synchronous>, transform_indices = @transform_1, window_bounds = array<i64: 640, 128>}, {pipeline_mode = #tpu.pipeline_mode<synchronous>, transform_indices = @transform_2, window_bounds = array<i64: 1, 128>}, {transform_indices = @transform_3, window_bounds = array<i64: 104, 128>}]} {
    %c0 = arith.constant 0 : index
    %c0_0 = arith.constant 0 : index
    %0 = vector.load %arg1[%c0, %c0_0] : memref<104x640xf32, #tpu.memory_space<vmem>>, vector<104x640xf32>
    %c0_1 = arith.constant 0 : index
    %c0_2 = arith.constant 0 : index
    %1 = vector.load %arg2[%c0_1, %c0_2] : memref<640x128xf32, #tpu.memory_space<vmem>>, vector<640x128xf32>
    %cst = arith.constant dense<0.000000e+00> : vector<104x128xf32>
    %2 = tpu.matmul %0, %1, %cst {dimension_numbers = #tpu.dot_dimension_numbers<[1], [0], [0], [1], [0, 0, 1, 1], [], []>} : vector<104x640xf32>, vector<640x128xf32>, vector<104x128xf32> -> vector<104x128xf32>
    %c0_3 = arith.constant 0 : index
    %c0_4 = arith.constant 0 : index
    %3 = vector.load %arg3[%c0_3, %c0_4] : memref<1x128xf32, #tpu.memory_space<vmem>>, vector<1x128xf32>
    %4 = vector.broadcast %3 : vector<1x128xf32> to vector<104x128xf32>
    %5 = arith.addf %2, %4 : vector<104x128xf32>
    %cst_5 = arith.constant 0.000000e+00 : f32
    %6 = vector.broadcast %cst_5 : f32 to vector<104x128xf32>
    %7 = arith.maximumf %5, %6 : vector<104x128xf32>
    %c0_6 = arith.constant 0 : index
    %c0_7 = arith.constant 0 : index
    %8 = vector.load %arg4[%c0_6, %c0_7] : memref<104x128xf32, #tpu.memory_space<vmem>>, vector<104x128xf32>
    tpu.vector_store %arg4[%c0_6, %c0_7], %7 {strides = array<i32>} : memref<104x128xf32, #tpu.memory_space<vmem>>, vector<104x128xf32>,
    return
  }
  func.func @transform_0(%arg0: i32) -> (i32, i32) {
    %c0_i32 = arith.constant 0 : i32
    %c0_i32_0 = arith.constant 0 : i32
    return %arg0, %c0_i32 : i32, i32
  }
  func.func @transform_1(%arg0: i32) -> (i32, i32) {
    %c0_i32 = arith.constant 0 : i32
    %c0_i32_0 = arith.constant 0 : i32
    %c0_i32_1 = arith.constant 0 : i32
    return %c0_i32, %c0_i32_0 : i32, i32
  }
  func.func @transform_2(%arg0: i32) -> (i32, i32) {
    %c0_i32 = arith.constant 0 : i32
    %c0_i32_0 = arith.constant 0 : i32
    %c0_i32_1 = arith.constant 0 : i32
    return %c0_i32, %c0_i32_0 : i32, i32
  }
  func.func @transform_3(%arg0: i32) -> (i32, i32) {
    %c0_i32 = arith.constant 0 : i32
    %c0_i32_0 = arith.constant 0 : i32
    return %arg0, %c0_i32 : i32, i32
  }
}

module attributes {stable_mosaic.version = 11 : i64} {
  func.func @_fc_stack_kernel(%arg0: i32, %arg1: memref<8x3200xf32, #tpu.memory_space<vmem>>, %arg2: memref<3200x512xf32, #tpu.memory_space<vmem>>, %arg3: memref<1x512xf32, #tpu.memory_space<vmem>>, %arg4: memref<512x512xf32, #tpu.memory_space<vmem>>, %arg5: memref<1x512xf32, #tpu.memory_space<vmem>>, %arg6: memref<512x128xf32, #tpu.memory_space<vmem>>, %arg7: memref<1x128xf32, #tpu.memory_space<vmem>>, %arg8: memref<8x128xf32, #tpu.memory_space<vmem>>) attributes {dimension_semantics = [#tpu.dimension_semantics<arbitrary>], iteration_bounds = array<i64: 1>, scalar_prefetch = 0 : i64, scratch_operands = 0 : i64, tpu.core_type = #tpu.core_type<tc>, window_params = [{pipeline_mode = #tpu.pipeline_mode<synchronous>, transform_indices = @transform_0, window_bounds = array<i64: 8, 3200>}, {pipeline_mode = #tpu.pipeline_mode<synchronous>, transform_indices = @transform_1, window_bounds = array<i64: 3200, 512>}, {pipeline_mode = #tpu.pipeline_mode<synchronous>, transform_indices = @transform_2, window_bounds = array<i64: 1, 512>}, {pipeline_mode = #tpu.pipeline_mode<synchronous>, transform_indices = @transform_3, window_bounds = array<i64: 512, 512>}, {pipeline_mode = #tpu.pipeline_mode<synchronous>, transform_indices = @transform_4, window_bounds = array<i64: 1, 512>}, {pipeline_mode = #tpu.pipeline_mode<synchronous>, transform_indices = @transform_5, window_bounds = array<i64: 512, 128>}, {pipeline_mode = #tpu.pipeline_mode<synchronous>, transform_indices = @transform_6, window_bounds = array<i64: 1, 128>}, {pipeline_mode = #tpu.pipeline_mode<synchronous>, transform_indices = @transform_7, window_bounds = array<i64: 8, 128>}]} {
    %c0 = arith.constant 0 : index
    %c0_0 = arith.constant 0 : index
    %0 = vector.load %arg1[%c0, %c0_0] : memref<8x3200xf32, #tpu.memory_space<vmem>>, vector<8x3200xf32>
    %c0_1 = arith.constant 0 : index
    %c0_2 = arith.constant 0 : index
    %1 = vector.load %arg2[%c0_1, %c0_2] : memref<3200x512xf32, #tpu.memory_space<vmem>>, vector<3200x512xf32>
    %cst = arith.constant dense<0.000000e+00> : vector<8x512xf32>
    %2 = tpu.matmul %0, %1, %cst {dimension_numbers = #tpu.dot_dimension_numbers<[1], [0], [0], [1], [0, 0, 1, 1], [], []>} : vector<8x3200xf32>, vector<3200x512xf32>, vector<8x512xf32> -> vector<8x512xf32>
    %c0_3 = arith.constant 0 : index
    %c0_4 = arith.constant 0 : index
    %3 = vector.load %arg3[%c0_3, %c0_4] : memref<1x512xf32, #tpu.memory_space<vmem>>, vector<1x512xf32>
    %4 = vector.broadcast %3 : vector<1x512xf32> to vector<8x512xf32>
    %5 = arith.addf %2, %4 : vector<8x512xf32>
    %cst_5 = arith.constant 0.000000e+00 : f32
    %6 = vector.broadcast %cst_5 : f32 to vector<8x512xf32>
    %7 = arith.maximumf %5, %6 : vector<8x512xf32>
    %c0_6 = arith.constant 0 : index
    %c0_7 = arith.constant 0 : index
    %8 = vector.load %arg4[%c0_6, %c0_7] : memref<512x512xf32, #tpu.memory_space<vmem>>, vector<512x512xf32>
    %cst_8 = arith.constant dense<0.000000e+00> : vector<8x512xf32>
    %9 = tpu.matmul %7, %8, %cst_8 {dimension_numbers = #tpu.dot_dimension_numbers<[1], [0], [0], [1], [0, 0, 1, 1], [], []>} : vector<8x512xf32>, vector<512x512xf32>, vector<8x512xf32> -> vector<8x512xf32>
    %c0_9 = arith.constant 0 : index
    %c0_10 = arith.constant 0 : index
    %10 = vector.load %arg5[%c0_9, %c0_10] : memref<1x512xf32, #tpu.memory_space<vmem>>, vector<1x512xf32>
    %11 = vector.broadcast %10 : vector<1x512xf32> to vector<8x512xf32>
    %12 = arith.addf %9, %11 : vector<8x512xf32>
    %c0_11 = arith.constant 0 : index
    %c0_12 = arith.constant 0 : index
    %13 = vector.load %arg6[%c0_11, %c0_12] : memref<512x128xf32, #tpu.memory_space<vmem>>, vector<512x128xf32>
    %cst_13 = arith.constant dense<0.000000e+00> : vector<8x128xf32>
    %14 = tpu.matmul %12, %13, %cst_13 {dimension_numbers = #tpu.dot_dimension_numbers<[1], [0], [0], [1], [0, 0, 1, 1], [], []>} : vector<8x512xf32>, vector<512x128xf32>, vector<8x128xf32> -> vector<8x128xf32>
    %c0_14 = arith.constant 0 : index
    %c0_15 = arith.constant 0 : index
    %15 = vector.load %arg7[%c0_14, %c0_15] : memref<1x128xf32, #tpu.memory_space<vmem>>, vector<1x128xf32>
    %16 = vector.broadcast %15 : vector<1x128xf32> to vector<8x128xf32>
    %17 = arith.addf %14, %16 : vector<8x128xf32>
    %c0_16 = arith.constant 0 : index
    %c0_17 = arith.constant 0 : index
    %18 = vector.load %arg8[%c0_16, %c0_17] : memref<8x128xf32, #tpu.memory_space<vmem>>, vector<8x128xf32>
    tpu.vector_store %arg8[%c0_16, %c0_17], %17 {strides = array<i32>} : memref<8x128xf32, #tpu.memory_space<vmem>>, vector<8x128xf32>,
    return
  }
  func.func @transform_0(%arg0: i32) -> (i32, i32) {
    %c0_i32 = arith.constant 0 : i32
    %c0_i32_0 = arith.constant 0 : i32
    %c0_i32_1 = arith.constant 0 : i32
    return %c0_i32, %c0_i32_0 : i32, i32
  }
  func.func @transform_1(%arg0: i32) -> (i32, i32) {
    %c0_i32 = arith.constant 0 : i32
    %c0_i32_0 = arith.constant 0 : i32
    %c0_i32_1 = arith.constant 0 : i32
    return %c0_i32, %c0_i32_0 : i32, i32
  }
  func.func @transform_2(%arg0: i32) -> (i32, i32) {
    %c0_i32 = arith.constant 0 : i32
    %c0_i32_0 = arith.constant 0 : i32
    %c0_i32_1 = arith.constant 0 : i32
    return %c0_i32, %c0_i32_0 : i32, i32
  }
  func.func @transform_3(%arg0: i32) -> (i32, i32) {
    %c0_i32 = arith.constant 0 : i32
    %c0_i32_0 = arith.constant 0 : i32
    %c0_i32_1 = arith.constant 0 : i32
    return %c0_i32, %c0_i32_0 : i32, i32
  }
  func.func @transform_4(%arg0: i32) -> (i32, i32) {
    %c0_i32 = arith.constant 0 : i32
    %c0_i32_0 = arith.constant 0 : i32
    %c0_i32_1 = arith.constant 0 : i32
    return %c0_i32, %c0_i32_0 : i32, i32
  }
  func.func @transform_5(%arg0: i32) -> (i32, i32) {
    %c0_i32 = arith.constant 0 : i32
    %c0_i32_0 = arith.constant 0 : i32
    %c0_i32_1 = arith.constant 0 : i32
    return %c0_i32, %c0_i32_0 : i32, i32
  }
  func.func @transform_6(%arg0: i32) -> (i32, i32) {
    %c0_i32 = arith.constant 0 : i32
    %c0_i32_0 = arith.constant 0 : i32
    %c0_i32_1 = arith.constant 0 : i32
    return %c0_i32, %c0_i32_0 : i32, i32
  }
  func.func @transform_7(%arg0: i32) -> (i32, i32) {
    %c0_i32 = arith.constant 0 : i32
    %c0_i32_0 = arith.constant 0 : i32
    %c0_i32_1 = arith.constant 0 : i32
    return %c0_i32, %c0_i32_0 : i32, i32
  }
}

</mosaic_0001>

<bundles_post_ra>
// kernel: fwd.4
= control target key start
LH: loop header
LB: loop body
LE: loop exit
PB: predicated region body
PF: predicated region fallthrough
CT: control target
= control target key end

     0   :  { %s883_s12 = smov 0   ;;  %s1211_s0 = inlined_call_operand.vmem [shape: f32[800,256], index: 0, kind: input, shape index: {}]   ;;  %s1212_s1 = inlined_call_operand.vmem [shape: f32[256,128], index: 1, kind: input, shape index: {}]   ;;  %s1213_s2 = inlined_call_operand.vmem [shape: f32[1,128], index: 2, kind: input, shape index: {}]   ;;  %s1214_s3 = inlined_call_operand.vmem [shape: f32[800,128], index: 3, kind: output, shape index: {}]  }
   0x1 LB: > { %s803_s13 = sadd.s32 4294967295, %s861_s12   ;;  %p807_p0 = scmp.ge.s32.totalorder %s861_s12, 1  ;;  %s861_s12 = sphi %s883_s12, %s13_s12  }
   0x2   : > { %p139_p1 = scmp.lt.s32.totalorder %s861_s12, 3 }
   0x4   : > { %p140_p2 = pnand %p807_p0, %p139_p1 }
   0x5   : > { %s164_s17 = smul.u32 (!%p140_p2), 50, %s803_s13 }
   0x6   : > { %143 = sbr.rel (%p140_p2) target bundleno = 374 (0x176), region = 32 }
   0x7   : > { %p165_p3 = scmp.lt.s32.totalorder (!%p140_p2), %s164_s17, 99 }
   0xb   : > { %v292_v0 = vld [vmem:[%s1212_s1 + $0x78] sm:$0xff]  ;;  %v291_v1 = vld [vmem:[%s1212_s1 + $0x70] sm:$0xff]  ;;  %v290_v4 = vld [vmem:[%s1212_s1 + $0x68] sm:$0xff]  ;;  %s1216_s17 = smov (!%p165_p3, %s164_s17), 99 }
   0xc   : > { %v308_v2 = vld [vmem:[%s1212_s1 + $0xf8] sm:$0xff]  ;;  %814 = vmatpush.msra.mxu2 %v292_v0  ;;  %v307_v3 = vld [vmem:[%s1212_s1 + $0xf0] sm:$0xff]  ;;  %313 = vmatpush.msra.mxu0 %v292_v0  ;;  %v306_v5 = vld [vmem:[%s1212_s1 + $0xe8] sm:$0xff]  ;;  %s813_s16 = sshll.u32 %s1216_s17, 4  ;;  %s810_s7 = sshll.u32 %s1216_s17, 3 }
   0xd   : > { %830 = vmatpush.msra.mxu3 %v308_v2  ;;  %480 = vmatpush.msra.mxu1 %v308_v2  ;;  %v289_v6 = vld [vmem:[%s1212_s1 + $0x60] sm:$0xff]  ;;  %v288_v8 = vld [vmem:[%s1212_s1 + $0x58] sm:$0xff]  ;;  %v287_v10 = vld [vmem:[%s1212_s1 + $0x50] sm:$0xff]  ;;  %s989_s27 = scalar_lea.vmem %s1211_s0, %s813_s16  ;;  %s1075_s10 = scalar_lea.vmem %s1214_s3, %s810_s7 }
   0xe   : > { %815 = vmatpush.msra.mxu2 %v291_v1  ;;  %314 = vmatpush.msra.mxu0 %v291_v1  ;;  %v305_v7 = vld [vmem:[%s1212_s1 + $0xe0] sm:$0xff]  ;;  %v304_v9 = vld [vmem:[%s1212_s1 + $0xd8] sm:$0xff]  ;;  %v303_v11 = vld [vmem:[%s1212_s1 + $0xd0] sm:$0xff] }
   0xf   : > { %831 = vmatpush.msra.mxu3 %v307_v3  ;;  %481 = vmatpush.msra.mxu1 %v307_v3  ;;  %v286_v12 = vld [vmem:[%s1212_s1 + $0x48] sm:$0xff]  ;;  %v285_v14 = vld [vmem:[%s1212_s1 + $0x40] sm:$0xff]  ;;  %v284_v16 = vld [vmem:[%s1212_s1 + $0x38] sm:$0xff] }
  0x10   : > { %816 = vmatpush.msra.mxu2 %v290_v4  ;;  %315 = vmatpush.msra.mxu0 %v290_v4  ;;  %v302_v13 = vld [vmem:[%s1212_s1 + $0xc8] sm:$0xff]  ;;  %v301_v15 = vld [vmem:[%s1212_s1 + $0xc0] sm:$0xff]  ;;  %v300_v17 = vld [vmem:[%s1212_s1 + $0xb8] sm:$0xff] }
  0x11   : > { %832 = vmatpush.msra.mxu3 %v306_v5  ;;  %482 = vmatpush.msra.mxu1 %v306_v5  ;;  %v283_v18 = vld [vmem:[%s1212_s1 + $0x30] sm:$0xff]  ;;  %v282_v20 = vld [vmem:[%s1212_s1 + $0x28] sm:$0xff]  ;;  %v281_v22 = vld [vmem:[%s1212_s1 + $0x20] sm:$0xff] }
  0x12   : > { %817 = vmatpush.msra.mxu2 %v289_v6  ;;  %316 = vmatpush.msra.mxu0 %v289_v6  ;;  %v299_v19 = vld [vmem:[%s1212_s1 + $0xb0] sm:$0xff]  ;;  %v298_v21 = vld [vmem:[%s1212_s1 + $0xa8] sm:$0xff]  ;;  %v297_v23 = vld [vmem:[%s1212_s1 + $0xa0] sm:$0xff] }
  0x13   : > { %833 = vmatpush.msra.mxu3 %v305_v7  ;;  %483 = vmatpush.msra.mxu1 %v305_v7  ;;  %v280_v24 = vld [vmem:[%s1212_s1 + $0x18] sm:$0xff]  ;;  %v279_v26 = vld [vmem:[%s1212_s1 + $0x10] sm:$0xff]  ;;  %v278_v28 = vld [vmem:[%s1212_s1 + $0x8] sm:$0xff] }
  0x14   : > { %818 = vmatpush.msra.mxu2 %v288_v8  ;;  %317 = vmatpush.msra.mxu0 %v288_v8  ;;  %v296_v25 = vld [vmem:[%s1212_s1 + $0x98] sm:$0xff]  ;;  %v295_v27 = vld [vmem:[%s1212_s1 + $0x90] sm:$0xff]  ;;  %v294_v29 = vld [vmem:[%s1212_s1 + $0x88] sm:$0xff] }
  0x15   : > { %834 = vmatpush.msra.mxu3 %v304_v9  ;;  %484 = vmatpush.msra.mxu1 %v304_v9  ;;  %v277_v30 = vld [vmem:[%s1212_s1] sm:$0xff]  ;;  %v227_v32 = vld [vmem:[%s989_s27 + $0x190] sm:$0xff]  ;;  %v228_v33 = vld [vmem:[%s989_s27 + $0x198] sm:$0xff] }
  0x16   : > { %819 = vmatpush.msra.mxu2 %v287_v10  ;;  %318 = vmatpush.msra.mxu0 %v287_v10  ;;  %v293_v31 = vld [vmem:[%s1212_s1 + $0x80] sm:$0xff]  ;;  %v178_v35 = vld [vmem:[%s989_s27 + $0x8] sm:$0xff]  ;;  %v179_v38 = vld [vmem:[%s989_s27 + $0x10] sm:$0xff] }
  0x17   : > { %835 = vmatpush.msra.mxu3 %v303_v11  ;;  %485 = vmatpush.msra.mxu1 %v303_v11  ;;  %v177_v34 = vld [vmem:[%s989_s27] sm:$0xff]  ;;  %v230_v37 = vld [vmem:[%s989_s27 + $0x1a8] sm:$0xff]  ;;  %v180_v39 = vld [vmem:[%s989_s27 + $0x18] sm:$0xff] }
  0x18   : > { %820 = vmatpush.msra.mxu2 %v286_v12  ;;  %319 = vmatpush.msra.mxu0 %v286_v12  ;;  %v229_v36 = vld [vmem:[%s989_s27 + $0x1a0] sm:$0xff]  ;;  %v231_v40 = vld [vmem:[%s989_s27 + $0x1b0] sm:$0xff]  ;;  %v232_v41 = vld [vmem:[%s989_s27 + $0x1b8] sm:$0xff] }
  0x19   : > { %836 = vmatpush.msra.mxu3 %v302_v13  ;;  %486 = vmatpush.msra.mxu1 %v302_v13  ;;  %v181_v42 = vld [vmem:[%s989_s27 + $0x20] sm:$0xff]  ;;  %v182_v43 = vld [vmem:[%s989_s27 + $0x28] sm:$0xff]  ;;  %v183_v46 = vld [vmem:[%s989_s27 + $0x30] sm:$0xff] }
  0x1a   : > { %821 = vmatpush.msra.mxu2 %v285_v14  ;;  %320 = vmatpush.msra.mxu0 %v285_v14  ;;  %v233_v44 = vld [vmem:[%s989_s27 + $0x1c0] sm:$0xff]  ;;  %v234_v45 = vld [vmem:[%s989_s27 + $0x1c8] sm:$0xff]  ;;  %v184_v47 = vld [vmem:[%s989_s27 + $0x38] sm:$0xff] }
  0x1b   : > { %837 = vmatpush.msra.mxu3 %v301_v15  ;;  %487 = vmatpush.msra.mxu1 %v301_v15  ;;  %v235_v48 = vld [vmem:[%s989_s27 + $0x1d0] sm:$0xff]  ;;  %v236_v49 = vld [vmem:[%s989_s27 + $0x1d8] sm:$0xff]  ;;  %v185_v50 = vld [vmem:[%s989_s27 + $0x40] sm:$0xff] }
  0x1c   : > { %822 = vmatpush.msra.mxu2 %v284_v16  ;;  %321 = vmatpush.msra.mxu0 %v284_v16  ;;  %v186_v51 = vld [vmem:[%s989_s27 + $0x48] sm:$0xff]  ;;  %v237_v52 = vld [vmem:[%s989_s27 + $0x1e0] sm:$0xff]  ;;  %v187_v54 = vld [vmem:[%s989_s27 + $0x50] sm:$0xff] }
  0x1d   : > { %838 = vmatpush.msra.mxu3 %v300_v17  ;;  %488 = vmatpush.msra.mxu1 %v300_v17  ;;  %v238_v53 = vld [vmem:[%s989_s27 + $0x1e8] sm:$0xff]  ;;  %v188_v55 = vld [vmem:[%s989_s27 + $0x58] sm:$0xff]  ;;  %v239_v56 = vld [vmem:[%s989_s27 + $0x1f0] sm:$0xff] }
  0x1e   : > { %823 = vmatpush.msra.mxu2 %v283_v18  ;;  %322 = vmatpush.msra.mxu0 %v283_v18  ;;  %v240_v57 = vld [vmem:[%s989_s27 + $0x1f8] sm:$0xff]  ;;  %v189_v58 = vld [vmem:[%s989_s27 + $0x60] sm:$0xff]  ;;  %v190_v59 = vld [vmem:[%s989_s27 + $0x68] sm:$0xff] }
  0x1f   : > { %839 = vmatpush.msra.mxu3 %v299_v19  ;;  %489 = vmatpush.msra.mxu1 %v299_v19  ;;  %v241_v60 = vld [vmem:[%s989_s27 + $0x200] sm:$0xff]  ;;  %v242_v61 = vld [vmem:[%s989_s27 + $0x208] sm:$0xff]  ;;  %v191_v62 = vld [vmem:[%s989_s27 + $0x70] sm:$0xff] }
  0x20   : > { %824 = vmatpush.msra.mxu2 %v282_v20  ;;  %323 = vmatpush.msra.mxu0 %v282_v20  ;;  %v192_v63 = vld [vmem:[%s989_s27 + $0x78] sm:$0xff]  ;;  %v243_v0 = vld [vmem:[%s989_s27 + $0x210] sm:$0xff]  ;;  %v193_v2 = vld [vmem:[%s989_s27 + $0x80] sm:$0xff] }
  0x21   : > { %840 = vmatpush.msra.mxu3 %v298_v21  ;;  %490 = vmatpush.msra.mxu1 %v298_v21  ;;  %v244_v1 = vld [vmem:[%s989_s27 + $0x218] sm:$0xff]  ;;  %v194_v3 = vld [vmem:[%s989_s27 + $0x88] sm:$0xff]  ;;  %v245_v4 = vld [vmem:[%s989_s27 + $0x220] sm:$0xff] }
  0x22   : > { %825 = vmatpush.msra.mxu2 %v281_v22  ;;  %324 = vmatpush.msra.mxu0 %v281_v22  ;;  %v246_v5 = vld [vmem:[%s989_s27 + $0x228] sm:$0xff]  ;;  %v195_v6 = vld [vmem:[%s989_s27 + $0x90] sm:$0xff]  ;;  %v196_v7 = vld [vmem:[%s989_s27 + $0x98] sm:$0xff] }
  0x23   : > { %841 = vmatpush.msra.mxu3 %v297_v23  ;;  %491 = vmatpush.msra.mxu1 %v297_v23  ;;  %v247_v8 = vld [vmem:[%s989_s27 + $0x230] sm:$0xff]  ;;  %v248_v9 = vld [vmem:[%s989_s27 + $0x238] sm:$0xff]  ;;  %v197_v10 = vld [vmem:[%s989_s27 + $0xa0] sm:$0xff] }
  0x24   : > { %826 = vmatpush.msra.mxu2 %v280_v24  ;;  %325 = vmatpush.msra.mxu0 %v280_v24  ;;  %v198_v11 = vld [vmem:[%s989_s27 + $0xa8] sm:$0xff]  ;;  %v249_v12 = vld [vmem:[%s989_s27 + $0x240] sm:$0xff]  ;;  %v199_v14 = vld [vmem:[%s989_s27 + $0xb0] sm:$0xff] }
  0x25   : > { %842 = vmatpush.msra.mxu3 %v296_v25  ;;  %492 = vmatpush.msra.mxu1 %v296_v25  ;;  %v250_v13 = vld [vmem:[%s989_s27 + $0x248] sm:$0xff]  ;;  %v200_v15 = vld [vmem:[%s989_s27 + $0xb8] sm:$0xff]  ;;  %v251_v16 = vld [vmem:[%s989_s27 + $0x250] sm:$0xff] }
  0x26   : > { %827 = vmatpush.msra.mxu2 %v279_v26  ;;  %326 = vmatpush.msra.mxu0 %v279_v26  ;;  %v252_v17 = vld [vmem:[%s989_s27 + $0x258] sm:$0xff]  ;;  %v201_v18 = vld [vmem:[%s989_s27 + $0xc0] sm:$0xff]  ;;  %v202_v19 = vld [vmem:[%s989_s27 + $0xc8] sm:$0xff] }
  0x27   : > { %843 = vmatpush.msra.mxu3 %v295_v27  ;;  %493 = vmatpush.msra.mxu1 %v295_v27  ;;  %v253_v20 = vld [vmem:[%s989_s27 + $0x260] sm:$0xff]  ;;  %v254_v21 = vld [vmem:[%s989_s27 + $0x268] sm:$0xff]  ;;  %v203_v22 = vld [vmem:[%s989_s27 + $0xd0] sm:$0xff] }
  0x28   : > { %828 = vmatpush.msra.mxu2 %v278_v28  ;;  %327 = vmatpush.msra.mxu0 %v278_v28  ;;  %v204_v23 = vld [vmem:[%s989_s27 + $0xd8] sm:$0xff]  ;;  %v255_v24 = vld [vmem:[%s989_s27 + $0x270] sm:$0xff]  ;;  %v205_v26 = vld [vmem:[%s989_s27 + $0xe0] sm:$0xff] }
  0x29   : > { %844 = vmatpush.msra.mxu3 %v294_v29  ;;  %494 = vmatpush.msra.mxu1 %v294_v29  ;;  %v256_v25 = vld [vmem:[%s989_s27 + $0x278] sm:$0xff]  ;;  %v206_v27 = vld [vmem:[%s989_s27 + $0xe8] sm:$0xff]  ;;  %v257_v28 = vld [vmem:[%s989_s27 + $0x280] sm:$0xff] }
  0x2a   : > { %829 = vmatpush.msra.mxu2 %v277_v30  ;;  %328 = vmatpush.msra.mxu0 %v277_v30  ;;  %v258_v29 = vld [vmem:[%s989_s27 + $0x288] sm:$0xff]  ;;  %v207_v30 = vld [vmem:[%s989_s27 + $0xf0] sm:$0xff] }
  0x2b   : > { %845 = vmatpush.msra.mxu3 %v293_v31  ;;  %404 = vmatmul.f32.vlgmr.msra.gmra.mxu2 %v227_v32  ;;  %v1064_v32 = vld [vmem:[%s1213_s2] ss:$0 sm:$0xff] }
  0x2c   : > { %571 = vmatmul.f32.vlgmr.msra.gmra.mxu3 %v228_v33  ;;  %495 = vmatpush.msra.mxu1 %v293_v31  ;;  %v208_v31 = vld [vmem:[%s989_s27 + $0xf8] sm:$0xff]  ;;  %v259_v33 = vld [vmem:[%s989_s27 + $0x290] sm:$0xff] }
  0x2d   : > { %329 = vmatmul.f32.vlgmr.msra.gmra.mxu0 %v177_v34  ;;  %496 = vmatmul.f32.vlgmr.msra.gmra.mxu1 %v178_v35  ;;  %v260_v34 = vld [vmem:[%s989_s27 + $0x298] sm:$0xff] }
  0x33   : > { %407 = vmatmul.f32.gmra.mxu2 %v229_v36 }
  0x34   : > { %574 = vmatmul.f32.gmra.mxu3 %v230_v37  ;;  %v209_v37 = vld [vmem:[%s989_s27 + $0x100] sm:$0xff] }
  0x35   : > { %332 = vmatmul.f32.gmra.mxu0 %v179_v38  ;;  %499 = vmatmul.f32.gmra.mxu1 %v180_v39  ;;  %v210_v38 = vld [vmem:[%s989_s27 + $0x108] sm:$0xff] }
  0x3b   : > { %410 = vmatmul.f32.gmra.mxu2 %v231_v40 }
  0x3c   : > { %577 = vmatmul.f32.gmra.mxu3 %v232_v41 }
  0x3d   : > { %335 = vmatmul.f32.gmra.mxu0 %v181_v42  ;;  %502 = vmatmul.f32.gmra.mxu1 %v182_v43 }
  0x43   : > { %413 = vmatmul.f32.gmra.mxu2 %v233_v44 }
  0x44   : > { %580 = vmatmul.f32.gmra.mxu3 %v234_v45  ;;  %v261_v45 = vld [vmem:[%s989_s27 + $0x2a0] sm:$0xff] }
  0x45   : > { %338 = vmatmul.f32.gmra.mxu0 %v183_v46  ;;  %505 = vmatmul.f32.gmra.mxu1 %v184_v47  ;;  %v262_v46 = vld [vmem:[%s989_s27 + $0x2a8] sm:$0xff] }
  0x4b   : > { %416 = vmatmul.f32.gmra.mxu2 %v235_v48 }
  0x4c   : > { %583 = vmatmul.f32.gmra.mxu3 %v236_v49 }
  0x4d   : > { %341 = vmatmul.f32.gmra.mxu0 %v185_v50  ;;  %508 = vmatmul.f32.gmra.mxu1 %v186_v51  ;;  %v211_v50 = vld [vmem:[%s989_s27 + $0x110] sm:$0xff]  ;;  %v212_v51 = vld [vmem:[%s989_s27 + $0x118] sm:$0xff] }
  0x53   : > { %419 = vmatmul.f32.gmra.mxu2 %v237_v52 }
  0x54   : > { %586 = vmatmul.f32.gmra.mxu3 %v238_v53 }
  0x55   : > { %344 = vmatmul.f32.gmra.mxu0 %v187_v54  ;;  %511 = vmatmul.f32.gmra.mxu1 %v188_v55 }
  0x5b   : > { %422 = vmatmul.f32.gmra.mxu2 %v239_v56 }
  0x5c   : > { %589 = vmatmul.f32.gmra.mxu3 %v240_v57 }
  0x5d   : > { %347 = vmatmul.f32.gmra.mxu0 %v189_v58  ;;  %514 = vmatmul.f32.gmra.mxu1 %v190_v59  ;;  %v263_v59 = vld [vmem:[%s989_s27 + $0x2b0] sm:$0xff] }
  0x63   : > { %425 = vmatmul.f32.gmra.mxu2 %v241_v60  ;;  %v264_v60 = vld [vmem:[%s989_s27 + $0x2b8] sm:$0xff] }
  0x64   : > { %592 = vmatmul.f32.gmra.mxu3 %v242_v61 }
  0x65   : > { %350 = vmatmul.f32.gmra.mxu0 %v191_v62  ;;  %517 = vmatmul.f32.gmra.mxu1 %v192_v63 }
  0x6b   : > { %428 = vmatmul.f32.gmra.mxu2 %v243_v0  ;;  %v213_v0 = vld [vmem:[%s989_s27 + $0x120] sm:$0xff] }
  0x6c   : > { %595 = vmatmul.f32.gmra.mxu3 %v244_v1  ;;  %v214_v1 = vld [vmem:[%s989_s27 + $0x128] sm:$0xff] }
  0x6d   : > { %353 = vmatmul.f32.gmra.mxu0 %v193_v2  ;;  %520 = vmatmul.f32.gmra.mxu1 %v194_v3 }
  0x73   : > { %431 = vmatmul.f32.gmra.mxu2 %v245_v4 }
  0x74   : > { %598 = vmatmul.f32.gmra.mxu3 %v246_v5 }
  0x75   : > { %356 = vmatmul.f32.gmra.mxu0 %v195_v6  ;;  %523 = vmatmul.f32.gmra.mxu1 %v196_v7 }
  0x7b   : > { %434 = vmatmul.f32.gmra.mxu2 %v247_v8 }
  0x7c   : > { %601 = vmatmul.f32.gmra.mxu3 %v248_v9  ;;  %v265_v9 = vld [vmem:[%s989_s27 + $0x2c0] sm:$0xff] }
  0x7d   : > { %359 = vmatmul.f32.gmra.mxu0 %v197_v10  ;;  %526 = vmatmul.f32.gmra.mxu1 %v198_v11  ;;  %v266_v10 = vld [vmem:[%s989_s27 + $0x2c8] sm:$0xff] }
  0x83   : > { %437 = vmatmul.f32.gmra.mxu2 %v249_v12 }
  0x84   : > { %604 = vmatmul.f32.gmra.mxu3 %v250_v13 }
  0x85   : > { %362 = vmatmul.f32.gmra.mxu0 %v199_v14  ;;  %529 = vmatmul.f32.gmra.mxu1 %v200_v15  ;;  %v215_v14 = vld [vmem:[%s989_s27 + $0x130] sm:$0xff]  ;;  %v216_v15 = vld [vmem:[%s989_s27 + $0x138] sm:$0xff] }
  0x8b   : > { %440 = vmatmul.f32.gmra.mxu2 %v251_v16 }
  0x8c   : > { %607 = vmatmul.f32.gmra.mxu3 %v252_v17 }
  0x8d   : > { %365 = vmatmul.f32.gmra.mxu0 %v201_v18  ;;  %532 = vmatmul.f32.gmra.mxu1 %v202_v19 }
  0x93   : > { %443 = vmatmul.f32.gmra.mxu2 %v253_v20 }
  0x94   : > { %610 = vmatmul.f32.gmra.mxu3 %v254_v21 }
  0x95   : > { %368 = vmatmul.f32.gmra.mxu0 %v203_v22  ;;  %535 = vmatmul.f32.gmra.mxu1 %v204_v23  ;;  %v267_v23 = vld [vmem:[%s989_s27 + $0x2d0] sm:$0xff] }
  0x9b   : > { %446 = vmatmul.f32.gmra.mxu2 %v255_v24  ;;  %v268_v24 = vld [vmem:[%s989_s27 + $0x2d8] sm:$0xff] }
  0x9c   : > { %613 = vmatmul.f32.gmra.mxu3 %v256_v25 }
  0x9d   : > { %371 = vmatmul.f32.gmra.mxu0 %v205_v26  ;;  %538 = vmatmul.f32.gmra.mxu1 %v206_v27 }
  0xa3   : > { %449 = vmatmul.f32.gmra.mxu2 %v257_v28  ;;  %v217_v28 = vld [vmem:[%s989_s27 + $0x140] sm:$0xff] }
  0xa4   : > { %616 = vmatmul.f32.gmra.mxu3 %v258_v29  ;;  %v218_v29 = vld [vmem:[%s989_s27 + $0x148] sm:$0xff] }
  0xa5   : > { %374 = vmatmul.f32.gmra.mxu0 %v207_v30  ;;  %541 = vmatmul.f32.gmra.mxu1 %v208_v31 }
  0xaa   : > { %v330_v35 = vpop.f32.mrf.mxu0  ;;  %v497_v36 = vpop.f32.mrf.mxu1 }
  0xab   : > { %452 = vmatmul.f32.gmra.mxu2 %v259_v33  ;;  %v331_v39 = vadd.f32 %v1064_v32, %v330_v35 }
  0xac   : > { %619 = vmatmul.f32.gmra.mxu3 %v260_v34 }
  0xad   : > { %v498_v40 = vadd.f32 %v497_v36, %v331_v39  ;;  %377 = vmatmul.f32.gmra.mxu0 %v209_v37  ;;  %544 = vmatmul.f32.gmra.mxu1 %v210_v38  ;;  %v269_v38 = vld [vmem:[%s989_s27 + $0x2e0] sm:$0xff]  ;;  %v270_v39 = vld [vmem:[%s989_s27 + $0x2e8] sm:$0xff] }
  0xae   : > { %v405_v41 = vpop.f32.mrf.mxu2 }
  0xaf   : > { %v572_v42 = vpop.f32.mrf.mxu3  ;;  %v406_v43 = vadd.f32 %v1064_v32, %v405_v41  ;;  %v647_v44 = vmax.f32 %v498_v40, 0.0 }
  0xb1   : > { %697 = vst [vmem:[%s1075_s10] sm:$0xff] %v647_v44  ;;  %v573_v47 = vadd.f32 %v572_v42, %v406_v43  ;;  %v219_v43 = vld [vmem:[%s989_s27 + $0x150] sm:$0xff]  ;;  %v220_v44 = vld [vmem:[%s989_s27 + $0x158] sm:$0xff] }
  0xb2   : > { %v333_v48 = vpop.f32.mrf.mxu0  ;;  %v500_v49 = vpop.f32.mrf.mxu1 }
  0xb3   : > { %v672_v52 = vmax.f32 %v573_v47, 0.0  ;;  %455 = vmatmul.f32.gmra.mxu2 %v261_v45  ;;  %v334_v53 = vadd.f32 %v1064_v32, %v333_v48 }
  0xb4   : > { %622 = vmatmul.f32.gmra.mxu3 %v262_v46 }
  0xb5   : > { %722 = vst [vmem:[%s1075_s10 + $0xc8] sm:$0xff] %v672_v52  ;;  %v501_v54 = vadd.f32 %v500_v49, %v334_v53  ;;  %380 = vmatmul.f32.gmra.mxu0 %v211_v50  ;;  %547 = vmatmul.f32.gmra.mxu1 %v212_v51  ;;  %v271_v52 = vld [vmem:[%s989_s27 + $0x2f0] sm:$0xff]  ;;  %v272_v53 = vld [vmem:[%s989_s27 + $0x2f8] sm:$0xff] }
  0xb6   : > { %v408_v55 = vpop.f32.mrf.mxu2 }
  0xb7   : > { %v575_v56 = vpop.f32.mrf.mxu3  ;;  %v409_v57 = vadd.f32 %v1064_v32, %v408_v55  ;;  %v648_v58 = vmax.f32 %v501_v54, 0.0 }
  0xb9   : > { %698 = vst [vmem:[%s1075_s10 + $0x8] sm:$0xff] %v648_v58  ;;  %v576_v61 = vadd.f32 %v575_v56, %v409_v57  ;;  %v221_v57 = vld [vmem:[%s989_s27 + $0x160] sm:$0xff]  ;;  %v222_v58 = vld [vmem:[%s989_s27 + $0x168] sm:$0xff] }
  0xba   : > { %v336_v62 = vpop.f32.mrf.mxu0  ;;  %v503_v63 = vpop.f32.mrf.mxu1 }
  0xbb   : > { %v673_v2 = vmax.f32 %v576_v61, 0.0  ;;  %458 = vmatmul.f32.gmra.mxu2 %v263_v59  ;;  %v337_v3 = vadd.f32 %v1064_v32, %v336_v62 }
  0xbc   : > { %625 = vmatmul.f32.gmra.mxu3 %v264_v60 }
  0xbd   : > { %723 = vst [vmem:[%s1075_s10 + $0xd0] sm:$0xff] %v673_v2  ;;  %v504_v4 = vadd.f32 %v503_v63, %v337_v3  ;;  %383 = vmatmul.f32.gmra.mxu0 %v213_v0  ;;  %550 = vmatmul.f32.gmra.mxu1 %v214_v1  ;;  %v273_v2 = vld [vmem:[%s989_s27 + $0x300] sm:$0xff]  ;;  %v274_v3 = vld [vmem:[%s989_s27 + $0x308] sm:$0xff] }
  0xbe   : > { %v411_v5 = vpop.f32.mrf.mxu2 }
  0xbf   : > { %v578_v6 = vpop.f32.mrf.mxu3  ;;  %v412_v7 = vadd.f32 %v1064_v32, %v411_v5  ;;  %v649_v8 = vmax.f32 %v504_v4, 0.0 }
  0xc1   : > { %699 = vst [vmem:[%s1075_s10 + $0x10] sm:$0xff] %v649_v8  ;;  %v579_v11 = vadd.f32 %v578_v6, %v412_v7  ;;  %v223_v7 = vld [vmem:[%s989_s27 + $0x170] sm:$0xff]  ;;  %v224_v8 = vld [vmem:[%s989_s27 + $0x178] sm:$0xff] }
  0xc2   : > { %v339_v12 = vpop.f32.mrf.mxu0  ;;  %v506_v13 = vpop.f32.mrf.mxu1 }
  0xc3   : > { %v674_v16 = vmax.f32 %v579_v11, 0.0  ;;  %461 = vmatmul.f32.gmra.mxu2 %v265_v9  ;;  %v340_v17 = vadd.f32 %v1064_v32, %v339_v12 }
  0xc4   : > { %628 = vmatmul.f32.gmra.mxu3 %v266_v10 }
  0xc5   : > { %724 = vst [vmem:[%s1075_s10 + $0xd8] sm:$0xff] %v674_v16  ;;  %v507_v18 = vadd.f32 %v506_v13, %v340_v17  ;;  %386 = vmatmul.f32.gmra.mxu0 %v215_v14  ;;  %553 = vmatmul.f32.gmra.mxu1 %v216_v15  ;;  %v275_v16 = vld [vmem:[%s989_s27 + $0x310] sm:$0xff]  ;;  %v276_v17 = vld [vmem:[%s989_s27 + $0x318] sm:$0xff] }
  0xc6   : > { %v414_v19 = vpop.f32.mrf.mxu2 }
  0xc7   : > { %v581_v20 = vpop.f32.mrf.mxu3  ;;  %v415_v21 = vadd.f32 %v1064_v32, %v414_v19  ;;  %v650_v22 = vmax.f32 %v507_v18, 0.0 }
  0xc9   : > { %700 = vst [vmem:[%s1075_s10 + $0x18] sm:$0xff] %v650_v22  ;;  %v582_v25 = vadd.f32 %v581_v20, %v415_v21  ;;  %v225_v21 = vld [vmem:[%s989_s27 + $0x180] sm:$0xff]  ;;  %v226_v22 = vld [vmem:[%s989_s27 + $0x188] sm:$0xff] }
  0xca   : > { %v342_v26 = vpop.f32.mrf.mxu0  ;;  %v509_v27 = vpop.f32.mrf.mxu1 }
  0xcb   : > { %v675_v30 = vmax.f32 %v582_v25, 0.0  ;;  %464 = vmatmul.f32.gmra.mxu2 %v267_v23  ;;  %v343_v31 = vadd.f32 %v1064_v32, %v342_v26 }
  0xcc   : > { %631 = vmatmul.f32.gmra.mxu3 %v268_v24 }
  0xcd   : > { %725 = vst [vmem:[%s1075_s10 + $0xe0] sm:$0xff] %v675_v30  ;;  %v510_v33 = vadd.f32 %v509_v27, %v343_v31  ;;  %389 = vmatmul.f32.gmra.mxu0 %v217_v28  ;;  %556 = vmatmul.f32.gmra.mxu1 %v218_v29 }
  0xce   : > { %v417_v34 = vpop.f32.mrf.mxu2 }
  0xcf   : > { %v584_v35 = vpop.f32.mrf.mxu3  ;;  %v418_v36 = vadd.f32 %v1064_v32, %v417_v34  ;;  %v651_v37 = vmax.f32 %v510_v33, 0.0 }
  0xd1   : > { %701 = vst [vmem:[%s1075_s10 + $0x20] sm:$0xff] %v651_v37  ;;  %v585_v40 = vadd.f32 %v584_v35, %v418_v36 }
  0xd2   : > { %v345_v41 = vpop.f32.mrf.mxu0  ;;  %v512_v42 = vpop.f32.mrf.mxu1 }
  0xd3   : > { %v676_v45 = vmax.f32 %v585_v40, 0.0  ;;  %467 = vmatmul.f32.gmra.mxu2 %v269_v38  ;;  %v346_v46 = vadd.f32 %v1064_v32, %v345_v41 }
  0xd4   : > { %634 = vmatmul.f32.gmra.mxu3 %v270_v39 }
  0xd5   : > { %726 = vst [vmem:[%s1075_s10 + $0xe8] sm:$0xff] %v676_v45  ;;  %v513_v47 = vadd.f32 %v512_v42, %v346_v46  ;;  %392 = vmatmul.f32.gmra.mxu0 %v219_v43  ;;  %559 = vmatmul.f32.gmra.mxu1 %v220_v44 }
  0xd6   : > { %v420_v48 = vpop.f32.mrf.mxu2 }
  0xd7   : > { %v587_v49 = vpop.f32.mrf.mxu3  ;;  %v421_v50 = vadd.f32 %v1064_v32, %v420_v48  ;;  %v652_v51 = vmax.f32 %v513_v47, 0.0 }
  0xd9   : > { %702 = vst [vmem:[%s1075_s10 + $0x28] sm:$0xff] %v652_v51  ;;  %v588_v54 = vadd.f32 %v587_v49, %v421_v50 }
  0xda   : > { %v348_v55 = vpop.f32.mrf.mxu0  ;;  %v515_v56 = vpop.f32.mrf.mxu1 }
  0xdb   : > { %v677_v59 = vmax.f32 %v588_v54, 0.0  ;;  %470 = vmatmul.f32.gmra.mxu2 %v271_v52  ;;  %v349_v60 = vadd.f32 %v1064_v32, %v348_v55 }
  0xdc   : > { %637 = vmatmul.f32.gmra.mxu3 %v272_v53 }
  0xdd   : > { %727 = vst [vmem:[%s1075_s10 + $0xf0] sm:$0xff] %v677_v59  ;;  %v516_v61 = vadd.f32 %v515_v56, %v349_v60  ;;  %395 = vmatmul.f32.gmra.mxu0 %v221_v57  ;;  %562 = vmatmul.f32.gmra.mxu1 %v222_v58 }
  0xde   : > { %v423_v62 = vpop.f32.mrf.mxu2 }
  0xdf   : > { %v590_v63 = vpop.f32.mrf.mxu3  ;;  %v424_v0 = vadd.f32 %v1064_v32, %v423_v62  ;;  %v653_v1 = vmax.f32 %v516_v61, 0.0 }
  0xe1   : > { %703 = vst [vmem:[%s1075_s10 + $0x30] sm:$0xff] %v653_v1  ;;  %v591_v4 = vadd.f32 %v590_v63, %v424_v0 }
  0xe2   : > { %v351_v5 = vpop.f32.mrf.mxu0  ;;  %v518_v6 = vpop.f32.mrf.mxu1 }
  0xe3   : > { %v678_v9 = vmax.f32 %v591_v4, 0.0  ;;  %473 = vmatmul.f32.gmra.mxu2 %v273_v2  ;;  %v352_v10 = vadd.f32 %v1064_v32, %v351_v5 }
  0xe4   : > { %640 = vmatmul.f32.gmra.mxu3 %v274_v3 }
  0xe5   : > { %728 = vst [vmem:[%s1075_s10 + $0xf8] sm:$0xff] %v678_v9  ;;  %v519_v11 = vadd.f32 %v518_v6, %v352_v10  ;;  %398 = vmatmul.f32.gmra.mxu0 %v223_v7  ;;  %565 = vmatmul.f32.gmra.mxu1 %v224_v8 }
  0xe6   : > { %v426_v12 = vpop.f32.mrf.mxu2 }
  0xe7   : > { %v593_v13 = vpop.f32.mrf.mxu3  ;;  %v427_v14 = vadd.f32 %v1064_v32, %v426_v12  ;;  %v654_v15 = vmax.f32 %v519_v11, 0.0 }
  0xe9   : > { %704 = vst [vmem:[%s1075_s10 + $0x38] sm:$0xff] %v654_v15  ;;  %v594_v18 = vadd.f32 %v593_v13, %v427_v14 }
  0xea   : > { %v354_v19 = vpop.f32.mrf.mxu0  ;;  %v521_v20 = vpop.f32.mrf.mxu1 }
  0xeb   : > { %v679_v23 = vmax.f32 %v594_v18, 0.0  ;;  %476 = vmatmul.f32.gmra.mxu2 %v275_v16  ;;  %v355_v24 = vadd.f32 %v1064_v32, %v354_v19 }
  0xec   : > { %643 = vmatmul.f32.gmra.mxu3 %v276_v17 }
  0xed   : > { %729 = vst [vmem:[%s1075_s10 + $0x100] sm:$0xff] %v679_v23  ;;  %v522_v25 = vadd.f32 %v521_v20, %v355_v24  ;;  %401 = vmatmul.f32.gmra.mxu0 %v225_v21  ;;  %568 = vmatmul.f32.gmra.mxu1 %v226_v22 }
  0xee   : > { %v429_v26 = vpop.f32.mrf.mxu2 }
  0xef   : > { %v596_v27 = vpop.f32.mrf.mxu3  ;;  %v430_v28 = vadd.f32 %v1064_v32, %v429_v26  ;;  %v655_v29 = vmax.f32 %v522_v25, 0.0 }
  0xf1   : > { %705 = vst [vmem:[%s1075_s10 + $0x40] sm:$0xff] %v655_v29  ;;  %v597_v30 = vadd.f32 %v596_v27, %v430_v28 }
  0xf2   : > { %v357_v31 = vpop.f32.mrf.mxu0  ;;  %v524_v33 = vpop.f32.mrf.mxu1 }
  0xf3   : > { %v680_v34 = vmax.f32 %v597_v30, 0.0  ;;  %v358_v35 = vadd.f32 %v1064_v32, %v357_v31 }
  0xf5   : > { %730 = vst [vmem:[%s1075_s10 + $0x108] sm:$0xff] %v680_v34  ;;  %v525_v36 = vadd.f32 %v524_v33, %v358_v35 }
  0xf6   : > { %v432_v37 = vpop.f32.mrf.mxu2 }
  0xf7   : > { %v599_v38 = vpop.f32.mrf.mxu3  ;;  %v433_v39 = vadd.f32 %v1064_v32, %v432_v37  ;;  %v656_v40 = vmax.f32 %v525_v36, 0.0 }
  0xf9   : > { %706 = vst [vmem:[%s1075_s10 + $0x48] sm:$0xff] %v656_v40  ;;  %v600_v41 = vadd.f32 %v599_v38, %v433_v39 }
  0xfa   : > { %v360_v42 = vpop.f32.mrf.mxu0  ;;  %v527_v43 = vpop.f32.mrf.mxu1 }
  0xfb   : > { %v681_v44 = vmax.f32 %v600_v41, 0.0  ;;  %v361_v45 = vadd.f32 %v1064_v32, %v360_v42 }
  0xfd   : > { %731 = vst [vmem:[%s1075_s10 + $0x110] sm:$0xff] %v681_v44  ;;  %v528_v46 = vadd.f32 %v527_v43, %v361_v45 }
  0xfe   : > { %v435_v47 = vpop.f32.mrf.mxu2 }
  0xff   : > { %v602_v48 = vpop.f32.mrf.mxu3  ;;  %v436_v49 = vadd.f32 %v1064_v32, %v435_v47  ;;  %v657_v50 = vmax.f32 %v528_v46, 0.0 }
 0x101   : > { %707 = vst [vmem:[%s1075_s10 + $0x50] sm:$0xff] %v657_v50  ;;  %v603_v51 = vadd.f32 %v602_v48, %v436_v49 }
 0x102   : > { %v363_v52 = vpop.f32.mrf.mxu0  ;;  %v530_v53 = vpop.f32.mrf.mxu1 }
 0x103   : > { %v682_v54 = vmax.f32 %v603_v51, 0.0  ;;  %v364_v55 = vadd.f32 %v1064_v32, %v363_v52 }
 0x105   : > { %732 = vst [vmem:[%s1075_s10 + $0x118] sm:$0xff] %v682_v54  ;;  %v531_v56 = vadd.f32 %v530_v53, %v364_v55 }
 0x106   : > { %v438_v57 = vpop.f32.mrf.mxu2 }
 0x107   : > { %v605_v58 = vpop.f32.mrf.mxu3  ;;  %v439_v59 = vadd.f32 %v1064_v32, %v438_v57  ;;  %v658_v60 = vmax.f32 %v531_v56, 0.0 }
 0x109   : > { %708 = vst [vmem:[%s1075_s10 + $0x58] sm:$0xff] %v658_v60  ;;  %v606_v61 = vadd.f32 %v605_v58, %v439_v59 }
 0x10a   : > { %v366_v62 = vpop.f32.mrf.mxu0  ;;  %v533_v63 = vpop.f32.mrf.mxu1 }
 0x10b   : > { %v683_v0 = vmax.f32 %v606_v61, 0.0  ;;  %v367_v1 = vadd.f32 %v1064_v32, %v366_v62 }
 0x10d   : > { %733 = vst [vmem:[%s1075_s10 + $0x120] sm:$0xff] %v683_v0  ;;  %v534_v2 = vadd.f32 %v533_v63, %v367_v1 }
 0x10e   : > { %v441_v3 = vpop.f32.mrf.mxu2 }
 0x10f   : > { %v608_v4 = vpop.f32.mrf.mxu3  ;;  %v442_v5 = vadd.f32 %v1064_v32, %v441_v3  ;;  %v659_v6 = vmax.f32 %v534_v2, 0.0 }
 0x111   : > { %709 = vst [vmem:[%s1075_s10 + $0x60] sm:$0xff] %v659_v6  ;;  %v609_v7 = vadd.f32 %v608_v4, %v442_v5 }
 0x112   : > { %v369_v8 = vpop.f32.mrf.mxu0  ;;  %v536_v9 = vpop.f32.mrf.mxu1 }
 0x113   : > { %v684_v10 = vmax.f32 %v609_v7, 0.0  ;;  %v370_v11 = vadd.f32 %v1064_v32, %v369_v8 }
 0x115   : > { %734 = vst [vmem:[%s1075_s10 + $0x128] sm:$0xff] %v684_v10  ;;  %v537_v12 = vadd.f32 %v536_v9, %v370_v11 }
 0x116   : > { %v444_v13 = vpop.f32.mrf.mxu2 }
 0x117   : > { %v611_v14 = vpop.f32.mrf.mxu3  ;;  %v445_v15 = vadd.f32 %v1064_v32, %v444_v13  ;;  %v660_v16 = vmax.f32 %v537_v12, 0.0 }
 0x119   : > { %710 = vst [vmem:[%s1075_s10 + $0x68] sm:$0xff] %v660_v16  ;;  %v612_v17 = vadd.f32 %v611_v14, %v445_v15 }
 0x11a   : > { %v372_v18 = vpop.f32.mrf.mxu0  ;;  %v539_v19 = vpop.f32.mrf.mxu1 }
 0x11b   : > { %v685_v20 = vmax.f32 %v612_v17, 0.0  ;;  %v373_v21 = vadd.f32 %v1064_v32, %v372_v18 }
 0x11d   : > { %735 = vst [vmem:[%s1075_s10 + $0x130] sm:$0xff] %v685_v20  ;;  %v540_v22 = vadd.f32 %v539_v19, %v373_v21 }
 0x11e   : > { %v447_v23 = vpop.f32.mrf.mxu2 }
 0x11f   : > { %v614_v24 = vpop.f32.mrf.mxu3  ;;  %v448_v25 = vadd.f32 %v1064_v32, %v447_v23  ;;  %v661_v26 = vmax.f32 %v540_v22, 0.0 }
 0x121   : > { %711 = vst [vmem:[%s1075_s10 + $0x70] sm:$0xff] %v661_v26  ;;  %v615_v27 = vadd.f32 %v614_v24, %v448_v25 }
 0x122   : > { %v375_v28 = vpop.f32.mrf.mxu0  ;;  %v542_v29 = vpop.f32.mrf.mxu1 }
 0x123   : > { %v686_v30 = vmax.f32 %v615_v27, 0.0  ;;  %v376_v31 = vadd.f32 %v1064_v32, %v375_v28 }
 0x125   : > { %736 = vst [vmem:[%s1075_s10 + $0x138] sm:$0xff] %v686_v30  ;;  %v543_v33 = vadd.f32 %v542_v29, %v376_v31 }
 0x126   : > { %v450_v34 = vpop.f32.mrf.mxu2 }
 0x127   : > { %v617_v35 = vpop.f32.mrf.mxu3  ;;  %v451_v36 = vadd.f32 %v1064_v32, %v450_v34  ;;  %v662_v37 = vmax.f32 %v543_v33, 0.0 }
 0x129   : > { %712 = vst [vmem:[%s1075_s10 + $0x78] sm:$0xff] %v662_v37  ;;  %v618_v38 = vadd.f32 %v617_v35, %v451_v36 }
 0x12a   : > { %v378_v39 = vpop.f32.mrf.mxu0  ;;  %v545_v40 = vpop.f32.mrf.mxu1 }
 0x12b   : > { %v687_v41 = vmax.f32 %v618_v38, 0.0  ;;  %v379_v42 = vadd.f32 %v1064_v32, %v378_v39 }
 0x12d   : > { %737 = vst [vmem:[%s1075_s10 + $0x140] sm:$0xff] %v687_v41  ;;  %v546_v43 = vadd.f32 %v545_v40, %v379_v42 }
 0x12e   : > { %v453_v44 = vpop.f32.mrf.mxu2 }
 0x12f   : > { %v620_v45 = vpop.f32.mrf.mxu3  ;;  %v454_v46 = vadd.f32 %v1064_v32, %v453_v44  ;;  %v663_v47 = vmax.f32 %v546_v43, 0.0 }
 0x131   : > { %713 = vst [vmem:[%s1075_s10 + $0x80] sm:$0xff] %v663_v47  ;;  %v621_v48 = vadd.f32 %v620_v45, %v454_v46 }
 0x132   : > { %v381_v49 = vpop.f32.mrf.mxu0  ;;  %v548_v50 = vpop.f32.mrf.mxu1 }
 0x133   : > { %v688_v51 = vmax.f32 %v621_v48, 0.0  ;;  %v382_v52 = vadd.f32 %v1064_v32, %v381_v49 }
 0x135   : > { %738 = vst [vmem:[%s1075_s10 + $0x148] sm:$0xff] %v688_v51  ;;  %v549_v53 = vadd.f32 %v548_v50, %v382_v52 }
 0x136   : > { %v456_v54 = vpop.f32.mrf.mxu2 }
 0x137   : > { %v623_v55 = vpop.f32.mrf.mxu3  ;;  %v457_v56 = vadd.f32 %v1064_v32, %v456_v54  ;;  %v664_v57 = vmax.f32 %v549_v53, 0.0 }
 0x139   : > { %714 = vst [vmem:[%s1075_s10 + $0x88] sm:$0xff] %v664_v57  ;;  %v624_v58 = vadd.f32 %v623_v55, %v457_v56 }
 0x13a   : > { %v384_v59 = vpop.f32.mrf.mxu0  ;;  %v551_v60 = vpop.f32.mrf.mxu1 }
 0x13b   : > { %v689_v61 = vmax.f32 %v624_v58, 0.0  ;;  %v385_v62 = vadd.f32 %v1064_v32, %v384_v59 }
 0x13d   : > { %739 = vst [vmem:[%s1075_s10 + $0x150] sm:$0xff] %v689_v61  ;;  %v552_v63 = vadd.f32 %v551_v60, %v385_v62 }
 0x13e   : > { %v459_v0 = vpop.f32.mrf.mxu2 }
 0x13f   : > { %v626_v1 = vpop.f32.mrf.mxu3  ;;  %v460_v2 = vadd.f32 %v1064_v32, %v459_v0  ;;  %v665_v3 = vmax.f32 %v552_v63, 0.0 }
 0x141   : > { %715 = vst [vmem:[%s1075_s10 + $0x90] sm:$0xff] %v665_v3  ;;  %v627_v4 = vadd.f32 %v626_v1, %v460_v2 }
 0x142   : > { %v387_v5 = vpop.f32.mrf.mxu0  ;;  %v554_v6 = vpop.f32.mrf.mxu1 }
 0x143   : > { %v690_v7 = vmax.f32 %v627_v4, 0.0  ;;  %v388_v8 = vadd.f32 %v1064_v32, %v387_v5 }
 0x145   : > { %740 = vst [vmem:[%s1075_s10 + $0x158] sm:$0xff] %v690_v7  ;;  %v555_v9 = vadd.f32 %v554_v6, %v388_v8 }
 0x146   : > { %v462_v10 = vpop.f32.mrf.mxu2 }
 0x147   : > { %v629_v11 = vpop.f32.mrf.mxu3  ;;  %v463_v12 = vadd.f32 %v1064_v32, %v462_v10  ;;  %v666_v13 = vmax.f32 %v555_v9, 0.0 }
 0x149   : > { %716 = vst [vmem:[%s1075_s10 + $0x98] sm:$0xff] %v666_v13  ;;  %v630_v14 = vadd.f32 %v629_v11, %v463_v12 }
 0x14a   : > { %v390_v15 = vpop.f32.mrf.mxu0  ;;  %v557_v16 = vpop.f32.mrf.mxu1 }
 0x14b   : > { %v691_v17 = vmax.f32 %v630_v14, 0.0  ;;  %v391_v18 = vadd.f32 %v1064_v32, %v390_v15 }
 0x14d   : > { %741 = vst [vmem:[%s1075_s10 + $0x160] sm:$0xff] %v691_v17  ;;  %v558_v19 = vadd.f32 %v557_v16, %v391_v18 }
 0x14e   : > { %v465_v20 = vpop.f32.mrf.mxu2 }
 0x14f   : > { %v632_v21 = vpop.f32.mrf.mxu3  ;;  %v466_v22 = vadd.f32 %v1064_v32, %v465_v20  ;;  %v667_v23 = vmax.f32 %v558_v19, 0.0 }
 0x151   : > { %717 = vst [vmem:[%s1075_s10 + $0xa0] sm:$0xff] %v667_v23  ;;  %v633_v24 = vadd.f32 %v632_v21, %v466_v22 }
 0x152   : > { %v393_v25 = vpop.f32.mrf.mxu0  ;;  %v560_v26 = vpop.f32.mrf.mxu1 }
 0x153   : > { %v692_v27 = vmax.f32 %v633_v24, 0.0  ;;  %v394_v28 = vadd.f32 %v1064_v32, %v393_v25 }
 0x155   : > { %742 = vst [vmem:[%s1075_s10 + $0x168] sm:$0xff] %v692_v27  ;;  %v561_v29 = vadd.f32 %v560_v26, %v394_v28 }
 0x156   : > { %v468_v30 = vpop.f32.mrf.mxu2 }
 0x157   : > { %v635_v31 = vpop.f32.mrf.mxu3  ;;  %v469_v33 = vadd.f32 %v1064_v32, %v468_v30  ;;  %v668_v34 = vmax.f32 %v561_v29, 0.0 }
 0x159   : > { %718 = vst [vmem:[%s1075_s10 + $0xa8] sm:$0xff] %v668_v34  ;;  %v636_v35 = vadd.f32 %v635_v31, %v469_v33 }
 0x15a   : > { %v396_v36 = vpop.f32.mrf.mxu0  ;;  %v563_v37 = vpop.f32.mrf.mxu1 }
 0x15b   : > { %v693_v38 = vmax.f32 %v636_v35, 0.0  ;;  %v397_v39 = vadd.f32 %v1064_v32, %v396_v36 }
 0x15d   : > { %743 = vst [vmem:[%s1075_s10 + $0x170] sm:$0xff] %v693_v38  ;;  %v564_v40 = vadd.f32 %v563_v37, %v397_v39 }
 0x15e   : > { %v471_v41 = vpop.f32.mrf.mxu2 }
 0x15f   : > { %v638_v42 = vpop.f32.mrf.mxu3  ;;  %v472_v43 = vadd.f32 %v1064_v32, %v471_v41  ;;  %v669_v44 = vmax.f32 %v564_v40, 0.0 }
 0x161   : > { %719 = vst [vmem:[%s1075_s10 + $0xb0] sm:$0xff] %v669_v44  ;;  %v639_v45 = vadd.f32 %v638_v42, %v472_v43 }
 0x162   : > { %v399_v46 = vpop.f32.mrf.mxu0  ;;  %v566_v47 = vpop.f32.mrf.mxu1 }
 0x163   : > { %v694_v48 = vmax.f32 %v639_v45, 0.0  ;;  %v400_v49 = vadd.f32 %v1064_v32, %v399_v46 }
 0x165   : > { %744 = vst [vmem:[%s1075_s10 + $0x178] sm:$0xff] %v694_v48  ;;  %v567_v50 = vadd.f32 %v566_v47, %v400_v49 }
 0x166   : > { %v474_v51 = vpop.f32.mrf.mxu2 }
 0x167   : > { %v641_v52 = vpop.f32.mrf.mxu3  ;;  %v475_v53 = vadd.f32 %v1064_v32, %v474_v51  ;;  %v670_v54 = vmax.f32 %v567_v50, 0.0 }
 0x169   : > { %720 = vst [vmem:[%s1075_s10 + $0xb8] sm:$0xff] %v670_v54  ;;  %v642_v55 = vadd.f32 %v641_v52, %v475_v53 }
 0x16a   : > { %v402_v56 = vpop.f32.mrf.mxu0  ;;  %v569_v57 = vpop.f32.mrf.mxu1 }
 0x16b   : > { %v695_v58 = vmax.f32 %v642_v55, 0.0  ;;  %v403_v59 = vadd.f32 %v1064_v32, %v402_v56 }
 0x16d   : > { %745 = vst [vmem:[%s1075_s10 + $0x180] sm:$0xff] %v695_v58  ;;  %v570_v60 = vadd.f32 %v569_v57, %v403_v59 }
 0x16e   : > { %v477_v61 = vpop.f32.mrf.mxu2 }
 0x16f   : > { %v644_v62 = vpop.f32.mrf.mxu3  ;;  %v478_v63 = vadd.f32 %v1064_v32, %v477_v61  ;;  %v671_v0 = vmax.f32 %v570_v60, 0.0 }
 0x171   : > { %721 = vst [vmem:[%s1075_s10 + $0xc0] sm:$0xff] %v671_v0  ;;  %v645_v1 = vadd.f32 %v644_v62, %v478_v63 }
 0x173   : > { %v696_v2 = vmax.f32 %v645_v1, 0.0 }
 0x175   : > { %746 = vst [vmem:[%s1075_s10 + $0x188] sm:$0xff] %v696_v2 }
 0x176 PF: > { %s13_s12 = sadd.s32 1, %s861_s12  }
 0x177   : > { %p10_p4 = scmp.ge.s32.totalorder %s13_s12, 4  }
 0x179   :  { %12 = sbr.rel (!%p10_p4) target bundleno = 1 (0x1), region = 62 }

// kernel: fwd.5
= control target key start
LH: loop header
LB: loop body
LE: loop exit
PB: predicated region body
PF: predicated region fallthrough
CT: control target
= control target key end

     0   :  { %s1086_s1 = inlined_call_operand.vmem [shape: f32[512,128], index: 1, kind: input, shape index: {}]   ;;  %s1087_s0 = inlined_call_operand.vmem [shape: f32[168,512], index: 0, kind: input, shape index: {}]   ;;  %s1088_s2 = inlined_call_operand.vmem [shape: f32[1,128], index: 2, kind: input, shape index: {}]   ;;  %s1089_s3 = inlined_call_operand.vmem [shape: f32[168,128], index: 3, kind: output, shape index: {}]  }
   0x1   :  { %v145_v0 = vld [vmem:[%s1086_s1 + $0x178] sm:$0xff]  ;;  %v144_v2 = vld [vmem:[%s1086_s1 + $0x170] sm:$0xff]  ;;  %v143_v6 = vld [vmem:[%s1086_s1 + $0x168] sm:$0xff] }
   0x2   :  { %v113_v1 = vld [vmem:[%s1086_s1 + $0x78] sm:$0xff]  ;;  %326 = vmatpush.msra.mxu2 %v145_v0  ;;  %v112_v4 = vld [vmem:[%s1086_s1 + $0x70] sm:$0xff]  ;;  %v111_v8 = vld [vmem:[%s1086_s1 + $0x68] sm:$0xff] }
   0x3   :  { %166 = vmatpush.msra.mxu0 %v113_v1  ;;  %v161_v3 = vld [vmem:[%s1086_s1 + $0x1f8] sm:$0xff]  ;;  %v160_v7 = vld [vmem:[%s1086_s1 + $0x1f0] sm:$0xff]  ;;  %v159_v10 = vld [vmem:[%s1086_s1 + $0x1e8] sm:$0xff] }
   0x4   :  { %v129_v5 = vld [vmem:[%s1086_s1 + $0xf8] sm:$0xff]  ;;  %406 = vmatpush.msra.mxu3 %v161_v3  ;;  %327 = vmatpush.msra.mxu2 %v144_v2  ;;  %v128_v9 = vld [vmem:[%s1086_s1 + $0xf0] sm:$0xff]  ;;  %v142_v11 = vld [vmem:[%s1086_s1 + $0x160] sm:$0xff] }
   0x5   :  { %246 = vmatpush.msra.mxu1 %v129_v5  ;;  %167 = vmatpush.msra.mxu0 %v112_v4  ;;  %v110_v12 = vld [vmem:[%s1086_s1 + $0x60] sm:$0xff]  ;;  %v127_v13 = vld [vmem:[%s1086_s1 + $0xe8] sm:$0xff]  ;;  %v141_v16 = vld [vmem:[%s1086_s1 + $0x158] sm:$0xff] }
   0x6   :  { %407 = vmatpush.msra.mxu3 %v160_v7  ;;  %328 = vmatpush.msra.mxu2 %v143_v6  ;;  %v158_v14 = vld [vmem:[%s1086_s1 + $0x1e0] sm:$0xff]  ;;  %v109_v17 = vld [vmem:[%s1086_s1 + $0x58] sm:$0xff]  ;;  %v140_v20 = vld [vmem:[%s1086_s1 + $0x150] sm:$0xff] }
   0x7   :  { %247 = vmatpush.msra.mxu1 %v128_v9  ;;  %168 = vmatpush.msra.mxu0 %v111_v8  ;;  %v126_v15 = vld [vmem:[%s1086_s1 + $0xe0] sm:$0xff]  ;;  %v157_v18 = vld [vmem:[%s1086_s1 + $0x1d8] sm:$0xff]  ;;  %v108_v21 = vld [vmem:[%s1086_s1 + $0x50] sm:$0xff] }
   0x8   :  { %408 = vmatpush.msra.mxu3 %v159_v10  ;;  %329 = vmatpush.msra.mxu2 %v142_v11  ;;  %v125_v19 = vld [vmem:[%s1086_s1 + $0xd8] sm:$0xff]  ;;  %v156_v22 = vld [vmem:[%s1086_s1 + $0x1d0] sm:$0xff]  ;;  %v139_v24 = vld [vmem:[%s1086_s1 + $0x148] sm:$0xff] }
   0x9   :  { %248 = vmatpush.msra.mxu1 %v127_v13  ;;  %169 = vmatpush.msra.mxu0 %v110_v12  ;;  %v124_v23 = vld [vmem:[%s1086_s1 + $0xd0] sm:$0xff]  ;;  %v107_v25 = vld [vmem:[%s1086_s1 + $0x48] sm:$0xff]  ;;  %v138_v28 = vld [vmem:[%s1086_s1 + $0x140] sm:$0xff] }
   0xa   :  { %409 = vmatpush.msra.mxu3 %v158_v14  ;;  %330 = vmatpush.msra.mxu2 %v141_v16  ;;  %v155_v26 = vld [vmem:[%s1086_s1 + $0x1c8] sm:$0xff]  ;;  %v106_v29 = vld [vmem:[%s1086_s1 + $0x40] sm:$0xff]  ;;  %v137_v32 = vld [vmem:[%s1086_s1 + $0x138] sm:$0xff] }
   0xb   :  { %249 = vmatpush.msra.mxu1 %v126_v15  ;;  %170 = vmatpush.msra.mxu0 %v109_v17  ;;  %v123_v27 = vld [vmem:[%s1086_s1 + $0xc8] sm:$0xff]  ;;  %v154_v30 = vld [vmem:[%s1086_s1 + $0x1c0] sm:$0xff]  ;;  %v105_v33 = vld [vmem:[%s1086_s1 + $0x38] sm:$0xff] }
   0xc   :  { %410 = vmatpush.msra.mxu3 %v157_v18  ;;  %331 = vmatpush.msra.mxu2 %v140_v20  ;;  %v122_v31 = vld [vmem:[%s1086_s1 + $0xc0] sm:$0xff]  ;;  %v153_v34 = vld [vmem:[%s1086_s1 + $0x1b8] sm:$0xff]  ;;  %v136_v36 = vld [vmem:[%s1086_s1 + $0x130] sm:$0xff] }
   0xd   :  { %250 = vmatpush.msra.mxu1 %v125_v19  ;;  %171 = vmatpush.msra.mxu0 %v108_v21  ;;  %v121_v35 = vld [vmem:[%s1086_s1 + $0xb8] sm:$0xff]  ;;  %v104_v37 = vld [vmem:[%s1086_s1 + $0x30] sm:$0xff]  ;;  %v135_v40 = vld [vmem:[%s1086_s1 + $0x128] sm:$0xff] }
   0xe   :  { %411 = vmatpush.msra.mxu3 %v156_v22  ;;  %332 = vmatpush.msra.mxu2 %v139_v24  ;;  %v152_v38 = vld [vmem:[%s1086_s1 + $0x1b0] sm:$0xff]  ;;  %v103_v41 = vld [vmem:[%s1086_s1 + $0x28] sm:$0xff]  ;;  %v134_v44 = vld [vmem:[%s1086_s1 + $0x120] sm:$0xff] }
   0xf   :  { %251 = vmatpush.msra.mxu1 %v124_v23  ;;  %172 = vmatpush.msra.mxu0 %v107_v25  ;;  %v120_v39 = vld [vmem:[%s1086_s1 + $0xb0] sm:$0xff]  ;;  %v151_v42 = vld [vmem:[%s1086_s1 + $0x1a8] sm:$0xff]  ;;  %v102_v45 = vld [vmem:[%s1086_s1 + $0x20] sm:$0xff] }
  0x10   :  { %412 = vmatpush.msra.mxu3 %v155_v26  ;;  %333 = vmatpush.msra.mxu2 %v138_v28  ;;  %v119_v43 = vld [vmem:[%s1086_s1 + $0xa8] sm:$0xff]  ;;  %v150_v46 = vld [vmem:[%s1086_s1 + $0x1a0] sm:$0xff]  ;;  %v133_v48 = vld [vmem:[%s1086_s1 + $0x118] sm:$0xff] }
  0x11   :  { %252 = vmatpush.msra.mxu1 %v123_v27  ;;  %173 = vmatpush.msra.mxu0 %v106_v29  ;;  %v118_v47 = vld [vmem:[%s1086_s1 + $0xa0] sm:$0xff]  ;;  %v101_v49 = vld [vmem:[%s1086_s1 + $0x18] sm:$0xff]  ;;  %v132_v52 = vld [vmem:[%s1086_s1 + $0x110] sm:$0xff] }
  0x12   :  { %413 = vmatpush.msra.mxu3 %v154_v30  ;;  %334 = vmatpush.msra.mxu2 %v137_v32  ;;  %v149_v50 = vld [vmem:[%s1086_s1 + $0x198] sm:$0xff]  ;;  %v100_v53 = vld [vmem:[%s1086_s1 + $0x10] sm:$0xff]  ;;  %v131_v56 = vld [vmem:[%s1086_s1 + $0x108] sm:$0xff] }
  0x13   :  { %253 = vmatpush.msra.mxu1 %v122_v31  ;;  %174 = vmatpush.msra.mxu0 %v105_v33  ;;  %v117_v51 = vld [vmem:[%s1086_s1 + $0x98] sm:$0xff]  ;;  %v148_v54 = vld [vmem:[%s1086_s1 + $0x190] sm:$0xff]  ;;  %v99_v57 = vld [vmem:[%s1086_s1 + $0x8] sm:$0xff] }
  0x14   :  { %414 = vmatpush.msra.mxu3 %v153_v34  ;;  %335 = vmatpush.msra.mxu2 %v136_v36  ;;  %v116_v55 = vld [vmem:[%s1086_s1 + $0x90] sm:$0xff]  ;;  %v147_v58 = vld [vmem:[%s1086_s1 + $0x188] sm:$0xff]  ;;  %v130_v60 = vld [vmem:[%s1086_s1 + $0x100] sm:$0xff] }
  0x15   :  { %254 = vmatpush.msra.mxu1 %v121_v35  ;;  %175 = vmatpush.msra.mxu0 %v104_v37  ;;  %v115_v59 = vld [vmem:[%s1086_s1 + $0x88] sm:$0xff]  ;;  %v98_v61 = vld [vmem:[%s1086_s1] sm:$0xff]  ;;  %v16_v62 = vld [vmem:[%s1087_s0 + $0x10] sm:$0xff] }
  0x16   :  { %415 = vmatpush.msra.mxu3 %v152_v38  ;;  %336 = vmatpush.msra.mxu2 %v135_v40  ;;  %v146_v63 = vld [vmem:[%s1086_s1 + $0x180] sm:$0xff]  ;;  %v17_v1 = vld [vmem:[%s1087_s0 + $0x18] sm:$0xff]  ;;  %v15_v3 = vld [vmem:[%s1087_s0 + $0x8] sm:$0xff] }
  0x17   :  { %255 = vmatpush.msra.mxu1 %v120_v39  ;;  %176 = vmatpush.msra.mxu0 %v103_v41  ;;  %v14_v0 = vld [vmem:[%s1087_s0] sm:$0xff]  ;;  %v20_v4 = vld [vmem:[%s1087_s0 + $0x30] sm:$0xff]  ;;  %v21_v6 = vld [vmem:[%s1087_s0 + $0x38] sm:$0xff] }
  0x18   :  { %416 = vmatpush.msra.mxu3 %v151_v42  ;;  %337 = vmatpush.msra.mxu2 %v134_v44  ;;  %v114_v2 = vld [vmem:[%s1086_s1 + $0x80] sm:$0xff]  ;;  %v19_v7 = vld [vmem:[%s1087_s0 + $0x28] sm:$0xff]  ;;  %v24_v8 = vld [vmem:[%s1087_s0 + $0x50] sm:$0xff] }
  0x19   :  { %256 = vmatpush.msra.mxu1 %v119_v43  ;;  %177 = vmatpush.msra.mxu0 %v102_v45  ;;  %v18_v5 = vld [vmem:[%s1087_s0 + $0x20] sm:$0xff]  ;;  %v25_v10 = vld [vmem:[%s1087_s0 + $0x58] sm:$0xff]  ;;  %v23_v11 = vld [vmem:[%s1087_s0 + $0x48] sm:$0xff] }
  0x1a   :  { %417 = vmatpush.msra.mxu3 %v150_v46  ;;  %338 = vmatpush.msra.mxu2 %v133_v48  ;;  %v22_v9 = vld [vmem:[%s1087_s0 + $0x40] sm:$0xff]  ;;  %v28_v12 = vld [vmem:[%s1087_s0 + $0x70] sm:$0xff]  ;;  %v29_v14 = vld [vmem:[%s1087_s0 + $0x78] sm:$0xff] }
  0x1b   :  { %257 = vmatpush.msra.mxu1 %v118_v47  ;;  %178 = vmatpush.msra.mxu0 %v101_v49  ;;  %v26_v13 = vld [vmem:[%s1087_s0 + $0x60] sm:$0xff]  ;;  %v27_v15 = vld [vmem:[%s1087_s0 + $0x68] sm:$0xff]  ;;  %v32_v16 = vld [vmem:[%s1087_s0 + $0x90] sm:$0xff] }
  0x1c   :  { %418 = vmatpush.msra.mxu3 %v149_v50  ;;  %339 = vmatpush.msra.mxu2 %v132_v52  ;;  %v30_v17 = vld [vmem:[%s1087_s0 + $0x80] sm:$0xff]  ;;  %v33_v18 = vld [vmem:[%s1087_s0 + $0x98] sm:$0xff]  ;;  %v31_v19 = vld [vmem:[%s1087_s0 + $0x88] sm:$0xff] }
  0x1d   :  { %258 = vmatpush.msra.mxu1 %v117_v51  ;;  %179 = vmatpush.msra.mxu0 %v100_v53  ;;  %v36_v20 = vld [vmem:[%s1087_s0 + $0xb0] sm:$0xff]  ;;  %v34_v21 = vld [vmem:[%s1087_s0 + $0xa0] sm:$0xff]  ;;  %v37_v22 = vld [vmem:[%s1087_s0 + $0xb8] sm:$0xff] }
  0x1e   :  { %419 = vmatpush.msra.mxu3 %v148_v54  ;;  %340 = vmatpush.msra.mxu2 %v131_v56  ;;  %v35_v23 = vld [vmem:[%s1087_s0 + $0xa8] sm:$0xff]  ;;  %v40_v24 = vld [vmem:[%s1087_s0 + $0xd0] sm:$0xff]  ;;  %v38_v25 = vld [vmem:[%s1087_s0 + $0xc0] sm:$0xff] }
  0x1f   :  { %259 = vmatpush.msra.mxu1 %v116_v55  ;;  %180 = vmatpush.msra.mxu0 %v99_v57  ;;  %v41_v26 = vld [vmem:[%s1087_s0 + $0xd8] sm:$0xff]  ;;  %v39_v27 = vld [vmem:[%s1087_s0 + $0xc8] sm:$0xff]  ;;  %v44_v28 = vld [vmem:[%s1087_s0 + $0xf0] sm:$0xff] }
  0x20   :  { %420 = vmatpush.msra.mxu3 %v147_v58  ;;  %341 = vmatpush.msra.mxu2 %v130_v60  ;;  %v42_v29 = vld [vmem:[%s1087_s0 + $0xe0] sm:$0xff]  ;;  %v45_v30 = vld [vmem:[%s1087_s0 + $0xf8] sm:$0xff]  ;;  %v43_v31 = vld [vmem:[%s1087_s0 + $0xe8] sm:$0xff] }
  0x21   :  { %260 = vmatpush.msra.mxu1 %v115_v59  ;;  %181 = vmatpush.msra.mxu0 %v98_v61  ;;  %v48_v32 = vld [vmem:[%s1087_s0 + $0x110] sm:$0xff]  ;;  %v46_v33 = vld [vmem:[%s1087_s0 + $0x100] sm:$0xff]  ;;  %v49_v34 = vld [vmem:[%s1087_s0 + $0x118] sm:$0xff] }
  0x22   :  { %342 = vmatmul.f32.vlgmr.msra.gmra.mxu2 %v16_v62  ;;  %421 = vmatpush.msra.mxu3 %v146_v63  ;;  %v47_v35 = vld [vmem:[%s1087_s0 + $0x108] sm:$0xff]  ;;  %v52_v36 = vld [vmem:[%s1087_s0 + $0x130] sm:$0xff]  ;;  %v50_v37 = vld [vmem:[%s1087_s0 + $0x120] sm:$0xff] }
  0x23   :  { %182 = vmatmul.f32.vlgmr.msra.gmra.mxu0 %v14_v0  ;;  %422 = vmatmul.f32.vlgmr.msra.gmra.mxu3 %v17_v1  ;;  %v53_v38 = vld [vmem:[%s1087_s0 + $0x138] sm:$0xff]  ;;  %v51_v39 = vld [vmem:[%s1087_s0 + $0x128] sm:$0xff]  ;;  %v56_v40 = vld [vmem:[%s1087_s0 + $0x150] sm:$0xff] }
  0x24   :  { %261 = vmatpush.msra.mxu1 %v114_v2  ;;  %v54_v41 = vld [vmem:[%s1087_s0 + $0x140] sm:$0xff]  ;;  %v57_v42 = vld [vmem:[%s1087_s0 + $0x158] sm:$0xff]  ;;  %v55_v43 = vld [vmem:[%s1087_s0 + $0x148] sm:$0xff] }
  0x25   :  { %262 = vmatmul.f32.vlgmr.msra.gmra.mxu1 %v15_v3  ;;  %v60_v44 = vld [vmem:[%s1087_s0 + $0x170] sm:$0xff]  ;;  %v58_v45 = vld [vmem:[%s1087_s0 + $0x160] sm:$0xff]  ;;  %v61_v46 = vld [vmem:[%s1087_s0 + $0x178] sm:$0xff] }
  0x26   :  { %v59_v47 = vld [vmem:[%s1087_s0 + $0x168] sm:$0xff]  ;;  %v64_v48 = vld [vmem:[%s1087_s0 + $0x190] sm:$0xff]  ;;  %v62_v49 = vld [vmem:[%s1087_s0 + $0x180] sm:$0xff] }
  0x27   :  { %v65_v50 = vld [vmem:[%s1087_s0 + $0x198] sm:$0xff]  ;;  %v63_v51 = vld [vmem:[%s1087_s0 + $0x188] sm:$0xff]  ;;  %v68_v52 = vld [vmem:[%s1087_s0 + $0x1b0] sm:$0xff] }
  0x28   :  { %v66_v53 = vld [vmem:[%s1087_s0 + $0x1a0] sm:$0xff]  ;;  %v69_v54 = vld [vmem:[%s1087_s0 + $0x1b8] sm:$0xff]  ;;  %v67_v55 = vld [vmem:[%s1087_s0 + $0x1a8] sm:$0xff] }
  0x29   :  { %v72_v56 = vld [vmem:[%s1087_s0 + $0x1d0] sm:$0xff]  ;;  %v70_v57 = vld [vmem:[%s1087_s0 + $0x1c0] sm:$0xff]  ;;  %v73_v58 = vld [vmem:[%s1087_s0 + $0x1d8] sm:$0xff] }
  0x2a   :  { %345 = vmatmul.f32.gmra.mxu2 %v20_v4  ;;  %v71_v59 = vld [vmem:[%s1087_s0 + $0x1c8] sm:$0xff]  ;;  %v76_v60 = vld [vmem:[%s1087_s0 + $0x1f0] sm:$0xff]  ;;  %v74_v61 = vld [vmem:[%s1087_s0 + $0x1e0] sm:$0xff] }
  0x2b   :  { %185 = vmatmul.f32.gmra.mxu0 %v18_v5  ;;  %425 = vmatmul.f32.gmra.mxu3 %v21_v6  ;;  %v77_v62 = vld [vmem:[%s1087_s0 + $0x1f8] sm:$0xff]  ;;  %v75_v63 = vld [vmem:[%s1087_s0 + $0x1e8] sm:$0xff]  ;;  %v940_v0 = vld [vmem:[%s1088_s2] ss:$0 sm:$0xff] }
  0x2c   :  { %v80_v1 = vld [vmem:[%s1087_s0 + $0x210] sm:$0xff]  ;;  %v78_v3 = vld [vmem:[%s1087_s0 + $0x200] sm:$0xff]  ;;  %v81_v4 = vld [vmem:[%s1087_s0 + $0x218] sm:$0xff] }
  0x2d   :  { %265 = vmatmul.f32.gmra.mxu1 %v19_v7  ;;  %v79_v7 = vld [vmem:[%s1087_s0 + $0x208] sm:$0xff] }
  0x32   :  { %348 = vmatmul.f32.gmra.mxu2 %v24_v8 }
  0x33   :  { %188 = vmatmul.f32.gmra.mxu0 %v22_v9  ;;  %428 = vmatmul.f32.gmra.mxu3 %v25_v10 }
  0x35   :  { %268 = vmatmul.f32.gmra.mxu1 %v23_v11 }
  0x3a   :  { %351 = vmatmul.f32.gmra.mxu2 %v28_v12  ;;  %v84_v12 = vld [vmem:[%s1087_s0 + $0x230] sm:$0xff] }
  0x3b   :  { %191 = vmatmul.f32.gmra.mxu0 %v26_v13  ;;  %431 = vmatmul.f32.gmra.mxu3 %v29_v14 }
  0x3d   :  { %271 = vmatmul.f32.gmra.mxu1 %v27_v15  ;;  %v82_v15 = vld [vmem:[%s1087_s0 + $0x220] sm:$0xff] }
  0x42   :  { %354 = vmatmul.f32.gmra.mxu2 %v32_v16  ;;  %v85_v16 = vld [vmem:[%s1087_s0 + $0x238] sm:$0xff] }
  0x43   :  { %194 = vmatmul.f32.gmra.mxu0 %v30_v17  ;;  %434 = vmatmul.f32.gmra.mxu3 %v33_v18 }
  0x45   :  { %274 = vmatmul.f32.gmra.mxu1 %v31_v19 }
  0x4a   :  { %357 = vmatmul.f32.gmra.mxu2 %v36_v20  ;;  %v83_v20 = vld [vmem:[%s1087_s0 + $0x228] sm:$0xff] }
  0x4b   :  { %197 = vmatmul.f32.gmra.mxu0 %v34_v21  ;;  %437 = vmatmul.f32.gmra.mxu3 %v37_v22 }
  0x4d   :  { %277 = vmatmul.f32.gmra.mxu1 %v35_v23 }
  0x52   :  { %360 = vmatmul.f32.gmra.mxu2 %v40_v24 }
  0x53   :  { %200 = vmatmul.f32.gmra.mxu0 %v38_v25  ;;  %440 = vmatmul.f32.gmra.mxu3 %v41_v26  ;;  %v88_v25 = vld [vmem:[%s1087_s0 + $0x250] sm:$0xff] }
  0x55   :  { %280 = vmatmul.f32.gmra.mxu1 %v39_v27 }
  0x5a   :  { %363 = vmatmul.f32.gmra.mxu2 %v44_v28  ;;  %v86_v28 = vld [vmem:[%s1087_s0 + $0x240] sm:$0xff] }
  0x5b   :  { %203 = vmatmul.f32.gmra.mxu0 %v42_v29  ;;  %443 = vmatmul.f32.gmra.mxu3 %v45_v30  ;;  %v89_v29 = vld [vmem:[%s1087_s0 + $0x258] sm:$0xff] }
  0x5d   :  { %283 = vmatmul.f32.gmra.mxu1 %v43_v31 }
  0x62   :  { %366 = vmatmul.f32.gmra.mxu2 %v48_v32 }
  0x63   :  { %206 = vmatmul.f32.gmra.mxu0 %v46_v33  ;;  %446 = vmatmul.f32.gmra.mxu3 %v49_v34  ;;  %v87_v33 = vld [vmem:[%s1087_s0 + $0x248] sm:$0xff] }
  0x65   :  { %286 = vmatmul.f32.gmra.mxu1 %v47_v35 }
  0x6a   :  { %369 = vmatmul.f32.gmra.mxu2 %v52_v36 }
  0x6b   :  { %209 = vmatmul.f32.gmra.mxu0 %v50_v37  ;;  %449 = vmatmul.f32.gmra.mxu3 %v53_v38  ;;  %v92_v38 = vld [vmem:[%s1087_s0 + $0x270] sm:$0xff] }
  0x6d   :  { %289 = vmatmul.f32.gmra.mxu1 %v51_v39 }
  0x72   :  { %372 = vmatmul.f32.gmra.mxu2 %v56_v40 }
  0x73   :  { %212 = vmatmul.f32.gmra.mxu0 %v54_v41  ;;  %452 = vmatmul.f32.gmra.mxu3 %v57_v42  ;;  %v90_v41 = vld [vmem:[%s1087_s0 + $0x260] sm:$0xff]  ;;  %v93_v42 = vld [vmem:[%s1087_s0 + $0x278] sm:$0xff] }
  0x75   :  { %292 = vmatmul.f32.gmra.mxu1 %v55_v43 }
  0x7a   :  { %375 = vmatmul.f32.gmra.mxu2 %v60_v44 }
  0x7b   :  { %215 = vmatmul.f32.gmra.mxu0 %v58_v45  ;;  %455 = vmatmul.f32.gmra.mxu3 %v61_v46  ;;  %v91_v46 = vld [vmem:[%s1087_s0 + $0x268] sm:$0xff] }
  0x7d   :  { %295 = vmatmul.f32.gmra.mxu1 %v59_v47 }
  0x82   :  { %378 = vmatmul.f32.gmra.mxu2 %v64_v48 }
  0x83   :  { %218 = vmatmul.f32.gmra.mxu0 %v62_v49  ;;  %458 = vmatmul.f32.gmra.mxu3 %v65_v50 }
  0x85   :  { %298 = vmatmul.f32.gmra.mxu1 %v63_v51  ;;  %v96_v51 = vld [vmem:[%s1087_s0 + $0x290] sm:$0xff] }
  0x8a   :  { %381 = vmatmul.f32.gmra.mxu2 %v68_v52 }
  0x8b   :  { %221 = vmatmul.f32.gmra.mxu0 %v66_v53  ;;  %461 = vmatmul.f32.gmra.mxu3 %v69_v54  ;;  %v94_v54 = vld [vmem:[%s1087_s0 + $0x280] sm:$0xff] }
  0x8d   :  { %301 = vmatmul.f32.gmra.mxu1 %v67_v55  ;;  %v97_v55 = vld [vmem:[%s1087_s0 + $0x298] sm:$0xff] }
  0x92   :  { %384 = vmatmul.f32.gmra.mxu2 %v72_v56 }
  0x93   :  { %224 = vmatmul.f32.gmra.mxu0 %v70_v57  ;;  %464 = vmatmul.f32.gmra.mxu3 %v73_v58 }
  0x95   :  { %304 = vmatmul.f32.gmra.mxu1 %v71_v59  ;;  %v95_v59 = vld [vmem:[%s1087_s0 + $0x288] sm:$0xff] }
  0x9a   :  { %387 = vmatmul.f32.gmra.mxu2 %v76_v60 }
  0x9b   :  { %227 = vmatmul.f32.gmra.mxu0 %v74_v61  ;;  %467 = vmatmul.f32.gmra.mxu3 %v77_v62 }
  0x9d   :  { %307 = vmatmul.f32.gmra.mxu1 %v75_v63 }
  0xa0   :  { %v183_v2 = vpop.f32.mrf.mxu0 }
  0xa1   :  { %v184_v5 = vadd.f32 %v940_v0, %v183_v2 }
  0xa2   :  { %390 = vmatmul.f32.gmra.mxu2 %v80_v1  ;;  %v263_v6 = vpop.f32.mrf.mxu1 }
  0xa3   :  { %v264_v8 = vadd.f32 %v263_v6, %v184_v5  ;;  %230 = vmatmul.f32.gmra.mxu0 %v78_v3  ;;  %470 = vmatmul.f32.gmra.mxu3 %v81_v4 }
  0xa5   :  { %v343_v9 = vpop.f32.mrf.mxu2  ;;  %310 = vmatmul.f32.gmra.mxu1 %v79_v7 }
  0xa6   :  { %v344_v10 = vadd.f32 %v343_v9, %v264_v8  ;;  %v423_v11 = vpop.f32.mrf.mxu3 }
  0xa8   :  { %v424_v13 = vadd.f32 %v423_v11, %v344_v10  ;;  %v186_v14 = vpop.f32.mrf.mxu0 }
  0xa9   :  { %v187_v17 = vadd.f32 %v940_v0, %v186_v14 }
  0xaa   :  { %v486_v18 = vmax.f32 %v424_v13, 0.0  ;;  %393 = vmatmul.f32.gmra.mxu2 %v84_v12  ;;  %v266_v19 = vpop.f32.mrf.mxu1 }
  0xab   :  { %v267_v21 = vadd.f32 %v266_v19, %v187_v17  ;;  %233 = vmatmul.f32.gmra.mxu0 %v82_v15  ;;  %473 = vmatmul.f32.gmra.mxu3 %v85_v16 }
  0xac   :  { %507 = vst [vmem:[%s1089_s3] sm:$0xff] %v486_v18 }
  0xad   :  { %v346_v22 = vpop.f32.mrf.mxu2  ;;  %313 = vmatmul.f32.gmra.mxu1 %v83_v20 }
  0xae   :  { %v347_v23 = vadd.f32 %v346_v22, %v267_v21  ;;  %v426_v24 = vpop.f32.mrf.mxu3 }
  0xb0   :  { %v427_v26 = vadd.f32 %v426_v24, %v347_v23  ;;  %v189_v27 = vpop.f32.mrf.mxu0 }
  0xb1   :  { %v190_v30 = vadd.f32 %v940_v0, %v189_v27 }
  0xb2   :  { %v487_v31 = vmax.f32 %v427_v26, 0.0  ;;  %396 = vmatmul.f32.gmra.mxu2 %v88_v25  ;;  %v269_v32 = vpop.f32.mrf.mxu1 }
  0xb3   :  { %v270_v34 = vadd.f32 %v269_v32, %v190_v30  ;;  %236 = vmatmul.f32.gmra.mxu0 %v86_v28  ;;  %476 = vmatmul.f32.gmra.mxu3 %v89_v29 }
  0xb4   :  { %508 = vst [vmem:[%s1089_s3 + $0x8] sm:$0xff] %v487_v31 }
  0xb5   :  { %v349_v35 = vpop.f32.mrf.mxu2  ;;  %316 = vmatmul.f32.gmra.mxu1 %v87_v33 }
  0xb6   :  { %v350_v36 = vadd.f32 %v349_v35, %v270_v34  ;;  %v429_v37 = vpop.f32.mrf.mxu3 }
  0xb8   :  { %v430_v39 = vadd.f32 %v429_v37, %v350_v36  ;;  %v192_v40 = vpop.f32.mrf.mxu0 }
  0xb9   :  { %v193_v43 = vadd.f32 %v940_v0, %v192_v40 }
  0xba   :  { %v488_v44 = vmax.f32 %v430_v39, 0.0  ;;  %399 = vmatmul.f32.gmra.mxu2 %v92_v38  ;;  %v272_v45 = vpop.f32.mrf.mxu1 }
  0xbb   :  { %v273_v47 = vadd.f32 %v272_v45, %v193_v43  ;;  %239 = vmatmul.f32.gmra.mxu0 %v90_v41  ;;  %479 = vmatmul.f32.gmra.mxu3 %v93_v42 }
  0xbc   :  { %509 = vst [vmem:[%s1089_s3 + $0x10] sm:$0xff] %v488_v44 }
  0xbd   :  { %v352_v48 = vpop.f32.mrf.mxu2  ;;  %319 = vmatmul.f32.gmra.mxu1 %v91_v46 }
  0xbe   :  { %v353_v49 = vadd.f32 %v352_v48, %v273_v47  ;;  %v432_v50 = vpop.f32.mrf.mxu3 }
  0xc0   :  { %v433_v52 = vadd.f32 %v432_v50, %v353_v49  ;;  %v195_v53 = vpop.f32.mrf.mxu0 }
  0xc1   :  { %v196_v56 = vadd.f32 %v940_v0, %v195_v53 }
  0xc2   :  { %v489_v57 = vmax.f32 %v433_v52, 0.0  ;;  %402 = vmatmul.f32.gmra.mxu2 %v96_v51  ;;  %v275_v58 = vpop.f32.mrf.mxu1 }
  0xc3   :  { %v276_v60 = vadd.f32 %v275_v58, %v196_v56  ;;  %242 = vmatmul.f32.gmra.mxu0 %v94_v54  ;;  %482 = vmatmul.f32.gmra.mxu3 %v97_v55 }
  0xc4   :  { %510 = vst [vmem:[%s1089_s3 + $0x18] sm:$0xff] %v489_v57 }
  0xc5   :  { %v355_v61 = vpop.f32.mrf.mxu2  ;;  %322 = vmatmul.f32.gmra.mxu1 %v95_v59 }
  0xc6   :  { %v356_v62 = vadd.f32 %v355_v61, %v276_v60  ;;  %v435_v63 = vpop.f32.mrf.mxu3 }
  0xc8   :  { %v436_v1 = vadd.f32 %v435_v63, %v356_v62  ;;  %v198_v2 = vpop.f32.mrf.mxu0 }
  0xc9   :  { %v199_v3 = vadd.f32 %v940_v0, %v198_v2 }
  0xca   :  { %v490_v4 = vmax.f32 %v436_v1, 0.0  ;;  %v278_v5 = vpop.f32.mrf.mxu1 }
  0xcb   :  { %v279_v6 = vadd.f32 %v278_v5, %v199_v3 }
  0xcc   :  { %511 = vst [vmem:[%s1089_s3 + $0x20] sm:$0xff] %v490_v4 }
  0xcd   :  { %v358_v7 = vpop.f32.mrf.mxu2 }
  0xce   :  { %v359_v8 = vadd.f32 %v358_v7, %v279_v6  ;;  %v438_v9 = vpop.f32.mrf.mxu3 }
  0xd0   :  { %v439_v10 = vadd.f32 %v438_v9, %v359_v8  ;;  %v201_v11 = vpop.f32.mrf.mxu0 }
  0xd1   :  { %v202_v12 = vadd.f32 %v940_v0, %v201_v11 }
  0xd2   :  { %v491_v13 = vmax.f32 %v439_v10, 0.0  ;;  %v281_v14 = vpop.f32.mrf.mxu1 }
  0xd3   :  { %v282_v15 = vadd.f32 %v281_v14, %v202_v12 }
  0xd4   :  { %512 = vst [vmem:[%s1089_s3 + $0x28] sm:$0xff] %v491_v13 }
  0xd5   :  { %v361_v16 = vpop.f32.mrf.mxu2 }
  0xd6   :  { %v362_v17 = vadd.f32 %v361_v16, %v282_v15  ;;  %v441_v18 = vpop.f32.mrf.mxu3 }
  0xd8   :  { %v442_v19 = vadd.f32 %v441_v18, %v362_v17  ;;  %v204_v20 = vpop.f32.mrf.mxu0 }
  0xd9   :  { %v205_v21 = vadd.f32 %v940_v0, %v204_v20 }
  0xda   :  { %v492_v22 = vmax.f32 %v442_v19, 0.0  ;;  %v284_v23 = vpop.f32.mrf.mxu1 }
  0xdb   :  { %v285_v24 = vadd.f32 %v284_v23, %v205_v21 }
  0xdc   :  { %513 = vst [vmem:[%s1089_s3 + $0x30] sm:$0xff] %v492_v22 }
  0xdd   :  { %v364_v25 = vpop.f32.mrf.mxu2 }
  0xde   :  { %v365_v26 = vadd.f32 %v364_v25, %v285_v24  ;;  %v444_v27 = vpop.f32.mrf.mxu3 }
  0xe0   :  { %v445_v28 = vadd.f32 %v444_v27, %v365_v26  ;;  %v207_v29 = vpop.f32.mrf.mxu0 }
  0xe1   :  { %v208_v30 = vadd.f32 %v940_v0, %v207_v29 }
  0xe2   :  { %v493_v31 = vmax.f32 %v445_v28, 0.0  ;;  %v287_v32 = vpop.f32.mrf.mxu1 }
  0xe3   :  { %v288_v33 = vadd.f32 %v287_v32, %v208_v30 }
  0xe4   :  { %514 = vst [vmem:[%s1089_s3 + $0x38] sm:$0xff] %v493_v31 }
  0xe5   :  { %v367_v34 = vpop.f32.mrf.mxu2 }
  0xe6   :  { %v368_v35 = vadd.f32 %v367_v34, %v288_v33  ;;  %v447_v36 = vpop.f32.mrf.mxu3 }
  0xe8   :  { %v448_v37 = vadd.f32 %v447_v36, %v368_v35  ;;  %v210_v38 = vpop.f32.mrf.mxu0 }
  0xe9   :  { %v211_v39 = vadd.f32 %v940_v0, %v210_v38 }
  0xea   :  { %v494_v40 = vmax.f32 %v448_v37, 0.0  ;;  %v290_v41 = vpop.f32.mrf.mxu1 }
  0xeb   :  { %v291_v42 = vadd.f32 %v290_v41, %v211_v39 }
  0xec   :  { %515 = vst [vmem:[%s1089_s3 + $0x40] sm:$0xff] %v494_v40 }
  0xed   :  { %v370_v43 = vpop.f32.mrf.mxu2 }
  0xee   :  { %v371_v44 = vadd.f32 %v370_v43, %v291_v42  ;;  %v450_v45 = vpop.f32.mrf.mxu3 }
  0xf0   :  { %v451_v46 = vadd.f32 %v450_v45, %v371_v44  ;;  %v213_v47 = vpop.f32.mrf.mxu0 }
  0xf1   :  { %v214_v48 = vadd.f32 %v940_v0, %v213_v47 }
  0xf2   :  { %v495_v49 = vmax.f32 %v451_v46, 0.0  ;;  %v293_v50 = vpop.f32.mrf.mxu1 }
  0xf3   :  { %v294_v51 = vadd.f32 %v293_v50, %v214_v48 }
  0xf4   :  { %516 = vst [vmem:[%s1089_s3 + $0x48] sm:$0xff] %v495_v49 }
  0xf5   :  { %v373_v52 = vpop.f32.mrf.mxu2 }
  0xf6   :  { %v374_v53 = vadd.f32 %v373_v52, %v294_v51  ;;  %v453_v54 = vpop.f32.mrf.mxu3 }
  0xf8   :  { %v454_v55 = vadd.f32 %v453_v54, %v374_v53  ;;  %v216_v56 = vpop.f32.mrf.mxu0 }
  0xf9   :  { %v217_v57 = vadd.f32 %v940_v0, %v216_v56 }
  0xfa   :  { %v496_v58 = vmax.f32 %v454_v55, 0.0  ;;  %v296_v59 = vpop.f32.mrf.mxu1 }
  0xfb   :  { %v297_v60 = vadd.f32 %v296_v59, %v217_v57 }
  0xfc   :  { %517 = vst [vmem:[%s1089_s3 + $0x50] sm:$0xff] %v496_v58 }
  0xfd   :  { %v376_v61 = vpop.f32.mrf.mxu2 }
  0xfe   :  { %v377_v62 = vadd.f32 %v376_v61, %v297_v60  ;;  %v456_v63 = vpop.f32.mrf.mxu3 }
 0x100   :  { %v457_v1 = vadd.f32 %v456_v63, %v377_v62  ;;  %v219_v2 = vpop.f32.mrf.mxu0 }
 0x101   :  { %v220_v3 = vadd.f32 %v940_v0, %v219_v2 }
 0x102   :  { %v497_v4 = vmax.f32 %v457_v1, 0.0  ;;  %v299_v5 = vpop.f32.mrf.mxu1 }
 0x103   :  { %v300_v6 = vadd.f32 %v299_v5, %v220_v3 }
 0x104   :  { %518 = vst [vmem:[%s1089_s3 + $0x58] sm:$0xff] %v497_v4 }
 0x105   :  { %v379_v7 = vpop.f32.mrf.mxu2 }
 0x106   :  { %v380_v8 = vadd.f32 %v379_v7, %v300_v6  ;;  %v459_v9 = vpop.f32.mrf.mxu3 }
 0x108   :  { %v460_v10 = vadd.f32 %v459_v9, %v380_v8  ;;  %v222_v11 = vpop.f32.mrf.mxu0 }
 0x109   :  { %v223_v12 = vadd.f32 %v940_v0, %v222_v11 }
 0x10a   :  { %v498_v13 = vmax.f32 %v460_v10, 0.0  ;;  %v302_v14 = vpop.f32.mrf.mxu1 }
 0x10b   :  { %v303_v15 = vadd.f32 %v302_v14, %v223_v12 }
 0x10c   :  { %519 = vst [vmem:[%s1089_s3 + $0x60] sm:$0xff] %v498_v13 }
 0x10d   :  { %v382_v16 = vpop.f32.mrf.mxu2 }
 0x10e   :  { %v383_v17 = vadd.f32 %v382_v16, %v303_v15  ;;  %v462_v18 = vpop.f32.mrf.mxu3 }
 0x110   :  { %v463_v19 = vadd.f32 %v462_v18, %v383_v17  ;;  %v225_v20 = vpop.f32.mrf.mxu0 }
 0x111   :  { %v226_v21 = vadd.f32 %v940_v0, %v225_v20 }
 0x112   :  { %v499_v22 = vmax.f32 %v463_v19, 0.0  ;;  %v305_v23 = vpop.f32.mrf.mxu1 }
 0x113   :  { %v306_v24 = vadd.f32 %v305_v23, %v226_v21 }
 0x114   :  { %520 = vst [vmem:[%s1089_s3 + $0x68] sm:$0xff] %v499_v22 }
 0x115   :  { %v385_v25 = vpop.f32.mrf.mxu2 }
 0x116   :  { %v386_v26 = vadd.f32 %v385_v25, %v306_v24  ;;  %v465_v27 = vpop.f32.mrf.mxu3 }
 0x118   :  { %v466_v28 = vadd.f32 %v465_v27, %v386_v26  ;;  %v228_v29 = vpop.f32.mrf.mxu0 }
 0x119   :  { %v229_v30 = vadd.f32 %v940_v0, %v228_v29 }
 0x11a   :  { %v500_v31 = vmax.f32 %v466_v28, 0.0  ;;  %v308_v32 = vpop.f32.mrf.mxu1 }
 0x11b   :  { %v309_v33 = vadd.f32 %v308_v32, %v229_v30 }
 0x11c   :  { %521 = vst [vmem:[%s1089_s3 + $0x70] sm:$0xff] %v500_v31 }
 0x11d   :  { %v388_v34 = vpop.f32.mrf.mxu2 }
 0x11e   :  { %v389_v35 = vadd.f32 %v388_v34, %v309_v33  ;;  %v468_v36 = vpop.f32.mrf.mxu3 }
 0x120   :  { %v469_v37 = vadd.f32 %v468_v36, %v389_v35  ;;  %v231_v38 = vpop.f32.mrf.mxu0 }
 0x121   :  { %v232_v39 = vadd.f32 %v940_v0, %v231_v38 }
 0x122   :  { %v501_v40 = vmax.f32 %v469_v37, 0.0  ;;  %v311_v41 = vpop.f32.mrf.mxu1 }
 0x123   :  { %v312_v42 = vadd.f32 %v311_v41, %v232_v39 }
 0x124   :  { %522 = vst [vmem:[%s1089_s3 + $0x78] sm:$0xff] %v501_v40 }
 0x125   :  { %v391_v43 = vpop.f32.mrf.mxu2 }
 0x126   :  { %v392_v44 = vadd.f32 %v391_v43, %v312_v42  ;;  %v471_v45 = vpop.f32.mrf.mxu3 }
 0x128   :  { %v472_v46 = vadd.f32 %v471_v45, %v392_v44  ;;  %v234_v47 = vpop.f32.mrf.mxu0 }
 0x129   :  { %v235_v48 = vadd.f32 %v940_v0, %v234_v47 }
 0x12a   :  { %v502_v49 = vmax.f32 %v472_v46, 0.0  ;;  %v314_v50 = vpop.f32.mrf.mxu1 }
 0x12b   :  { %v315_v51 = vadd.f32 %v314_v50, %v235_v48 }
 0x12c   :  { %523 = vst [vmem:[%s1089_s3 + $0x80] sm:$0xff] %v502_v49 }
 0x12d   :  { %v394_v52 = vpop.f32.mrf.mxu2 }
 0x12e   :  { %v395_v53 = vadd.f32 %v394_v52, %v315_v51  ;;  %v474_v54 = vpop.f32.mrf.mxu3 }
 0x130   :  { %v475_v55 = vadd.f32 %v474_v54, %v395_v53  ;;  %v237_v56 = vpop.f32.mrf.mxu0 }
 0x131   :  { %v238_v57 = vadd.f32 %v940_v0, %v237_v56 }
 0x132   :  { %v503_v58 = vmax.f32 %v475_v55, 0.0  ;;  %v317_v59 = vpop.f32.mrf.mxu1 }
 0x133   :  { %v318_v60 = vadd.f32 %v317_v59, %v238_v57 }
 0x134   :  { %524 = vst [vmem:[%s1089_s3 + $0x88] sm:$0xff] %v503_v58 }
 0x135   :  { %v397_v61 = vpop.f32.mrf.mxu2 }
 0x136   :  { %v398_v62 = vadd.f32 %v397_v61, %v318_v60  ;;  %v477_v63 = vpop.f32.mrf.mxu3 }
 0x138   :  { %v478_v1 = vadd.f32 %v477_v63, %v398_v62  ;;  %v240_v2 = vpop.f32.mrf.mxu0 }
 0x139   :  { %v241_v3 = vadd.f32 %v940_v0, %v240_v2 }
 0x13a   :  { %v504_v4 = vmax.f32 %v478_v1, 0.0  ;;  %v320_v5 = vpop.f32.mrf.mxu1 }
 0x13b   :  { %v321_v6 = vadd.f32 %v320_v5, %v241_v3 }
 0x13c   :  { %525 = vst [vmem:[%s1089_s3 + $0x90] sm:$0xff] %v504_v4 }
 0x13d   :  { %v400_v7 = vpop.f32.mrf.mxu2 }
 0x13e   :  { %v401_v8 = vadd.f32 %v400_v7, %v321_v6  ;;  %v480_v9 = vpop.f32.mrf.mxu3 }
 0x140   :  { %v481_v10 = vadd.f32 %v480_v9, %v401_v8  ;;  %v243_v11 = vpop.f32.mrf.mxu0 }
 0x141   :  { %v244_v12 = vadd.f32 %v940_v0, %v243_v11 }
 0x142   :  { %v505_v13 = vmax.f32 %v481_v10, 0.0  ;;  %v323_v14 = vpop.f32.mrf.mxu1 }
 0x143   :  { %v324_v15 = vadd.f32 %v323_v14, %v244_v12 }
 0x144   :  { %526 = vst [vmem:[%s1089_s3 + $0x98] sm:$0xff] %v505_v13 }
 0x145   :  { %v403_v16 = vpop.f32.mrf.mxu2 }
 0x146   :  { %v404_v17 = vadd.f32 %v403_v16, %v324_v15  ;;  %v483_v18 = vpop.f32.mrf.mxu3 }
 0x148   :  { %v484_v19 = vadd.f32 %v483_v18, %v404_v17 }
 0x14a   :  { %v506_v20 = vmax.f32 %v484_v19, 0.0 }
 0x14c   :  { %527 = vst [vmem:[%s1089_s3 + $0xa0] sm:$0xff] %v506_v20 }

// kernel: fwd.6
= control target key start
LH: loop header
LB: loop body
LE: loop exit
PB: predicated region body
PF: predicated region fallthrough
CT: control target
= control target key end

     0   :  { %s1061_s1 = inlined_call_operand.vmem [shape: f32[640,128], index: 1, kind: input, shape index: {}]   ;;  %s1062_s0 = inlined_call_operand.vmem [shape: f32[104,640], index: 0, kind: input, shape index: {}]   ;;  %s1063_s2 = inlined_call_operand.vmem [shape: f32[1,128], index: 2, kind: input, shape index: {}]   ;;  %s1064_s3 = inlined_call_operand.vmem [shape: f32[104,128], index: 3, kind: output, shape index: {}]  }
   0x1   :  { %v94_v0 = vld [vmem:[%s1061_s1 + $0x78] sm:$0xff]  ;;  %v93_v1 = vld [vmem:[%s1061_s1 + $0x70] sm:$0xff]  ;;  %v92_v2 = vld [vmem:[%s1061_s1 + $0x68] sm:$0xff] }
   0x2   :  { %473 = vmatpush.msra.mxu1 %v94_v0  ;;  %474 = vmatpush.msra.mxu2 %v94_v0  ;;  %v91_v3 = vld [vmem:[%s1061_s1 + $0x60] sm:$0xff]  ;;  %v90_v4 = vld [vmem:[%s1061_s1 + $0x58] sm:$0xff]  ;;  %v89_v5 = vld [vmem:[%s1061_s1 + $0x50] sm:$0xff] }
   0x3   :  { %475 = vmatpush.msra.mxu3 %v94_v0  ;;  %163 = vmatpush.msra.mxu0 %v94_v0  ;;  %v88_v6 = vld [vmem:[%s1061_s1 + $0x48] sm:$0xff]  ;;  %v87_v7 = vld [vmem:[%s1061_s1 + $0x40] sm:$0xff]  ;;  %v86_v8 = vld [vmem:[%s1061_s1 + $0x38] sm:$0xff] }
   0x4   :  { %476 = vmatpush.msra.mxu1 %v93_v1  ;;  %477 = vmatpush.msra.mxu2 %v93_v1  ;;  %v85_v9 = vld [vmem:[%s1061_s1 + $0x30] sm:$0xff]  ;;  %v84_v10 = vld [vmem:[%s1061_s1 + $0x28] sm:$0xff]  ;;  %v83_v11 = vld [vmem:[%s1061_s1 + $0x20] sm:$0xff] }
   0x5   :  { %478 = vmatpush.msra.mxu3 %v93_v1  ;;  %164 = vmatpush.msra.mxu0 %v93_v1  ;;  %v82_v12 = vld [vmem:[%s1061_s1 + $0x18] sm:$0xff]  ;;  %v81_v13 = vld [vmem:[%s1061_s1 + $0x10] sm:$0xff]  ;;  %v80_v14 = vld [vmem:[%s1061_s1 + $0x8] sm:$0xff] }
   0x6   :  { %479 = vmatpush.msra.mxu1 %v92_v2  ;;  %480 = vmatpush.msra.mxu2 %v92_v2  ;;  %v79_v15 = vld [vmem:[%s1061_s1] sm:$0xff]  ;;  %v126_v18 = vld [vmem:[%s1061_s1 + $0x178] sm:$0xff]  ;;  %v125_v20 = vld [vmem:[%s1061_s1 + $0x170] sm:$0xff] }
   0x7   :  { %481 = vmatpush.msra.mxu3 %v92_v2  ;;  %165 = vmatpush.msra.mxu0 %v92_v2  ;;  %v34_v16 = vld [vmem:[%s1062_s0 + $0xa0] sm:$0xff]  ;;  %v110_v19 = vld [vmem:[%s1061_s1 + $0xf8] sm:$0xff]  ;;  %v109_v21 = vld [vmem:[%s1061_s1 + $0xf0] sm:$0xff] }
   0x8   :  { %482 = vmatpush.msra.mxu1 %v91_v3  ;;  %483 = vmatpush.msra.mxu2 %v91_v3  ;;  %v54_v17 = vld [vmem:[%s1062_s0 + $0x140] sm:$0xff]  ;;  %v142_v22 = vld [vmem:[%s1061_s1 + $0x1f8] sm:$0xff]  ;;  %v124_v24 = vld [vmem:[%s1061_s1 + $0x168] sm:$0xff] }
   0x9   :  { %484 = vmatpush.msra.mxu3 %v91_v3  ;;  %166 = vmatpush.msra.mxu0 %v91_v3  ;;  %v14_v23 = vld [vmem:[%s1062_s0] sm:$0xff]  ;;  %v108_v25 = vld [vmem:[%s1061_s1 + $0xe8] sm:$0xff]  ;;  %v141_v26 = vld [vmem:[%s1061_s1 + $0x1f0] sm:$0xff] }
   0xa   :  { %485 = vmatpush.msra.mxu1 %v90_v4  ;;  %486 = vmatpush.msra.mxu2 %v90_v4  ;;  %v158_v27 = vld [vmem:[%s1061_s1 + $0x278] sm:$0xff]  ;;  %v123_v28 = vld [vmem:[%s1061_s1 + $0x160] sm:$0xff]  ;;  %v140_v30 = vld [vmem:[%s1061_s1 + $0x1e8] sm:$0xff] }
   0xb   :  { %487 = vmatpush.msra.mxu3 %v90_v4  ;;  %167 = vmatpush.msra.mxu0 %v90_v4  ;;  %v107_v29 = vld [vmem:[%s1061_s1 + $0xe0] sm:$0xff]  ;;  %v39_v31 = vld [vmem:[%s1062_s0 + $0xc8] sm:$0xff]  ;;  %v106_v33 = vld [vmem:[%s1061_s1 + $0xd8] sm:$0xff] }
   0xc   :  { %488 = vmatpush.msra.mxu1 %v89_v5  ;;  %489 = vmatpush.msra.mxu2 %v89_v5  ;;  %v59_v32 = vld [vmem:[%s1062_s0 + $0x168] sm:$0xff]  ;;  %v122_v34 = vld [vmem:[%s1061_s1 + $0x158] sm:$0xff]  ;;  %v139_v35 = vld [vmem:[%s1061_s1 + $0x1e0] sm:$0xff] }
   0xd   :  { %490 = vmatpush.msra.mxu3 %v89_v5  ;;  %168 = vmatpush.msra.mxu0 %v89_v5  ;;  %v105_v36 = vld [vmem:[%s1061_s1 + $0xd0] sm:$0xff]  ;;  %v138_v39 = vld [vmem:[%s1061_s1 + $0x1d8] sm:$0xff]  ;;  %v104_v40 = vld [vmem:[%s1061_s1 + $0xc8] sm:$0xff] }
   0xe   :  { %491 = vmatpush.msra.mxu1 %v88_v6  ;;  %492 = vmatpush.msra.mxu2 %v88_v6  ;;  %v157_v37 = vld [vmem:[%s1061_s1 + $0x270] sm:$0xff]  ;;  %v156_v41 = vld [vmem:[%s1061_s1 + $0x268] sm:$0xff]  ;;  %v103_v44 = vld [vmem:[%s1061_s1 + $0xc0] sm:$0xff] }
   0xf   :  { %493 = vmatpush.msra.mxu3 %v88_v6  ;;  %169 = vmatpush.msra.mxu0 %v88_v6  ;;  %v121_v38 = vld [vmem:[%s1061_s1 + $0x150] sm:$0xff]  ;;  %v120_v42 = vld [vmem:[%s1061_s1 + $0x148] sm:$0xff]  ;;  %v155_v45 = vld [vmem:[%s1061_s1 + $0x260] sm:$0xff] }
  0x10   :  { %494 = vmatpush.msra.mxu1 %v87_v7  ;;  %495 = vmatpush.msra.mxu2 %v87_v7  ;;  %v137_v43 = vld [vmem:[%s1061_s1 + $0x1d0] sm:$0xff]  ;;  %v119_v46 = vld [vmem:[%s1061_s1 + $0x140] sm:$0xff]  ;;  %v136_v47 = vld [vmem:[%s1061_s1 + $0x1c8] sm:$0xff] }
  0x11   :  { %496 = vmatpush.msra.mxu3 %v87_v7  ;;  %170 = vmatpush.msra.mxu0 %v87_v7  ;;  %v44_v48 = vld [vmem:[%s1062_s0 + $0xf0] sm:$0xff]  ;;  %v118_v50 = vld [vmem:[%s1061_s1 + $0x138] sm:$0xff]  ;;  %v135_v52 = vld [vmem:[%s1061_s1 + $0x1c0] sm:$0xff] }
  0x12   :  { %497 = vmatpush.msra.mxu1 %v86_v8  ;;  %498 = vmatpush.msra.mxu2 %v86_v8  ;;  %v64_v49 = vld [vmem:[%s1062_s0 + $0x190] sm:$0xff]  ;;  %v102_v51 = vld [vmem:[%s1061_s1 + $0xb8] sm:$0xff]  ;;  %v19_v53 = vld [vmem:[%s1062_s0 + $0x28] sm:$0xff] }
  0x13   :  { %499 = vmatpush.msra.mxu3 %v86_v8  ;;  %171 = vmatpush.msra.mxu0 %v86_v8  ;;  %v117_v54 = vld [vmem:[%s1061_s1 + $0x130] sm:$0xff]  ;;  %v154_v55 = vld [vmem:[%s1061_s1 + $0x258] sm:$0xff]  ;;  %v116_v58 = vld [vmem:[%s1061_s1 + $0x128] sm:$0xff] }
  0x14   :  { %500 = vmatpush.msra.mxu1 %v85_v9  ;;  %501 = vmatpush.msra.mxu2 %v85_v9  ;;  %v101_v56 = vld [vmem:[%s1061_s1 + $0xb0] sm:$0xff]  ;;  %v134_v57 = vld [vmem:[%s1061_s1 + $0x1b8] sm:$0xff]  ;;  %v100_v60 = vld [vmem:[%s1061_s1 + $0xa8] sm:$0xff] }
  0x15   :  { %502 = vmatpush.msra.mxu3 %v85_v9  ;;  %172 = vmatpush.msra.mxu0 %v85_v9  ;;  %v153_v59 = vld [vmem:[%s1061_s1 + $0x250] sm:$0xff]  ;;  %v115_v62 = vld [vmem:[%s1061_s1 + $0x120] sm:$0xff]  ;;  %v152_v63 = vld [vmem:[%s1061_s1 + $0x248] sm:$0xff] }
  0x16   :  { %503 = vmatpush.msra.mxu1 %v84_v10  ;;  %504 = vmatpush.msra.mxu2 %v84_v10  ;;  %v133_v61 = vld [vmem:[%s1061_s1 + $0x1b0] sm:$0xff]  ;;  %v99_v0 = vld [vmem:[%s1061_s1 + $0xa0] sm:$0xff]  ;;  %v132_v1 = vld [vmem:[%s1061_s1 + $0x1a8] sm:$0xff] }
  0x17   :  { %505 = vmatpush.msra.mxu3 %v84_v10  ;;  %173 = vmatpush.msra.mxu0 %v84_v10  ;;  %v49_v2 = vld [vmem:[%s1062_s0 + $0x118] sm:$0xff]  ;;  %v151_v5 = vld [vmem:[%s1061_s1 + $0x240] sm:$0xff]  ;;  %v24_v8 = vld [vmem:[%s1062_s0 + $0x50] sm:$0xff] }
  0x18   :  { %506 = vmatpush.msra.mxu1 %v83_v11  ;;  %507 = vmatpush.msra.mxu2 %v83_v11  ;;  %v69_v3 = vld [vmem:[%s1062_s0 + $0x1b8] sm:$0xff]  ;;  %v131_v7 = vld [vmem:[%s1061_s1 + $0x1a0] sm:$0xff]  ;;  %v113_v10 = vld [vmem:[%s1061_s1 + $0x110] sm:$0xff] }
  0x19   :  { %508 = vmatpush.msra.mxu3 %v83_v11  ;;  %174 = vmatpush.msra.mxu0 %v83_v11  ;;  %v114_v4 = vld [vmem:[%s1061_s1 + $0x118] sm:$0xff]  ;;  %v74_v9 = vld [vmem:[%s1062_s0 + $0x1e0] sm:$0xff] }
  0x1a   :  { %509 = vmatpush.msra.mxu1 %v82_v12  ;;  %510 = vmatpush.msra.mxu2 %v82_v12  ;;  %v98_v6 = vld [vmem:[%s1061_s1 + $0x98] sm:$0xff] }
  0x1b   :  { %511 = vmatpush.msra.mxu3 %v82_v12  ;;  %175 = vmatpush.msra.mxu0 %v82_v12  ;;  %v150_v11 = vld [vmem:[%s1061_s1 + $0x238] sm:$0xff]  ;;  %v97_v12 = vld [vmem:[%s1061_s1 + $0x90] sm:$0xff] }
  0x1c   :  { %512 = vmatpush.msra.mxu1 %v81_v13  ;;  %513 = vmatpush.msra.mxu2 %v81_v13 }
  0x1d   :  { %514 = vmatpush.msra.mxu3 %v81_v13  ;;  %176 = vmatpush.msra.mxu0 %v81_v13  ;;  %v130_v13 = vld [vmem:[%s1061_s1 + $0x198] sm:$0xff] }
  0x1e   :  { %515 = vmatpush.msra.mxu1 %v80_v14  ;;  %516 = vmatpush.msra.mxu2 %v80_v14 }
  0x1f   :  { %517 = vmatpush.msra.mxu3 %v80_v14  ;;  %177 = vmatpush.msra.mxu0 %v80_v14  ;;  %v112_v14 = vld [vmem:[%s1061_s1 + $0x108] sm:$0xff] }
  0x20   :  { %518 = vmatpush.msra.mxu1 %v79_v15  ;;  %519 = vmatpush.msra.mxu2 %v79_v15 }
  0x21   :  { %191 = vmatmul.f32.vlgmr.msra.gmra.mxu1 %v34_v16  ;;  %203 = vmatmul.f32.vlgmr.msra.gmra.mxu2 %v54_v17  ;;  %v96_v16 = vld [vmem:[%s1061_s1 + $0x88] sm:$0xff]  ;;  %v129_v17 = vld [vmem:[%s1061_s1 + $0x190] sm:$0xff] }
  0x22   :  { %275 = vmatpush.msrb.mxu2 %v126_v18  ;;  %219 = vmatpush.msrb.mxu1 %v110_v19  ;;  %v111_v18 = vld [vmem:[%s1061_s1 + $0x100] sm:$0xff]  ;;  %v148_v19 = vld [vmem:[%s1061_s1 + $0x228] sm:$0xff] }
  0x23   :  { %520 = vmatpush.msra.mxu3 %v79_v15  ;;  %178 = vmatpush.msra.mxu0 %v79_v15  ;;  %v149_v15 = vld [vmem:[%s1061_s1 + $0x230] sm:$0xff] }
  0x24   :  { %276 = vmatpush.msrb.mxu2 %v125_v20  ;;  %220 = vmatpush.msrb.mxu1 %v109_v21  ;;  %v95_v20 = vld [vmem:[%s1061_s1 + $0x80] sm:$0xff]  ;;  %v128_v21 = vld [vmem:[%s1061_s1 + $0x188] sm:$0xff] }
  0x25   :  { %331 = vmatpush.msrb.mxu3 %v142_v22  ;;  %179 = vmatmul.f32.vlgmr.msra.gmra.mxu0 %v14_v23  ;;  %v15_v22 = vld [vmem:[%s1062_s0 + $0x8] sm:$0xff]  ;;  %v16_v23 = vld [vmem:[%s1062_s0 + $0x10] sm:$0xff] }
  0x26   :  { %277 = vmatpush.msrb.mxu2 %v124_v24  ;;  %221 = vmatpush.msrb.mxu1 %v108_v25  ;;  %v147_v24 = vld [vmem:[%s1061_s1 + $0x220] sm:$0xff] }
  0x27   :  { %332 = vmatpush.msrb.mxu3 %v141_v26  ;;  %387 = vmatpush.msrb.mxu0 %v158_v27  ;;  %v127_v25 = vld [vmem:[%s1061_s1 + $0x180] sm:$0xff]  ;;  %v29_v26 = vld [vmem:[%s1062_s0 + $0x78] sm:$0xff] }
  0x28   :  { %278 = vmatpush.msrb.mxu2 %v123_v28  ;;  %222 = vmatpush.msrb.mxu1 %v107_v29  ;;  %v17_v27 = vld [vmem:[%s1062_s0 + $0x18] sm:$0xff]  ;;  %v145_v29 = vld [vmem:[%s1061_s1 + $0x210] sm:$0xff] }
  0x29   :  { %333 = vmatpush.msrb.mxu3 %v140_v30  ;;  %194 = vmatmul.f32.gmra.mxu1 %v39_v31  ;;  %v146_v28 = vld [vmem:[%s1061_s1 + $0x218] sm:$0xff]  ;;  %v144_v30 = vld [vmem:[%s1061_s1 + $0x208] sm:$0xff]  ;;  %v20_v31 = vld [vmem:[%s1062_s0 + $0x30] sm:$0xff] }
  0x2a   :  { %206 = vmatmul.f32.gmra.mxu2 %v59_v32  ;;  %223 = vmatpush.msrb.mxu1 %v106_v33  ;;  %v21_v32 = vld [vmem:[%s1062_s0 + $0x38] sm:$0xff]  ;;  %v143_v33 = vld [vmem:[%s1061_s1 + $0x200] sm:$0xff] }
  0x2b   :  { %279 = vmatpush.msrb.mxu2 %v122_v34  ;;  %334 = vmatpush.msrb.mxu3 %v139_v35  ;;  %v22_v34 = vld [vmem:[%s1062_s0 + $0x40] sm:$0xff] }
  0x2c   :  { %224 = vmatpush.msrb.mxu1 %v105_v36  ;;  %388 = vmatpush.msrb.mxu0 %v157_v37  ;;  %v18_v35 = vld [vmem:[%s1062_s0 + $0x20] sm:$0xff]  ;;  %v25_v36 = vld [vmem:[%s1062_s0 + $0x58] sm:$0xff] }
  0x2d   :  { %280 = vmatpush.msrb.mxu2 %v121_v38  ;;  %335 = vmatpush.msrb.mxu3 %v138_v39  ;;  %v26_v37 = vld [vmem:[%s1062_s0 + $0x60] sm:$0xff]  ;;  %v27_v38 = vld [vmem:[%s1062_s0 + $0x68] sm:$0xff] }
  0x2e   :  { %225 = vmatpush.msrb.mxu1 %v104_v40  ;;  %389 = vmatpush.msrb.mxu0 %v156_v41  ;;  %v23_v39 = vld [vmem:[%s1062_s0 + $0x48] sm:$0xff]  ;;  %v30_v40 = vld [vmem:[%s1062_s0 + $0x80] sm:$0xff] }
  0x2f   :  { %281 = vmatpush.msrb.mxu2 %v120_v42  ;;  %336 = vmatpush.msrb.mxu3 %v137_v43  ;;  %v31_v41 = vld [vmem:[%s1062_s0 + $0x88] sm:$0xff]  ;;  %v32_v42 = vld [vmem:[%s1062_s0 + $0x90] sm:$0xff] }
  0x30   :  { %226 = vmatpush.msrb.mxu1 %v103_v44  ;;  %390 = vmatpush.msrb.mxu0 %v155_v45  ;;  %v28_v43 = vld [vmem:[%s1062_s0 + $0x70] sm:$0xff]  ;;  %v35_v44 = vld [vmem:[%s1062_s0 + $0xa8] sm:$0xff] }
  0x31   :  { %282 = vmatpush.msrb.mxu2 %v119_v46  ;;  %337 = vmatpush.msrb.mxu3 %v136_v47  ;;  %v36_v45 = vld [vmem:[%s1062_s0 + $0xb0] sm:$0xff]  ;;  %v37_v46 = vld [vmem:[%s1062_s0 + $0xb8] sm:$0xff] }
  0x32   :  { %197 = vmatmul.f32.gmra.mxu1 %v44_v48  ;;  %209 = vmatmul.f32.gmra.mxu2 %v64_v49  ;;  %v33_v47 = vld [vmem:[%s1062_s0 + $0x98] sm:$0xff]  ;;  %v40_v48 = vld [vmem:[%s1062_s0 + $0xd0] sm:$0xff] }
  0x33   :  { %283 = vmatpush.msrb.mxu2 %v118_v50  ;;  %227 = vmatpush.msrb.mxu1 %v102_v51  ;;  %v41_v49 = vld [vmem:[%s1062_s0 + $0xd8] sm:$0xff]  ;;  %v42_v50 = vld [vmem:[%s1062_s0 + $0xe0] sm:$0xff] }
  0x34   :  { %338 = vmatpush.msrb.mxu3 %v135_v52  ;;  %182 = vmatmul.f32.gmra.mxu0 %v19_v53  ;;  %v38_v51 = vld [vmem:[%s1062_s0 + $0xc0] sm:$0xff]  ;;  %v45_v52 = vld [vmem:[%s1062_s0 + $0xf8] sm:$0xff] }
  0x35   :  { %284 = vmatpush.msrb.mxu2 %v117_v54  ;;  %391 = vmatpush.msrb.mxu0 %v154_v55  ;;  %v46_v53 = vld [vmem:[%s1062_s0 + $0x100] sm:$0xff]  ;;  %v47_v54 = vld [vmem:[%s1062_s0 + $0x108] sm:$0xff] }
  0x36   :  { %228 = vmatpush.msrb.mxu1 %v101_v56  ;;  %339 = vmatpush.msrb.mxu3 %v134_v57  ;;  %v43_v55 = vld [vmem:[%s1062_s0 + $0xe8] sm:$0xff]  ;;  %v50_v56 = vld [vmem:[%s1062_s0 + $0x120] sm:$0xff] }
  0x37   :  { %285 = vmatpush.msrb.mxu2 %v116_v58  ;;  %392 = vmatpush.msrb.mxu0 %v153_v59  ;;  %v51_v57 = vld [vmem:[%s1062_s0 + $0x128] sm:$0xff]  ;;  %v52_v58 = vld [vmem:[%s1062_s0 + $0x130] sm:$0xff] }
  0x38   :  { %229 = vmatpush.msrb.mxu1 %v100_v60  ;;  %340 = vmatpush.msrb.mxu3 %v133_v61  ;;  %v48_v59 = vld [vmem:[%s1062_s0 + $0x110] sm:$0xff]  ;;  %v55_v60 = vld [vmem:[%s1062_s0 + $0x148] sm:$0xff] }
  0x39   :  { %286 = vmatpush.msrb.mxu2 %v115_v62  ;;  %393 = vmatpush.msrb.mxu0 %v152_v63  ;;  %v56_v61 = vld [vmem:[%s1062_s0 + $0x150] sm:$0xff]  ;;  %v57_v62 = vld [vmem:[%s1062_s0 + $0x158] sm:$0xff] }
  0x3a   :  { %230 = vmatpush.msrb.mxu1 %v99_v0  ;;  %341 = vmatpush.msrb.mxu3 %v132_v1  ;;  %v53_v63 = vld [vmem:[%s1062_s0 + $0x138] sm:$0xff]  ;;  %v60_v0 = vld [vmem:[%s1062_s0 + $0x170] sm:$0xff] }
  0x3b   :  { %200 = vmatmul.f32.gmra.mxu1 %v49_v2  ;;  %212 = vmatmul.f32.gmra.mxu2 %v69_v3  ;;  %v61_v1 = vld [vmem:[%s1062_s0 + $0x178] sm:$0xff]  ;;  %v62_v2 = vld [vmem:[%s1062_s0 + $0x180] sm:$0xff] }
  0x3c   :  { %287 = vmatpush.msrb.mxu2 %v114_v4  ;;  %394 = vmatpush.msrb.mxu0 %v151_v5  ;;  %v58_v3 = vld [vmem:[%s1062_s0 + $0x160] sm:$0xff]  ;;  %v65_v4 = vld [vmem:[%s1062_s0 + $0x198] sm:$0xff] }
  0x3d   :  { %231 = vmatpush.msrb.mxu1 %v98_v6  ;;  %342 = vmatpush.msrb.mxu3 %v131_v7  ;;  %v66_v5 = vld [vmem:[%s1062_s0 + $0x1a0] sm:$0xff]  ;;  %v67_v6 = vld [vmem:[%s1062_s0 + $0x1a8] sm:$0xff] }
  0x3e   :  { %185 = vmatmul.f32.gmra.mxu0 %v24_v8  ;;  %215 = vmatmul.f32.vlgmr.msra.gmra.mxu3 %v74_v9  ;;  %v63_v7 = vld [vmem:[%s1062_s0 + $0x188] sm:$0xff]  ;;  %v70_v8 = vld [vmem:[%s1062_s0 + $0x1c0] sm:$0xff] }
  0x3f   :  { %288 = vmatpush.msrb.mxu2 %v113_v10  ;;  %395 = vmatpush.msrb.mxu0 %v150_v11  ;;  %v71_v9 = vld [vmem:[%s1062_s0 + $0x1c8] sm:$0xff]  ;;  %v72_v10 = vld [vmem:[%s1062_s0 + $0x1d0] sm:$0xff] }
  0x40   :  { %232 = vmatpush.msrb.mxu1 %v97_v12  ;;  %343 = vmatpush.msrb.mxu3 %v130_v13  ;;  %v68_v11 = vld [vmem:[%s1062_s0 + $0x1b0] sm:$0xff]  ;;  %v75_v13 = vld [vmem:[%s1062_s0 + $0x1e8] sm:$0xff] }
  0x41   :  { %289 = vmatpush.msrb.mxu2 %v112_v14  ;;  %396 = vmatpush.msrb.mxu0 %v149_v15  ;;  %v76_v14 = vld [vmem:[%s1062_s0 + $0x1f0] sm:$0xff]  ;;  %v973_v15 = vld [vmem:[%s1063_s2] ss:$0 sm:$0xff] }
  0x42   :  { %233 = vmatpush.msrb.mxu1 %v96_v16  ;;  %344 = vmatpush.msrb.mxu3 %v129_v17  ;;  %v77_v16 = vld [vmem:[%s1062_s0 + $0x1f8] sm:$0xff] }
  0x43   :  { %290 = vmatpush.msrb.mxu2 %v111_v18  ;;  %397 = vmatpush.msrb.mxu0 %v148_v19  ;;  %v73_v17 = vld [vmem:[%s1062_s0 + $0x1d8] sm:$0xff] }
  0x44   :  { %234 = vmatpush.msrb.mxu1 %v95_v20  ;;  %345 = vmatpush.msrb.mxu3 %v128_v21 }
  0x45   :  { %235 = vmatmul.f32.vlgmr.msrb.gmra.mxu1 %v15_v22  ;;  %291 = vmatmul.f32.vlgmr.msrb.gmra.mxu2 %v16_v23  ;;  %v78_v22 = vld [vmem:[%s1062_s0 + $0x200] sm:$0xff] }
  0x46   :  { %398 = vmatpush.msrb.mxu0 %v147_v24  ;;  %346 = vmatpush.msrb.mxu3 %v127_v25 }
  0x47   :  { %188 = vmatmul.f32.gmra.mxu0 %v29_v26  ;;  %347 = vmatmul.f32.vlgmr.msrb.gmra.mxu3 %v17_v27 }
  0x48   :  { %399 = vmatpush.msrb.mxu0 %v146_v28 }
  0x4a   :  { %400 = vmatpush.msrb.mxu0 %v145_v29 }
  0x4c   :  { %401 = vmatpush.msrb.mxu0 %v144_v30 }
  0x4d   :  { %238 = vmatmul.f32.gmra.mxu1 %v20_v31  ;;  %294 = vmatmul.f32.gmra.mxu2 %v21_v32 }
  0x4e   :  { %402 = vmatpush.msrb.mxu0 %v143_v33 }
  0x4f   :  { %350 = vmatmul.f32.gmra.mxu3 %v22_v34  ;;  %403 = vmatmul.f32.vlgmr.msrb.gmra.mxu0 %v18_v35 }
  0x55   :  { %241 = vmatmul.f32.gmra.mxu1 %v25_v36  ;;  %297 = vmatmul.f32.gmra.mxu2 %v26_v37 }
  0x57   :  { %353 = vmatmul.f32.gmra.mxu3 %v27_v38  ;;  %406 = vmatmul.f32.gmra.mxu0 %v23_v39 }
  0x5d   :  { %244 = vmatmul.f32.gmra.mxu1 %v30_v40  ;;  %300 = vmatmul.f32.gmra.mxu2 %v31_v41 }
  0x5f   :  { %356 = vmatmul.f32.gmra.mxu3 %v32_v42  ;;  %409 = vmatmul.f32.gmra.mxu0 %v28_v43 }
  0x65   :  { %247 = vmatmul.f32.gmra.mxu1 %v35_v44  ;;  %303 = vmatmul.f32.gmra.mxu2 %v36_v45 }
  0x67   :  { %359 = vmatmul.f32.gmra.mxu3 %v37_v46  ;;  %412 = vmatmul.f32.gmra.mxu0 %v33_v47 }
  0x6d   :  { %250 = vmatmul.f32.gmra.mxu1 %v40_v48  ;;  %306 = vmatmul.f32.gmra.mxu2 %v41_v49 }
  0x6f   :  { %362 = vmatmul.f32.gmra.mxu3 %v42_v50  ;;  %415 = vmatmul.f32.gmra.mxu0 %v38_v51 }
  0x75   :  { %253 = vmatmul.f32.gmra.mxu1 %v45_v52  ;;  %309 = vmatmul.f32.gmra.mxu2 %v46_v53 }
  0x77   :  { %365 = vmatmul.f32.gmra.mxu3 %v47_v54  ;;  %418 = vmatmul.f32.gmra.mxu0 %v43_v55 }
  0x7d   :  { %256 = vmatmul.f32.gmra.mxu1 %v50_v56  ;;  %312 = vmatmul.f32.gmra.mxu2 %v51_v57 }
  0x7f   :  { %368 = vmatmul.f32.gmra.mxu3 %v52_v58  ;;  %421 = vmatmul.f32.gmra.mxu0 %v48_v59 }
  0x85   :  { %259 = vmatmul.f32.gmra.mxu1 %v55_v60  ;;  %315 = vmatmul.f32.gmra.mxu2 %v56_v61 }
  0x87   :  { %371 = vmatmul.f32.gmra.mxu3 %v57_v62  ;;  %424 = vmatmul.f32.gmra.mxu0 %v53_v63 }
  0x8d   :  { %262 = vmatmul.f32.gmra.mxu1 %v60_v0  ;;  %318 = vmatmul.f32.gmra.mxu2 %v61_v1 }
  0x8f   :  { %374 = vmatmul.f32.gmra.mxu3 %v62_v2  ;;  %427 = vmatmul.f32.gmra.mxu0 %v58_v3 }
  0x95   :  { %265 = vmatmul.f32.gmra.mxu1 %v65_v4  ;;  %321 = vmatmul.f32.gmra.mxu2 %v66_v5 }
  0x97   :  { %377 = vmatmul.f32.gmra.mxu3 %v67_v6  ;;  %430 = vmatmul.f32.gmra.mxu0 %v63_v7 }
  0x9d   :  { %268 = vmatmul.f32.gmra.mxu1 %v70_v8  ;;  %324 = vmatmul.f32.gmra.mxu2 %v71_v9 }
  0x9e   :  { %v962_v12 = vpop.f32.mrf.mxu1 }
  0x9f   :  { %380 = vmatmul.f32.gmra.mxu3 %v72_v10  ;;  %433 = vmatmul.f32.gmra.mxu0 %v68_v11  ;;  %v193_v11 = vadd.f32 %v973_v15, %v962_v12 }
  0xa2   :  { %v180_v21 = vpop.f32.mrf.mxu0 }
  0xa3   :  { %v181_v37 = vadd.f32 %v973_v15, %v180_v21 }
  0xa4   :  { %v204_v18 = vpop.f32.mrf.mxu2 }
  0xa5   :  { %271 = vmatmul.f32.gmra.mxu1 %v75_v13  ;;  %327 = vmatmul.f32.gmra.mxu2 %v76_v14  ;;  %v982_v19 = vadd.f32 %v973_v15, %v204_v18 }
  0xa6   :  { %v984_v20 = vpop.f32.mrf.mxu1 }
  0xa7   :  { %383 = vmatmul.f32.gmra.mxu3 %v77_v16  ;;  %436 = vmatmul.f32.gmra.mxu0 %v73_v17 }
  0xad   :  { %v207_v23 = vpop.f32.mrf.mxu2 }
  0xae   :  { %v990_v24 = vadd.f32 %v973_v15, %v207_v23 }
  0xaf   :  { %439 = vmatmul.f32.gmra.mxu0 %v78_v22  ;;  %v992_v25 = vpop.f32.mrf.mxu1 }
  0xb1   :  { %v183_v26 = vpop.f32.mrf.mxu0 }
  0xb2   :  { %v184_v45 = vadd.f32 %v973_v15, %v183_v26 }
  0xb5   :  { %v210_v27 = vpop.f32.mrf.mxu2 }
  0xb6   :  { %v995_v28 = vadd.f32 %v973_v15, %v210_v27  ;;  %v196_v27 = vadd.f32 %v973_v15, %v984_v20 }
  0xb8   :  { %v997_v29 = vpop.f32.mrf.mxu1 }
  0xbb   :  { %v186_v30 = vpop.f32.mrf.mxu0 }
  0xbc   :  { %v187_v55 = vadd.f32 %v973_v15, %v186_v30 }
  0xbe   :  { %v213_v31 = vpop.f32.mrf.mxu2 }
  0xbf   :  { %v1000_v32 = vadd.f32 %v973_v15, %v213_v31 }
  0xc1   :  { %v216_v33 = vpop.f32.mrf.mxu3 }
  0xc2   :  { %v1003_v34 = vadd.f32 %v973_v15, %v216_v33  ;;  %v236_v35 = vpop.f32.mrf.mxu1 }
  0xc3   :  { %v237_v38 = vadd.f32 %v236_v35, %v181_v37 }
  0xc4   :  { %v189_v36 = vpop.f32.mrf.mxu0 }
  0xc5   :  { %v190_v1 = vadd.f32 %v973_v15, %v189_v36 }
  0xc8   :  { %v292_v39 = vpop.f32.mrf.mxu2 }
  0xc9   :  { %v293_v40 = vadd.f32 %v292_v39, %v237_v38 }
  0xca   :  { %v239_v41 = vpop.f32.mrf.mxu1  ;;  %v348_v42 = vpop.f32.mrf.mxu3 }
  0xcb   :  { %v349_v43 = vadd.f32 %v348_v42, %v293_v40  ;;  %v240_v47 = vadd.f32 %v239_v41, %v184_v45  ;;  %v199_v40 = vadd.f32 %v973_v15, %v992_v25 }
  0xcc   :  { %v404_v44 = vpop.f32.mrf.mxu0 }
  0xcd   :  { %v405_v46 = vadd.f32 %v404_v44, %v349_v43 }
  0xcf   :  { %v443_v48 = vmax.f32 %v405_v46, 0.0 }
  0xd0   :  { %v295_v49 = vpop.f32.mrf.mxu2 }
  0xd1   :  { %456 = vst [vmem:[%s1064_s3] sm:$0xff] %v443_v48  ;;  %v296_v50 = vadd.f32 %v295_v49, %v240_v47  ;;  %v202_v49 = vadd.f32 %v973_v15, %v997_v29 }
  0xd2   :  { %v242_v51 = vpop.f32.mrf.mxu1  ;;  %v351_v52 = vpop.f32.mrf.mxu3 }
  0xd3   :  { %v352_v53 = vadd.f32 %v351_v52, %v296_v50  ;;  %v243_v57 = vadd.f32 %v242_v51, %v187_v55 }
  0xd4   :  { %v407_v54 = vpop.f32.mrf.mxu0 }
  0xd5   :  { %v408_v56 = vadd.f32 %v407_v54, %v352_v53 }
  0xd7   :  { %v444_v58 = vmax.f32 %v408_v56, 0.0 }
  0xd8   :  { %v298_v59 = vpop.f32.mrf.mxu2 }
  0xd9   :  { %457 = vst [vmem:[%s1064_s3 + $0x8] sm:$0xff] %v444_v58  ;;  %v299_v60 = vadd.f32 %v298_v59, %v243_v57 }
  0xda   :  { %v245_v61 = vpop.f32.mrf.mxu1  ;;  %v354_v62 = vpop.f32.mrf.mxu3 }
  0xdb   :  { %v355_v63 = vadd.f32 %v354_v62, %v299_v60  ;;  %v246_v3 = vadd.f32 %v245_v61, %v190_v1 }
  0xdc   :  { %v410_v0 = vpop.f32.mrf.mxu0 }
  0xdd   :  { %v411_v2 = vadd.f32 %v410_v0, %v355_v63 }
  0xdf   :  { %v445_v4 = vmax.f32 %v411_v2, 0.0 }
  0xe0   :  { %v301_v5 = vpop.f32.mrf.mxu2 }
  0xe1   :  { %458 = vst [vmem:[%s1064_s3 + $0x10] sm:$0xff] %v445_v4  ;;  %v302_v6 = vadd.f32 %v301_v5, %v246_v3 }
  0xe2   :  { %v248_v7 = vpop.f32.mrf.mxu1  ;;  %v357_v8 = vpop.f32.mrf.mxu3 }
  0xe3   :  { %v358_v9 = vadd.f32 %v357_v8, %v302_v6  ;;  %v249_v14 = vadd.f32 %v248_v7, %v193_v11 }
  0xe4   :  { %v413_v10 = vpop.f32.mrf.mxu0 }
  0xe5   :  { %v414_v13 = vadd.f32 %v413_v10, %v358_v9 }
  0xe7   :  { %v446_v16 = vmax.f32 %v414_v13, 0.0 }
  0xe8   :  { %v304_v17 = vpop.f32.mrf.mxu2 }
  0xe9   :  { %459 = vst [vmem:[%s1064_s3 + $0x18] sm:$0xff] %v446_v16  ;;  %v305_v18 = vadd.f32 %v304_v17, %v249_v14 }
  0xea   :  { %v251_v21 = vpop.f32.mrf.mxu1  ;;  %v360_v22 = vpop.f32.mrf.mxu3 }
  0xeb   :  { %v361_v23 = vadd.f32 %v360_v22, %v305_v18  ;;  %v252_v31 = vadd.f32 %v251_v21, %v196_v27 }
  0xec   :  { %v416_v26 = vpop.f32.mrf.mxu0 }
  0xed   :  { %v417_v30 = vadd.f32 %v416_v26, %v361_v23 }
  0xef   :  { %v447_v33 = vmax.f32 %v417_v30, 0.0 }
  0xf0   :  { %v307_v12 = vpop.f32.mrf.mxu2 }
  0xf1   :  { %460 = vst [vmem:[%s1064_s3 + $0x20] sm:$0xff] %v447_v33  ;;  %v308_v35 = vadd.f32 %v307_v12, %v252_v31 }
  0xf2   :  { %v254_v36 = vpop.f32.mrf.mxu1  ;;  %v363_v37 = vpop.f32.mrf.mxu3 }
  0xf3   :  { %v364_v38 = vadd.f32 %v363_v37, %v308_v35  ;;  %v255_v42 = vadd.f32 %v254_v36, %v199_v40 }
  0xf4   :  { %v419_v39 = vpop.f32.mrf.mxu0 }
  0xf5   :  { %v420_v41 = vadd.f32 %v419_v39, %v364_v38 }
  0xf7   :  { %v448_v43 = vmax.f32 %v420_v41, 0.0 }
  0xf8   :  { %v310_v20 = vpop.f32.mrf.mxu2 }
  0xf9   :  { %461 = vst [vmem:[%s1064_s3 + $0x28] sm:$0xff] %v448_v43  ;;  %v311_v44 = vadd.f32 %v310_v20, %v255_v42 }
  0xfa   :  { %v257_v45 = vpop.f32.mrf.mxu1  ;;  %v366_v46 = vpop.f32.mrf.mxu3 }
  0xfb   :  { %v367_v47 = vadd.f32 %v366_v46, %v311_v44  ;;  %v258_v51 = vadd.f32 %v257_v45, %v202_v49 }
  0xfc   :  { %v422_v48 = vpop.f32.mrf.mxu0 }
  0xfd   :  { %v423_v50 = vadd.f32 %v422_v48, %v367_v47 }
  0xff   :  { %v449_v52 = vmax.f32 %v423_v50, 0.0 }
 0x100   :  { %v313_v25 = vpop.f32.mrf.mxu2 }
 0x101   :  { %462 = vst [vmem:[%s1064_s3 + $0x30] sm:$0xff] %v449_v52  ;;  %v314_v53 = vadd.f32 %v313_v25, %v258_v51 }
 0x102   :  { %v260_v54 = vpop.f32.mrf.mxu1  ;;  %v369_v55 = vpop.f32.mrf.mxu3 }
 0x103   :  { %v370_v56 = vadd.f32 %v369_v55, %v314_v53  ;;  %v261_v59 = vadd.f32 %v260_v54, %v982_v19 }
 0x104   :  { %v425_v57 = vpop.f32.mrf.mxu0 }
 0x105   :  { %v426_v58 = vadd.f32 %v425_v57, %v370_v56 }
 0x107   :  { %v450_v60 = vmax.f32 %v426_v58, 0.0 }
 0x108   :  { %v316_v61 = vpop.f32.mrf.mxu2 }
 0x109   :  { %463 = vst [vmem:[%s1064_s3 + $0x38] sm:$0xff] %v450_v60  ;;  %v317_v15 = vadd.f32 %v316_v61, %v261_v59 }
 0x10a   :  { %v263_v29 = vpop.f32.mrf.mxu1  ;;  %v372_v62 = vpop.f32.mrf.mxu3 }
 0x10b   :  { %v373_v63 = vadd.f32 %v372_v62, %v317_v15  ;;  %v264_v2 = vadd.f32 %v263_v29, %v990_v24 }
 0x10c   :  { %v428_v0 = vpop.f32.mrf.mxu0 }
 0x10d   :  { %v429_v1 = vadd.f32 %v428_v0, %v373_v63 }
 0x10f   :  { %v451_v3 = vmax.f32 %v429_v1, 0.0 }
 0x110   :  { %v319_v4 = vpop.f32.mrf.mxu2 }
 0x111   :  { %464 = vst [vmem:[%s1064_s3 + $0x40] sm:$0xff] %v451_v3  ;;  %v320_v19 = vadd.f32 %v319_v4, %v264_v2 }
 0x112   :  { %v266_v5 = vpop.f32.mrf.mxu1  ;;  %v375_v6 = vpop.f32.mrf.mxu3 }
 0x113   :  { %v376_v7 = vadd.f32 %v375_v6, %v320_v19  ;;  %v267_v10 = vadd.f32 %v266_v5, %v995_v28 }
 0x114   :  { %v431_v8 = vpop.f32.mrf.mxu0 }
 0x115   :  { %v432_v9 = vadd.f32 %v431_v8, %v376_v7 }
 0x117   :  { %v452_v11 = vmax.f32 %v432_v9, 0.0 }
 0x118   :  { %v322_v13 = vpop.f32.mrf.mxu2 }
 0x119   :  { %465 = vst [vmem:[%s1064_s3 + $0x48] sm:$0xff] %v452_v11  ;;  %v323_v24 = vadd.f32 %v322_v13, %v267_v10 }
 0x11a   :  { %v269_v14 = vpop.f32.mrf.mxu1  ;;  %v378_v16 = vpop.f32.mrf.mxu3 }
 0x11b   :  { %v379_v17 = vadd.f32 %v378_v16, %v323_v24  ;;  %v270_v22 = vadd.f32 %v269_v14, %v1000_v32 }
 0x11c   :  { %v434_v18 = vpop.f32.mrf.mxu0 }
 0x11d   :  { %v435_v21 = vadd.f32 %v434_v18, %v379_v17 }
 0x11f   :  { %v453_v23 = vmax.f32 %v435_v21, 0.0 }
 0x120   :  { %v325_v26 = vpop.f32.mrf.mxu2 }
 0x121   :  { %466 = vst [vmem:[%s1064_s3 + $0x50] sm:$0xff] %v453_v23  ;;  %v326_v28 = vadd.f32 %v325_v26, %v270_v22 }
 0x122   :  { %v381_v27 = vpop.f32.mrf.mxu3  ;;  %v272_v31 = vpop.f32.mrf.mxu1 }
 0x123   :  { %v382_v30 = vadd.f32 %v381_v27, %v326_v28  ;;  %v273_v35 = vadd.f32 %v272_v31, %v1003_v34 }
 0x124   :  { %v437_v33 = vpop.f32.mrf.mxu0 }
 0x125   :  { %v438_v12 = vadd.f32 %v437_v33, %v382_v30 }
 0x127   :  { %v454_v36 = vmax.f32 %v438_v12, 0.0 }
 0x128   :  { %v328_v37 = vpop.f32.mrf.mxu2 }
 0x129   :  { %467 = vst [vmem:[%s1064_s3 + $0x58] sm:$0xff] %v454_v36  ;;  %v329_v32 = vadd.f32 %v328_v37, %v273_v35 }
 0x12a   :  { %v384_v38 = vpop.f32.mrf.mxu3 }
 0x12b   :  { %v385_v39 = vadd.f32 %v384_v38, %v329_v32 }
 0x12c   :  { %v440_v40 = vpop.f32.mrf.mxu0 }
 0x12d   :  { %v441_v41 = vadd.f32 %v440_v40, %v385_v39 }
 0x12f   :  { %v455_v42 = vmax.f32 %v441_v41, 0.0 }
 0x131   :  { %468 = vst [vmem:[%s1064_s3 + $0x60] sm:$0xff] %v455_v42 }

// kernel: fwd.7
= control target key start
LH: loop header
LB: loop body
LE: loop exit
PB: predicated region body
PF: predicated region fallthrough
CT: control target
= control target key end

     0   :  { %s10776_s1 = inlined_call_operand.vmem [shape: f32[3200,512], index: 1, kind: input, shape index: {}]   ;;  %s10777_s0 = inlined_call_operand.vmem [shape: f32[8,3200], index: 0, kind: input, shape index: {}]   ;;  %s10778_s2 = inlined_call_operand.vmem [shape: f32[1,512], index: 2, kind: input, shape index: {}]   ;;  %s10779_s3 = inlined_call_operand.vmem [shape: f32[512,512], index: 3, kind: input, shape index: {}]   ;;  %s10780_s5 = inlined_call_operand.vmem [shape: f32[512,128], index: 5, kind: input, shape index: {}]   ;;  %s10781_s6 = inlined_call_operand.vmem [shape: f32[1,128], index: 6, kind: input, shape index: {}]   ;;  %s10782_s4 = inlined_call_operand.vmem [shape: f32[1,512], index: 4, kind: input, shape index: {}]   ;;  %s10783_s7 = inlined_call_operand.vmem [shape: f32[8,128], index: 7, kind: output, shape index: {}]  }
   0x1   :  { %v111_v0 = vld [vmem:[%s10776_s1 + $0x1e0] sm:$0xff] }
   0x2   :  { %v175_v1 = vld [vmem:[%s10776_s1 + $0x3e0] sm:$0xff]  ;;  %1661 = vmatpush.msra.mxu0 %v111_v0 }
   0x3   :  { %v239_v2 = vld [vmem:[%s10776_s1 + $0x5e0] sm:$0xff]  ;;  %1681 = vmatpush.msra.mxu1 %v175_v1 }
   0x4   :  { %v107_v3 = vld [vmem:[%s10776_s1 + $0x1c0] sm:$0xff]  ;;  %1701 = vmatpush.msra.mxu2 %v239_v2 }
   0x5   :  { %v171_v4 = vld [vmem:[%s10776_s1 + $0x3c0] sm:$0xff]  ;;  %1662 = vmatpush.msra.mxu0 %v107_v3 }
   0x6   :  { %v235_v5 = vld [vmem:[%s10776_s1 + $0x5c0] sm:$0xff]  ;;  %1682 = vmatpush.msra.mxu1 %v171_v4 }
   0x7   :  { %v303_v6 = vld [vmem:[%s10776_s1 + $0x7e0] sm:$0xff]  ;;  %1702 = vmatpush.msra.mxu2 %v235_v5 }
   0x8   :  { %v103_v7 = vld [vmem:[%s10776_s1 + $0x1a0] sm:$0xff]  ;;  %1721 = vmatpush.msra.mxu3 %v303_v6 }
   0x9   :  { %v167_v8 = vld [vmem:[%s10776_s1 + $0x3a0] sm:$0xff]  ;;  %1663 = vmatpush.msra.mxu0 %v103_v7 }
   0xa   :  { %v231_v9 = vld [vmem:[%s10776_s1 + $0x5a0] sm:$0xff]  ;;  %1683 = vmatpush.msra.mxu1 %v167_v8 }
   0xb   :  { %v299_v10 = vld [vmem:[%s10776_s1 + $0x7c0] sm:$0xff]  ;;  %1703 = vmatpush.msra.mxu2 %v231_v9 }
   0xc   :  { %v99_v11 = vld [vmem:[%s10776_s1 + $0x180] sm:$0xff]  ;;  %1722 = vmatpush.msra.mxu3 %v299_v10 }
   0xd   :  { %v163_v12 = vld [vmem:[%s10776_s1 + $0x380] sm:$0xff]  ;;  %1664 = vmatpush.msra.mxu0 %v99_v11 }
   0xe   :  { %v227_v13 = vld [vmem:[%s10776_s1 + $0x580] sm:$0xff]  ;;  %1684 = vmatpush.msra.mxu1 %v163_v12 }
   0xf   :  { %v295_v14 = vld [vmem:[%s10776_s1 + $0x7a0] sm:$0xff]  ;;  %1704 = vmatpush.msra.mxu2 %v227_v13 }
  0x10   :  { %v95_v15 = vld [vmem:[%s10776_s1 + $0x160] sm:$0xff]  ;;  %1723 = vmatpush.msra.mxu3 %v295_v14 }
  0x11   :  { %v159_v16 = vld [vmem:[%s10776_s1 + $0x360] sm:$0xff]  ;;  %1665 = vmatpush.msra.mxu0 %v95_v15 }
  0x12   :  { %v223_v17 = vld [vmem:[%s10776_s1 + $0x560] sm:$0xff]  ;;  %1685 = vmatpush.msra.mxu1 %v159_v16 }
  0x13   :  { %v291_v18 = vld [vmem:[%s10776_s1 + $0x780] sm:$0xff]  ;;  %1705 = vmatpush.msra.mxu2 %v223_v17 }
  0x14   :  { %v91_v19 = vld [vmem:[%s10776_s1 + $0x140] sm:$0xff]  ;;  %1724 = vmatpush.msra.mxu3 %v291_v18 }
  0x15   :  { %v155_v20 = vld [vmem:[%s10776_s1 + $0x340] sm:$0xff]  ;;  %1666 = vmatpush.msra.mxu0 %v91_v19 }
  0x16   :  { %v219_v21 = vld [vmem:[%s10776_s1 + $0x540] sm:$0xff]  ;;  %1686 = vmatpush.msra.mxu1 %v155_v20 }
  0x17   :  { %v287_v22 = vld [vmem:[%s10776_s1 + $0x760] sm:$0xff]  ;;  %1706 = vmatpush.msra.mxu2 %v219_v21 }
  0x18   :  { %v87_v23 = vld [vmem:[%s10776_s1 + $0x120] sm:$0xff]  ;;  %1725 = vmatpush.msra.mxu3 %v287_v22 }
  0x19   :  { %v151_v24 = vld [vmem:[%s10776_s1 + $0x320] sm:$0xff]  ;;  %1667 = vmatpush.msra.mxu0 %v87_v23 }
  0x1a   :  { %v215_v25 = vld [vmem:[%s10776_s1 + $0x520] sm:$0xff]  ;;  %1687 = vmatpush.msra.mxu1 %v151_v24 }
  0x1b   :  { %v283_v26 = vld [vmem:[%s10776_s1 + $0x740] sm:$0xff]  ;;  %1707 = vmatpush.msra.mxu2 %v215_v25 }
  0x1c   :  { %v83_v27 = vld [vmem:[%s10776_s1 + $0x100] sm:$0xff]  ;;  %1726 = vmatpush.msra.mxu3 %v283_v26 }
  0x1d   :  { %v147_v28 = vld [vmem:[%s10776_s1 + $0x300] sm:$0xff]  ;;  %1668 = vmatpush.msra.mxu0 %v83_v27 }
  0x1e   :  { %v211_v29 = vld [vmem:[%s10776_s1 + $0x500] sm:$0xff]  ;;  %1688 = vmatpush.msra.mxu1 %v147_v28 }
  0x1f   :  { %v279_v30 = vld [vmem:[%s10776_s1 + $0x720] sm:$0xff]  ;;  %1708 = vmatpush.msra.mxu2 %v211_v29 }
  0x20   :  { %v79_v31 = vld [vmem:[%s10776_s1 + $0xe0] sm:$0xff]  ;;  %1727 = vmatpush.msra.mxu3 %v279_v30 }
  0x21   :  { %v143_v32 = vld [vmem:[%s10776_s1 + $0x2e0] sm:$0xff]  ;;  %1669 = vmatpush.msra.mxu0 %v79_v31 }
  0x22   :  { %v207_v33 = vld [vmem:[%s10776_s1 + $0x4e0] sm:$0xff]  ;;  %1689 = vmatpush.msra.mxu1 %v143_v32 }
  0x23   :  { %v275_v34 = vld [vmem:[%s10776_s1 + $0x700] sm:$0xff]  ;;  %1709 = vmatpush.msra.mxu2 %v207_v33 }
  0x24   :  { %v75_v35 = vld [vmem:[%s10776_s1 + $0xc0] sm:$0xff]  ;;  %1728 = vmatpush.msra.mxu3 %v275_v34 }
  0x25   :  { %v139_v36 = vld [vmem:[%s10776_s1 + $0x2c0] sm:$0xff]  ;;  %1670 = vmatpush.msra.mxu0 %v75_v35 }
  0x26   :  { %v203_v37 = vld [vmem:[%s10776_s1 + $0x4c0] sm:$0xff]  ;;  %1690 = vmatpush.msra.mxu1 %v139_v36 }
  0x27   :  { %v271_v38 = vld [vmem:[%s10776_s1 + $0x6e0] sm:$0xff]  ;;  %1710 = vmatpush.msra.mxu2 %v203_v37 }
  0x28   :  { %v71_v39 = vld [vmem:[%s10776_s1 + $0xa0] sm:$0xff]  ;;  %1729 = vmatpush.msra.mxu3 %v271_v38 }
  0x29   :  { %v135_v40 = vld [vmem:[%s10776_s1 + $0x2a0] sm:$0xff]  ;;  %1671 = vmatpush.msra.mxu0 %v71_v39 }
  0x2a   :  { %v199_v41 = vld [vmem:[%s10776_s1 + $0x4a0] sm:$0xff]  ;;  %1691 = vmatpush.msra.mxu1 %v135_v40 }
  0x2b   :  { %v267_v42 = vld [vmem:[%s10776_s1 + $0x6c0] sm:$0xff]  ;;  %1711 = vmatpush.msra.mxu2 %v199_v41 }
  0x2c   :  { %v67_v43 = vld [vmem:[%s10776_s1 + $0x80] sm:$0xff]  ;;  %1730 = vmatpush.msra.mxu3 %v267_v42 }
  0x2d   :  { %v131_v44 = vld [vmem:[%s10776_s1 + $0x280] sm:$0xff]  ;;  %1672 = vmatpush.msra.mxu0 %v67_v43 }
  0x2e   :  { %v195_v45 = vld [vmem:[%s10776_s1 + $0x480] sm:$0xff]  ;;  %1692 = vmatpush.msra.mxu1 %v131_v44 }
  0x2f   :  { %v263_v46 = vld [vmem:[%s10776_s1 + $0x6a0] sm:$0xff]  ;;  %1712 = vmatpush.msra.mxu2 %v195_v45 }
  0x30   :  { %v63_v47 = vld [vmem:[%s10776_s1 + $0x60] sm:$0xff]  ;;  %1731 = vmatpush.msra.mxu3 %v263_v46 }
  0x31   :  { %v127_v48 = vld [vmem:[%s10776_s1 + $0x260] sm:$0xff]  ;;  %1673 = vmatpush.msra.mxu0 %v63_v47 }
  0x32   :  { %v191_v49 = vld [vmem:[%s10776_s1 + $0x460] sm:$0xff]  ;;  %1693 = vmatpush.msra.mxu1 %v127_v48 }
  0x33   :  { %v259_v50 = vld [vmem:[%s10776_s1 + $0x680] sm:$0xff]  ;;  %1713 = vmatpush.msra.mxu2 %v191_v49 }
  0x34   :  { %v59_v51 = vld [vmem:[%s10776_s1 + $0x40] sm:$0xff]  ;;  %1732 = vmatpush.msra.mxu3 %v259_v50 }
  0x35   :  { %v123_v52 = vld [vmem:[%s10776_s1 + $0x240] sm:$0xff]  ;;  %1674 = vmatpush.msra.mxu0 %v59_v51 }
  0x36   :  { %v187_v53 = vld [vmem:[%s10776_s1 + $0x440] sm:$0xff]  ;;  %1694 = vmatpush.msra.mxu1 %v123_v52 }
  0x37   :  { %v255_v54 = vld [vmem:[%s10776_s1 + $0x660] sm:$0xff]  ;;  %1714 = vmatpush.msra.mxu2 %v187_v53 }
  0x38   :  { %v55_v55 = vld [vmem:[%s10776_s1 + $0x20] sm:$0xff]  ;;  %1733 = vmatpush.msra.mxu3 %v255_v54 }
  0x39   :  { %v119_v56 = vld [vmem:[%s10776_s1 + $0x220] sm:$0xff]  ;;  %1675 = vmatpush.msra.mxu0 %v55_v55 }
  0x3a   :  { %v183_v57 = vld [vmem:[%s10776_s1 + $0x420] sm:$0xff]  ;;  %1695 = vmatpush.msra.mxu1 %v119_v56 }
  0x3b   :  { %v251_v58 = vld [vmem:[%s10776_s1 + $0x640] sm:$0xff]  ;;  %1715 = vmatpush.msra.mxu2 %v183_v57 }
  0x3c   :  { %v51_v59 = vld [vmem:[%s10776_s1] sm:$0xff]  ;;  %1734 = vmatpush.msra.mxu3 %v251_v58 }
  0x3d   :  { %v115_v60 = vld [vmem:[%s10776_s1 + $0x200] sm:$0xff]  ;;  %1676 = vmatpush.msra.mxu0 %v51_v59 }
  0x3e   :  { %v179_v61 = vld [vmem:[%s10776_s1 + $0x400] sm:$0xff]  ;;  %1696 = vmatpush.msra.mxu1 %v115_v60 }
  0x3f   :  { %v247_v62 = vld [vmem:[%s10776_s1 + $0x620] sm:$0xff]  ;;  %1716 = vmatpush.msra.mxu2 %v179_v61 }
  0x40   :  { %v367_v63 = vld [vmem:[%s10776_s1 + $0x9e0] sm:$0xff]  ;;  %1735 = vmatpush.msra.mxu3 %v247_v62 }
  0x41   :  { %v431_v0 = vld [vmem:[%s10776_s1 + $0xbe0] sm:$0xff]  ;;  %1741 = vmatpush.msrb.mxu0 %v367_v63 }
  0x42   :  { %v495_v1 = vld [vmem:[%s10776_s1 + $0xde0] sm:$0xff]  ;;  %1761 = vmatpush.msrb.mxu1 %v431_v0  ;;  %v27_v0 = vld [vmem:[%s10777_s0 + $0x8] sm:$0xff] }
  0x43   :  { %v243_v2 = vld [vmem:[%s10776_s1 + $0x600] sm:$0xff]  ;;  %1781 = vmatpush.msrb.mxu2 %v495_v1  ;;  %v28_v1 = vld [vmem:[%s10777_s0 + $0x10] sm:$0xff]  ;;  %1697 = vmatmul.f32.vlgmr.msra.gmra.mxu1 %v27_v0 }
  0x44   :  { %v363_v3 = vld [vmem:[%s10776_s1 + $0x9c0] sm:$0xff]  ;;  %1736 = vmatpush.msra.mxu3 %v243_v2  ;;  %1717 = vmatmul.f32.vlgmr.msra.gmra.mxu2 %v28_v1 }
  0x45   :  { %v427_v4 = vld [vmem:[%s10776_s1 + $0xbc0] sm:$0xff]  ;;  %1742 = vmatpush.msrb.mxu0 %v363_v3 }
  0x46   :  { %v491_v5 = vld [vmem:[%s10776_s1 + $0xdc0] sm:$0xff]  ;;  %1762 = vmatpush.msrb.mxu1 %v427_v4 }
  0x47   :  { %v559_v6 = vld [vmem:[%s10776_s1 + $0xfe0] sm:$0xff]  ;;  %1782 = vmatpush.msrb.mxu2 %v491_v5 }
  0x48   :  { %v359_v7 = vld [vmem:[%s10776_s1 + $0x9a0] sm:$0xff]  ;;  %1801 = vmatpush.msrb.mxu3 %v559_v6 }
  0x49   :  { %v423_v8 = vld [vmem:[%s10776_s1 + $0xba0] sm:$0xff]  ;;  %1743 = vmatpush.msrb.mxu0 %v359_v7  ;;  %v29_v7 = vld [vmem:[%s10777_s0 + $0x18] sm:$0xff] }
  0x4a   :  { %v487_v9 = vld [vmem:[%s10776_s1 + $0xda0] sm:$0xff]  ;;  %1763 = vmatpush.msrb.mxu1 %v423_v8  ;;  %1737 = vmatmul.f32.vlgmr.msra.gmra.mxu3 %v29_v7 }
  0x4b   :  { %v555_v10 = vld [vmem:[%s10776_s1 + $0xfc0] sm:$0xff]  ;;  %1783 = vmatpush.msrb.mxu2 %v487_v9 }
  0x4c   :  { %v355_v11 = vld [vmem:[%s10776_s1 + $0x980] sm:$0xff]  ;;  %1802 = vmatpush.msrb.mxu3 %v555_v10 }
  0x4d   :  { %v419_v12 = vld [vmem:[%s10776_s1 + $0xb80] sm:$0xff]  ;;  %1744 = vmatpush.msrb.mxu0 %v355_v11 }
  0x4e   :  { %v483_v13 = vld [vmem:[%s10776_s1 + $0xd80] sm:$0xff]  ;;  %1764 = vmatpush.msrb.mxu1 %v419_v12 }
  0x4f   :  { %v551_v14 = vld [vmem:[%s10776_s1 + $0xfa0] sm:$0xff]  ;;  %1784 = vmatpush.msrb.mxu2 %v483_v13 }
  0x50   :  { %v351_v15 = vld [vmem:[%s10776_s1 + $0x960] sm:$0xff]  ;;  %1803 = vmatpush.msrb.mxu3 %v551_v14 }
  0x51   :  { %v415_v16 = vld [vmem:[%s10776_s1 + $0xb60] sm:$0xff]  ;;  %1745 = vmatpush.msrb.mxu0 %v351_v15 }
  0x52   :  { %v479_v17 = vld [vmem:[%s10776_s1 + $0xd60] sm:$0xff]  ;;  %1765 = vmatpush.msrb.mxu1 %v415_v16 }
  0x53   :  { %v547_v18 = vld [vmem:[%s10776_s1 + $0xf80] sm:$0xff]  ;;  %1785 = vmatpush.msrb.mxu2 %v479_v17 }
  0x54   :  { %v347_v19 = vld [vmem:[%s10776_s1 + $0x940] sm:$0xff]  ;;  %1804 = vmatpush.msrb.mxu3 %v547_v18 }
  0x55   :  { %v411_v20 = vld [vmem:[%s10776_s1 + $0xb40] sm:$0xff]  ;;  %1746 = vmatpush.msrb.mxu0 %v347_v19  ;;  %v32_v19 = vld [vmem:[%s10777_s0 + $0x30] sm:$0xff] }
  0x56   :  { %v475_v21 = vld [vmem:[%s10776_s1 + $0xd40] sm:$0xff]  ;;  %1766 = vmatpush.msrb.mxu1 %v411_v20 }
  0x57   :  { %v543_v22 = vld [vmem:[%s10776_s1 + $0xf60] sm:$0xff]  ;;  %1786 = vmatpush.msrb.mxu2 %v475_v21 }
  0x58   :  { %v343_v23 = vld [vmem:[%s10776_s1 + $0x920] sm:$0xff]  ;;  %1805 = vmatpush.msrb.mxu3 %v543_v22 }
  0x59   :  { %v407_v24 = vld [vmem:[%s10776_s1 + $0xb20] sm:$0xff]  ;;  %1747 = vmatpush.msrb.mxu0 %v343_v23 }
  0x5a   :  { %v471_v25 = vld [vmem:[%s10776_s1 + $0xd20] sm:$0xff]  ;;  %1767 = vmatpush.msrb.mxu1 %v407_v24 }
  0x5b   :  { %v539_v26 = vld [vmem:[%s10776_s1 + $0xf40] sm:$0xff]  ;;  %1787 = vmatpush.msrb.mxu2 %v471_v25  ;;  %v33_v25 = vld [vmem:[%s10777_s0 + $0x38] sm:$0xff] }
  0x5c   :  { %v339_v27 = vld [vmem:[%s10776_s1 + $0x900] sm:$0xff]  ;;  %1806 = vmatpush.msrb.mxu3 %v539_v26 }
  0x5d   :  { %v403_v28 = vld [vmem:[%s10776_s1 + $0xb00] sm:$0xff]  ;;  %1748 = vmatpush.msrb.mxu0 %v339_v27 }
  0x5e   :  { %v467_v29 = vld [vmem:[%s10776_s1 + $0xd00] sm:$0xff]  ;;  %1768 = vmatpush.msrb.mxu1 %v403_v28 }
  0x5f   :  { %v535_v30 = vld [vmem:[%s10776_s1 + $0xf20] sm:$0xff]  ;;  %1788 = vmatpush.msrb.mxu2 %v467_v29 }
  0x60   :  { %v335_v31 = vld [vmem:[%s10776_s1 + $0x8e0] sm:$0xff]  ;;  %1807 = vmatpush.msrb.mxu3 %v535_v30  ;;  %v31_v30 = vld [vmem:[%s10777_s0 + $0x28] sm:$0xff] }
  0x61   :  { %v399_v32 = vld [vmem:[%s10776_s1 + $0xae0] sm:$0xff]  ;;  %1749 = vmatpush.msrb.mxu0 %v335_v31 }
  0x62   :  { %v463_v33 = vld [vmem:[%s10776_s1 + $0xce0] sm:$0xff]  ;;  %1769 = vmatpush.msrb.mxu1 %v399_v32 }
  0x63   :  { %v531_v34 = vld [vmem:[%s10776_s1 + $0xf00] sm:$0xff]  ;;  %1789 = vmatpush.msrb.mxu2 %v463_v33 }
  0x64   :  { %v331_v35 = vld [vmem:[%s10776_s1 + $0x8c0] sm:$0xff]  ;;  %1808 = vmatpush.msrb.mxu3 %v531_v34 }
  0x65   :  { %v395_v36 = vld [vmem:[%s10776_s1 + $0xac0] sm:$0xff]  ;;  %1750 = vmatpush.msrb.mxu0 %v331_v35 }
  0x66   :  { %v459_v37 = vld [vmem:[%s10776_s1 + $0xcc0] sm:$0xff]  ;;  %1770 = vmatpush.msrb.mxu1 %v395_v36 }
  0x67   :  { %v527_v38 = vld [vmem:[%s10776_s1 + $0xee0] sm:$0xff]  ;;  %1790 = vmatpush.msrb.mxu2 %v459_v37 }
  0x68   :  { %v327_v39 = vld [vmem:[%s10776_s1 + $0x8a0] sm:$0xff]  ;;  %1809 = vmatpush.msrb.mxu3 %v527_v38 }
  0x69   :  { %v391_v40 = vld [vmem:[%s10776_s1 + $0xaa0] sm:$0xff]  ;;  %1751 = vmatpush.msrb.mxu0 %v327_v39 }
  0x6a   :  { %v455_v41 = vld [vmem:[%s10776_s1 + $0xca0] sm:$0xff]  ;;  %1771 = vmatpush.msrb.mxu1 %v391_v40 }
  0x6b   :  { %v523_v42 = vld [vmem:[%s10776_s1 + $0xec0] sm:$0xff]  ;;  %1791 = vmatpush.msrb.mxu2 %v455_v41 }
  0x6c   :  { %v323_v43 = vld [vmem:[%s10776_s1 + $0x880] sm:$0xff]  ;;  %1810 = vmatpush.msrb.mxu3 %v523_v42 }
  0x6d   :  { %v387_v44 = vld [vmem:[%s10776_s1 + $0xa80] sm:$0xff]  ;;  %1752 = vmatpush.msrb.mxu0 %v323_v43 }
  0x6e   :  { %v451_v45 = vld [vmem:[%s10776_s1 + $0xc80] sm:$0xff]  ;;  %1772 = vmatpush.msrb.mxu1 %v387_v44 }
  0x6f   :  { %v519_v46 = vld [vmem:[%s10776_s1 + $0xea0] sm:$0xff]  ;;  %1792 = vmatpush.msrb.mxu2 %v451_v45 }
  0x70   :  { %v319_v47 = vld [vmem:[%s10776_s1 + $0x860] sm:$0xff]  ;;  %1811 = vmatpush.msrb.mxu3 %v519_v46 }
  0x71   :  { %v383_v48 = vld [vmem:[%s10776_s1 + $0xa60] sm:$0xff]  ;;  %1753 = vmatpush.msrb.mxu0 %v319_v47 }
  0x72   :  { %v447_v49 = vld [vmem:[%s10776_s1 + $0xc60] sm:$0xff]  ;;  %1773 = vmatpush.msrb.mxu1 %v383_v48 }
  0x73   :  { %v515_v50 = vld [vmem:[%s10776_s1 + $0xe80] sm:$0xff]  ;;  %1793 = vmatpush.msrb.mxu2 %v447_v49 }
  0x74   :  { %v315_v51 = vld [vmem:[%s10776_s1 + $0x840] sm:$0xff]  ;;  %1812 = vmatpush.msrb.mxu3 %v515_v50 }
  0x75   :  { %v379_v52 = vld [vmem:[%s10776_s1 + $0xa40] sm:$0xff]  ;;  %1754 = vmatpush.msrb.mxu0 %v315_v51 }
  0x76   :  { %v443_v53 = vld [vmem:[%s10776_s1 + $0xc40] sm:$0xff]  ;;  %1774 = vmatpush.msrb.mxu1 %v379_v52 }
  0x77   :  { %v511_v54 = vld [vmem:[%s10776_s1 + $0xe60] sm:$0xff]  ;;  %1794 = vmatpush.msrb.mxu2 %v443_v53 }
  0x78   :  { %v311_v55 = vld [vmem:[%s10776_s1 + $0x820] sm:$0xff]  ;;  %1813 = vmatpush.msrb.mxu3 %v511_v54 }
  0x79   :  { %v375_v56 = vld [vmem:[%s10776_s1 + $0xa20] sm:$0xff]  ;;  %1755 = vmatpush.msrb.mxu0 %v311_v55 }
  0x7a   :  { %v439_v57 = vld [vmem:[%s10776_s1 + $0xc20] sm:$0xff]  ;;  %1775 = vmatpush.msrb.mxu1 %v375_v56 }
  0x7b   :  { %v507_v58 = vld [vmem:[%s10776_s1 + $0xe40] sm:$0xff]  ;;  %1795 = vmatpush.msrb.mxu2 %v439_v57 }
  0x7c   :  { %v307_v59 = vld [vmem:[%s10776_s1 + $0x800] sm:$0xff]  ;;  %1814 = vmatpush.msrb.mxu3 %v507_v58 }
  0x7d   :  { %v371_v60 = vld [vmem:[%s10776_s1 + $0xa00] sm:$0xff]  ;;  %1756 = vmatpush.msrb.mxu0 %v307_v59 }
  0x7e   :  { %v435_v61 = vld [vmem:[%s10776_s1 + $0xc00] sm:$0xff]  ;;  %1776 = vmatpush.msrb.mxu1 %v371_v60 }
  0x7f   :  { %v503_v62 = vld [vmem:[%s10776_s1 + $0xe20] sm:$0xff]  ;;  %1796 = vmatpush.msrb.mxu2 %v435_v61  ;;  %1777 = vmatmul.f32.vlgmr.msrb.gmra.mxu1 %v31_v30 }
  0x80   :  { %v26_v63 = vld [vmem:[%s10777_s0] sm:$0xff]  ;;  %1815 = vmatpush.msrb.mxu3 %v503_v62  ;;  %1797 = vmatmul.f32.vlgmr.msrb.gmra.mxu2 %v32_v19 }
  0x81   :  { %v623_v2 = vld [vmem:[%s10776_s1 + $0x11e0] sm:$0xff]  ;;  %1677 = vmatmul.f32.vlgmr.msra.gmra.mxu0 %v26_v63 }
  0x82   :  { %v687_v3 = vld [vmem:[%s10776_s1 + $0x13e0] sm:$0xff]  ;;  %1821 = vmatpush.msra.mxu0 %v623_v2 }
  0x83   :  { %v751_v4 = vld [vmem:[%s10776_s1 + $0x15e0] sm:$0xff]  ;;  %1841 = vmatpush.msra.mxu1 %v687_v3 }
  0x84   :  { %v499_v5 = vld [vmem:[%s10776_s1 + $0xe00] sm:$0xff]  ;;  %1861 = vmatpush.msra.mxu2 %v751_v4 }
  0x85   :  { %v619_v6 = vld [vmem:[%s10776_s1 + $0x11c0] sm:$0xff]  ;;  %1816 = vmatpush.msrb.mxu3 %v499_v5 }
  0x86   :  { %v683_v8 = vld [vmem:[%s10776_s1 + $0x13c0] sm:$0xff]  ;;  %1822 = vmatpush.msra.mxu0 %v619_v6  ;;  %1817 = vmatmul.f32.vlgmr.msrb.gmra.mxu3 %v33_v25 }
  0x87   :  { %v747_v9 = vld [vmem:[%s10776_s1 + $0x15c0] sm:$0xff]  ;;  %1842 = vmatpush.msra.mxu1 %v683_v8  ;;  %v36_v8 = vld [vmem:[%s10777_s0 + $0x50] sm:$0xff] }
  0x88   :  { %v815_v10 = vld [vmem:[%s10776_s1 + $0x17e0] sm:$0xff]  ;;  %1862 = vmatpush.msra.mxu2 %v747_v9 }
  0x89   :  { %v615_v11 = vld [vmem:[%s10776_s1 + $0x11a0] sm:$0xff]  ;;  %1881 = vmatpush.msra.mxu3 %v815_v10 }
  0x8a   :  { %v679_v12 = vld [vmem:[%s10776_s1 + $0x13a0] sm:$0xff]  ;;  %1823 = vmatpush.msra.mxu0 %v615_v11 }
  0x8b   :  { %v743_v13 = vld [vmem:[%s10776_s1 + $0x15a0] sm:$0xff]  ;;  %1843 = vmatpush.msra.mxu1 %v679_v12 }
  0x8c   :  { %v811_v14 = vld [vmem:[%s10776_s1 + $0x17c0] sm:$0xff]  ;;  %1863 = vmatpush.msra.mxu2 %v743_v13  ;;  %v35_v13 = vld [vmem:[%s10777_s0 + $0x48] sm:$0xff] }
  0x8d   :  { %v611_v15 = vld [vmem:[%s10776_s1 + $0x1180] sm:$0xff]  ;;  %1882 = vmatpush.msra.mxu3 %v811_v14  ;;  %v37_v14 = vld [vmem:[%s10777_s0 + $0x58] sm:$0xff] }
  0x8e   :  { %v675_v16 = vld [vmem:[%s10776_s1 + $0x1380] sm:$0xff]  ;;  %1824 = vmatpush.msra.mxu0 %v611_v15 }
  0x8f   :  { %v739_v17 = vld [vmem:[%s10776_s1 + $0x1580] sm:$0xff]  ;;  %1844 = vmatpush.msra.mxu1 %v675_v16 }
  0x90   :  { %v807_v18 = vld [vmem:[%s10776_s1 + $0x17a0] sm:$0xff]  ;;  %1864 = vmatpush.msra.mxu2 %v739_v17 }
  0x91   :  { %v607_v20 = vld [vmem:[%s10776_s1 + $0x1160] sm:$0xff]  ;;  %1883 = vmatpush.msra.mxu3 %v807_v18 }
  0x92   :  { %v671_v21 = vld [vmem:[%s10776_s1 + $0x1360] sm:$0xff]  ;;  %1825 = vmatpush.msra.mxu0 %v607_v20 }
  0x93   :  { %v735_v22 = vld [vmem:[%s10776_s1 + $0x1560] sm:$0xff]  ;;  %1845 = vmatpush.msra.mxu1 %v671_v21 }
  0x94   :  { %v803_v23 = vld [vmem:[%s10776_s1 + $0x1780] sm:$0xff]  ;;  %1865 = vmatpush.msra.mxu2 %v735_v22 }
  0x95   :  { %v30_v24 = vld [vmem:[%s10777_s0 + $0x20] sm:$0xff]  ;;  %1884 = vmatpush.msra.mxu3 %v803_v23 }
  0x96   :  { %v603_v26 = vld [vmem:[%s10776_s1 + $0x1140] sm:$0xff]  ;;  %1757 = vmatmul.f32.vlgmr.msrb.gmra.mxu0 %v30_v24 }
  0x97   :  { %v667_v27 = vld [vmem:[%s10776_s1 + $0x1340] sm:$0xff]  ;;  %1826 = vmatpush.msra.mxu0 %v603_v26 }
  0x98   :  { %v731_v28 = vld [vmem:[%s10776_s1 + $0x1540] sm:$0xff]  ;;  %1846 = vmatpush.msra.mxu1 %v667_v27 }
  0x99   :  { %v799_v29 = vld [vmem:[%s10776_s1 + $0x1760] sm:$0xff]  ;;  %1866 = vmatpush.msra.mxu2 %v731_v28 }
  0x9a   :  { %v599_v31 = vld [vmem:[%s10776_s1 + $0x1120] sm:$0xff]  ;;  %1885 = vmatpush.msra.mxu3 %v799_v29 }
  0x9b   :  { %v663_v32 = vld [vmem:[%s10776_s1 + $0x1320] sm:$0xff]  ;;  %1827 = vmatpush.msra.mxu0 %v599_v31 }
  0x9c   :  { %v727_v33 = vld [vmem:[%s10776_s1 + $0x1520] sm:$0xff]  ;;  %1847 = vmatpush.msra.mxu1 %v663_v32 }
  0x9d   :  { %v795_v34 = vld [vmem:[%s10776_s1 + $0x1740] sm:$0xff]  ;;  %1867 = vmatpush.msra.mxu2 %v727_v33 }
  0x9e   :  { %v595_v35 = vld [vmem:[%s10776_s1 + $0x1100] sm:$0xff]  ;;  %1886 = vmatpush.msra.mxu3 %v795_v34 }
  0x9f   :  { %v659_v36 = vld [vmem:[%s10776_s1 + $0x1300] sm:$0xff]  ;;  %1828 = vmatpush.msra.mxu0 %v595_v35 }
  0xa0   :  { %v723_v37 = vld [vmem:[%s10776_s1 + $0x1500] sm:$0xff]  ;;  %1848 = vmatpush.msra.mxu1 %v659_v36 }
  0xa1   :  { %v791_v38 = vld [vmem:[%s10776_s1 + $0x1720] sm:$0xff]  ;;  %1868 = vmatpush.msra.mxu2 %v723_v37 }
  0xa2   :  { %v591_v39 = vld [vmem:[%s10776_s1 + $0x10e0] sm:$0xff]  ;;  %1887 = vmatpush.msra.mxu3 %v791_v38 }
  0xa3   :  { %v655_v40 = vld [vmem:[%s10776_s1 + $0x12e0] sm:$0xff]  ;;  %1829 = vmatpush.msra.mxu0 %v591_v39 }
  0xa4   :  { %v719_v41 = vld [vmem:[%s10776_s1 + $0x14e0] sm:$0xff]  ;;  %1849 = vmatpush.msra.mxu1 %v655_v40 }
  0xa5   :  { %v787_v42 = vld [vmem:[%s10776_s1 + $0x1700] sm:$0xff]  ;;  %1869 = vmatpush.msra.mxu2 %v719_v41 }
  0xa6   :  { %v587_v43 = vld [vmem:[%s10776_s1 + $0x10c0] sm:$0xff]  ;;  %1888 = vmatpush.msra.mxu3 %v787_v42 }
  0xa7   :  { %v651_v44 = vld [vmem:[%s10776_s1 + $0x12c0] sm:$0xff]  ;;  %1830 = vmatpush.msra.mxu0 %v587_v43 }
  0xa8   :  { %v715_v45 = vld [vmem:[%s10776_s1 + $0x14c0] sm:$0xff]  ;;  %1850 = vmatpush.msra.mxu1 %v651_v44 }
  0xa9   :  { %v783_v46 = vld [vmem:[%s10776_s1 + $0x16e0] sm:$0xff]  ;;  %1870 = vmatpush.msra.mxu2 %v715_v45 }
  0xaa   :  { %v583_v47 = vld [vmem:[%s10776_s1 + $0x10a0] sm:$0xff]  ;;  %1889 = vmatpush.msra.mxu3 %v783_v46 }
  0xab   :  { %v647_v48 = vld [vmem:[%s10776_s1 + $0x12a0] sm:$0xff]  ;;  %1831 = vmatpush.msra.mxu0 %v583_v47 }
  0xac   :  { %v711_v49 = vld [vmem:[%s10776_s1 + $0x14a0] sm:$0xff]  ;;  %1851 = vmatpush.msra.mxu1 %v647_v48 }
  0xad   :  { %v779_v50 = vld [vmem:[%s10776_s1 + $0x16c0] sm:$0xff]  ;;  %1871 = vmatpush.msra.mxu2 %v711_v49 }
  0xae   :  { %v579_v51 = vld [vmem:[%s10776_s1 + $0x1080] sm:$0xff]  ;;  %1890 = vmatpush.msra.mxu3 %v779_v50 }
  0xaf   :  { %v643_v52 = vld [vmem:[%s10776_s1 + $0x1280] sm:$0xff]  ;;  %1832 = vmatpush.msra.mxu0 %v579_v51 }
  0xb0   :  { %v707_v53 = vld [vmem:[%s10776_s1 + $0x1480] sm:$0xff]  ;;  %1852 = vmatpush.msra.mxu1 %v643_v52 }
  0xb1   :  { %v775_v54 = vld [vmem:[%s10776_s1 + $0x16a0] sm:$0xff]  ;;  %1872 = vmatpush.msra.mxu2 %v707_v53 }
  0xb2   :  { %v575_v55 = vld [vmem:[%s10776_s1 + $0x1060] sm:$0xff]  ;;  %1891 = vmatpush.msra.mxu3 %v775_v54 }
  0xb3   :  { %v639_v56 = vld [vmem:[%s10776_s1 + $0x1260] sm:$0xff]  ;;  %1833 = vmatpush.msra.mxu0 %v575_v55 }
  0xb4   :  { %v703_v57 = vld [vmem:[%s10776_s1 + $0x1460] sm:$0xff]  ;;  %1853 = vmatpush.msra.mxu1 %v639_v56 }
  0xb5   :  { %v771_v58 = vld [vmem:[%s10776_s1 + $0x1680] sm:$0xff]  ;;  %1873 = vmatpush.msra.mxu2 %v703_v57 }
  0xb6   :  { %v571_v59 = vld [vmem:[%s10776_s1 + $0x1040] sm:$0xff]  ;;  %1892 = vmatpush.msra.mxu3 %v771_v58 }
  0xb7   :  { %v635_v60 = vld [vmem:[%s10776_s1 + $0x1240] sm:$0xff]  ;;  %1834 = vmatpush.msra.mxu0 %v571_v59 }
  0xb8   :  { %v699_v61 = vld [vmem:[%s10776_s1 + $0x1440] sm:$0xff]  ;;  %1854 = vmatpush.msra.mxu1 %v635_v60 }
  0xb9   :  { %v767_v62 = vld [vmem:[%s10776_s1 + $0x1660] sm:$0xff]  ;;  %1874 = vmatpush.msra.mxu2 %v699_v61 }
  0xba   :  { %v567_v63 = vld [vmem:[%s10776_s1 + $0x1020] sm:$0xff]  ;;  %1893 = vmatpush.msra.mxu3 %v767_v62 }
  0xbb   :  { %v631_v0 = vld [vmem:[%s10776_s1 + $0x1220] sm:$0xff]  ;;  %1835 = vmatpush.msra.mxu0 %v567_v63 }
  0xbc   :  { %v695_v1 = vld [vmem:[%s10776_s1 + $0x1420] sm:$0xff]  ;;  %1855 = vmatpush.msra.mxu1 %v631_v0 }
  0xbd   :  { %v763_v2 = vld [vmem:[%s10776_s1 + $0x1640] sm:$0xff]  ;;  %1875 = vmatpush.msra.mxu2 %v695_v1 }
  0xbe   :  { %v563_v3 = vld [vmem:[%s10776_s1 + $0x1000] sm:$0xff]  ;;  %1894 = vmatpush.msra.mxu3 %v763_v2 }
  0xbf   :  { %v627_v4 = vld [vmem:[%s10776_s1 + $0x1200] sm:$0xff]  ;;  %1836 = vmatpush.msra.mxu0 %v563_v3 }
  0xc0   :  { %v691_v5 = vld [vmem:[%s10776_s1 + $0x1400] sm:$0xff]  ;;  %1856 = vmatpush.msra.mxu1 %v627_v4 }
  0xc1   :  { %v759_v6 = vld [vmem:[%s10776_s1 + $0x1620] sm:$0xff]  ;;  %1876 = vmatpush.msra.mxu2 %v691_v5  ;;  %1857 = vmatmul.f32.vlgmr.msra.gmra.mxu1 %v35_v13 }
  0xc2   :  { %v34_v7 = vld [vmem:[%s10777_s0 + $0x40] sm:$0xff]  ;;  %1895 = vmatpush.msra.mxu3 %v759_v6  ;;  %1877 = vmatmul.f32.vlgmr.msra.gmra.mxu2 %v36_v8 }
  0xc3   :  { %v879_v9 = vld [vmem:[%s10776_s1 + $0x19e0] sm:$0xff]  ;;  %1837 = vmatmul.f32.vlgmr.msra.gmra.mxu0 %v34_v7 }
  0xc4   :  { %v943_v10 = vld [vmem:[%s10776_s1 + $0x1be0] sm:$0xff]  ;;  %1901 = vmatpush.msrb.mxu0 %v879_v9 }
  0xc5   :  { %v1007_v11 = vld [vmem:[%s10776_s1 + $0x1de0] sm:$0xff]  ;;  %1921 = vmatpush.msrb.mxu1 %v943_v10 }
  0xc6   :  { %v755_v12 = vld [vmem:[%s10776_s1 + $0x1600] sm:$0xff]  ;;  %1941 = vmatpush.msrb.mxu2 %v1007_v11 }
  0xc7   :  { %v875_v15 = vld [vmem:[%s10776_s1 + $0x19c0] sm:$0xff]  ;;  %1896 = vmatpush.msra.mxu3 %v755_v12  ;;  %v40_v12 = vld [vmem:[%s10777_s0 + $0x70] sm:$0xff] }
  0xc8   :  { %v939_v16 = vld [vmem:[%s10776_s1 + $0x1bc0] sm:$0xff]  ;;  %1897 = vmatmul.f32.vlgmr.msra.gmra.mxu3 %v37_v14  ;;  %1902 = vmatpush.msrb.mxu0 %v875_v15 }
  0xc9   :  { %v1003_v17 = vld [vmem:[%s10776_s1 + $0x1dc0] sm:$0xff]  ;;  %1922 = vmatpush.msrb.mxu1 %v939_v16 }
  0xca   :  { %v1071_v18 = vld [vmem:[%s10776_s1 + $0x1fe0] sm:$0xff]  ;;  %1942 = vmatpush.msrb.mxu2 %v1003_v17  ;;  %v39_v17 = vld [vmem:[%s10777_s0 + $0x68] sm:$0xff] }
  0xcb   :  { %v871_v19 = vld [vmem:[%s10776_s1 + $0x19a0] sm:$0xff]  ;;  %1961 = vmatpush.msrb.mxu3 %v1071_v18  ;;  %v41_v18 = vld [vmem:[%s10777_s0 + $0x78] sm:$0xff] }
  0xcc   :  { %v935_v20 = vld [vmem:[%s10776_s1 + $0x1ba0] sm:$0xff]  ;;  %1903 = vmatpush.msrb.mxu0 %v871_v19 }
  0xcd   :  { %v999_v21 = vld [vmem:[%s10776_s1 + $0x1da0] sm:$0xff]  ;;  %1923 = vmatpush.msrb.mxu1 %v935_v20 }
  0xce   :  { %v1067_v22 = vld [vmem:[%s10776_s1 + $0x1fc0] sm:$0xff]  ;;  %1943 = vmatpush.msrb.mxu2 %v999_v21 }
  0xcf   :  { %v867_v23 = vld [vmem:[%s10776_s1 + $0x1980] sm:$0xff]  ;;  %1962 = vmatpush.msrb.mxu3 %v1067_v22 }
  0xd0   :  { %v931_v24 = vld [vmem:[%s10776_s1 + $0x1b80] sm:$0xff]  ;;  %1904 = vmatpush.msrb.mxu0 %v867_v23 }
  0xd1   :  { %v995_v25 = vld [vmem:[%s10776_s1 + $0x1d80] sm:$0xff]  ;;  %1924 = vmatpush.msrb.mxu1 %v931_v24 }
  0xd2   :  { %v1063_v26 = vld [vmem:[%s10776_s1 + $0x1fa0] sm:$0xff]  ;;  %1944 = vmatpush.msrb.mxu2 %v995_v25 }
  0xd3   :  { %v863_v27 = vld [vmem:[%s10776_s1 + $0x1960] sm:$0xff]  ;;  %1963 = vmatpush.msrb.mxu3 %v1063_v26 }
  0xd4   :  { %v927_v28 = vld [vmem:[%s10776_s1 + $0x1b60] sm:$0xff]  ;;  %1905 = vmatpush.msrb.mxu0 %v863_v27 }
  0xd5   :  { %v991_v29 = vld [vmem:[%s10776_s1 + $0x1d60] sm:$0xff]  ;;  %1925 = vmatpush.msrb.mxu1 %v927_v28 }
  0xd6   :  { %v1059_v30 = vld [vmem:[%s10776_s1 + $0x1f80] sm:$0xff]  ;;  %1945 = vmatpush.msrb.mxu2 %v991_v29 }
  0xd7   :  { %v859_v31 = vld [vmem:[%s10776_s1 + $0x1940] sm:$0xff]  ;;  %1964 = vmatpush.msrb.mxu3 %v1059_v30 }
  0xd8   :  { %v923_v32 = vld [vmem:[%s10776_s1 + $0x1b40] sm:$0xff]  ;;  %1906 = vmatpush.msrb.mxu0 %v859_v31 }
  0xd9   :  { %v987_v33 = vld [vmem:[%s10776_s1 + $0x1d40] sm:$0xff]  ;;  %1926 = vmatpush.msrb.mxu1 %v923_v32 }
  0xda   :  { %v1055_v34 = vld [vmem:[%s10776_s1 + $0x1f60] sm:$0xff]  ;;  %1946 = vmatpush.msrb.mxu2 %v987_v33 }
  0xdb   :  { %v855_v35 = vld [vmem:[%s10776_s1 + $0x1920] sm:$0xff]  ;;  %1965 = vmatpush.msrb.mxu3 %v1055_v34 }
  0xdc   :  { %v919_v36 = vld [vmem:[%s10776_s1 + $0x1b20] sm:$0xff]  ;;  %1907 = vmatpush.msrb.mxu0 %v855_v35 }
  0xdd   :  { %v983_v37 = vld [vmem:[%s10776_s1 + $0x1d20] sm:$0xff]  ;;  %1927 = vmatpush.msrb.mxu1 %v919_v36 }
  0xde   :  { %v1051_v38 = vld [vmem:[%s10776_s1 + $0x1f40] sm:$0xff]  ;;  %1947 = vmatpush.msrb.mxu2 %v983_v37 }
  0xdf   :  { %v851_v39 = vld [vmem:[%s10776_s1 + $0x1900] sm:$0xff]  ;;  %1966 = vmatpush.msrb.mxu3 %v1051_v38 }
  0xe0   :  { %v915_v40 = vld [vmem:[%s10776_s1 + $0x1b00] sm:$0xff]  ;;  %1908 = vmatpush.msrb.mxu0 %v851_v39 }
  0xe1   :  { %v979_v41 = vld [vmem:[%s10776_s1 + $0x1d00] sm:$0xff]  ;;  %1928 = vmatpush.msrb.mxu1 %v915_v40 }
  0xe2   :  { %v1047_v42 = vld [vmem:[%s10776_s1 + $0x1f20] sm:$0xff]  ;;  %1948 = vmatpush.msrb.mxu2 %v979_v41 }
  0xe3   :  { %v847_v43 = vld [vmem:[%s10776_s1 + $0x18e0] sm:$0xff]  ;;  %1967 = vmatpush.msrb.mxu3 %v1047_v42 }
  0xe4   :  { %v911_v44 = vld [vmem:[%s10776_s1 + $0x1ae0] sm:$0xff]  ;;  %1909 = vmatpush.msrb.mxu0 %v847_v43 }
  0xe5   :  { %v975_v45 = vld [vmem:[%s10776_s1 + $0x1ce0] sm:$0xff]  ;;  %1929 = vmatpush.msrb.mxu1 %v911_v44 }
  0xe6   :  { %v1043_v46 = vld [vmem:[%s10776_s1 + $0x1f00] sm:$0xff]  ;;  %1949 = vmatpush.msrb.mxu2 %v975_v45 }
  0xe7   :  { %v843_v47 = vld [vmem:[%s10776_s1 + $0x18c0] sm:$0xff]  ;;  %1968 = vmatpush.msrb.mxu3 %v1043_v46 }
  0xe8   :  { %v907_v48 = vld [vmem:[%s10776_s1 + $0x1ac0] sm:$0xff]  ;;  %1910 = vmatpush.msrb.mxu0 %v843_v47 }
  0xe9   :  { %v971_v49 = vld [vmem:[%s10776_s1 + $0x1cc0] sm:$0xff]  ;;  %1930 = vmatpush.msrb.mxu1 %v907_v48 }
  0xea   :  { %v1039_v50 = vld [vmem:[%s10776_s1 + $0x1ee0] sm:$0xff]  ;;  %1950 = vmatpush.msrb.mxu2 %v971_v49 }
  0xeb   :  { %v839_v51 = vld [vmem:[%s10776_s1 + $0x18a0] sm:$0xff]  ;;  %1969 = vmatpush.msrb.mxu3 %v1039_v50 }
  0xec   :  { %v903_v52 = vld [vmem:[%s10776_s1 + $0x1aa0] sm:$0xff]  ;;  %1911 = vmatpush.msrb.mxu0 %v839_v51 }
  0xed   :  { %v967_v53 = vld [vmem:[%s10776_s1 + $0x1ca0] sm:$0xff]  ;;  %1931 = vmatpush.msrb.mxu1 %v903_v52 }
  0xee   :  { %v1035_v54 = vld [vmem:[%s10776_s1 + $0x1ec0] sm:$0xff]  ;;  %1951 = vmatpush.msrb.mxu2 %v967_v53 }
  0xef   :  { %v835_v55 = vld [vmem:[%s10776_s1 + $0x1880] sm:$0xff]  ;;  %1970 = vmatpush.msrb.mxu3 %v1035_v54 }
  0xf0   :  { %v899_v56 = vld [vmem:[%s10776_s1 + $0x1a80] sm:$0xff]  ;;  %1912 = vmatpush.msrb.mxu0 %v835_v55 }
  0xf1   :  { %v963_v57 = vld [vmem:[%s10776_s1 + $0x1c80] sm:$0xff]  ;;  %1932 = vmatpush.msrb.mxu1 %v899_v56 }
  0xf2   :  { %v1031_v58 = vld [vmem:[%s10776_s1 + $0x1ea0] sm:$0xff]  ;;  %1952 = vmatpush.msrb.mxu2 %v963_v57 }
  0xf3   :  { %v831_v59 = vld [vmem:[%s10776_s1 + $0x1860] sm:$0xff]  ;;  %1971 = vmatpush.msrb.mxu3 %v1031_v58 }
  0xf4   :  { %v895_v60 = vld [vmem:[%s10776_s1 + $0x1a60] sm:$0xff]  ;;  %1913 = vmatpush.msrb.mxu0 %v831_v59 }
  0xf5   :  { %v959_v61 = vld [vmem:[%s10776_s1 + $0x1c60] sm:$0xff]  ;;  %1933 = vmatpush.msrb.mxu1 %v895_v60 }
  0xf6   :  { %v1027_v62 = vld [vmem:[%s10776_s1 + $0x1e80] sm:$0xff]  ;;  %1953 = vmatpush.msrb.mxu2 %v959_v61 }
  0xf7   :  { %v827_v63 = vld [vmem:[%s10776_s1 + $0x1840] sm:$0xff]  ;;  %1972 = vmatpush.msrb.mxu3 %v1027_v62 }
  0xf8   :  { %v891_v0 = vld [vmem:[%s10776_s1 + $0x1a40] sm:$0xff]  ;;  %1914 = vmatpush.msrb.mxu0 %v827_v63 }
  0xf9   :  { %v955_v1 = vld [vmem:[%s10776_s1 + $0x1c40] sm:$0xff]  ;;  %1934 = vmatpush.msrb.mxu1 %v891_v0 }
  0xfa   :  { %v1023_v2 = vld [vmem:[%s10776_s1 + $0x1e60] sm:$0xff]  ;;  %1954 = vmatpush.msrb.mxu2 %v955_v1 }
  0xfb   :  { %v823_v3 = vld [vmem:[%s10776_s1 + $0x1820] sm:$0xff]  ;;  %1973 = vmatpush.msrb.mxu3 %v1023_v2 }
  0xfc   :  { %v887_v4 = vld [vmem:[%s10776_s1 + $0x1a20] sm:$0xff]  ;;  %1915 = vmatpush.msrb.mxu0 %v823_v3 }
  0xfd   :  { %v951_v5 = vld [vmem:[%s10776_s1 + $0x1c20] sm:$0xff]  ;;  %1935 = vmatpush.msrb.mxu1 %v887_v4 }
  0xfe   :  { %v1019_v6 = vld [vmem:[%s10776_s1 + $0x1e40] sm:$0xff]  ;;  %1955 = vmatpush.msrb.mxu2 %v951_v5 }
  0xff   :  { %v819_v7 = vld [vmem:[%s10776_s1 + $0x1800] sm:$0xff]  ;;  %1974 = vmatpush.msrb.mxu3 %v1019_v6 }
 0x100   :  { %v883_v8 = vld [vmem:[%s10776_s1 + $0x1a00] sm:$0xff]  ;;  %1916 = vmatpush.msrb.mxu0 %v819_v7 }
 0x101   :  { %v947_v9 = vld [vmem:[%s10776_s1 + $0x1c00] sm:$0xff]  ;;  %1936 = vmatpush.msrb.mxu1 %v883_v8 }
 0x102   :  { %v1015_v10 = vld [vmem:[%s10776_s1 + $0x1e20] sm:$0xff]  ;;  %1956 = vmatpush.msrb.mxu2 %v947_v9  ;;  %1937 = vmatmul.f32.vlgmr.msrb.gmra.mxu1 %v39_v17 }
 0x103   :  { %v38_v11 = vld [vmem:[%s10777_s0 + $0x60] sm:$0xff]  ;;  %1975 = vmatpush.msrb.mxu3 %v1015_v10  ;;  %1957 = vmatmul.f32.vlgmr.msrb.gmra.mxu2 %v40_v12 }
 0x104   :  { %v1135_v13 = vld [vmem:[%s10776_s1 + $0x21e0] sm:$0xff]  ;;  %1917 = vmatmul.f32.vlgmr.msrb.gmra.mxu0 %v38_v11 }
 0x105   :  { %v1199_v14 = vld [vmem:[%s10776_s1 + $0x23e0] sm:$0xff]  ;;  %1981 = vmatpush.msra.mxu0 %v1135_v13 }
 0x106   :  { %v1263_v15 = vld [vmem:[%s10776_s1 + $0x25e0] sm:$0xff]  ;;  %2001 = vmatpush.msra.mxu1 %v1199_v14 }
 0x107   :  { %v1011_v16 = vld [vmem:[%s10776_s1 + $0x1e00] sm:$0xff]  ;;  %2021 = vmatpush.msra.mxu2 %v1263_v15 }
 0x108   :  { %v1131_v19 = vld [vmem:[%s10776_s1 + $0x21c0] sm:$0xff]  ;;  %1976 = vmatpush.msrb.mxu3 %v1011_v16  ;;  %v44_v16 = vld [vmem:[%s10777_s0 + $0x90] sm:$0xff] }
 0x109   :  { %v1195_v20 = vld [vmem:[%s10776_s1 + $0x23c0] sm:$0xff]  ;;  %1977 = vmatmul.f32.vlgmr.msrb.gmra.mxu3 %v41_v18  ;;  %1982 = vmatpush.msra.mxu0 %v1131_v19 }
 0x10a   :  { %v1259_v21 = vld [vmem:[%s10776_s1 + $0x25c0] sm:$0xff]  ;;  %2002 = vmatpush.msra.mxu1 %v1195_v20 }
 0x10b   :  { %v1327_v22 = vld [vmem:[%s10776_s1 + $0x27e0] sm:$0xff]  ;;  %2022 = vmatpush.msra.mxu2 %v1259_v21  ;;  %v43_v21 = vld [vmem:[%s10777_s0 + $0x88] sm:$0xff] }
 0x10c   :  { %v1127_v23 = vld [vmem:[%s10776_s1 + $0x21a0] sm:$0xff]  ;;  %2041 = vmatpush.msra.mxu3 %v1327_v22  ;;  %v45_v22 = vld [vmem:[%s10777_s0 + $0x98] sm:$0xff] }
 0x10d   :  { %v1191_v24 = vld [vmem:[%s10776_s1 + $0x23a0] sm:$0xff]  ;;  %1983 = vmatpush.msra.mxu0 %v1127_v23 }
 0x10e   :  { %v1255_v25 = vld [vmem:[%s10776_s1 + $0x25a0] sm:$0xff]  ;;  %2003 = vmatpush.msra.mxu1 %v1191_v24 }
 0x10f   :  { %v1323_v26 = vld [vmem:[%s10776_s1 + $0x27c0] sm:$0xff]  ;;  %2023 = vmatpush.msra.mxu2 %v1255_v25 }
 0x110   :  { %v1123_v27 = vld [vmem:[%s10776_s1 + $0x2180] sm:$0xff]  ;;  %2042 = vmatpush.msra.mxu3 %v1323_v26 }
 0x111   :  { %v1187_v28 = vld [vmem:[%s10776_s1 + $0x2380] sm:$0xff]  ;;  %1984 = vmatpush.msra.mxu0 %v1123_v27 }
 0x112   :  { %v1251_v29 = vld [vmem:[%s10776_s1 + $0x2580] sm:$0xff]  ;;  %2004 = vmatpush.msra.mxu1 %v1187_v28 }
 0x113   :  { %v1319_v30 = vld [vmem:[%s10776_s1 + $0x27a0] sm:$0xff]  ;;  %2024 = vmatpush.msra.mxu2 %v1251_v29 }
 0x114   :  { %v1119_v31 = vld [vmem:[%s10776_s1 + $0x2160] sm:$0xff]  ;;  %2043 = vmatpush.msra.mxu3 %v1319_v30 }
 0x115   :  { %v1183_v32 = vld [vmem:[%s10776_s1 + $0x2360] sm:$0xff]  ;;  %1985 = vmatpush.msra.mxu0 %v1119_v31 }
 0x116   :  { %v1247_v33 = vld [vmem:[%s10776_s1 + $0x2560] sm:$0xff]  ;;  %2005 = vmatpush.msra.mxu1 %v1183_v32 }
 0x117   :  { %v1315_v34 = vld [vmem:[%s10776_s1 + $0x2780] sm:$0xff]  ;;  %2025 = vmatpush.msra.mxu2 %v1247_v33 }
 0x118   :  { %v1115_v35 = vld [vmem:[%s10776_s1 + $0x2140] sm:$0xff]  ;;  %2044 = vmatpush.msra.mxu3 %v1315_v34 }
 0x119   :  { %v1179_v36 = vld [vmem:[%s10776_s1 + $0x2340] sm:$0xff]  ;;  %1986 = vmatpush.msra.mxu0 %v1115_v35 }
 0x11a   :  { %v1243_v37 = vld [vmem:[%s10776_s1 + $0x2540] sm:$0xff]  ;;  %2006 = vmatpush.msra.mxu1 %v1179_v36 }
 0x11b   :  { %v1311_v38 = vld [vmem:[%s10776_s1 + $0x2760] sm:$0xff]  ;;  %2026 = vmatpush.msra.mxu2 %v1243_v37 }
 0x11c   :  { %v1111_v39 = vld [vmem:[%s10776_s1 + $0x2120] sm:$0xff]  ;;  %2045 = vmatpush.msra.mxu3 %v1311_v38 }
 0x11d   :  { %v1175_v40 = vld [vmem:[%s10776_s1 + $0x2320] sm:$0xff]  ;;  %1987 = vmatpush.msra.mxu0 %v1111_v39 }
 0x11e   :  { %v1239_v41 = vld [vmem:[%s10776_s1 + $0x2520] sm:$0xff]  ;;  %2007 = vmatpush.msra.mxu1 %v1175_v40 }
 0x11f   :  { %v1307_v42 = vld [vmem:[%s10776_s1 + $0x2740] sm:$0xff]  ;;  %2027 = vmatpush.msra.mxu2 %v1239_v41 }
 0x120   :  { %v1107_v43 = vld [vmem:[%s10776_s1 + $0x2100] sm:$0xff]  ;;  %2046 = vmatpush.msra.mxu3 %v1307_v42 }
 0x121   :  { %v1171_v44 = vld [vmem:[%s10776_s1 + $0x2300] sm:$0xff]  ;;  %1988 = vmatpush.msra.mxu0 %v1107_v43 }
 0x122   :  { %v1235_v45 = vld [vmem:[%s10776_s1 + $0x2500] sm:$0xff]  ;;  %2008 = vmatpush.msra.mxu1 %v1171_v44 }
 0x123   :  { %v1303_v46 = vld [vmem:[%s10776_s1 + $0x2720] sm:$0xff]  ;;  %2028 = vmatpush.msra.mxu2 %v1235_v45 }
 0x124   :  { %v1103_v47 = vld [vmem:[%s10776_s1 + $0x20e0] sm:$0xff]  ;;  %2047 = vmatpush.msra.mxu3 %v1303_v46 }
 0x125   :  { %v1167_v48 = vld [vmem:[%s10776_s1 + $0x22e0] sm:$0xff]  ;;  %1989 = vmatpush.msra.mxu0 %v1103_v47 }
 0x126   :  { %v1231_v49 = vld [vmem:[%s10776_s1 + $0x24e0] sm:$0xff]  ;;  %2009 = vmatpush.msra.mxu1 %v1167_v48 }
 0x127   :  { %v1299_v50 = vld [vmem:[%s10776_s1 + $0x2700] sm:$0xff]  ;;  %2029 = vmatpush.msra.mxu2 %v1231_v49 }
 0x128   :  { %v1099_v51 = vld [vmem:[%s10776_s1 + $0x20c0] sm:$0xff]  ;;  %2048 = vmatpush.msra.mxu3 %v1299_v50 }
 0x129   :  { %v1163_v52 = vld [vmem:[%s10776_s1 + $0x22c0] sm:$0xff]  ;;  %1990 = vmatpush.msra.mxu0 %v1099_v51 }
 0x12a   :  { %v1227_v53 = vld [vmem:[%s10776_s1 + $0x24c0] sm:$0xff]  ;;  %2010 = vmatpush.msra.mxu1 %v1163_v52 }
 0x12b   :  { %v1295_v54 = vld [vmem:[%s10776_s1 + $0x26e0] sm:$0xff]  ;;  %2030 = vmatpush.msra.mxu2 %v1227_v53 }
 0x12c   :  { %v1095_v55 = vld [vmem:[%s10776_s1 + $0x20a0] sm:$0xff]  ;;  %2049 = vmatpush.msra.mxu3 %v1295_v54 }
 0x12d   :  { %v1159_v56 = vld [vmem:[%s10776_s1 + $0x22a0] sm:$0xff]  ;;  %1991 = vmatpush.msra.mxu0 %v1095_v55 }
 0x12e   :  { %v1223_v57 = vld [vmem:[%s10776_s1 + $0x24a0] sm:$0xff]  ;;  %2011 = vmatpush.msra.mxu1 %v1159_v56 }
 0x12f   :  { %v1291_v58 = vld [vmem:[%s10776_s1 + $0x26c0] sm:$0xff]  ;;  %2031 = vmatpush.msra.mxu2 %v1223_v57 }
 0x130   :  { %v1091_v59 = vld [vmem:[%s10776_s1 + $0x2080] sm:$0xff]  ;;  %2050 = vmatpush.msra.mxu3 %v1291_v58 }
 0x131   :  { %v1155_v60 = vld [vmem:[%s10776_s1 + $0x2280] sm:$0xff]  ;;  %1992 = vmatpush.msra.mxu0 %v1091_v59 }
 0x132   :  { %v1219_v61 = vld [vmem:[%s10776_s1 + $0x2480] sm:$0xff]  ;;  %2012 = vmatpush.msra.mxu1 %v1155_v60 }
 0x133   :  { %v1287_v62 = vld [vmem:[%s10776_s1 + $0x26a0] sm:$0xff]  ;;  %2032 = vmatpush.msra.mxu2 %v1219_v61 }
 0x134   :  { %v1087_v63 = vld [vmem:[%s10776_s1 + $0x2060] sm:$0xff]  ;;  %2051 = vmatpush.msra.mxu3 %v1287_v62 }
 0x135   :  { %v1151_v0 = vld [vmem:[%s10776_s1 + $0x2260] sm:$0xff]  ;;  %1993 = vmatpush.msra.mxu0 %v1087_v63 }
 0x136   :  { %v1215_v1 = vld [vmem:[%s10776_s1 + $0x2460] sm:$0xff]  ;;  %2013 = vmatpush.msra.mxu1 %v1151_v0 }
 0x137   :  { %v1283_v2 = vld [vmem:[%s10776_s1 + $0x2680] sm:$0xff]  ;;  %2033 = vmatpush.msra.mxu2 %v1215_v1 }
 0x138   :  { %v1083_v3 = vld [vmem:[%s10776_s1 + $0x2040] sm:$0xff]  ;;  %2052 = vmatpush.msra.mxu3 %v1283_v2 }
 0x139   :  { %v1147_v4 = vld [vmem:[%s10776_s1 + $0x2240] sm:$0xff]  ;;  %1994 = vmatpush.msra.mxu0 %v1083_v3 }
 0x13a   :  { %v1211_v5 = vld [vmem:[%s10776_s1 + $0x2440] sm:$0xff]  ;;  %2014 = vmatpush.msra.mxu1 %v1147_v4 }
 0x13b   :  { %v1279_v6 = vld [vmem:[%s10776_s1 + $0x2660] sm:$0xff]  ;;  %2034 = vmatpush.msra.mxu2 %v1211_v5 }
 0x13c   :  { %v1079_v7 = vld [vmem:[%s10776_s1 + $0x2020] sm:$0xff]  ;;  %2053 = vmatpush.msra.mxu3 %v1279_v6 }
 0x13d   :  { %v1143_v8 = vld [vmem:[%s10776_s1 + $0x2220] sm:$0xff]  ;;  %1995 = vmatpush.msra.mxu0 %v1079_v7 }
 0x13e   :  { %v1207_v9 = vld [vmem:[%s10776_s1 + $0x2420] sm:$0xff]  ;;  %2015 = vmatpush.msra.mxu1 %v1143_v8 }
 0x13f   :  { %v1275_v10 = vld [vmem:[%s10776_s1 + $0x2640] sm:$0xff]  ;;  %2035 = vmatpush.msra.mxu2 %v1207_v9 }
 0x140   :  { %v1075_v11 = vld [vmem:[%s10776_s1 + $0x2000] sm:$0xff]  ;;  %2054 = vmatpush.msra.mxu3 %v1275_v10 }
 0x141   :  { %v1139_v12 = vld [vmem:[%s10776_s1 + $0x2200] sm:$0xff]  ;;  %1996 = vmatpush.msra.mxu0 %v1075_v11 }
 0x142   :  { %v1203_v13 = vld [vmem:[%s10776_s1 + $0x2400] sm:$0xff]  ;;  %2016 = vmatpush.msra.mxu1 %v1139_v12 }
 0x143   :  { %v1271_v14 = vld [vmem:[%s10776_s1 + $0x2620] sm:$0xff]  ;;  %2036 = vmatpush.msra.mxu2 %v1203_v13  ;;  %2017 = vmatmul.f32.vlgmr.msra.gmra.mxu1 %v43_v21 }
 0x144   :  { %v42_v15 = vld [vmem:[%s10777_s0 + $0x80] sm:$0xff]  ;;  %2055 = vmatpush.msra.mxu3 %v1271_v14  ;;  %2037 = vmatmul.f32.vlgmr.msra.gmra.mxu2 %v44_v16 }
 0x145   :  { %v1391_v17 = vld [vmem:[%s10776_s1 + $0x29e0] sm:$0xff]  ;;  %1997 = vmatmul.f32.vlgmr.msra.gmra.mxu0 %v42_v15 }
 0x146   :  { %v1455_v18 = vld [vmem:[%s10776_s1 + $0x2be0] sm:$0xff]  ;;  %2061 = vmatpush.msrb.mxu0 %v1391_v17 }
 0x147   :  { %v1519_v19 = vld [vmem:[%s10776_s1 + $0x2de0] sm:$0xff]  ;;  %2081 = vmatpush.msrb.mxu1 %v1455_v18 }
 0x148   :  { %v1267_v20 = vld [vmem:[%s10776_s1 + $0x2600] sm:$0xff]  ;;  %2101 = vmatpush.msrb.mxu2 %v1519_v19 }
 0x149   :  { %v1387_v23 = vld [vmem:[%s10776_s1 + $0x29c0] sm:$0xff]  ;;  %2056 = vmatpush.msra.mxu3 %v1267_v20  ;;  %v48_v20 = vld [vmem:[%s10777_s0 + $0xb0] sm:$0xff] }
 0x14a   :  { %v1451_v24 = vld [vmem:[%s10776_s1 + $0x2bc0] sm:$0xff]  ;;  %2057 = vmatmul.f32.vlgmr.msra.gmra.mxu3 %v45_v22  ;;  %2062 = vmatpush.msrb.mxu0 %v1387_v23  ;;  %v112_v22 = vld [vmem:[%s10776_s1 + $0x1e8] sm:$0xff] }
 0x14b   :  { %v1515_v25 = vld [vmem:[%s10776_s1 + $0x2dc0] sm:$0xff]  ;;  %2082 = vmatpush.msrb.mxu1 %v1451_v24  ;;  %v176_v23 = vld [vmem:[%s10776_s1 + $0x3e8] sm:$0xff] }
 0x14c   :  { %v1583_v26 = vld [vmem:[%s10776_s1 + $0x2fe0] sm:$0xff]  ;;  %2102 = vmatpush.msrb.mxu2 %v1515_v25  ;;  %v47_v25 = vld [vmem:[%s10777_s0 + $0xa8] sm:$0xff] }
 0x14d   :  { %v1383_v27 = vld [vmem:[%s10776_s1 + $0x29a0] sm:$0xff]  ;;  %2121 = vmatpush.msrb.mxu3 %v1583_v26  ;;  %v49_v26 = vld [vmem:[%s10777_s0 + $0xb8] sm:$0xff] }
 0x14e   :  { %v1447_v28 = vld [vmem:[%s10776_s1 + $0x2ba0] sm:$0xff]  ;;  %2063 = vmatpush.msrb.mxu0 %v1383_v27 }
 0x14f   :  { %v1511_v29 = vld [vmem:[%s10776_s1 + $0x2da0] sm:$0xff]  ;;  %2083 = vmatpush.msrb.mxu1 %v1447_v28  ;;  %v108_v28 = vld [vmem:[%s10776_s1 + $0x1c8] sm:$0xff] }
 0x150   :  { %v1579_v30 = vld [vmem:[%s10776_s1 + $0x2fc0] sm:$0xff]  ;;  %2103 = vmatpush.msrb.mxu2 %v1511_v29  ;;  %v172_v29 = vld [vmem:[%s10776_s1 + $0x3c8] sm:$0xff] }
 0x151   :  { %v1379_v31 = vld [vmem:[%s10776_s1 + $0x2980] sm:$0xff]  ;;  %2122 = vmatpush.msrb.mxu3 %v1579_v30  ;;  %v240_v30 = vld [vmem:[%s10776_s1 + $0x5e8] sm:$0xff] }
 0x152   :  { %v1443_v32 = vld [vmem:[%s10776_s1 + $0x2b80] sm:$0xff]  ;;  %2064 = vmatpush.msrb.mxu0 %v1379_v31 }
 0x153   :  { %v1507_v33 = vld [vmem:[%s10776_s1 + $0x2d80] sm:$0xff]  ;;  %2084 = vmatpush.msrb.mxu1 %v1443_v32  ;;  %v104_v32 = vld [vmem:[%s10776_s1 + $0x1a8] sm:$0xff] }
 0x154   :  { %v1575_v34 = vld [vmem:[%s10776_s1 + $0x2fa0] sm:$0xff]  ;;  %2104 = vmatpush.msrb.mxu2 %v1507_v33  ;;  %v168_v33 = vld [vmem:[%s10776_s1 + $0x3a8] sm:$0xff] }
 0x155   :  { %v1375_v35 = vld [vmem:[%s10776_s1 + $0x2960] sm:$0xff]  ;;  %2123 = vmatpush.msrb.mxu3 %v1575_v34  ;;  %v236_v34 = vld [vmem:[%s10776_s1 + $0x5c8] sm:$0xff] }
 0x156   :  { %v1439_v36 = vld [vmem:[%s10776_s1 + $0x2b60] sm:$0xff]  ;;  %2065 = vmatpush.msrb.mxu0 %v1375_v35 }
 0x157   :  { %v1503_v37 = vld [vmem:[%s10776_s1 + $0x2d60] sm:$0xff]  ;;  %2085 = vmatpush.msrb.mxu1 %v1439_v36  ;;  %v100_v36 = vld [vmem:[%s10776_s1 + $0x188] sm:$0xff] }
 0x158   :  { %v1571_v38 = vld [vmem:[%s10776_s1 + $0x2f80] sm:$0xff]  ;;  %2105 = vmatpush.msrb.mxu2 %v1503_v37  ;;  %v164_v37 = vld [vmem:[%s10776_s1 + $0x388] sm:$0xff] }
 0x159   :  { %v1371_v39 = vld [vmem:[%s10776_s1 + $0x2940] sm:$0xff]  ;;  %2124 = vmatpush.msrb.mxu3 %v1571_v38  ;;  %v232_v38 = vld [vmem:[%s10776_s1 + $0x5a8] sm:$0xff] }
 0x15a   :  { %v1435_v40 = vld [vmem:[%s10776_s1 + $0x2b40] sm:$0xff]  ;;  %2066 = vmatpush.msrb.mxu0 %v1371_v39 }
 0x15b   :  { %v1499_v41 = vld [vmem:[%s10776_s1 + $0x2d40] sm:$0xff]  ;;  %2086 = vmatpush.msrb.mxu1 %v1435_v40  ;;  %v96_v40 = vld [vmem:[%s10776_s1 + $0x168] sm:$0xff] }
 0x15c   :  { %v1567_v42 = vld [vmem:[%s10776_s1 + $0x2f60] sm:$0xff]  ;;  %2106 = vmatpush.msrb.mxu2 %v1499_v41  ;;  %v160_v41 = vld [vmem:[%s10776_s1 + $0x368] sm:$0xff] }
 0x15d   :  { %v1367_v43 = vld [vmem:[%s10776_s1 + $0x2920] sm:$0xff]  ;;  %2125 = vmatpush.msrb.mxu3 %v1567_v42  ;;  %v228_v42 = vld [vmem:[%s10776_s1 + $0x588] sm:$0xff] }
 0x15e   :  { %v1431_v44 = vld [vmem:[%s10776_s1 + $0x2b20] sm:$0xff]  ;;  %2067 = vmatpush.msrb.mxu0 %v1367_v43 }
 0x15f   :  { %v1495_v45 = vld [vmem:[%s10776_s1 + $0x2d20] sm:$0xff]  ;;  %2087 = vmatpush.msrb.mxu1 %v1431_v44  ;;  %v92_v44 = vld [vmem:[%s10776_s1 + $0x148] sm:$0xff] }
 0x160   :  { %v1563_v46 = vld [vmem:[%s10776_s1 + $0x2f40] sm:$0xff]  ;;  %2107 = vmatpush.msrb.mxu2 %v1495_v45  ;;  %v156_v45 = vld [vmem:[%s10776_s1 + $0x348] sm:$0xff] }
 0x161   :  { %v1363_v47 = vld [vmem:[%s10776_s1 + $0x2900] sm:$0xff]  ;;  %2126 = vmatpush.msrb.mxu3 %v1563_v46  ;;  %v224_v46 = vld [vmem:[%s10776_s1 + $0x568] sm:$0xff] }
 0x162   :  { %v1427_v48 = vld [vmem:[%s10776_s1 + $0x2b00] sm:$0xff]  ;;  %2068 = vmatpush.msrb.mxu0 %v1363_v47 }
 0x163   :  { %v1491_v49 = vld [vmem:[%s10776_s1 + $0x2d00] sm:$0xff]  ;;  %2088 = vmatpush.msrb.mxu1 %v1427_v48  ;;  %v88_v48 = vld [vmem:[%s10776_s1 + $0x128] sm:$0xff] }
 0x164   :  { %v1559_v50 = vld [vmem:[%s10776_s1 + $0x2f20] sm:$0xff]  ;;  %2108 = vmatpush.msrb.mxu2 %v1491_v49  ;;  %v152_v49 = vld [vmem:[%s10776_s1 + $0x328] sm:$0xff] }
 0x165   :  { %v1359_v51 = vld [vmem:[%s10776_s1 + $0x28e0] sm:$0xff]  ;;  %2127 = vmatpush.msrb.mxu3 %v1559_v50  ;;  %v220_v50 = vld [vmem:[%s10776_s1 + $0x548] sm:$0xff] }
 0x166   :  { %v1423_v52 = vld [vmem:[%s10776_s1 + $0x2ae0] sm:$0xff]  ;;  %2069 = vmatpush.msrb.mxu0 %v1359_v51 }
 0x167   :  { %v1487_v53 = vld [vmem:[%s10776_s1 + $0x2ce0] sm:$0xff]  ;;  %2089 = vmatpush.msrb.mxu1 %v1423_v52  ;;  %v84_v52 = vld [vmem:[%s10776_s1 + $0x108] sm:$0xff] }
 0x168   :  { %v1555_v54 = vld [vmem:[%s10776_s1 + $0x2f00] sm:$0xff]  ;;  %2109 = vmatpush.msrb.mxu2 %v1487_v53  ;;  %v148_v53 = vld [vmem:[%s10776_s1 + $0x308] sm:$0xff] }
 0x169   :  { %v1355_v55 = vld [vmem:[%s10776_s1 + $0x28c0] sm:$0xff]  ;;  %2128 = vmatpush.msrb.mxu3 %v1555_v54  ;;  %v216_v54 = vld [vmem:[%s10776_s1 + $0x528] sm:$0xff] }
 0x16a   :  { %v1419_v56 = vld [vmem:[%s10776_s1 + $0x2ac0] sm:$0xff]  ;;  %2070 = vmatpush.msrb.mxu0 %v1355_v55 }
 0x16b   :  { %v1483_v57 = vld [vmem:[%s10776_s1 + $0x2cc0] sm:$0xff]  ;;  %2090 = vmatpush.msrb.mxu1 %v1419_v56  ;;  %v80_v56 = vld [vmem:[%s10776_s1 + $0xe8] sm:$0xff] }
 0x16c   :  { %v1551_v58 = vld [vmem:[%s10776_s1 + $0x2ee0] sm:$0xff]  ;;  %2110 = vmatpush.msrb.mxu2 %v1483_v57  ;;  %v144_v57 = vld [vmem:[%s10776_s1 + $0x2e8] sm:$0xff] }
 0x16d   :  { %v1351_v59 = vld [vmem:[%s10776_s1 + $0x28a0] sm:$0xff]  ;;  %2129 = vmatpush.msrb.mxu3 %v1551_v58  ;;  %v212_v58 = vld [vmem:[%s10776_s1 + $0x508] sm:$0xff] }
 0x16e   :  { %v1415_v60 = vld [vmem:[%s10776_s1 + $0x2aa0] sm:$0xff]  ;;  %2071 = vmatpush.msrb.mxu0 %v1351_v59 }
 0x16f   :  { %v1479_v61 = vld [vmem:[%s10776_s1 + $0x2ca0] sm:$0xff]  ;;  %2091 = vmatpush.msrb.mxu1 %v1415_v60  ;;  %v76_v60 = vld [vmem:[%s10776_s1 + $0xc8] sm:$0xff] }
 0x170   :  { %v1547_v62 = vld [vmem:[%s10776_s1 + $0x2ec0] sm:$0xff]  ;;  %2111 = vmatpush.msrb.mxu2 %v1479_v61  ;;  %v140_v61 = vld [vmem:[%s10776_s1 + $0x2c8] sm:$0xff] }
 0x171   :  { %v1347_v63 = vld [vmem:[%s10776_s1 + $0x2880] sm:$0xff]  ;;  %2130 = vmatpush.msrb.mxu3 %v1547_v62  ;;  %v208_v62 = vld [vmem:[%s10776_s1 + $0x4e8] sm:$0xff] }
 0x172   :  { %v1411_v0 = vld [vmem:[%s10776_s1 + $0x2a80] sm:$0xff]  ;;  %2072 = vmatpush.msrb.mxu0 %v1347_v63 }
 0x173   :  { %v1475_v1 = vld [vmem:[%s10776_s1 + $0x2c80] sm:$0xff]  ;;  %2092 = vmatpush.msrb.mxu1 %v1411_v0  ;;  %v72_v0 = vld [vmem:[%s10776_s1 + $0xa8] sm:$0xff] }
 0x174   :  { %v1543_v2 = vld [vmem:[%s10776_s1 + $0x2ea0] sm:$0xff]  ;;  %2112 = vmatpush.msrb.mxu2 %v1475_v1  ;;  %v136_v1 = vld [vmem:[%s10776_s1 + $0x2a8] sm:$0xff] }
 0x175   :  { %v1343_v3 = vld [vmem:[%s10776_s1 + $0x2860] sm:$0xff]  ;;  %2131 = vmatpush.msrb.mxu3 %v1543_v2  ;;  %v204_v2 = vld [vmem:[%s10776_s1 + $0x4c8] sm:$0xff] }
 0x176   :  { %v1407_v4 = vld [vmem:[%s10776_s1 + $0x2a60] sm:$0xff]  ;;  %2073 = vmatpush.msrb.mxu0 %v1343_v3 }
 0x177   :  { %v1471_v5 = vld [vmem:[%s10776_s1 + $0x2c60] sm:$0xff]  ;;  %2093 = vmatpush.msrb.mxu1 %v1407_v4  ;;  %v68_v4 = vld [vmem:[%s10776_s1 + $0x88] sm:$0xff] }
 0x178   :  { %v1539_v6 = vld [vmem:[%s10776_s1 + $0x2e80] sm:$0xff]  ;;  %2113 = vmatpush.msrb.mxu2 %v1471_v5  ;;  %v132_v5 = vld [vmem:[%s10776_s1 + $0x288] sm:$0xff] }
 0x179   :  { %v1339_v7 = vld [vmem:[%s10776_s1 + $0x2840] sm:$0xff]  ;;  %2132 = vmatpush.msrb.mxu3 %v1539_v6  ;;  %v200_v6 = vld [vmem:[%s10776_s1 + $0x4a8] sm:$0xff] }
 0x17a   :  { %v1403_v8 = vld [vmem:[%s10776_s1 + $0x2a40] sm:$0xff]  ;;  %2074 = vmatpush.msrb.mxu0 %v1339_v7 }
 0x17b   :  { %v1467_v9 = vld [vmem:[%s10776_s1 + $0x2c40] sm:$0xff]  ;;  %2094 = vmatpush.msrb.mxu1 %v1403_v8  ;;  %v64_v8 = vld [vmem:[%s10776_s1 + $0x68] sm:$0xff] }
 0x17c   :  { %v1535_v10 = vld [vmem:[%s10776_s1 + $0x2e60] sm:$0xff]  ;;  %2114 = vmatpush.msrb.mxu2 %v1467_v9  ;;  %v128_v9 = vld [vmem:[%s10776_s1 + $0x268] sm:$0xff] }
 0x17d   :  { %v1335_v11 = vld [vmem:[%s10776_s1 + $0x2820] sm:$0xff]  ;;  %2133 = vmatpush.msrb.mxu3 %v1535_v10  ;;  %v196_v10 = vld [vmem:[%s10776_s1 + $0x488] sm:$0xff] }
 0x17e   :  { %v1399_v12 = vld [vmem:[%s10776_s1 + $0x2a20] sm:$0xff]  ;;  %2075 = vmatpush.msrb.mxu0 %v1335_v11 }
 0x17f   :  { %v1463_v13 = vld [vmem:[%s10776_s1 + $0x2c20] sm:$0xff]  ;;  %2095 = vmatpush.msrb.mxu1 %v1399_v12  ;;  %v60_v12 = vld [vmem:[%s10776_s1 + $0x48] sm:$0xff] }
 0x180   :  { %v1531_v14 = vld [vmem:[%s10776_s1 + $0x2e40] sm:$0xff]  ;;  %2115 = vmatpush.msrb.mxu2 %v1463_v13  ;;  %v124_v13 = vld [vmem:[%s10776_s1 + $0x248] sm:$0xff] }
 0x181   :  { %v1331_v15 = vld [vmem:[%s10776_s1 + $0x2800] sm:$0xff]  ;;  %2134 = vmatpush.msrb.mxu3 %v1531_v14  ;;  %v192_v14 = vld [vmem:[%s10776_s1 + $0x468] sm:$0xff] }
 0x182   :  { %v1395_v16 = vld [vmem:[%s10776_s1 + $0x2a00] sm:$0xff]  ;;  %2076 = vmatpush.msrb.mxu0 %v1331_v15 }
 0x183   :  { %v1459_v17 = vld [vmem:[%s10776_s1 + $0x2c00] sm:$0xff]  ;;  %2096 = vmatpush.msrb.mxu1 %v1395_v16  ;;  %v56_v16 = vld [vmem:[%s10776_s1 + $0x28] sm:$0xff] }
 0x184   :  { %v1527_v18 = vld [vmem:[%s10776_s1 + $0x2e20] sm:$0xff]  ;;  %2116 = vmatpush.msrb.mxu2 %v1459_v17  ;;  %2097 = vmatmul.f32.vlgmr.msrb.gmra.mxu1 %v47_v25  ;;  %v120_v17 = vld [vmem:[%s10776_s1 + $0x228] sm:$0xff] }
 0x185   :  { %v46_v19 = vld [vmem:[%s10777_s0 + $0xa0] sm:$0xff]  ;;  %2135 = vmatpush.msrb.mxu3 %v1527_v18  ;;  %2117 = vmatmul.f32.vlgmr.msrb.gmra.mxu2 %v48_v20  ;;  %v188_v18 = vld [vmem:[%s10776_s1 + $0x448] sm:$0xff] }
 0x186   :  { %v1647_v21 = vld [vmem:[%s10776_s1 + $0x31e0] sm:$0xff]  ;;  %2077 = vmatmul.f32.vlgmr.msrb.gmra.mxu0 %v46_v19  ;;  %2161 = vmatpush.msra.mxu1 %v112_v22  ;;  %v52_v20 = vld [vmem:[%s10776_s1 + $0x8] sm:$0xff] }
 0x187   :  { %v1523_v24 = vld [vmem:[%s10776_s1 + $0x2e00] sm:$0xff]  ;;  %2141 = vmatpush.msra.mxu0 %v1647_v21  ;;  %2181 = vmatpush.msra.mxu2 %v176_v23  ;;  %v116_v21 = vld [vmem:[%s10776_s1 + $0x208] sm:$0xff] }
 0x188   :  { %v1643_v27 = vld [vmem:[%s10776_s1 + $0x31c0] sm:$0xff]  ;;  %2136 = vmatpush.msrb.mxu3 %v1523_v24  ;;  %2162 = vmatpush.msra.mxu1 %v108_v28  ;;  %v184_v22 = vld [vmem:[%s10776_s1 + $0x428] sm:$0xff] }
 0x189   :  { %2137 = vmatmul.f32.vlgmr.msrb.gmra.mxu3 %v49_v26  ;;  %v1639_v31 = vld [vmem:[%s10776_s1 + $0x31a0] sm:$0xff]  ;;  %2142 = vmatpush.msra.mxu0 %v1643_v27  ;;  %v368_v24 = vld [vmem:[%s10776_s1 + $0x9e8] sm:$0xff] }
 0x18a   :  { %2182 = vmatpush.msra.mxu2 %v172_v29  ;;  %2201 = vmatpush.msra.mxu3 %v240_v30  ;;  %v1635_v35 = vld [vmem:[%s10776_s1 + $0x3180] sm:$0xff]  ;;  %v304_v25 = vld [vmem:[%s10776_s1 + $0x7e8] sm:$0xff] }
 0x18b   :  { %2143 = vmatpush.msra.mxu0 %v1639_v31  ;;  %2163 = vmatpush.msra.mxu1 %v104_v32  ;;  %v1631_v39 = vld [vmem:[%s10776_s1 + $0x3160] sm:$0xff]  ;;  %v432_v26 = vld [vmem:[%s10776_s1 + $0xbe8] sm:$0xff] }
 0x18c   :  { %2183 = vmatpush.msra.mxu2 %v168_v33  ;;  %2202 = vmatpush.msra.mxu3 %v236_v34  ;;  %v1627_v43 = vld [vmem:[%s10776_s1 + $0x3140] sm:$0xff]  ;;  %v180_v27 = vld [vmem:[%s10776_s1 + $0x408] sm:$0xff] }
 0x18d   :  { %2144 = vmatpush.msra.mxu0 %v1635_v35  ;;  %2164 = vmatpush.msra.mxu1 %v100_v36  ;;  %v1623_v47 = vld [vmem:[%s10776_s1 + $0x3120] sm:$0xff]  ;;  %v364_v28 = vld [vmem:[%s10776_s1 + $0x9c8] sm:$0xff] }
 0x18e   :  { %2184 = vmatpush.msra.mxu2 %v164_v37  ;;  %2203 = vmatpush.msra.mxu3 %v232_v38  ;;  %v1619_v51 = vld [vmem:[%s10776_s1 + $0x3100] sm:$0xff]  ;;  %v300_v29 = vld [vmem:[%s10776_s1 + $0x7c8] sm:$0xff] }
 0x18f   :  { %2145 = vmatpush.msra.mxu0 %v1631_v39  ;;  %2165 = vmatpush.msra.mxu1 %v96_v40  ;;  %v1615_v55 = vld [vmem:[%s10776_s1 + $0x30e0] sm:$0xff]  ;;  %v428_v30 = vld [vmem:[%s10776_s1 + $0xbc8] sm:$0xff] }
 0x190   :  { %2185 = vmatpush.msra.mxu2 %v160_v41  ;;  %2204 = vmatpush.msra.mxu3 %v228_v42  ;;  %v1611_v59 = vld [vmem:[%s10776_s1 + $0x30c0] sm:$0xff]  ;;  %v496_v31 = vld [vmem:[%s10776_s1 + $0xde8] sm:$0xff] }
 0x191   :  { %2146 = vmatpush.msra.mxu0 %v1627_v43  ;;  %2166 = vmatpush.msra.mxu1 %v92_v44  ;;  %v1607_v63 = vld [vmem:[%s10776_s1 + $0x30a0] sm:$0xff]  ;;  %v360_v32 = vld [vmem:[%s10776_s1 + $0x9a8] sm:$0xff] }
 0x192   :  { %2186 = vmatpush.msra.mxu2 %v156_v45  ;;  %2205 = vmatpush.msra.mxu3 %v224_v46  ;;  %v1603_v3 = vld [vmem:[%s10776_s1 + $0x3080] sm:$0xff]  ;;  %v296_v33 = vld [vmem:[%s10776_s1 + $0x7a8] sm:$0xff] }
 0x193   :  { %2147 = vmatpush.msra.mxu0 %v1623_v47  ;;  %2167 = vmatpush.msra.mxu1 %v88_v48  ;;  %v1599_v7 = vld [vmem:[%s10776_s1 + $0x3060] sm:$0xff]  ;;  %v424_v34 = vld [vmem:[%s10776_s1 + $0xba8] sm:$0xff] }
 0x194   :  { %2187 = vmatpush.msra.mxu2 %v152_v49  ;;  %2206 = vmatpush.msra.mxu3 %v220_v50  ;;  %v1595_v11 = vld [vmem:[%s10776_s1 + $0x3040] sm:$0xff]  ;;  %v492_v35 = vld [vmem:[%s10776_s1 + $0xdc8] sm:$0xff] }
 0x195   :  { %2148 = vmatpush.msra.mxu0 %v1619_v51  ;;  %2168 = vmatpush.msra.mxu1 %v84_v52  ;;  %v1591_v15 = vld [vmem:[%s10776_s1 + $0x3020] sm:$0xff]  ;;  %v356_v36 = vld [vmem:[%s10776_s1 + $0x988] sm:$0xff] }
 0x196   :  { %2188 = vmatpush.msra.mxu2 %v148_v53  ;;  %2207 = vmatpush.msra.mxu3 %v216_v54  ;;  %v1587_v19 = vld [vmem:[%s10776_s1 + $0x3000] sm:$0xff]  ;;  %v292_v37 = vld [vmem:[%s10776_s1 + $0x788] sm:$0xff] }
 0x197   :  { %2149 = vmatpush.msra.mxu0 %v1615_v55  ;;  %2169 = vmatpush.msra.mxu1 %v80_v56  ;;  %v50_v23 = vld [vmem:[%s10777_s0 + $0xc0] sm:$0xff]  ;;  %v420_v38 = vld [vmem:[%s10776_s1 + $0xb88] sm:$0xff] }
 0x198   :  { %2189 = vmatpush.msra.mxu2 %v144_v57  ;;  %2208 = vmatpush.msra.mxu3 %v212_v58  ;;  %v488_v39 = vld [vmem:[%s10776_s1 + $0xda8] sm:$0xff] }
 0x199   :  { %2150 = vmatpush.msra.mxu0 %v1611_v59  ;;  %2170 = vmatpush.msra.mxu1 %v76_v60  ;;  %v352_v40 = vld [vmem:[%s10776_s1 + $0x968] sm:$0xff] }
 0x19a   :  { %2190 = vmatpush.msra.mxu2 %v140_v61  ;;  %2209 = vmatpush.msra.mxu3 %v208_v62  ;;  %v288_v41 = vld [vmem:[%s10776_s1 + $0x768] sm:$0xff] }
 0x19b   :  { %2151 = vmatpush.msra.mxu0 %v1607_v63  ;;  %2171 = vmatpush.msra.mxu1 %v72_v0  ;;  %v416_v42 = vld [vmem:[%s10776_s1 + $0xb68] sm:$0xff] }
 0x19c   :  { %2191 = vmatpush.msra.mxu2 %v136_v1  ;;  %2210 = vmatpush.msra.mxu3 %v204_v2  ;;  %v484_v43 = vld [vmem:[%s10776_s1 + $0xd88] sm:$0xff] }
 0x19d   :  { %2152 = vmatpush.msra.mxu0 %v1603_v3  ;;  %2172 = vmatpush.msra.mxu1 %v68_v4  ;;  %v348_v44 = vld [vmem:[%s10776_s1 + $0x948] sm:$0xff] }
 0x19e   :  { %2192 = vmatpush.msra.mxu2 %v132_v5  ;;  %2211 = vmatpush.msra.mxu3 %v200_v6  ;;  %v284_v45 = vld [vmem:[%s10776_s1 + $0x748] sm:$0xff] }
 0x19f   :  { %2153 = vmatpush.msra.mxu0 %v1599_v7  ;;  %2173 = vmatpush.msra.mxu1 %v64_v8  ;;  %v412_v46 = vld [vmem:[%s10776_s1 + $0xb48] sm:$0xff] }
 0x1a0   :  { %2193 = vmatpush.msra.mxu2 %v128_v9  ;;  %2212 = vmatpush.msra.mxu3 %v196_v10  ;;  %v480_v47 = vld [vmem:[%s10776_s1 + $0xd68] sm:$0xff] }
 0x1a1   :  { %2154 = vmatpush.msra.mxu0 %v1595_v11  ;;  %2174 = vmatpush.msra.mxu1 %v60_v12  ;;  %v344_v48 = vld [vmem:[%s10776_s1 + $0x928] sm:$0xff] }
 0x1a2   :  { %2194 = vmatpush.msra.mxu2 %v124_v13  ;;  %2213 = vmatpush.msra.mxu3 %v192_v14  ;;  %v280_v49 = vld [vmem:[%s10776_s1 + $0x728] sm:$0xff] }
 0x1a3   :  { %2155 = vmatpush.msra.mxu0 %v1591_v15  ;;  %2175 = vmatpush.msra.mxu1 %v56_v16  ;;  %v408_v50 = vld [vmem:[%s10776_s1 + $0xb28] sm:$0xff] }
 0x1a4   :  { %2195 = vmatpush.msra.mxu2 %v120_v17  ;;  %2214 = vmatpush.msra.mxu3 %v188_v18  ;;  %v476_v51 = vld [vmem:[%s10776_s1 + $0xd48] sm:$0xff] }
 0x1a5   :  { %2156 = vmatpush.msra.mxu0 %v1587_v19  ;;  %2176 = vmatpush.msra.mxu1 %v52_v20  ;;  %v340_v52 = vld [vmem:[%s10776_s1 + $0x908] sm:$0xff] }
 0x1a6   :  { %2196 = vmatpush.msra.mxu2 %v116_v21  ;;  %2215 = vmatpush.msra.mxu3 %v184_v22  ;;  %v276_v53 = vld [vmem:[%s10776_s1 + $0x708] sm:$0xff] }
 0x1a7   :  { %2157 = vmatmul.f32.vlgmr.msra.gmra.mxu0 %v50_v23  ;;  %2241 = vmatpush.msrb.mxu1 %v368_v24  ;;  %v404_v54 = vld [vmem:[%s10776_s1 + $0xb08] sm:$0xff] }
 0x1a8   :  { %2221 = vmatpush.msrb.mxu0 %v304_v25  ;;  %2261 = vmatpush.msrb.mxu2 %v432_v26  ;;  %v472_v55 = vld [vmem:[%s10776_s1 + $0xd28] sm:$0xff] }
 0x1a9   :  { %2216 = vmatpush.msra.mxu3 %v180_v27  ;;  %2242 = vmatpush.msrb.mxu1 %v364_v28  ;;  %v336_v56 = vld [vmem:[%s10776_s1 + $0x8e8] sm:$0xff]  ;;  %v4405_v27 = vld [vmem:[%s10777_s0] sm:$0xff] }
 0x1aa   :  { %2222 = vmatpush.msrb.mxu0 %v300_v29  ;;  %2262 = vmatpush.msrb.mxu2 %v428_v30  ;;  %v272_v57 = vld [vmem:[%s10776_s1 + $0x6e8] sm:$0xff] }
 0x1ab   :  { %2281 = vmatpush.msrb.mxu3 %v496_v31  ;;  %2243 = vmatpush.msrb.mxu1 %v360_v32  ;;  %v400_v58 = vld [vmem:[%s10776_s1 + $0xae8] sm:$0xff] }
 0x1ac   :  { %2223 = vmatpush.msrb.mxu0 %v296_v33  ;;  %2263 = vmatpush.msrb.mxu2 %v424_v34  ;;  %v468_v59 = vld [vmem:[%s10776_s1 + $0xd08] sm:$0xff] }
 0x1ad   :  { %2282 = vmatpush.msrb.mxu3 %v492_v35  ;;  %2244 = vmatpush.msrb.mxu1 %v356_v36  ;;  %v332_v60 = vld [vmem:[%s10776_s1 + $0x8c8] sm:$0xff]  ;;  %v4407_v36 = vld [vmem:[%s10777_s0 + $0x10] sm:$0xff] }
 0x1ae   :  { %2224 = vmatpush.msrb.mxu0 %v292_v37  ;;  %2264 = vmatpush.msrb.mxu2 %v420_v38  ;;  %v268_v61 = vld [vmem:[%s10776_s1 + $0x6c8] sm:$0xff] }
 0x1af   :  { %2283 = vmatpush.msrb.mxu3 %v488_v39  ;;  %2245 = vmatpush.msrb.mxu1 %v352_v40  ;;  %v396_v62 = vld [vmem:[%s10776_s1 + $0xac8] sm:$0xff] }
 0x1b0   :  { %2225 = vmatpush.msrb.mxu0 %v288_v41  ;;  %2265 = vmatpush.msrb.mxu2 %v416_v42  ;;  %v464_v63 = vld [vmem:[%s10776_s1 + $0xce8] sm:$0xff] }
 0x1b1   :  { %2284 = vmatpush.msrb.mxu3 %v484_v43  ;;  %2246 = vmatpush.msrb.mxu1 %v348_v44  ;;  %v328_v0 = vld [vmem:[%s10776_s1 + $0x8a8] sm:$0xff] }
 0x1b2   :  { %2226 = vmatpush.msrb.mxu0 %v284_v45  ;;  %2266 = vmatpush.msrb.mxu2 %v412_v46  ;;  %v264_v1 = vld [vmem:[%s10776_s1 + $0x6a8] sm:$0xff] }
 0x1b3   :  { %2285 = vmatpush.msrb.mxu3 %v480_v47  ;;  %2247 = vmatpush.msrb.mxu1 %v344_v48  ;;  %v392_v2 = vld [vmem:[%s10776_s1 + $0xaa8] sm:$0xff] }
 0x1b4   :  { %2227 = vmatpush.msrb.mxu0 %v280_v49  ;;  %2267 = vmatpush.msrb.mxu2 %v408_v50  ;;  %v460_v3 = vld [vmem:[%s10776_s1 + $0xcc8] sm:$0xff] }
 0x1b5   :  { %2286 = vmatpush.msrb.mxu3 %v476_v51  ;;  %2248 = vmatpush.msrb.mxu1 %v340_v52  ;;  %v324_v4 = vld [vmem:[%s10776_s1 + $0x888] sm:$0xff]  ;;  %v4409_v51 = vld [vmem:[%s10777_s0 + $0x18] sm:$0xff] }
 0x1b6   :  { %2228 = vmatpush.msrb.mxu0 %v276_v53  ;;  %2268 = vmatpush.msrb.mxu2 %v404_v54  ;;  %v260_v5 = vld [vmem:[%s10776_s1 + $0x688] sm:$0xff]  ;;  %v4410_v53 = vld [vmem:[%s10777_s0 + $0x30] sm:$0xff] }
 0x1b7   :  { %2287 = vmatpush.msrb.mxu3 %v472_v55  ;;  %2249 = vmatpush.msrb.mxu1 %v336_v56  ;;  %v388_v6 = vld [vmem:[%s10776_s1 + $0xa88] sm:$0xff] }
 0x1b8   :  { %2229 = vmatpush.msrb.mxu0 %v272_v57  ;;  %2269 = vmatpush.msrb.mxu2 %v400_v58  ;;  %v456_v7 = vld [vmem:[%s10776_s1 + $0xca8] sm:$0xff]  ;;  %v4411_v58 = vld [vmem:[%s10777_s0 + $0x20] sm:$0xff] }
 0x1b9   :  { %2288 = vmatpush.msrb.mxu3 %v468_v59  ;;  %2250 = vmatpush.msrb.mxu1 %v332_v60  ;;  %v320_v8 = vld [vmem:[%s10776_s1 + $0x868] sm:$0xff] }
 0x1ba   :  { %2230 = vmatpush.msrb.mxu0 %v268_v61  ;;  %2270 = vmatpush.msrb.mxu2 %v396_v62  ;;  %v256_v9 = vld [vmem:[%s10776_s1 + $0x668] sm:$0xff] }
 0x1bb   :  { %2289 = vmatpush.msrb.mxu3 %v464_v63  ;;  %2251 = vmatpush.msrb.mxu1 %v328_v0  ;;  %v384_v10 = vld [vmem:[%s10776_s1 + $0xa68] sm:$0xff] }
 0x1bc   :  { %2231 = vmatpush.msrb.mxu0 %v264_v1  ;;  %2271 = vmatpush.msrb.mxu2 %v392_v2  ;;  %v452_v11 = vld [vmem:[%s10776_s1 + $0xc88] sm:$0xff] }
 0x1bd   :  { %2290 = vmatpush.msrb.mxu3 %v460_v3  ;;  %2252 = vmatpush.msrb.mxu1 %v324_v4  ;;  %v316_v12 = vld [vmem:[%s10776_s1 + $0x848] sm:$0xff] }
 0x1be   :  { %2232 = vmatpush.msrb.mxu0 %v260_v5  ;;  %2272 = vmatpush.msrb.mxu2 %v388_v6  ;;  %v252_v13 = vld [vmem:[%s10776_s1 + $0x648] sm:$0xff] }
 0x1bf   :  { %2291 = vmatpush.msrb.mxu3 %v456_v7  ;;  %2253 = vmatpush.msrb.mxu1 %v320_v8  ;;  %v380_v14 = vld [vmem:[%s10776_s1 + $0xa48] sm:$0xff] }
 0x1c0   :  { %2233 = vmatpush.msrb.mxu0 %v256_v9  ;;  %2273 = vmatpush.msrb.mxu2 %v384_v10  ;;  %v448_v15 = vld [vmem:[%s10776_s1 + $0xc68] sm:$0xff] }
 0x1c1   :  { %v312_v16 = vld [vmem:[%s10776_s1 + $0x828] sm:$0xff]  ;;  %2292 = vmatpush.msrb.mxu3 %v452_v11  ;;  %2254 = vmatpush.msrb.mxu1 %v316_v12 }
 0x1c2   :  { %v248_v17 = vld [vmem:[%s10776_s1 + $0x628] sm:$0xff]  ;;  %2234 = vmatpush.msrb.mxu0 %v252_v13  ;;  %2274 = vmatpush.msrb.mxu2 %v380_v14 }
 0x1c3   :  { %v376_v18 = vld [vmem:[%s10776_s1 + $0xa28] sm:$0xff]  ;;  %2293 = vmatpush.msrb.mxu3 %v448_v15  ;;  %2255 = vmatpush.msrb.mxu1 %v312_v16 }
 0x1c4   :  { %v444_v19 = vld [vmem:[%s10776_s1 + $0xc48] sm:$0xff]  ;;  %2235 = vmatpush.msrb.mxu0 %v248_v17  ;;  %2275 = vmatpush.msrb.mxu2 %v376_v18 }
 0x1c5   :  { %v308_v20 = vld [vmem:[%s10776_s1 + $0x808] sm:$0xff]  ;;  %2294 = vmatpush.msrb.mxu3 %v444_v19  ;;  %2177 = vmatmul.f32.vlgmr.msra.gmra.mxu1 %v4405_v27 }
 0x1c6   :  { %v244_v21 = vld [vmem:[%s10776_s1 + $0x608] sm:$0xff]  ;;  %2256 = vmatpush.msrb.mxu1 %v308_v20  ;;  %2217 = vmatmul.f32.vlgmr.msra.gmra.mxu3 %v4407_v36 }
 0x1c7   :  { %v372_v22 = vld [vmem:[%s10776_s1 + $0xa08] sm:$0xff]  ;;  %2236 = vmatpush.msrb.mxu0 %v244_v21 }
 0x1c8   :  { %v440_v23 = vld [vmem:[%s10776_s1 + $0xc28] sm:$0xff]  ;;  %2276 = vmatpush.msrb.mxu2 %v372_v22  ;;  %2237 = vmatmul.f32.vlgmr.msrb.gmra.mxu0 %v4409_v51 }
 0x1c9   :  { %v560_v24 = vld [vmem:[%s10776_s1 + $0xfe8] sm:$0xff]  ;;  %2295 = vmatpush.msrb.mxu3 %v440_v23 }
 0x1ca   :  { %v624_v25 = vld [vmem:[%s10776_s1 + $0x11e8] sm:$0xff]  ;;  %2301 = vmatpush.msra.mxu0 %v560_v24 }
 0x1cb   :  { %v688_v26 = vld [vmem:[%s10776_s1 + $0x13e8] sm:$0xff]  ;;  %2321 = vmatpush.msra.mxu1 %v624_v25 }
 0x1cc   :  { %v436_v28 = vld [vmem:[%s10776_s1 + $0xc08] sm:$0xff] }
 0x1cd   :  { %v556_v29 = vld [vmem:[%s10776_s1 + $0xfc8] sm:$0xff]  ;;  %2296 = vmatpush.msrb.mxu3 %v436_v28  ;;  %2257 = vmatmul.f32.vlgmr.msrb.gmra.mxu1 %v4411_v58 }
 0x1ce   :  { %v4406_v30 = vld [vmem:[%s10777_s0 + $0x8] sm:$0xff]  ;;  %2302 = vmatpush.msra.mxu0 %v556_v29  ;;  %2297 = vmatmul.f32.vlgmr.msrb.gmra.mxu3 %v4410_v53 }
 0x1cf   :  { %2197 = vmatmul.f32.vlgmr.msra.gmra.mxu2 %v4406_v30  ;;  %v620_v31 = vld [vmem:[%s10776_s1 + $0x11c8] sm:$0xff] }
 0x1d0   :  { %2341 = vmatpush.msra.mxu2 %v688_v26  ;;  %v684_v32 = vld [vmem:[%s10776_s1 + $0x13c8] sm:$0xff]  ;;  %2322 = vmatpush.msra.mxu1 %v620_v31 }
 0x1d1   :  { %v752_v33 = vld [vmem:[%s10776_s1 + $0x15e8] sm:$0xff] }
 0x1d2   :  { %v552_v34 = vld [vmem:[%s10776_s1 + $0xfa8] sm:$0xff]  ;;  %2342 = vmatpush.msra.mxu2 %v684_v32  ;;  %2361 = vmatpush.msra.mxu3 %v752_v33 }
 0x1d3   :  { %v616_v35 = vld [vmem:[%s10776_s1 + $0x11a8] sm:$0xff]  ;;  %2303 = vmatpush.msra.mxu0 %v552_v34 }
 0x1d4   :  { %v680_v37 = vld [vmem:[%s10776_s1 + $0x13a8] sm:$0xff]  ;;  %2323 = vmatpush.msra.mxu1 %v616_v35  ;;  %v4412_v35 = vld [vmem:[%s10777_s0 + $0x38] sm:$0xff] }
 0x1d5   :  { %v748_v38 = vld [vmem:[%s10776_s1 + $0x15c8] sm:$0xff]  ;;  %2343 = vmatpush.msra.mxu2 %v680_v37 }
 0x1d6   :  { %v548_v39 = vld [vmem:[%s10776_s1 + $0xf88] sm:$0xff]  ;;  %2362 = vmatpush.msra.mxu3 %v748_v38 }
 0x1d7   :  { %v612_v40 = vld [vmem:[%s10776_s1 + $0x1188] sm:$0xff]  ;;  %2304 = vmatpush.msra.mxu0 %v548_v39 }
 0x1d8   :  { %v676_v41 = vld [vmem:[%s10776_s1 + $0x1388] sm:$0xff]  ;;  %2324 = vmatpush.msra.mxu1 %v612_v40 }
 0x1d9   :  { %v744_v42 = vld [vmem:[%s10776_s1 + $0x15a8] sm:$0xff]  ;;  %2344 = vmatpush.msra.mxu2 %v676_v41  ;;  %v4414_v41 = vld [vmem:[%s10777_s0 + $0x40] sm:$0xff] }
 0x1da   :  { %v544_v43 = vld [vmem:[%s10776_s1 + $0xf68] sm:$0xff]  ;;  %2363 = vmatpush.msra.mxu3 %v744_v42  ;;  %v4415_v42 = vld [vmem:[%s10777_s0 + $0x50] sm:$0xff] }
 0x1db   :  { %v608_v44 = vld [vmem:[%s10776_s1 + $0x1168] sm:$0xff]  ;;  %2305 = vmatpush.msra.mxu0 %v544_v43 }
 0x1dc   :  { %v672_v45 = vld [vmem:[%s10776_s1 + $0x1368] sm:$0xff]  ;;  %2325 = vmatpush.msra.mxu1 %v608_v44 }
 0x1dd   :  { %v740_v46 = vld [vmem:[%s10776_s1 + $0x1588] sm:$0xff]  ;;  %2345 = vmatpush.msra.mxu2 %v672_v45 }
 0x1de   :  { %v4408_v47 = vld [vmem:[%s10777_s0 + $0x28] sm:$0xff]  ;;  %2364 = vmatpush.msra.mxu3 %v740_v46 }
 0x1df   :  { %2277 = vmatmul.f32.vlgmr.msrb.gmra.mxu2 %v4408_v47  ;;  %v540_v48 = vld [vmem:[%s10776_s1 + $0xf48] sm:$0xff] }
 0x1e0   :  { %v604_v49 = vld [vmem:[%s10776_s1 + $0x1148] sm:$0xff]  ;;  %2306 = vmatpush.msra.mxu0 %v540_v48 }
 0x1e1   :  { %v668_v50 = vld [vmem:[%s10776_s1 + $0x1348] sm:$0xff]  ;;  %2326 = vmatpush.msra.mxu1 %v604_v49 }
 0x1e2   :  { %v736_v52 = vld [vmem:[%s10776_s1 + $0x1568] sm:$0xff]  ;;  %2346 = vmatpush.msra.mxu2 %v668_v50 }
 0x1e3   :  { %v536_v54 = vld [vmem:[%s10776_s1 + $0xf28] sm:$0xff]  ;;  %2365 = vmatpush.msra.mxu3 %v736_v52 }
 0x1e4   :  { %v600_v55 = vld [vmem:[%s10776_s1 + $0x1128] sm:$0xff]  ;;  %2307 = vmatpush.msra.mxu0 %v536_v54 }
 0x1e5   :  { %v664_v56 = vld [vmem:[%s10776_s1 + $0x1328] sm:$0xff]  ;;  %2327 = vmatpush.msra.mxu1 %v600_v55 }
 0x1e6   :  { %v732_v57 = vld [vmem:[%s10776_s1 + $0x1548] sm:$0xff]  ;;  %2347 = vmatpush.msra.mxu2 %v664_v56 }
 0x1e7   :  { %v532_v59 = vld [vmem:[%s10776_s1 + $0xf08] sm:$0xff]  ;;  %2366 = vmatpush.msra.mxu3 %v732_v57 }
 0x1e8   :  { %v596_v60 = vld [vmem:[%s10776_s1 + $0x1108] sm:$0xff]  ;;  %2308 = vmatpush.msra.mxu0 %v532_v59 }
 0x1e9   :  { %v660_v61 = vld [vmem:[%s10776_s1 + $0x1308] sm:$0xff]  ;;  %2328 = vmatpush.msra.mxu1 %v596_v60 }
 0x1ea   :  { %v728_v62 = vld [vmem:[%s10776_s1 + $0x1528] sm:$0xff]  ;;  %2348 = vmatpush.msra.mxu2 %v660_v61 }
 0x1eb   :  { %v528_v63 = vld [vmem:[%s10776_s1 + $0xee8] sm:$0xff]  ;;  %2367 = vmatpush.msra.mxu3 %v728_v62 }
 0x1ec   :  { %v592_v0 = vld [vmem:[%s10776_s1 + $0x10e8] sm:$0xff]  ;;  %2309 = vmatpush.msra.mxu0 %v528_v63 }
 0x1ed   :  { %v656_v1 = vld [vmem:[%s10776_s1 + $0x12e8] sm:$0xff]  ;;  %2329 = vmatpush.msra.mxu1 %v592_v0 }
 0x1ee   :  { %v724_v2 = vld [vmem:[%s10776_s1 + $0x1508] sm:$0xff]  ;;  %2349 = vmatpush.msra.mxu2 %v656_v1 }
 0x1ef   :  { %v524_v3 = vld [vmem:[%s10776_s1 + $0xec8] sm:$0xff]  ;;  %2368 = vmatpush.msra.mxu3 %v724_v2 }
 0x1f0   :  { %v588_v4 = vld [vmem:[%s10776_s1 + $0x10c8] sm:$0xff]  ;;  %2310 = vmatpush.msra.mxu0 %v524_v3 }
 0x1f1   :  { %v652_v5 = vld [vmem:[%s10776_s1 + $0x12c8] sm:$0xff]  ;;  %2330 = vmatpush.msra.mxu1 %v588_v4 }
 0x1f2   :  { %v720_v6 = vld [vmem:[%s10776_s1 + $0x14e8] sm:$0xff]  ;;  %2350 = vmatpush.msra.mxu2 %v652_v5 }
 0x1f3   :  { %v520_v7 = vld [vmem:[%s10776_s1 + $0xea8] sm:$0xff]  ;;  %2369 = vmatpush.msra.mxu3 %v720_v6 }
 0x1f4   :  { %v584_v8 = vld [vmem:[%s10776_s1 + $0x10a8] sm:$0xff]  ;;  %2311 = vmatpush.msra.mxu0 %v520_v7 }
 0x1f5   :  { %v648_v9 = vld [vmem:[%s10776_s1 + $0x12a8] sm:$0xff]  ;;  %2331 = vmatpush.msra.mxu1 %v584_v8 }
 0x1f6   :  { %v716_v10 = vld [vmem:[%s10776_s1 + $0x14c8] sm:$0xff]  ;;  %2351 = vmatpush.msra.mxu2 %v648_v9 }
 0x1f7   :  { %v516_v11 = vld [vmem:[%s10776_s1 + $0xe88] sm:$0xff]  ;;  %2370 = vmatpush.msra.mxu3 %v716_v10 }
 0x1f8   :  { %v580_v12 = vld [vmem:[%s10776_s1 + $0x1088] sm:$0xff]  ;;  %2312 = vmatpush.msra.mxu0 %v516_v11 }
 0x1f9   :  { %v644_v13 = vld [vmem:[%s10776_s1 + $0x1288] sm:$0xff]  ;;  %2332 = vmatpush.msra.mxu1 %v580_v12 }
 0x1fa   :  { %v712_v14 = vld [vmem:[%s10776_s1 + $0x14a8] sm:$0xff]  ;;  %2352 = vmatpush.msra.mxu2 %v644_v13 }
 0x1fb   :  { %v512_v15 = vld [vmem:[%s10776_s1 + $0xe68] sm:$0xff]  ;;  %2371 = vmatpush.msra.mxu3 %v712_v14 }
 0x1fc   :  { %v576_v16 = vld [vmem:[%s10776_s1 + $0x1068] sm:$0xff]  ;;  %2313 = vmatpush.msra.mxu0 %v512_v15 }
 0x1fd   :  { %v640_v17 = vld [vmem:[%s10776_s1 + $0x1268] sm:$0xff]  ;;  %2333 = vmatpush.msra.mxu1 %v576_v16 }
 0x1fe   :  { %v708_v18 = vld [vmem:[%s10776_s1 + $0x1488] sm:$0xff]  ;;  %2353 = vmatpush.msra.mxu2 %v640_v17 }
 0x1ff   :  { %v508_v19 = vld [vmem:[%s10776_s1 + $0xe48] sm:$0xff]  ;;  %2372 = vmatpush.msra.mxu3 %v708_v18 }
 0x200   :  { %v572_v20 = vld [vmem:[%s10776_s1 + $0x1048] sm:$0xff]  ;;  %2314 = vmatpush.msra.mxu0 %v508_v19 }
 0x201   :  { %v636_v21 = vld [vmem:[%s10776_s1 + $0x1248] sm:$0xff]  ;;  %2334 = vmatpush.msra.mxu1 %v572_v20 }
 0x202   :  { %v704_v22 = vld [vmem:[%s10776_s1 + $0x1468] sm:$0xff]  ;;  %2354 = vmatpush.msra.mxu2 %v636_v21 }
 0x203   :  { %v504_v23 = vld [vmem:[%s10776_s1 + $0xe28] sm:$0xff]  ;;  %2373 = vmatpush.msra.mxu3 %v704_v22 }
 0x204   :  { %v568_v24 = vld [vmem:[%s10776_s1 + $0x1028] sm:$0xff]  ;;  %2315 = vmatpush.msra.mxu0 %v504_v23 }
 0x205   :  { %v632_v25 = vld [vmem:[%s10776_s1 + $0x1228] sm:$0xff]  ;;  %2335 = vmatpush.msra.mxu1 %v568_v24 }
 0x206   :  { %v700_v26 = vld [vmem:[%s10776_s1 + $0x1448] sm:$0xff]  ;;  %2355 = vmatpush.msra.mxu2 %v632_v25 }
 0x207   :  { %v500_v27 = vld [vmem:[%s10776_s1 + $0xe08] sm:$0xff]  ;;  %2374 = vmatpush.msra.mxu3 %v700_v26 }
 0x208   :  { %v564_v28 = vld [vmem:[%s10776_s1 + $0x1008] sm:$0xff]  ;;  %2316 = vmatpush.msra.mxu0 %v500_v27 }
 0x209   :  { %v628_v29 = vld [vmem:[%s10776_s1 + $0x1208] sm:$0xff]  ;;  %2336 = vmatpush.msra.mxu1 %v564_v28  ;;  %2317 = vmatmul.f32.vlgmr.msra.gmra.mxu0 %v4412_v35 }
 0x20a   :  { %v696_v30 = vld [vmem:[%s10776_s1 + $0x1428] sm:$0xff]  ;;  %2356 = vmatpush.msra.mxu2 %v628_v29  ;;  %2337 = vmatmul.f32.vlgmr.msra.gmra.mxu1 %v4414_v41 }
 0x20b   :  { %v816_v31 = vld [vmem:[%s10776_s1 + $0x17e8] sm:$0xff]  ;;  %2375 = vmatpush.msra.mxu3 %v696_v30 }
 0x20c   :  { %v880_v32 = vld [vmem:[%s10776_s1 + $0x19e8] sm:$0xff]  ;;  %2381 = vmatpush.msrb.mxu0 %v816_v31 }
 0x20d   :  { %v944_v33 = vld [vmem:[%s10776_s1 + $0x1be8] sm:$0xff]  ;;  %2401 = vmatpush.msrb.mxu1 %v880_v32 }
 0x20e   :  { %v692_v34 = vld [vmem:[%s10776_s1 + $0x1408] sm:$0xff]  ;;  %2421 = vmatpush.msrb.mxu2 %v944_v33 }
 0x20f   :  { %v4413_v36 = vld [vmem:[%s10777_s0 + $0x48] sm:$0xff]  ;;  %2376 = vmatpush.msra.mxu3 %v692_v34 }
 0x210   :  { %2357 = vmatmul.f32.vlgmr.msra.gmra.mxu2 %v4413_v36  ;;  %v812_v37 = vld [vmem:[%s10776_s1 + $0x17c8] sm:$0xff]  ;;  %2377 = vmatmul.f32.vlgmr.msra.gmra.mxu3 %v4415_v42 }
 0x211   :  { %v876_v38 = vld [vmem:[%s10776_s1 + $0x19c8] sm:$0xff]  ;;  %2382 = vmatpush.msrb.mxu0 %v812_v37 }
 0x212   :  { %v940_v39 = vld [vmem:[%s10776_s1 + $0x1bc8] sm:$0xff]  ;;  %2402 = vmatpush.msrb.mxu1 %v876_v38 }
 0x213   :  { %v1008_v40 = vld [vmem:[%s10776_s1 + $0x1de8] sm:$0xff]  ;;  %2422 = vmatpush.msrb.mxu2 %v940_v39  ;;  %v4416_v39 = vld [vmem:[%s10777_s0 + $0x58] sm:$0xff] }
 0x214   :  { %v808_v43 = vld [vmem:[%s10776_s1 + $0x17a8] sm:$0xff]  ;;  %2441 = vmatpush.msrb.mxu3 %v1008_v40 }
 0x215   :  { %v872_v44 = vld [vmem:[%s10776_s1 + $0x19a8] sm:$0xff]  ;;  %2383 = vmatpush.msrb.mxu0 %v808_v43 }
 0x216   :  { %v936_v45 = vld [vmem:[%s10776_s1 + $0x1ba8] sm:$0xff]  ;;  %2403 = vmatpush.msrb.mxu1 %v872_v44 }
 0x217   :  { %v1004_v46 = vld [vmem:[%s10776_s1 + $0x1dc8] sm:$0xff]  ;;  %2423 = vmatpush.msrb.mxu2 %v936_v45  ;;  %v4418_v45 = vld [vmem:[%s10777_s0 + $0x60] sm:$0xff] }
 0x218   :  { %v804_v47 = vld [vmem:[%s10776_s1 + $0x1788] sm:$0xff]  ;;  %2442 = vmatpush.msrb.mxu3 %v1004_v46  ;;  %v4419_v46 = vld [vmem:[%s10777_s0 + $0x70] sm:$0xff] }
 0x219   :  { %v868_v48 = vld [vmem:[%s10776_s1 + $0x1988] sm:$0xff]  ;;  %2384 = vmatpush.msrb.mxu0 %v804_v47 }
 0x21a   :  { %v932_v49 = vld [vmem:[%s10776_s1 + $0x1b88] sm:$0xff]  ;;  %2404 = vmatpush.msrb.mxu1 %v868_v48 }
 0x21b   :  { %v1000_v50 = vld [vmem:[%s10776_s1 + $0x1da8] sm:$0xff]  ;;  %2424 = vmatpush.msrb.mxu2 %v932_v49 }
 0x21c   :  { %v800_v51 = vld [vmem:[%s10776_s1 + $0x1768] sm:$0xff]  ;;  %2443 = vmatpush.msrb.mxu3 %v1000_v50 }
 0x21d   :  { %v864_v52 = vld [vmem:[%s10776_s1 + $0x1968] sm:$0xff]  ;;  %2385 = vmatpush.msrb.mxu0 %v800_v51 }
 0x21e   :  { %v928_v53 = vld [vmem:[%s10776_s1 + $0x1b68] sm:$0xff]  ;;  %2405 = vmatpush.msrb.mxu1 %v864_v52 }
 0x21f   :  { %v996_v54 = vld [vmem:[%s10776_s1 + $0x1d88] sm:$0xff]  ;;  %2425 = vmatpush.msrb.mxu2 %v928_v53 }
 0x220   :  { %v796_v55 = vld [vmem:[%s10776_s1 + $0x1748] sm:$0xff]  ;;  %2444 = vmatpush.msrb.mxu3 %v996_v54 }
 0x221   :  { %v860_v56 = vld [vmem:[%s10776_s1 + $0x1948] sm:$0xff]  ;;  %2386 = vmatpush.msrb.mxu0 %v796_v55 }
 0x222   :  { %v924_v57 = vld [vmem:[%s10776_s1 + $0x1b48] sm:$0xff]  ;;  %2406 = vmatpush.msrb.mxu1 %v860_v56 }
 0x223   :  { %v992_v58 = vld [vmem:[%s10776_s1 + $0x1d68] sm:$0xff]  ;;  %2426 = vmatpush.msrb.mxu2 %v924_v57 }
 0x224   :  { %v792_v59 = vld [vmem:[%s10776_s1 + $0x1728] sm:$0xff]  ;;  %2445 = vmatpush.msrb.mxu3 %v992_v58 }
 0x225   :  { %v856_v60 = vld [vmem:[%s10776_s1 + $0x1928] sm:$0xff]  ;;  %2387 = vmatpush.msrb.mxu0 %v792_v59 }
 0x226   :  { %v920_v61 = vld [vmem:[%s10776_s1 + $0x1b28] sm:$0xff]  ;;  %2407 = vmatpush.msrb.mxu1 %v856_v60 }
 0x227   :  { %v988_v62 = vld [vmem:[%s10776_s1 + $0x1d48] sm:$0xff]  ;;  %2427 = vmatpush.msrb.mxu2 %v920_v61 }
 0x228   :  { %v788_v63 = vld [vmem:[%s10776_s1 + $0x1708] sm:$0xff]  ;;  %2446 = vmatpush.msrb.mxu3 %v988_v62 }
 0x229   :  { %v852_v0 = vld [vmem:[%s10776_s1 + $0x1908] sm:$0xff]  ;;  %2388 = vmatpush.msrb.mxu0 %v788_v63 }
 0x22a   :  { %v916_v1 = vld [vmem:[%s10776_s1 + $0x1b08] sm:$0xff]  ;;  %2408 = vmatpush.msrb.mxu1 %v852_v0 }
 0x22b   :  { %v984_v2 = vld [vmem:[%s10776_s1 + $0x1d28] sm:$0xff]  ;;  %2428 = vmatpush.msrb.mxu2 %v916_v1 }
 0x22c   :  { %v784_v3 = vld [vmem:[%s10776_s1 + $0x16e8] sm:$0xff]  ;;  %2447 = vmatpush.msrb.mxu3 %v984_v2 }
 0x22d   :  { %v848_v4 = vld [vmem:[%s10776_s1 + $0x18e8] sm:$0xff]  ;;  %2389 = vmatpush.msrb.mxu0 %v784_v3 }
 0x22e   :  { %v912_v5 = vld [vmem:[%s10776_s1 + $0x1ae8] sm:$0xff]  ;;  %2409 = vmatpush.msrb.mxu1 %v848_v4 }
 0x22f   :  { %v980_v6 = vld [vmem:[%s10776_s1 + $0x1d08] sm:$0xff]  ;;  %2429 = vmatpush.msrb.mxu2 %v912_v5 }
 0x230   :  { %v780_v7 = vld [vmem:[%s10776_s1 + $0x16c8] sm:$0xff]  ;;  %2448 = vmatpush.msrb.mxu3 %v980_v6 }
 0x231   :  { %v844_v8 = vld [vmem:[%s10776_s1 + $0x18c8] sm:$0xff]  ;;  %2390 = vmatpush.msrb.mxu0 %v780_v7 }
 0x232   :  { %v908_v9 = vld [vmem:[%s10776_s1 + $0x1ac8] sm:$0xff]  ;;  %2410 = vmatpush.msrb.mxu1 %v844_v8 }
 0x233   :  { %v976_v10 = vld [vmem:[%s10776_s1 + $0x1ce8] sm:$0xff]  ;;  %2430 = vmatpush.msrb.mxu2 %v908_v9 }
 0x234   :  { %v776_v11 = vld [vmem:[%s10776_s1 + $0x16a8] sm:$0xff]  ;;  %2449 = vmatpush.msrb.mxu3 %v976_v10 }
 0x235   :  { %v840_v12 = vld [vmem:[%s10776_s1 + $0x18a8] sm:$0xff]  ;;  %2391 = vmatpush.msrb.mxu0 %v776_v11 }
 0x236   :  { %v904_v13 = vld [vmem:[%s10776_s1 + $0x1aa8] sm:$0xff]  ;;  %2411 = vmatpush.msrb.mxu1 %v840_v12 }
 0x237   :  { %v972_v14 = vld [vmem:[%s10776_s1 + $0x1cc8] sm:$0xff]  ;;  %2431 = vmatpush.msrb.mxu2 %v904_v13 }
 0x238   :  { %v772_v15 = vld [vmem:[%s10776_s1 + $0x1688] sm:$0xff]  ;;  %2450 = vmatpush.msrb.mxu3 %v972_v14 }
 0x239   :  { %v836_v16 = vld [vmem:[%s10776_s1 + $0x1888] sm:$0xff]  ;;  %2392 = vmatpush.msrb.mxu0 %v772_v15 }
 0x23a   :  { %v900_v17 = vld [vmem:[%s10776_s1 + $0x1a88] sm:$0xff]  ;;  %2412 = vmatpush.msrb.mxu1 %v836_v16 }
 0x23b   :  { %v968_v18 = vld [vmem:[%s10776_s1 + $0x1ca8] sm:$0xff]  ;;  %2432 = vmatpush.msrb.mxu2 %v900_v17 }
 0x23c   :  { %v768_v19 = vld [vmem:[%s10776_s1 + $0x1668] sm:$0xff]  ;;  %2451 = vmatpush.msrb.mxu3 %v968_v18 }
 0x23d   :  { %v832_v20 = vld [vmem:[%s10776_s1 + $0x1868] sm:$0xff]  ;;  %2393 = vmatpush.msrb.mxu0 %v768_v19 }
 0x23e   :  { %v896_v21 = vld [vmem:[%s10776_s1 + $0x1a68] sm:$0xff]  ;;  %2413 = vmatpush.msrb.mxu1 %v832_v20 }
 0x23f   :  { %v964_v22 = vld [vmem:[%s10776_s1 + $0x1c88] sm:$0xff]  ;;  %2433 = vmatpush.msrb.mxu2 %v896_v21 }
 0x240   :  { %v764_v23 = vld [vmem:[%s10776_s1 + $0x1648] sm:$0xff]  ;;  %2452 = vmatpush.msrb.mxu3 %v964_v22 }
 0x241   :  { %v828_v24 = vld [vmem:[%s10776_s1 + $0x1848] sm:$0xff]  ;;  %2394 = vmatpush.msrb.mxu0 %v764_v23 }
 0x242   :  { %v892_v25 = vld [vmem:[%s10776_s1 + $0x1a48] sm:$0xff]  ;;  %2414 = vmatpush.msrb.mxu1 %v828_v24 }
 0x243   :  { %v960_v26 = vld [vmem:[%s10776_s1 + $0x1c68] sm:$0xff]  ;;  %2434 = vmatpush.msrb.mxu2 %v892_v25 }
 0x244   :  { %v760_v27 = vld [vmem:[%s10776_s1 + $0x1628] sm:$0xff]  ;;  %2453 = vmatpush.msrb.mxu3 %v960_v26 }
 0x245   :  { %v824_v28 = vld [vmem:[%s10776_s1 + $0x1828] sm:$0xff]  ;;  %2395 = vmatpush.msrb.mxu0 %v760_v27 }
 0x246   :  { %v888_v29 = vld [vmem:[%s10776_s1 + $0x1a28] sm:$0xff]  ;;  %2415 = vmatpush.msrb.mxu1 %v824_v28 }
 0x247   :  { %v956_v30 = vld [vmem:[%s10776_s1 + $0x1c48] sm:$0xff]  ;;  %2435 = vmatpush.msrb.mxu2 %v888_v29 }
 0x248   :  { %v756_v31 = vld [vmem:[%s10776_s1 + $0x1608] sm:$0xff]  ;;  %2454 = vmatpush.msrb.mxu3 %v956_v30 }
 0x249   :  { %v820_v32 = vld [vmem:[%s10776_s1 + $0x1808] sm:$0xff]  ;;  %2396 = vmatpush.msrb.mxu0 %v756_v31 }
 0x24a   :  { %v884_v33 = vld [vmem:[%s10776_s1 + $0x1a08] sm:$0xff]  ;;  %2416 = vmatpush.msrb.mxu1 %v820_v32  ;;  %2397 = vmatmul.f32.vlgmr.msrb.gmra.mxu0 %v4416_v39 }
 0x24b   :  { %v952_v34 = vld [vmem:[%s10776_s1 + $0x1c28] sm:$0xff]  ;;  %2436 = vmatpush.msrb.mxu2 %v884_v33  ;;  %2417 = vmatmul.f32.vlgmr.msrb.gmra.mxu1 %v4418_v45 }
 0x24c   :  { %v1072_v35 = vld [vmem:[%s10776_s1 + $0x1fe8] sm:$0xff]  ;;  %2455 = vmatpush.msrb.mxu3 %v952_v34 }
 0x24d   :  { %v1136_v36 = vld [vmem:[%s10776_s1 + $0x21e8] sm:$0xff]  ;;  %2461 = vmatpush.msra.mxu0 %v1072_v35 }
 0x24e   :  { %v1200_v37 = vld [vmem:[%s10776_s1 + $0x23e8] sm:$0xff]  ;;  %2481 = vmatpush.msra.mxu1 %v1136_v36 }
 0x24f   :  { %v948_v38 = vld [vmem:[%s10776_s1 + $0x1c08] sm:$0xff]  ;;  %2501 = vmatpush.msra.mxu2 %v1200_v37 }
 0x250   :  { %v4417_v40 = vld [vmem:[%s10777_s0 + $0x68] sm:$0xff]  ;;  %2456 = vmatpush.msrb.mxu3 %v948_v38 }
 0x251   :  { %2437 = vmatmul.f32.vlgmr.msrb.gmra.mxu2 %v4417_v40  ;;  %v1068_v41 = vld [vmem:[%s10776_s1 + $0x1fc8] sm:$0xff]  ;;  %2457 = vmatmul.f32.vlgmr.msrb.gmra.mxu3 %v4419_v46 }
 0x252   :  { %v1132_v42 = vld [vmem:[%s10776_s1 + $0x21c8] sm:$0xff]  ;;  %2462 = vmatpush.msra.mxu0 %v1068_v41 }
 0x253   :  { %v1196_v43 = vld [vmem:[%s10776_s1 + $0x23c8] sm:$0xff]  ;;  %2482 = vmatpush.msra.mxu1 %v1132_v42 }
 0x254   :  { %v1264_v44 = vld [vmem:[%s10776_s1 + $0x25e8] sm:$0xff]  ;;  %2502 = vmatpush.msra.mxu2 %v1196_v43  ;;  %v4420_v43 = vld [vmem:[%s10777_s0 + $0x78] sm:$0xff] }
 0x255   :  { %v1064_v47 = vld [vmem:[%s10776_s1 + $0x1fa8] sm:$0xff]  ;;  %2521 = vmatpush.msra.mxu3 %v1264_v44 }
 0x256   :  { %v1128_v48 = vld [vmem:[%s10776_s1 + $0x21a8] sm:$0xff]  ;;  %2463 = vmatpush.msra.mxu0 %v1064_v47 }
 0x257   :  { %v1192_v49 = vld [vmem:[%s10776_s1 + $0x23a8] sm:$0xff]  ;;  %2483 = vmatpush.msra.mxu1 %v1128_v48 }
 0x258   :  { %v1260_v50 = vld [vmem:[%s10776_s1 + $0x25c8] sm:$0xff]  ;;  %2503 = vmatpush.msra.mxu2 %v1192_v49  ;;  %v4422_v49 = vld [vmem:[%s10777_s0 + $0x80] sm:$0xff] }
 0x259   :  { %v1060_v51 = vld [vmem:[%s10776_s1 + $0x1f88] sm:$0xff]  ;;  %2522 = vmatpush.msra.mxu3 %v1260_v50  ;;  %v4423_v50 = vld [vmem:[%s10777_s0 + $0x90] sm:$0xff] }
 0x25a   :  { %v1124_v52 = vld [vmem:[%s10776_s1 + $0x2188] sm:$0xff]  ;;  %2464 = vmatpush.msra.mxu0 %v1060_v51 }
 0x25b   :  { %v1188_v53 = vld [vmem:[%s10776_s1 + $0x2388] sm:$0xff]  ;;  %2484 = vmatpush.msra.mxu1 %v1124_v52 }
 0x25c   :  { %v1256_v54 = vld [vmem:[%s10776_s1 + $0x25a8] sm:$0xff]  ;;  %2504 = vmatpush.msra.mxu2 %v1188_v53 }
 0x25d   :  { %v1056_v55 = vld [vmem:[%s10776_s1 + $0x1f68] sm:$0xff]  ;;  %2523 = vmatpush.msra.mxu3 %v1256_v54 }
 0x25e   :  { %v1120_v56 = vld [vmem:[%s10776_s1 + $0x2168] sm:$0xff]  ;;  %2465 = vmatpush.msra.mxu0 %v1056_v55 }
 0x25f   :  { %v1184_v57 = vld [vmem:[%s10776_s1 + $0x2368] sm:$0xff]  ;;  %2485 = vmatpush.msra.mxu1 %v1120_v56 }
 0x260   :  { %v1252_v58 = vld [vmem:[%s10776_s1 + $0x2588] sm:$0xff]  ;;  %2505 = vmatpush.msra.mxu2 %v1184_v57 }
 0x261   :  { %v1052_v59 = vld [vmem:[%s10776_s1 + $0x1f48] sm:$0xff]  ;;  %2524 = vmatpush.msra.mxu3 %v1252_v58 }
 0x262   :  { %v1116_v60 = vld [vmem:[%s10776_s1 + $0x2148] sm:$0xff]  ;;  %2466 = vmatpush.msra.mxu0 %v1052_v59 }
 0x263   :  { %v1180_v61 = vld [vmem:[%s10776_s1 + $0x2348] sm:$0xff]  ;;  %2486 = vmatpush.msra.mxu1 %v1116_v60 }
 0x264   :  { %v1248_v62 = vld [vmem:[%s10776_s1 + $0x2568] sm:$0xff]  ;;  %2506 = vmatpush.msra.mxu2 %v1180_v61 }
 0x265   :  { %v1048_v63 = vld [vmem:[%s10776_s1 + $0x1f28] sm:$0xff]  ;;  %2525 = vmatpush.msra.mxu3 %v1248_v62 }
 0x266   :  { %v1112_v0 = vld [vmem:[%s10776_s1 + $0x2128] sm:$0xff]  ;;  %2467 = vmatpush.msra.mxu0 %v1048_v63 }
 0x267   :  { %v1176_v1 = vld [vmem:[%s10776_s1 + $0x2328] sm:$0xff]  ;;  %2487 = vmatpush.msra.mxu1 %v1112_v0 }
 0x268   :  { %v1244_v2 = vld [vmem:[%s10776_s1 + $0x2548] sm:$0xff]  ;;  %2507 = vmatpush.msra.mxu2 %v1176_v1 }
 0x269   :  { %v1044_v3 = vld [vmem:[%s10776_s1 + $0x1f08] sm:$0xff]  ;;  %2526 = vmatpush.msra.mxu3 %v1244_v2 }
 0x26a   :  { %v1108_v4 = vld [vmem:[%s10776_s1 + $0x2108] sm:$0xff]  ;;  %2468 = vmatpush.msra.mxu0 %v1044_v3 }
 0x26b   :  { %v1172_v5 = vld [vmem:[%s10776_s1 + $0x2308] sm:$0xff]  ;;  %2488 = vmatpush.msra.mxu1 %v1108_v4 }
 0x26c   :  { %v1240_v6 = vld [vmem:[%s10776_s1 + $0x2528] sm:$0xff]  ;;  %2508 = vmatpush.msra.mxu2 %v1172_v5 }
 0x26d   :  { %v1040_v7 = vld [vmem:[%s10776_s1 + $0x1ee8] sm:$0xff]  ;;  %2527 = vmatpush.msra.mxu3 %v1240_v6 }
 0x26e   :  { %v1104_v8 = vld [vmem:[%s10776_s1 + $0x20e8] sm:$0xff]  ;;  %2469 = vmatpush.msra.mxu0 %v1040_v7 }
 0x26f   :  { %v1168_v9 = vld [vmem:[%s10776_s1 + $0x22e8] sm:$0xff]  ;;  %2489 = vmatpush.msra.mxu1 %v1104_v8 }
 0x270   :  { %v1236_v10 = vld [vmem:[%s10776_s1 + $0x2508] sm:$0xff]  ;;  %2509 = vmatpush.msra.mxu2 %v1168_v9 }
 0x271   :  { %v1036_v11 = vld [vmem:[%s10776_s1 + $0x1ec8] sm:$0xff]  ;;  %2528 = vmatpush.msra.mxu3 %v1236_v10 }
 0x272   :  { %v1100_v12 = vld [vmem:[%s10776_s1 + $0x20c8] sm:$0xff]  ;;  %2470 = vmatpush.msra.mxu0 %v1036_v11 }
 0x273   :  { %v1164_v13 = vld [vmem:[%s10776_s1 + $0x22c8] sm:$0xff]  ;;  %2490 = vmatpush.msra.mxu1 %v1100_v12 }
 0x274   :  { %v1232_v14 = vld [vmem:[%s10776_s1 + $0x24e8] sm:$0xff]  ;;  %2510 = vmatpush.msra.mxu2 %v1164_v13 }
 0x275   :  { %v1032_v15 = vld [vmem:[%s10776_s1 + $0x1ea8] sm:$0xff]  ;;  %2529 = vmatpush.msra.mxu3 %v1232_v14 }
 0x276   :  { %v1096_v16 = vld [vmem:[%s10776_s1 + $0x20a8] sm:$0xff]  ;;  %2471 = vmatpush.msra.mxu0 %v1032_v15 }
 0x277   :  { %v1160_v17 = vld [vmem:[%s10776_s1 + $0x22a8] sm:$0xff]  ;;  %2491 = vmatpush.msra.mxu1 %v1096_v16 }
 0x278   :  { %v1228_v18 = vld [vmem:[%s10776_s1 + $0x24c8] sm:$0xff]  ;;  %2511 = vmatpush.msra.mxu2 %v1160_v17 }
 0x279   :  { %v1028_v19 = vld [vmem:[%s10776_s1 + $0x1e88] sm:$0xff]  ;;  %2530 = vmatpush.msra.mxu3 %v1228_v18 }
 0x27a   :  { %v1092_v20 = vld [vmem:[%s10776_s1 + $0x2088] sm:$0xff]  ;;  %2472 = vmatpush.msra.mxu0 %v1028_v19 }
 0x27b   :  { %v1156_v21 = vld [vmem:[%s10776_s1 + $0x2288] sm:$0xff]  ;;  %2492 = vmatpush.msra.mxu1 %v1092_v20 }
 0x27c   :  { %v1224_v22 = vld [vmem:[%s10776_s1 + $0x24a8] sm:$0xff]  ;;  %2512 = vmatpush.msra.mxu2 %v1156_v21 }
 0x27d   :  { %v1024_v23 = vld [vmem:[%s10776_s1 + $0x1e68] sm:$0xff]  ;;  %2531 = vmatpush.msra.mxu3 %v1224_v22 }
 0x27e   :  { %v1088_v24 = vld [vmem:[%s10776_s1 + $0x2068] sm:$0xff]  ;;  %2473 = vmatpush.msra.mxu0 %v1024_v23 }
 0x27f   :  { %v1152_v25 = vld [vmem:[%s10776_s1 + $0x2268] sm:$0xff]  ;;  %2493 = vmatpush.msra.mxu1 %v1088_v24 }
 0x280   :  { %v1220_v26 = vld [vmem:[%s10776_s1 + $0x2488] sm:$0xff]  ;;  %2513 = vmatpush.msra.mxu2 %v1152_v25 }
 0x281   :  { %v1020_v27 = vld [vmem:[%s10776_s1 + $0x1e48] sm:$0xff]  ;;  %2532 = vmatpush.msra.mxu3 %v1220_v26 }
 0x282   :  { %v1084_v28 = vld [vmem:[%s10776_s1 + $0x2048] sm:$0xff]  ;;  %2474 = vmatpush.msra.mxu0 %v1020_v27 }
 0x283   :  { %v1148_v29 = vld [vmem:[%s10776_s1 + $0x2248] sm:$0xff]  ;;  %2494 = vmatpush.msra.mxu1 %v1084_v28 }
 0x284   :  { %v1216_v30 = vld [vmem:[%s10776_s1 + $0x2468] sm:$0xff]  ;;  %2514 = vmatpush.msra.mxu2 %v1148_v29 }
 0x285   :  { %v1016_v31 = vld [vmem:[%s10776_s1 + $0x1e28] sm:$0xff]  ;;  %2533 = vmatpush.msra.mxu3 %v1216_v30 }
 0x286   :  { %v1080_v32 = vld [vmem:[%s10776_s1 + $0x2028] sm:$0xff]  ;;  %2475 = vmatpush.msra.mxu0 %v1016_v31 }
 0x287   :  { %v1144_v33 = vld [vmem:[%s10776_s1 + $0x2228] sm:$0xff]  ;;  %2495 = vmatpush.msra.mxu1 %v1080_v32 }
 0x288   :  { %v1212_v34 = vld [vmem:[%s10776_s1 + $0x2448] sm:$0xff]  ;;  %2515 = vmatpush.msra.mxu2 %v1144_v33 }
 0x289   :  { %v1012_v35 = vld [vmem:[%s10776_s1 + $0x1e08] sm:$0xff]  ;;  %2534 = vmatpush.msra.mxu3 %v1212_v34 }
 0x28a   :  { %v1076_v36 = vld [vmem:[%s10776_s1 + $0x2008] sm:$0xff]  ;;  %2476 = vmatpush.msra.mxu0 %v1012_v35 }
 0x28b   :  { %v1140_v37 = vld [vmem:[%s10776_s1 + $0x2208] sm:$0xff]  ;;  %2496 = vmatpush.msra.mxu1 %v1076_v36  ;;  %2477 = vmatmul.f32.vlgmr.msra.gmra.mxu0 %v4420_v43 }
 0x28c   :  { %v1208_v38 = vld [vmem:[%s10776_s1 + $0x2428] sm:$0xff]  ;;  %2516 = vmatpush.msra.mxu2 %v1140_v37  ;;  %2497 = vmatmul.f32.vlgmr.msra.gmra.mxu1 %v4422_v49 }
 0x28d   :  { %v1328_v39 = vld [vmem:[%s10776_s1 + $0x27e8] sm:$0xff]  ;;  %2535 = vmatpush.msra.mxu3 %v1208_v38 }
 0x28e   :  { %v1392_v40 = vld [vmem:[%s10776_s1 + $0x29e8] sm:$0xff]  ;;  %2541 = vmatpush.msrb.mxu0 %v1328_v39 }
 0x28f   :  { %v1456_v41 = vld [vmem:[%s10776_s1 + $0x2be8] sm:$0xff]  ;;  %2561 = vmatpush.msrb.mxu1 %v1392_v40 }
 0x290   :  { %v1204_v42 = vld [vmem:[%s10776_s1 + $0x2408] sm:$0xff]  ;;  %2581 = vmatpush.msrb.mxu2 %v1456_v41 }
 0x291   :  { %v4421_v44 = vld [vmem:[%s10777_s0 + $0x88] sm:$0xff]  ;;  %2536 = vmatpush.msra.mxu3 %v1204_v42 }
 0x292   :  { %2517 = vmatmul.f32.vlgmr.msra.gmra.mxu2 %v4421_v44  ;;  %v1324_v45 = vld [vmem:[%s10776_s1 + $0x27c8] sm:$0xff]  ;;  %2537 = vmatmul.f32.vlgmr.msra.gmra.mxu3 %v4423_v50 }
 0x293   :  { %v1388_v46 = vld [vmem:[%s10776_s1 + $0x29c8] sm:$0xff]  ;;  %2542 = vmatpush.msrb.mxu0 %v1324_v45  ;;  %v113_v45 = vld [vmem:[%s10776_s1 + $0x1f0] sm:$0xff] }
 0x294   :  { %v1452_v47 = vld [vmem:[%s10776_s1 + $0x2bc8] sm:$0xff]  ;;  %2562 = vmatpush.msrb.mxu1 %v1388_v46 }
 0x295   :  { %v1520_v48 = vld [vmem:[%s10776_s1 + $0x2de8] sm:$0xff]  ;;  %2582 = vmatpush.msrb.mxu2 %v1452_v47  ;;  %v4424_v47 = vld [vmem:[%s10777_s0 + $0x98] sm:$0xff] }
 0x296   :  { %v1320_v51 = vld [vmem:[%s10776_s1 + $0x27a8] sm:$0xff]  ;;  %2601 = vmatpush.msrb.mxu3 %v1520_v48 }
 0x297   :  { %v1384_v52 = vld [vmem:[%s10776_s1 + $0x29a8] sm:$0xff]  ;;  %2543 = vmatpush.msrb.mxu0 %v1320_v51  ;;  %v109_v51 = vld [vmem:[%s10776_s1 + $0x1d0] sm:$0xff] }
 0x298   :  { %v1448_v53 = vld [vmem:[%s10776_s1 + $0x2ba8] sm:$0xff]  ;;  %2563 = vmatpush.msrb.mxu1 %v1384_v52  ;;  %v177_v52 = vld [vmem:[%s10776_s1 + $0x3f0] sm:$0xff] }
 0x299   :  { %v1516_v54 = vld [vmem:[%s10776_s1 + $0x2dc8] sm:$0xff]  ;;  %2583 = vmatpush.msrb.mxu2 %v1448_v53  ;;  %v4426_v53 = vld [vmem:[%s10777_s0 + $0xa0] sm:$0xff] }
 0x29a   :  { %v1316_v55 = vld [vmem:[%s10776_s1 + $0x2788] sm:$0xff]  ;;  %2602 = vmatpush.msrb.mxu3 %v1516_v54  ;;  %v4427_v54 = vld [vmem:[%s10777_s0 + $0xb0] sm:$0xff] }
 0x29b   :  { %v1380_v56 = vld [vmem:[%s10776_s1 + $0x2988] sm:$0xff]  ;;  %2544 = vmatpush.msrb.mxu0 %v1316_v55 }
 0x29c   :  { %v1444_v57 = vld [vmem:[%s10776_s1 + $0x2b88] sm:$0xff]  ;;  %2564 = vmatpush.msrb.mxu1 %v1380_v56 }
 0x29d   :  { %v1512_v58 = vld [vmem:[%s10776_s1 + $0x2da8] sm:$0xff]  ;;  %2584 = vmatpush.msrb.mxu2 %v1444_v57  ;;  %v105_v57 = vld [vmem:[%s10776_s1 + $0x1b0] sm:$0xff] }
 0x29e   :  { %v1312_v59 = vld [vmem:[%s10776_s1 + $0x2768] sm:$0xff]  ;;  %2603 = vmatpush.msrb.mxu3 %v1512_v58  ;;  %v173_v58 = vld [vmem:[%s10776_s1 + $0x3d0] sm:$0xff] }
 0x29f   :  { %v1376_v60 = vld [vmem:[%s10776_s1 + $0x2968] sm:$0xff]  ;;  %2545 = vmatpush.msrb.mxu0 %v1312_v59 }
 0x2a0   :  { %v1440_v61 = vld [vmem:[%s10776_s1 + $0x2b68] sm:$0xff]  ;;  %2565 = vmatpush.msrb.mxu1 %v1376_v60 }
 0x2a1   :  { %v1508_v62 = vld [vmem:[%s10776_s1 + $0x2d88] sm:$0xff]  ;;  %2585 = vmatpush.msrb.mxu2 %v1440_v61  ;;  %v101_v61 = vld [vmem:[%s10776_s1 + $0x190] sm:$0xff] }
 0x2a2   :  { %v1308_v63 = vld [vmem:[%s10776_s1 + $0x2748] sm:$0xff]  ;;  %2604 = vmatpush.msrb.mxu3 %v1508_v62  ;;  %v169_v62 = vld [vmem:[%s10776_s1 + $0x3b0] sm:$0xff] }
 0x2a3   :  { %v1372_v0 = vld [vmem:[%s10776_s1 + $0x2948] sm:$0xff]  ;;  %2546 = vmatpush.msrb.mxu0 %v1308_v63 }
 0x2a4   :  { %v1436_v1 = vld [vmem:[%s10776_s1 + $0x2b48] sm:$0xff]  ;;  %2566 = vmatpush.msrb.mxu1 %v1372_v0 }
 0x2a5   :  { %v1504_v2 = vld [vmem:[%s10776_s1 + $0x2d68] sm:$0xff]  ;;  %2586 = vmatpush.msrb.mxu2 %v1436_v1  ;;  %v97_v1 = vld [vmem:[%s10776_s1 + $0x170] sm:$0xff] }
 0x2a6   :  { %v1304_v3 = vld [vmem:[%s10776_s1 + $0x2728] sm:$0xff]  ;;  %2605 = vmatpush.msrb.mxu3 %v1504_v2  ;;  %v165_v2 = vld [vmem:[%s10776_s1 + $0x390] sm:$0xff] }
 0x2a7   :  { %v1368_v4 = vld [vmem:[%s10776_s1 + $0x2928] sm:$0xff]  ;;  %2547 = vmatpush.msrb.mxu0 %v1304_v3 }
 0x2a8   :  { %v1432_v5 = vld [vmem:[%s10776_s1 + $0x2b28] sm:$0xff]  ;;  %2567 = vmatpush.msrb.mxu1 %v1368_v4 }
 0x2a9   :  { %v1500_v6 = vld [vmem:[%s10776_s1 + $0x2d48] sm:$0xff]  ;;  %2587 = vmatpush.msrb.mxu2 %v1432_v5  ;;  %v93_v5 = vld [vmem:[%s10776_s1 + $0x150] sm:$0xff] }
 0x2aa   :  { %v1300_v7 = vld [vmem:[%s10776_s1 + $0x2708] sm:$0xff]  ;;  %2606 = vmatpush.msrb.mxu3 %v1500_v6  ;;  %v161_v6 = vld [vmem:[%s10776_s1 + $0x370] sm:$0xff] }
 0x2ab   :  { %v1364_v8 = vld [vmem:[%s10776_s1 + $0x2908] sm:$0xff]  ;;  %2548 = vmatpush.msrb.mxu0 %v1300_v7 }
 0x2ac   :  { %v1428_v9 = vld [vmem:[%s10776_s1 + $0x2b08] sm:$0xff]  ;;  %2568 = vmatpush.msrb.mxu1 %v1364_v8 }
 0x2ad   :  { %v1496_v10 = vld [vmem:[%s10776_s1 + $0x2d28] sm:$0xff]  ;;  %2588 = vmatpush.msrb.mxu2 %v1428_v9  ;;  %v89_v9 = vld [vmem:[%s10776_s1 + $0x130] sm:$0xff] }
 0x2ae   :  { %v1296_v11 = vld [vmem:[%s10776_s1 + $0x26e8] sm:$0xff]  ;;  %2607 = vmatpush.msrb.mxu3 %v1496_v10  ;;  %v157_v10 = vld [vmem:[%s10776_s1 + $0x350] sm:$0xff] }
 0x2af   :  { %v1360_v12 = vld [vmem:[%s10776_s1 + $0x28e8] sm:$0xff]  ;;  %2549 = vmatpush.msrb.mxu0 %v1296_v11 }
 0x2b0   :  { %v1424_v13 = vld [vmem:[%s10776_s1 + $0x2ae8] sm:$0xff]  ;;  %2569 = vmatpush.msrb.mxu1 %v1360_v12 }
 0x2b1   :  { %v1492_v14 = vld [vmem:[%s10776_s1 + $0x2d08] sm:$0xff]  ;;  %2589 = vmatpush.msrb.mxu2 %v1424_v13  ;;  %v85_v13 = vld [vmem:[%s10776_s1 + $0x110] sm:$0xff] }
 0x2b2   :  { %v1292_v15 = vld [vmem:[%s10776_s1 + $0x26c8] sm:$0xff]  ;;  %2608 = vmatpush.msrb.mxu3 %v1492_v14  ;;  %v153_v14 = vld [vmem:[%s10776_s1 + $0x330] sm:$0xff] }
 0x2b3   :  { %v1356_v16 = vld [vmem:[%s10776_s1 + $0x28c8] sm:$0xff]  ;;  %2550 = vmatpush.msrb.mxu0 %v1292_v15 }
 0x2b4   :  { %v1420_v17 = vld [vmem:[%s10776_s1 + $0x2ac8] sm:$0xff]  ;;  %2570 = vmatpush.msrb.mxu1 %v1356_v16 }
 0x2b5   :  { %v1488_v18 = vld [vmem:[%s10776_s1 + $0x2ce8] sm:$0xff]  ;;  %2590 = vmatpush.msrb.mxu2 %v1420_v17  ;;  %v81_v17 = vld [vmem:[%s10776_s1 + $0xf0] sm:$0xff] }
 0x2b6   :  { %v1288_v19 = vld [vmem:[%s10776_s1 + $0x26a8] sm:$0xff]  ;;  %2609 = vmatpush.msrb.mxu3 %v1488_v18  ;;  %v149_v18 = vld [vmem:[%s10776_s1 + $0x310] sm:$0xff] }
 0x2b7   :  { %v1352_v20 = vld [vmem:[%s10776_s1 + $0x28a8] sm:$0xff]  ;;  %2551 = vmatpush.msrb.mxu0 %v1288_v19 }
 0x2b8   :  { %v1416_v21 = vld [vmem:[%s10776_s1 + $0x2aa8] sm:$0xff]  ;;  %2571 = vmatpush.msrb.mxu1 %v1352_v20 }
 0x2b9   :  { %v1484_v22 = vld [vmem:[%s10776_s1 + $0x2cc8] sm:$0xff]  ;;  %2591 = vmatpush.msrb.mxu2 %v1416_v21  ;;  %v77_v21 = vld [vmem:[%s10776_s1 + $0xd0] sm:$0xff] }
 0x2ba   :  { %v1284_v23 = vld [vmem:[%s10776_s1 + $0x2688] sm:$0xff]  ;;  %2610 = vmatpush.msrb.mxu3 %v1484_v22  ;;  %v145_v22 = vld [vmem:[%s10776_s1 + $0x2f0] sm:$0xff] }
 0x2bb   :  { %v1348_v24 = vld [vmem:[%s10776_s1 + $0x2888] sm:$0xff]  ;;  %2552 = vmatpush.msrb.mxu0 %v1284_v23 }
 0x2bc   :  { %v1412_v25 = vld [vmem:[%s10776_s1 + $0x2a88] sm:$0xff]  ;;  %2572 = vmatpush.msrb.mxu1 %v1348_v24 }
 0x2bd   :  { %v1480_v26 = vld [vmem:[%s10776_s1 + $0x2ca8] sm:$0xff]  ;;  %2592 = vmatpush.msrb.mxu2 %v1412_v25  ;;  %v73_v25 = vld [vmem:[%s10776_s1 + $0xb0] sm:$0xff] }
 0x2be   :  { %v1280_v27 = vld [vmem:[%s10776_s1 + $0x2668] sm:$0xff]  ;;  %2611 = vmatpush.msrb.mxu3 %v1480_v26  ;;  %v141_v26 = vld [vmem:[%s10776_s1 + $0x2d0] sm:$0xff] }
 0x2bf   :  { %v1344_v28 = vld [vmem:[%s10776_s1 + $0x2868] sm:$0xff]  ;;  %2553 = vmatpush.msrb.mxu0 %v1280_v27 }
 0x2c0   :  { %v1408_v29 = vld [vmem:[%s10776_s1 + $0x2a68] sm:$0xff]  ;;  %2573 = vmatpush.msrb.mxu1 %v1344_v28 }
 0x2c1   :  { %v1476_v30 = vld [vmem:[%s10776_s1 + $0x2c88] sm:$0xff]  ;;  %2593 = vmatpush.msrb.mxu2 %v1408_v29  ;;  %v69_v29 = vld [vmem:[%s10776_s1 + $0x90] sm:$0xff] }
 0x2c2   :  { %v1276_v31 = vld [vmem:[%s10776_s1 + $0x2648] sm:$0xff]  ;;  %2612 = vmatpush.msrb.mxu3 %v1476_v30  ;;  %v137_v30 = vld [vmem:[%s10776_s1 + $0x2b0] sm:$0xff] }
 0x2c3   :  { %v1340_v32 = vld [vmem:[%s10776_s1 + $0x2848] sm:$0xff]  ;;  %2554 = vmatpush.msrb.mxu0 %v1276_v31 }
 0x2c4   :  { %v1404_v33 = vld [vmem:[%s10776_s1 + $0x2a48] sm:$0xff]  ;;  %2574 = vmatpush.msrb.mxu1 %v1340_v32 }
 0x2c5   :  { %v1472_v34 = vld [vmem:[%s10776_s1 + $0x2c68] sm:$0xff]  ;;  %2594 = vmatpush.msrb.mxu2 %v1404_v33  ;;  %v65_v33 = vld [vmem:[%s10776_s1 + $0x70] sm:$0xff] }
 0x2c6   :  { %v1272_v35 = vld [vmem:[%s10776_s1 + $0x2628] sm:$0xff]  ;;  %2613 = vmatpush.msrb.mxu3 %v1472_v34  ;;  %v133_v34 = vld [vmem:[%s10776_s1 + $0x290] sm:$0xff] }
 0x2c7   :  { %v1336_v36 = vld [vmem:[%s10776_s1 + $0x2828] sm:$0xff]  ;;  %2555 = vmatpush.msrb.mxu0 %v1272_v35 }
 0x2c8   :  { %v1400_v37 = vld [vmem:[%s10776_s1 + $0x2a28] sm:$0xff]  ;;  %2575 = vmatpush.msrb.mxu1 %v1336_v36 }
 0x2c9   :  { %v1468_v38 = vld [vmem:[%s10776_s1 + $0x2c48] sm:$0xff]  ;;  %2595 = vmatpush.msrb.mxu2 %v1400_v37  ;;  %v61_v37 = vld [vmem:[%s10776_s1 + $0x50] sm:$0xff] }
 0x2ca   :  { %v1268_v39 = vld [vmem:[%s10776_s1 + $0x2608] sm:$0xff]  ;;  %2614 = vmatpush.msrb.mxu3 %v1468_v38  ;;  %v129_v38 = vld [vmem:[%s10776_s1 + $0x270] sm:$0xff] }
 0x2cb   :  { %v1332_v40 = vld [vmem:[%s10776_s1 + $0x2808] sm:$0xff]  ;;  %2556 = vmatpush.msrb.mxu0 %v1268_v39 }
 0x2cc   :  { %v1396_v41 = vld [vmem:[%s10776_s1 + $0x2a08] sm:$0xff]  ;;  %2576 = vmatpush.msrb.mxu1 %v1332_v40  ;;  %2557 = vmatmul.f32.vlgmr.msrb.gmra.mxu0 %v4424_v47  ;;  %v305_v47 = vld [vmem:[%s10776_s1 + $0x7f0] sm:$0xff] }
 0x2cd   :  { %v1464_v42 = vld [vmem:[%s10776_s1 + $0x2c28] sm:$0xff]  ;;  %2596 = vmatpush.msrb.mxu2 %v1396_v41  ;;  %2577 = vmatmul.f32.vlgmr.msrb.gmra.mxu1 %v4426_v53  ;;  %v57_v41 = vld [vmem:[%s10776_s1 + $0x30] sm:$0xff] }
 0x2ce   :  { %v1584_v43 = vld [vmem:[%s10776_s1 + $0x2fe8] sm:$0xff]  ;;  %2615 = vmatpush.msrb.mxu3 %v1464_v42  ;;  %v125_v42 = vld [vmem:[%s10776_s1 + $0x250] sm:$0xff] }
 0x2cf   :  { %v1648_v44 = vld [vmem:[%s10776_s1 + $0x31e8] sm:$0xff]  ;;  %2621 = vmatpush.msra.mxu0 %v1584_v43  ;;  %2661 = vmatpush.msra.mxu2 %v113_v45  ;;  %v53_v45 = vld [vmem:[%s10776_s1 + $0x10] sm:$0xff] }
 0x2d0   :  { %v1460_v46 = vld [vmem:[%s10776_s1 + $0x2c08] sm:$0xff]  ;;  %2641 = vmatpush.msra.mxu1 %v1648_v44  ;;  %v301_v53 = vld [vmem:[%s10776_s1 + $0x7d0] sm:$0xff] }
 0x2d1   :  { %v4425_v48 = vld [vmem:[%s10777_s0 + $0xa8] sm:$0xff]  ;;  %2616 = vmatpush.msrb.mxu3 %v1460_v46  ;;  %2662 = vmatpush.msra.mxu2 %v109_v51  ;;  %v121_v46 = vld [vmem:[%s10776_s1 + $0x230] sm:$0xff]  ;;  %v4428_v51 = vld [vmem:[%s10777_s0 + $0xb8] sm:$0xff] }
 0x2d2   :  { %2597 = vmatmul.f32.vlgmr.msrb.gmra.mxu2 %v4425_v48  ;;  %v1580_v49 = vld [vmem:[%s10776_s1 + $0x2fc8] sm:$0xff]  ;;  %2617 = vmatmul.f32.vlgmr.msrb.gmra.mxu3 %v4427_v54  ;;  %v241_v48 = vld [vmem:[%s10776_s1 + $0x5f0] sm:$0xff] }
 0x2d3   :  { %v1644_v50 = vld [vmem:[%s10776_s1 + $0x31c8] sm:$0xff]  ;;  %2622 = vmatpush.msra.mxu0 %v1580_v49  ;;  %2681 = vmatpush.msra.mxu3 %v177_v52  ;;  %v369_v49 = vld [vmem:[%s10776_s1 + $0x9f0] sm:$0xff] }
 0x2d4   :  { %v1576_v55 = vld [vmem:[%s10776_s1 + $0x2fa8] sm:$0xff]  ;;  %2642 = vmatpush.msra.mxu1 %v1644_v50  ;;  %2663 = vmatpush.msra.mxu2 %v105_v57  ;;  %v117_v50 = vld [vmem:[%s10776_s1 + $0x210] sm:$0xff] }
 0x2d5   :  { %v1640_v56 = vld [vmem:[%s10776_s1 + $0x31a8] sm:$0xff]  ;;  %2623 = vmatpush.msra.mxu0 %v1576_v55  ;;  %2682 = vmatpush.msra.mxu3 %v173_v58  ;;  %v237_v52 = vld [vmem:[%s10776_s1 + $0x5d0] sm:$0xff] }
 0x2d6   :  { %v1572_v59 = vld [vmem:[%s10776_s1 + $0x2f88] sm:$0xff]  ;;  %2643 = vmatpush.msra.mxu1 %v1640_v56  ;;  %2664 = vmatpush.msra.mxu2 %v101_v61  ;;  %v365_v54 = vld [vmem:[%s10776_s1 + $0x9d0] sm:$0xff]  ;;  %v4429_v56 = vld [vmem:[%s10777_s0 + $0xc0] sm:$0xff] }
 0x2d7   :  { %v1636_v60 = vld [vmem:[%s10776_s1 + $0x3188] sm:$0xff]  ;;  %2624 = vmatpush.msra.mxu0 %v1572_v59  ;;  %2683 = vmatpush.msra.mxu3 %v169_v62  ;;  %v433_v55 = vld [vmem:[%s10776_s1 + $0xbf0] sm:$0xff] }
 0x2d8   :  { %v1568_v63 = vld [vmem:[%s10776_s1 + $0x2f68] sm:$0xff]  ;;  %2644 = vmatpush.msra.mxu1 %v1636_v60  ;;  %2665 = vmatpush.msra.mxu2 %v97_v1  ;;  %v233_v57 = vld [vmem:[%s10776_s1 + $0x5b0] sm:$0xff] }
 0x2d9   :  { %v1632_v0 = vld [vmem:[%s10776_s1 + $0x3168] sm:$0xff]  ;;  %2625 = vmatpush.msra.mxu0 %v1568_v63  ;;  %2684 = vmatpush.msra.mxu3 %v165_v2  ;;  %v297_v58 = vld [vmem:[%s10776_s1 + $0x7b0] sm:$0xff] }
 0x2da   :  { %v1564_v3 = vld [vmem:[%s10776_s1 + $0x2f48] sm:$0xff]  ;;  %2645 = vmatpush.msra.mxu1 %v1632_v0  ;;  %2666 = vmatpush.msra.mxu2 %v93_v5  ;;  %v361_v59 = vld [vmem:[%s10776_s1 + $0x9b0] sm:$0xff] }
 0x2db   :  { %v1628_v4 = vld [vmem:[%s10776_s1 + $0x3148] sm:$0xff]  ;;  %2626 = vmatpush.msra.mxu0 %v1564_v3  ;;  %2685 = vmatpush.msra.mxu3 %v161_v6  ;;  %v429_v60 = vld [vmem:[%s10776_s1 + $0xbd0] sm:$0xff] }
 0x2dc   :  { %v1560_v7 = vld [vmem:[%s10776_s1 + $0x2f28] sm:$0xff]  ;;  %2646 = vmatpush.msra.mxu1 %v1628_v4  ;;  %2667 = vmatpush.msra.mxu2 %v89_v9  ;;  %v229_v61 = vld [vmem:[%s10776_s1 + $0x590] sm:$0xff] }
 0x2dd   :  { %v1624_v8 = vld [vmem:[%s10776_s1 + $0x3128] sm:$0xff]  ;;  %2627 = vmatpush.msra.mxu0 %v1560_v7  ;;  %2686 = vmatpush.msra.mxu3 %v157_v10  ;;  %v293_v62 = vld [vmem:[%s10776_s1 + $0x790] sm:$0xff] }
 0x2de   :  { %v1556_v11 = vld [vmem:[%s10776_s1 + $0x2f08] sm:$0xff]  ;;  %2647 = vmatpush.msra.mxu1 %v1624_v8  ;;  %2668 = vmatpush.msra.mxu2 %v85_v13  ;;  %v357_v63 = vld [vmem:[%s10776_s1 + $0x990] sm:$0xff] }
 0x2df   :  { %v1620_v12 = vld [vmem:[%s10776_s1 + $0x3108] sm:$0xff]  ;;  %2628 = vmatpush.msra.mxu0 %v1556_v11  ;;  %2687 = vmatpush.msra.mxu3 %v153_v14  ;;  %v425_v0 = vld [vmem:[%s10776_s1 + $0xbb0] sm:$0xff] }
 0x2e0   :  { %v1552_v15 = vld [vmem:[%s10776_s1 + $0x2ee8] sm:$0xff]  ;;  %2648 = vmatpush.msra.mxu1 %v1620_v12  ;;  %2669 = vmatpush.msra.mxu2 %v81_v17  ;;  %v225_v1 = vld [vmem:[%s10776_s1 + $0x570] sm:$0xff] }
 0x2e1   :  { %v1616_v16 = vld [vmem:[%s10776_s1 + $0x30e8] sm:$0xff]  ;;  %2629 = vmatpush.msra.mxu0 %v1552_v15  ;;  %2688 = vmatpush.msra.mxu3 %v149_v18  ;;  %v289_v2 = vld [vmem:[%s10776_s1 + $0x770] sm:$0xff] }
 0x2e2   :  { %v1548_v19 = vld [vmem:[%s10776_s1 + $0x2ec8] sm:$0xff]  ;;  %2649 = vmatpush.msra.mxu1 %v1616_v16  ;;  %2670 = vmatpush.msra.mxu2 %v77_v21  ;;  %v353_v3 = vld [vmem:[%s10776_s1 + $0x970] sm:$0xff] }
 0x2e3   :  { %v1612_v20 = vld [vmem:[%s10776_s1 + $0x30c8] sm:$0xff]  ;;  %2630 = vmatpush.msra.mxu0 %v1548_v19  ;;  %2689 = vmatpush.msra.mxu3 %v145_v22  ;;  %v421_v4 = vld [vmem:[%s10776_s1 + $0xb90] sm:$0xff] }
 0x2e4   :  { %v1544_v23 = vld [vmem:[%s10776_s1 + $0x2ea8] sm:$0xff]  ;;  %2650 = vmatpush.msra.mxu1 %v1612_v20  ;;  %2671 = vmatpush.msra.mxu2 %v73_v25  ;;  %v221_v5 = vld [vmem:[%s10776_s1 + $0x550] sm:$0xff] }
 0x2e5   :  { %v1608_v24 = vld [vmem:[%s10776_s1 + $0x30a8] sm:$0xff]  ;;  %2631 = vmatpush.msra.mxu0 %v1544_v23  ;;  %2690 = vmatpush.msra.mxu3 %v141_v26  ;;  %v285_v6 = vld [vmem:[%s10776_s1 + $0x750] sm:$0xff] }
 0x2e6   :  { %v1540_v27 = vld [vmem:[%s10776_s1 + $0x2e88] sm:$0xff]  ;;  %2651 = vmatpush.msra.mxu1 %v1608_v24  ;;  %2672 = vmatpush.msra.mxu2 %v69_v29  ;;  %v349_v7 = vld [vmem:[%s10776_s1 + $0x950] sm:$0xff] }
 0x2e7   :  { %v1604_v28 = vld [vmem:[%s10776_s1 + $0x3088] sm:$0xff]  ;;  %2632 = vmatpush.msra.mxu0 %v1540_v27  ;;  %2691 = vmatpush.msra.mxu3 %v137_v30  ;;  %v417_v8 = vld [vmem:[%s10776_s1 + $0xb70] sm:$0xff] }
 0x2e8   :  { %v1536_v31 = vld [vmem:[%s10776_s1 + $0x2e68] sm:$0xff]  ;;  %2652 = vmatpush.msra.mxu1 %v1604_v28  ;;  %2673 = vmatpush.msra.mxu2 %v65_v33  ;;  %v217_v9 = vld [vmem:[%s10776_s1 + $0x530] sm:$0xff] }
 0x2e9   :  { %v1600_v32 = vld [vmem:[%s10776_s1 + $0x3068] sm:$0xff]  ;;  %2633 = vmatpush.msra.mxu0 %v1536_v31  ;;  %2692 = vmatpush.msra.mxu3 %v133_v34  ;;  %v281_v10 = vld [vmem:[%s10776_s1 + $0x730] sm:$0xff] }
 0x2ea   :  { %v1532_v35 = vld [vmem:[%s10776_s1 + $0x2e48] sm:$0xff]  ;;  %2653 = vmatpush.msra.mxu1 %v1600_v32  ;;  %2674 = vmatpush.msra.mxu2 %v61_v37  ;;  %v345_v11 = vld [vmem:[%s10776_s1 + $0x930] sm:$0xff] }
 0x2eb   :  { %v1596_v36 = vld [vmem:[%s10776_s1 + $0x3048] sm:$0xff]  ;;  %2634 = vmatpush.msra.mxu0 %v1532_v35  ;;  %2693 = vmatpush.msra.mxu3 %v129_v38  ;;  %v413_v12 = vld [vmem:[%s10776_s1 + $0xb50] sm:$0xff] }
 0x2ec   :  { %v1528_v39 = vld [vmem:[%s10776_s1 + $0x2e28] sm:$0xff]  ;;  %2654 = vmatpush.msra.mxu1 %v1596_v36  ;;  %2675 = vmatpush.msra.mxu2 %v57_v41  ;;  %v213_v13 = vld [vmem:[%s10776_s1 + $0x510] sm:$0xff] }
 0x2ed   :  { %v1592_v40 = vld [vmem:[%s10776_s1 + $0x3028] sm:$0xff]  ;;  %2635 = vmatpush.msra.mxu0 %v1528_v39  ;;  %2694 = vmatpush.msra.mxu3 %v125_v42  ;;  %v277_v14 = vld [vmem:[%s10776_s1 + $0x710] sm:$0xff] }
 0x2ee   :  { %v1524_v43 = vld [vmem:[%s10776_s1 + $0x2e08] sm:$0xff]  ;;  %2655 = vmatpush.msra.mxu1 %v1592_v40  ;;  %2676 = vmatpush.msra.mxu2 %v53_v45  ;;  %v341_v15 = vld [vmem:[%s10776_s1 + $0x910] sm:$0xff] }
 0x2ef   :  { %v1588_v44 = vld [vmem:[%s10776_s1 + $0x3008] sm:$0xff]  ;;  %2636 = vmatpush.msra.mxu0 %v1524_v43  ;;  %2695 = vmatpush.msra.mxu3 %v121_v46  ;;  %v409_v16 = vld [vmem:[%s10776_s1 + $0xb30] sm:$0xff] }
 0x2f0   :  { %2656 = vmatpush.msra.mxu1 %v1588_v44  ;;  %2637 = vmatmul.f32.vlgmr.msra.gmra.mxu0 %v4428_v51  ;;  %v209_v17 = vld [vmem:[%s10776_s1 + $0x4f0] sm:$0xff] }
 0x2f1   :  { %2701 = vmatpush.msrb.mxu0 %v241_v48  ;;  %2741 = vmatpush.msrb.mxu2 %v369_v49  ;;  %v273_v18 = vld [vmem:[%s10776_s1 + $0x6f0] sm:$0xff] }
 0x2f2   :  { %2721 = vmatpush.msrb.mxu1 %v305_v47  ;;  %2696 = vmatpush.msra.mxu3 %v117_v50  ;;  %v337_v19 = vld [vmem:[%s10776_s1 + $0x8f0] sm:$0xff] }
 0x2f3   :  { %2657 = vmatmul.f32.vlgmr.msra.gmra.mxu1 %v4429_v56  ;;  %2702 = vmatpush.msrb.mxu0 %v237_v52  ;;  %v405_v20 = vld [vmem:[%s10776_s1 + $0xb10] sm:$0xff] }
 0x2f4   :  { %2722 = vmatpush.msrb.mxu1 %v301_v53  ;;  %2742 = vmatpush.msrb.mxu2 %v365_v54  ;;  %v205_v21 = vld [vmem:[%s10776_s1 + $0x4d0] sm:$0xff]  ;;  %v4430_v54 = vld [vmem:[%s10777_s0] sm:$0xff] }
 0x2f5   :  { %2761 = vmatpush.msrb.mxu3 %v433_v55  ;;  %2703 = vmatpush.msrb.mxu0 %v233_v57  ;;  %v269_v22 = vld [vmem:[%s10776_s1 + $0x6d0] sm:$0xff] }
 0x2f6   :  { %2723 = vmatpush.msrb.mxu1 %v297_v58  ;;  %2743 = vmatpush.msrb.mxu2 %v361_v59  ;;  %v333_v23 = vld [vmem:[%s10776_s1 + $0x8d0] sm:$0xff] }
 0x2f7   :  { %2762 = vmatpush.msrb.mxu3 %v429_v60  ;;  %2704 = vmatpush.msrb.mxu0 %v229_v61  ;;  %v401_v24 = vld [vmem:[%s10776_s1 + $0xaf0] sm:$0xff]  ;;  %v4431_v60 = vld [vmem:[%s10777_s0 + $0x8] sm:$0xff] }
 0x2f8   :  { %2724 = vmatpush.msrb.mxu1 %v293_v62  ;;  %2744 = vmatpush.msrb.mxu2 %v357_v63  ;;  %v201_v25 = vld [vmem:[%s10776_s1 + $0x4b0] sm:$0xff] }
 0x2f9   :  { %2763 = vmatpush.msrb.mxu3 %v425_v0  ;;  %2705 = vmatpush.msrb.mxu0 %v225_v1  ;;  %v265_v26 = vld [vmem:[%s10776_s1 + $0x6b0] sm:$0xff] }
 0x2fa   :  { %2725 = vmatpush.msrb.mxu1 %v289_v2  ;;  %2745 = vmatpush.msrb.mxu2 %v353_v3  ;;  %v329_v27 = vld [vmem:[%s10776_s1 + $0x8b0] sm:$0xff] }
 0x2fb   :  { %2764 = vmatpush.msrb.mxu3 %v421_v4  ;;  %2706 = vmatpush.msrb.mxu0 %v221_v5  ;;  %v397_v28 = vld [vmem:[%s10776_s1 + $0xad0] sm:$0xff] }
 0x2fc   :  { %2726 = vmatpush.msrb.mxu1 %v285_v6  ;;  %2746 = vmatpush.msrb.mxu2 %v349_v7  ;;  %v197_v29 = vld [vmem:[%s10776_s1 + $0x490] sm:$0xff]  ;;  %v4432_v7 = vld [vmem:[%s10777_s0 + $0x20] sm:$0xff] }
 0x2fd   :  { %2765 = vmatpush.msrb.mxu3 %v417_v8  ;;  %2707 = vmatpush.msrb.mxu0 %v217_v9  ;;  %v261_v30 = vld [vmem:[%s10776_s1 + $0x690] sm:$0xff] }
 0x2fe   :  { %2727 = vmatpush.msrb.mxu1 %v281_v10  ;;  %2747 = vmatpush.msrb.mxu2 %v345_v11  ;;  %v325_v31 = vld [vmem:[%s10776_s1 + $0x890] sm:$0xff] }
 0x2ff   :  { %2766 = vmatpush.msrb.mxu3 %v413_v12  ;;  %2708 = vmatpush.msrb.mxu0 %v213_v13  ;;  %v393_v32 = vld [vmem:[%s10776_s1 + $0xab0] sm:$0xff]  ;;  %v4434_v13 = vld [vmem:[%s10777_s0 + $0x28] sm:$0xff] }
 0x300   :  { %2728 = vmatpush.msrb.mxu1 %v277_v14  ;;  %2748 = vmatpush.msrb.mxu2 %v341_v15  ;;  %v193_v33 = vld [vmem:[%s10776_s1 + $0x470] sm:$0xff] }
 0x301   :  { %2767 = vmatpush.msrb.mxu3 %v409_v16  ;;  %2709 = vmatpush.msrb.mxu0 %v209_v17  ;;  %v257_v34 = vld [vmem:[%s10776_s1 + $0x670] sm:$0xff] }
 0x302   :  { %2729 = vmatpush.msrb.mxu1 %v273_v18  ;;  %2749 = vmatpush.msrb.mxu2 %v337_v19  ;;  %v321_v35 = vld [vmem:[%s10776_s1 + $0x870] sm:$0xff]  ;;  %v4435_v18 = vld [vmem:[%s10777_s0 + $0x18] sm:$0xff] }
 0x303   :  { %2768 = vmatpush.msrb.mxu3 %v405_v20  ;;  %2710 = vmatpush.msrb.mxu0 %v205_v21  ;;  %v389_v36 = vld [vmem:[%s10776_s1 + $0xa90] sm:$0xff] }
 0x304   :  { %2730 = vmatpush.msrb.mxu1 %v269_v22  ;;  %2750 = vmatpush.msrb.mxu2 %v333_v23  ;;  %v189_v37 = vld [vmem:[%s10776_s1 + $0x450] sm:$0xff] }
 0x305   :  { %2769 = vmatpush.msrb.mxu3 %v401_v24  ;;  %2711 = vmatpush.msrb.mxu0 %v201_v25  ;;  %v253_v38 = vld [vmem:[%s10776_s1 + $0x650] sm:$0xff] }
 0x306   :  { %2731 = vmatpush.msrb.mxu1 %v265_v26  ;;  %2751 = vmatpush.msrb.mxu2 %v329_v27  ;;  %v317_v39 = vld [vmem:[%s10776_s1 + $0x850] sm:$0xff] }
 0x307   :  { %2770 = vmatpush.msrb.mxu3 %v397_v28  ;;  %2712 = vmatpush.msrb.mxu0 %v197_v29  ;;  %v385_v40 = vld [vmem:[%s10776_s1 + $0xa70] sm:$0xff] }
 0x308   :  { %2732 = vmatpush.msrb.mxu1 %v261_v30  ;;  %2752 = vmatpush.msrb.mxu2 %v325_v31  ;;  %v185_v41 = vld [vmem:[%s10776_s1 + $0x430] sm:$0xff] }
 0x309   :  { %2771 = vmatpush.msrb.mxu3 %v393_v32  ;;  %2713 = vmatpush.msrb.mxu0 %v193_v33  ;;  %v249_v42 = vld [vmem:[%s10776_s1 + $0x630] sm:$0xff] }
 0x30a   :  { %2733 = vmatpush.msrb.mxu1 %v257_v34  ;;  %2753 = vmatpush.msrb.mxu2 %v321_v35  ;;  %v313_v43 = vld [vmem:[%s10776_s1 + $0x830] sm:$0xff] }
 0x30b   :  { %2772 = vmatpush.msrb.mxu3 %v389_v36  ;;  %2714 = vmatpush.msrb.mxu0 %v189_v37  ;;  %v381_v44 = vld [vmem:[%s10776_s1 + $0xa50] sm:$0xff] }
 0x30c   :  { %2734 = vmatpush.msrb.mxu1 %v253_v38  ;;  %2754 = vmatpush.msrb.mxu2 %v317_v39  ;;  %v181_v45 = vld [vmem:[%s10776_s1 + $0x410] sm:$0xff] }
 0x30d   :  { %2773 = vmatpush.msrb.mxu3 %v385_v40  ;;  %v245_v46 = vld [vmem:[%s10776_s1 + $0x610] sm:$0xff]  ;;  %2715 = vmatpush.msrb.mxu0 %v185_v41 }
 0x30e   :  { %2735 = vmatpush.msrb.mxu1 %v249_v42  ;;  %v309_v47 = vld [vmem:[%s10776_s1 + $0x810] sm:$0xff]  ;;  %2755 = vmatpush.msrb.mxu2 %v313_v43 }
 0x30f   :  { %v377_v48 = vld [vmem:[%s10776_s1 + $0xa30] sm:$0xff]  ;;  %2774 = vmatpush.msrb.mxu3 %v381_v44  ;;  %2716 = vmatpush.msrb.mxu0 %v181_v45 }
 0x310   :  { %v497_v49 = vld [vmem:[%s10776_s1 + $0xdf0] sm:$0xff]  ;;  %2736 = vmatpush.msrb.mxu1 %v245_v46  ;;  %2756 = vmatpush.msrb.mxu2 %v309_v47 }
 0x311   :  { %v561_v50 = vld [vmem:[%s10776_s1 + $0xff0] sm:$0xff]  ;;  %2775 = vmatpush.msrb.mxu3 %v377_v48  ;;  %2677 = vmatmul.f32.vlgmr.msra.gmra.mxu2 %v4430_v54 }
 0x312   :  { %v625_v51 = vld [vmem:[%s10776_s1 + $0x11f0] sm:$0xff]  ;;  %2781 = vmatpush.msra.mxu0 %v497_v49  ;;  %2801 = vmatpush.msra.mxu1 %v561_v50 }
 0x313   :  { %v373_v52 = vld [vmem:[%s10776_s1 + $0xa10] sm:$0xff]  ;;  %2821 = vmatpush.msra.mxu2 %v625_v51  ;;  %2697 = vmatmul.f32.vlgmr.msra.gmra.mxu3 %v4431_v60  ;;  %v4437_v60 = vld [vmem:[%s10777_s0 + $0x40] sm:$0xff] }
 0x314   :  { %v493_v53 = vld [vmem:[%s10776_s1 + $0xdd0] sm:$0xff]  ;;  %2776 = vmatpush.msrb.mxu3 %v373_v52  ;;  %2737 = vmatmul.f32.vlgmr.msrb.gmra.mxu1 %v4435_v18 }
 0x315   :  { %v557_v55 = vld [vmem:[%s10776_s1 + $0xfd0] sm:$0xff]  ;;  %2782 = vmatpush.msra.mxu0 %v493_v53 }
 0x316   :  { %v621_v56 = vld [vmem:[%s10776_s1 + $0x11d0] sm:$0xff]  ;;  %2802 = vmatpush.msra.mxu1 %v557_v55 }
 0x317   :  { %v689_v57 = vld [vmem:[%s10776_s1 + $0x13f0] sm:$0xff]  ;;  %2822 = vmatpush.msra.mxu2 %v621_v56 }
 0x318   :  { %v489_v58 = vld [vmem:[%s10776_s1 + $0xdb0] sm:$0xff]  ;;  %2841 = vmatpush.msra.mxu3 %v689_v57 }
 0x319   :  { %v553_v59 = vld [vmem:[%s10776_s1 + $0xfb0] sm:$0xff]  ;;  %2783 = vmatpush.msra.mxu0 %v489_v58  ;;  %2757 = vmatmul.f32.vlgmr.msrb.gmra.mxu2 %v4432_v7 }
 0x31a   :  { %v617_v61 = vld [vmem:[%s10776_s1 + $0x11b0] sm:$0xff]  ;;  %2803 = vmatpush.msra.mxu1 %v553_v59 }
 0x31b   :  { %v685_v62 = vld [vmem:[%s10776_s1 + $0x13d0] sm:$0xff]  ;;  %2823 = vmatpush.msra.mxu2 %v617_v61  ;;  %2777 = vmatmul.f32.vlgmr.msrb.gmra.mxu3 %v4434_v13 }
 0x31c   :  { %v485_v63 = vld [vmem:[%s10776_s1 + $0xd90] sm:$0xff]  ;;  %2842 = vmatpush.msra.mxu3 %v685_v62 }
 0x31d   :  { %v549_v0 = vld [vmem:[%s10776_s1 + $0xf90] sm:$0xff]  ;;  %2784 = vmatpush.msra.mxu0 %v485_v63 }
 0x31e   :  { %v613_v1 = vld [vmem:[%s10776_s1 + $0x1190] sm:$0xff]  ;;  %2804 = vmatpush.msra.mxu1 %v549_v0 }
 0x31f   :  { %v681_v2 = vld [vmem:[%s10776_s1 + $0x13b0] sm:$0xff]  ;;  %2824 = vmatpush.msra.mxu2 %v613_v1  ;;  %v4438_v1 = vld [vmem:[%s10777_s0 + $0x38] sm:$0xff] }
 0x320   :  { %v481_v3 = vld [vmem:[%s10776_s1 + $0xd70] sm:$0xff]  ;;  %2843 = vmatpush.msra.mxu3 %v681_v2  ;;  %v4439_v2 = vld [vmem:[%s10777_s0 + $0x48] sm:$0xff] }
 0x321   :  { %v545_v4 = vld [vmem:[%s10776_s1 + $0xf70] sm:$0xff]  ;;  %2785 = vmatpush.msra.mxu0 %v481_v3 }
 0x322   :  { %v609_v5 = vld [vmem:[%s10776_s1 + $0x1170] sm:$0xff]  ;;  %2805 = vmatpush.msra.mxu1 %v545_v4 }
 0x323   :  { %v677_v6 = vld [vmem:[%s10776_s1 + $0x1390] sm:$0xff]  ;;  %2825 = vmatpush.msra.mxu2 %v609_v5 }
 0x324   :  { %v477_v8 = vld [vmem:[%s10776_s1 + $0xd50] sm:$0xff]  ;;  %2844 = vmatpush.msra.mxu3 %v677_v6 }
 0x325   :  { %v541_v9 = vld [vmem:[%s10776_s1 + $0xf50] sm:$0xff]  ;;  %2786 = vmatpush.msra.mxu0 %v477_v8 }
 0x326   :  { %v605_v10 = vld [vmem:[%s10776_s1 + $0x1150] sm:$0xff]  ;;  %2806 = vmatpush.msra.mxu1 %v541_v9 }
 0x327   :  { %v4433_v11 = vld [vmem:[%s10777_s0 + $0x10] sm:$0xff]  ;;  %2826 = vmatpush.msra.mxu2 %v605_v10 }
 0x328   :  { %2717 = vmatmul.f32.vlgmr.msrb.gmra.mxu0 %v4433_v11  ;;  %v673_v12 = vld [vmem:[%s10776_s1 + $0x1370] sm:$0xff] }
 0x329   :  { %v473_v14 = vld [vmem:[%s10776_s1 + $0xd30] sm:$0xff]  ;;  %2845 = vmatpush.msra.mxu3 %v673_v12 }
 0x32a   :  { %v537_v15 = vld [vmem:[%s10776_s1 + $0xf30] sm:$0xff]  ;;  %2787 = vmatpush.msra.mxu0 %v473_v14 }
 0x32b   :  { %v601_v16 = vld [vmem:[%s10776_s1 + $0x1130] sm:$0xff]  ;;  %2807 = vmatpush.msra.mxu1 %v537_v15 }
 0x32c   :  { %v669_v17 = vld [vmem:[%s10776_s1 + $0x1350] sm:$0xff]  ;;  %2827 = vmatpush.msra.mxu2 %v601_v16 }
 0x32d   :  { %v469_v19 = vld [vmem:[%s10776_s1 + $0xd10] sm:$0xff]  ;;  %2846 = vmatpush.msra.mxu3 %v669_v17 }
 0x32e   :  { %v533_v20 = vld [vmem:[%s10776_s1 + $0xf10] sm:$0xff]  ;;  %2788 = vmatpush.msra.mxu0 %v469_v19 }
 0x32f   :  { %v597_v21 = vld [vmem:[%s10776_s1 + $0x1110] sm:$0xff]  ;;  %2808 = vmatpush.msra.mxu1 %v533_v20 }
 0x330   :  { %v665_v22 = vld [vmem:[%s10776_s1 + $0x1330] sm:$0xff]  ;;  %2828 = vmatpush.msra.mxu2 %v597_v21 }
 0x331   :  { %v465_v23 = vld [vmem:[%s10776_s1 + $0xcf0] sm:$0xff]  ;;  %2847 = vmatpush.msra.mxu3 %v665_v22 }
 0x332   :  { %v529_v24 = vld [vmem:[%s10776_s1 + $0xef0] sm:$0xff]  ;;  %2789 = vmatpush.msra.mxu0 %v465_v23 }
 0x333   :  { %v593_v25 = vld [vmem:[%s10776_s1 + $0x10f0] sm:$0xff]  ;;  %2809 = vmatpush.msra.mxu1 %v529_v24 }
 0x334   :  { %v661_v26 = vld [vmem:[%s10776_s1 + $0x1310] sm:$0xff]  ;;  %2829 = vmatpush.msra.mxu2 %v593_v25 }
 0x335   :  { %v461_v27 = vld [vmem:[%s10776_s1 + $0xcd0] sm:$0xff]  ;;  %2848 = vmatpush.msra.mxu3 %v661_v26 }
 0x336   :  { %v525_v28 = vld [vmem:[%s10776_s1 + $0xed0] sm:$0xff]  ;;  %2790 = vmatpush.msra.mxu0 %v461_v27 }
 0x337   :  { %v589_v29 = vld [vmem:[%s10776_s1 + $0x10d0] sm:$0xff]  ;;  %2810 = vmatpush.msra.mxu1 %v525_v28 }
 0x338   :  { %v657_v30 = vld [vmem:[%s10776_s1 + $0x12f0] sm:$0xff]  ;;  %2830 = vmatpush.msra.mxu2 %v589_v29 }
 0x339   :  { %v457_v31 = vld [vmem:[%s10776_s1 + $0xcb0] sm:$0xff]  ;;  %2849 = vmatpush.msra.mxu3 %v657_v30 }
 0x33a   :  { %v521_v32 = vld [vmem:[%s10776_s1 + $0xeb0] sm:$0xff]  ;;  %2791 = vmatpush.msra.mxu0 %v457_v31 }
 0x33b   :  { %v585_v33 = vld [vmem:[%s10776_s1 + $0x10b0] sm:$0xff]  ;;  %2811 = vmatpush.msra.mxu1 %v521_v32 }
 0x33c   :  { %v653_v34 = vld [vmem:[%s10776_s1 + $0x12d0] sm:$0xff]  ;;  %2831 = vmatpush.msra.mxu2 %v585_v33 }
 0x33d   :  { %v453_v35 = vld [vmem:[%s10776_s1 + $0xc90] sm:$0xff]  ;;  %2850 = vmatpush.msra.mxu3 %v653_v34 }
 0x33e   :  { %v517_v36 = vld [vmem:[%s10776_s1 + $0xe90] sm:$0xff]  ;;  %2792 = vmatpush.msra.mxu0 %v453_v35 }
 0x33f   :  { %v581_v37 = vld [vmem:[%s10776_s1 + $0x1090] sm:$0xff]  ;;  %2812 = vmatpush.msra.mxu1 %v517_v36 }
 0x340   :  { %v649_v38 = vld [vmem:[%s10776_s1 + $0x12b0] sm:$0xff]  ;;  %2832 = vmatpush.msra.mxu2 %v581_v37 }
 0x341   :  { %v449_v39 = vld [vmem:[%s10776_s1 + $0xc70] sm:$0xff]  ;;  %2851 = vmatpush.msra.mxu3 %v649_v38 }
 0x342   :  { %v513_v40 = vld [vmem:[%s10776_s1 + $0xe70] sm:$0xff]  ;;  %2793 = vmatpush.msra.mxu0 %v449_v39 }
 0x343   :  { %v577_v41 = vld [vmem:[%s10776_s1 + $0x1070] sm:$0xff]  ;;  %2813 = vmatpush.msra.mxu1 %v513_v40 }
 0x344   :  { %v645_v42 = vld [vmem:[%s10776_s1 + $0x1290] sm:$0xff]  ;;  %2833 = vmatpush.msra.mxu2 %v577_v41 }
 0x345   :  { %v445_v43 = vld [vmem:[%s10776_s1 + $0xc50] sm:$0xff]  ;;  %2852 = vmatpush.msra.mxu3 %v645_v42 }
 0x346   :  { %v509_v44 = vld [vmem:[%s10776_s1 + $0xe50] sm:$0xff]  ;;  %2794 = vmatpush.msra.mxu0 %v445_v43 }
 0x347   :  { %v573_v45 = vld [vmem:[%s10776_s1 + $0x1050] sm:$0xff]  ;;  %2814 = vmatpush.msra.mxu1 %v509_v44 }
 0x348   :  { %v641_v46 = vld [vmem:[%s10776_s1 + $0x1270] sm:$0xff]  ;;  %2834 = vmatpush.msra.mxu2 %v573_v45 }
 0x349   :  { %v441_v47 = vld [vmem:[%s10776_s1 + $0xc30] sm:$0xff]  ;;  %2853 = vmatpush.msra.mxu3 %v641_v46 }
 0x34a   :  { %v505_v48 = vld [vmem:[%s10776_s1 + $0xe30] sm:$0xff]  ;;  %2795 = vmatpush.msra.mxu0 %v441_v47 }
 0x34b   :  { %v569_v49 = vld [vmem:[%s10776_s1 + $0x1030] sm:$0xff]  ;;  %2815 = vmatpush.msra.mxu1 %v505_v48 }
 0x34c   :  { %v637_v50 = vld [vmem:[%s10776_s1 + $0x1250] sm:$0xff]  ;;  %2835 = vmatpush.msra.mxu2 %v569_v49 }
 0x34d   :  { %v437_v51 = vld [vmem:[%s10776_s1 + $0xc10] sm:$0xff]  ;;  %2854 = vmatpush.msra.mxu3 %v637_v50 }
 0x34e   :  { %v501_v52 = vld [vmem:[%s10776_s1 + $0xe10] sm:$0xff]  ;;  %2796 = vmatpush.msra.mxu0 %v437_v51 }
 0x34f   :  { %v565_v53 = vld [vmem:[%s10776_s1 + $0x1010] sm:$0xff]  ;;  %2816 = vmatpush.msra.mxu1 %v501_v52 }
 0x350   :  { %v633_v54 = vld [vmem:[%s10776_s1 + $0x1230] sm:$0xff]  ;;  %2836 = vmatpush.msra.mxu2 %v565_v53  ;;  %2817 = vmatmul.f32.vlgmr.msra.gmra.mxu1 %v4438_v1 }
 0x351   :  { %v753_v55 = vld [vmem:[%s10776_s1 + $0x15f0] sm:$0xff]  ;;  %2855 = vmatpush.msra.mxu3 %v633_v54  ;;  %2837 = vmatmul.f32.vlgmr.msra.gmra.mxu2 %v4437_v60 }
 0x352   :  { %v817_v56 = vld [vmem:[%s10776_s1 + $0x17f0] sm:$0xff]  ;;  %2861 = vmatpush.msrb.mxu0 %v753_v55 }
 0x353   :  { %v881_v57 = vld [vmem:[%s10776_s1 + $0x19f0] sm:$0xff]  ;;  %2881 = vmatpush.msrb.mxu1 %v817_v56 }
 0x354   :  { %v629_v58 = vld [vmem:[%s10776_s1 + $0x1210] sm:$0xff]  ;;  %2901 = vmatpush.msrb.mxu2 %v881_v57 }
 0x355   :  { %v4436_v59 = vld [vmem:[%s10777_s0 + $0x30] sm:$0xff]  ;;  %2856 = vmatpush.msra.mxu3 %v629_v58 }
 0x356   :  { %2797 = vmatmul.f32.vlgmr.msra.gmra.mxu0 %v4436_v59  ;;  %v749_v61 = vld [vmem:[%s10776_s1 + $0x15d0] sm:$0xff]  ;;  %2857 = vmatmul.f32.vlgmr.msra.gmra.mxu3 %v4439_v2 }
 0x357   :  { %v813_v62 = vld [vmem:[%s10776_s1 + $0x17d0] sm:$0xff]  ;;  %2862 = vmatpush.msrb.mxu0 %v749_v61 }
 0x358   :  { %v877_v63 = vld [vmem:[%s10776_s1 + $0x19d0] sm:$0xff]  ;;  %2882 = vmatpush.msrb.mxu1 %v813_v62 }
 0x359   :  { %v945_v0 = vld [vmem:[%s10776_s1 + $0x1bf0] sm:$0xff]  ;;  %2902 = vmatpush.msrb.mxu2 %v877_v63 }
 0x35a   :  { %v745_v3 = vld [vmem:[%s10776_s1 + $0x15b0] sm:$0xff]  ;;  %2921 = vmatpush.msrb.mxu3 %v945_v0  ;;  %v4441_v0 = vld [vmem:[%s10777_s0 + $0x60] sm:$0xff] }
 0x35b   :  { %v809_v4 = vld [vmem:[%s10776_s1 + $0x17b0] sm:$0xff]  ;;  %2863 = vmatpush.msrb.mxu0 %v745_v3 }
 0x35c   :  { %v873_v5 = vld [vmem:[%s10776_s1 + $0x19b0] sm:$0xff]  ;;  %2883 = vmatpush.msrb.mxu1 %v809_v4 }
 0x35d   :  { %v941_v6 = vld [vmem:[%s10776_s1 + $0x1bd0] sm:$0xff]  ;;  %2903 = vmatpush.msrb.mxu2 %v873_v5  ;;  %v4442_v5 = vld [vmem:[%s10777_s0 + $0x58] sm:$0xff] }
 0x35e   :  { %v741_v7 = vld [vmem:[%s10776_s1 + $0x1590] sm:$0xff]  ;;  %2922 = vmatpush.msrb.mxu3 %v941_v6  ;;  %v4443_v6 = vld [vmem:[%s10777_s0 + $0x68] sm:$0xff] }
 0x35f   :  { %v805_v8 = vld [vmem:[%s10776_s1 + $0x1790] sm:$0xff]  ;;  %2864 = vmatpush.msrb.mxu0 %v741_v7 }
 0x360   :  { %v869_v9 = vld [vmem:[%s10776_s1 + $0x1990] sm:$0xff]  ;;  %2884 = vmatpush.msrb.mxu1 %v805_v8 }
 0x361   :  { %v937_v10 = vld [vmem:[%s10776_s1 + $0x1bb0] sm:$0xff]  ;;  %2904 = vmatpush.msrb.mxu2 %v869_v9 }
 0x362   :  { %v737_v11 = vld [vmem:[%s10776_s1 + $0x1570] sm:$0xff]  ;;  %2923 = vmatpush.msrb.mxu3 %v937_v10 }
 0x363   :  { %v801_v12 = vld [vmem:[%s10776_s1 + $0x1770] sm:$0xff]  ;;  %2865 = vmatpush.msrb.mxu0 %v737_v11 }
 0x364   :  { %v865_v13 = vld [vmem:[%s10776_s1 + $0x1970] sm:$0xff]  ;;  %2885 = vmatpush.msrb.mxu1 %v801_v12 }
 0x365   :  { %v933_v14 = vld [vmem:[%s10776_s1 + $0x1b90] sm:$0xff]  ;;  %2905 = vmatpush.msrb.mxu2 %v865_v13 }
 0x366   :  { %v733_v15 = vld [vmem:[%s10776_s1 + $0x1550] sm:$0xff]  ;;  %2924 = vmatpush.msrb.mxu3 %v933_v14 }
 0x367   :  { %v797_v16 = vld [vmem:[%s10776_s1 + $0x1750] sm:$0xff]  ;;  %2866 = vmatpush.msrb.mxu0 %v733_v15 }
 0x368   :  { %v861_v17 = vld [vmem:[%s10776_s1 + $0x1950] sm:$0xff]  ;;  %2886 = vmatpush.msrb.mxu1 %v797_v16 }
 0x369   :  { %v929_v18 = vld [vmem:[%s10776_s1 + $0x1b70] sm:$0xff]  ;;  %2906 = vmatpush.msrb.mxu2 %v861_v17 }
 0x36a   :  { %v729_v19 = vld [vmem:[%s10776_s1 + $0x1530] sm:$0xff]  ;;  %2925 = vmatpush.msrb.mxu3 %v929_v18 }
 0x36b   :  { %v793_v20 = vld [vmem:[%s10776_s1 + $0x1730] sm:$0xff]  ;;  %2867 = vmatpush.msrb.mxu0 %v729_v19 }
 0x36c   :  { %v857_v21 = vld [vmem:[%s10776_s1 + $0x1930] sm:$0xff]  ;;  %2887 = vmatpush.msrb.mxu1 %v793_v20 }
 0x36d   :  { %v925_v22 = vld [vmem:[%s10776_s1 + $0x1b50] sm:$0xff]  ;;  %2907 = vmatpush.msrb.mxu2 %v857_v21 }
 0x36e   :  { %v725_v23 = vld [vmem:[%s10776_s1 + $0x1510] sm:$0xff]  ;;  %2926 = vmatpush.msrb.mxu3 %v925_v22 }
 0x36f   :  { %v789_v24 = vld [vmem:[%s10776_s1 + $0x1710] sm:$0xff]  ;;  %2868 = vmatpush.msrb.mxu0 %v725_v23 }
 0x370   :  { %v853_v25 = vld [vmem:[%s10776_s1 + $0x1910] sm:$0xff]  ;;  %2888 = vmatpush.msrb.mxu1 %v789_v24 }
 0x371   :  { %v921_v26 = vld [vmem:[%s10776_s1 + $0x1b30] sm:$0xff]  ;;  %2908 = vmatpush.msrb.mxu2 %v853_v25 }
 0x372   :  { %v721_v27 = vld [vmem:[%s10776_s1 + $0x14f0] sm:$0xff]  ;;  %2927 = vmatpush.msrb.mxu3 %v921_v26 }
 0x373   :  { %v785_v28 = vld [vmem:[%s10776_s1 + $0x16f0] sm:$0xff]  ;;  %2869 = vmatpush.msrb.mxu0 %v721_v27 }
 0x374   :  { %v849_v29 = vld [vmem:[%s10776_s1 + $0x18f0] sm:$0xff]  ;;  %2889 = vmatpush.msrb.mxu1 %v785_v28 }
 0x375   :  { %v917_v30 = vld [vmem:[%s10776_s1 + $0x1b10] sm:$0xff]  ;;  %2909 = vmatpush.msrb.mxu2 %v849_v29 }
 0x376   :  { %v717_v31 = vld [vmem:[%s10776_s1 + $0x14d0] sm:$0xff]  ;;  %2928 = vmatpush.msrb.mxu3 %v917_v30 }
 0x377   :  { %v781_v32 = vld [vmem:[%s10776_s1 + $0x16d0] sm:$0xff]  ;;  %2870 = vmatpush.msrb.mxu0 %v717_v31 }
 0x378   :  { %v845_v33 = vld [vmem:[%s10776_s1 + $0x18d0] sm:$0xff]  ;;  %2890 = vmatpush.msrb.mxu1 %v781_v32 }
 0x379   :  { %v913_v34 = vld [vmem:[%s10776_s1 + $0x1af0] sm:$0xff]  ;;  %2910 = vmatpush.msrb.mxu2 %v845_v33 }
 0x37a   :  { %v713_v35 = vld [vmem:[%s10776_s1 + $0x14b0] sm:$0xff]  ;;  %2929 = vmatpush.msrb.mxu3 %v913_v34 }
 0x37b   :  { %v777_v36 = vld [vmem:[%s10776_s1 + $0x16b0] sm:$0xff]  ;;  %2871 = vmatpush.msrb.mxu0 %v713_v35 }
 0x37c   :  { %v841_v37 = vld [vmem:[%s10776_s1 + $0x18b0] sm:$0xff]  ;;  %2891 = vmatpush.msrb.mxu1 %v777_v36 }
 0x37d   :  { %v909_v38 = vld [vmem:[%s10776_s1 + $0x1ad0] sm:$0xff]  ;;  %2911 = vmatpush.msrb.mxu2 %v841_v37 }
 0x37e   :  { %v709_v39 = vld [vmem:[%s10776_s1 + $0x1490] sm:$0xff]  ;;  %2930 = vmatpush.msrb.mxu3 %v909_v38 }
 0x37f   :  { %v773_v40 = vld [vmem:[%s10776_s1 + $0x1690] sm:$0xff]  ;;  %2872 = vmatpush.msrb.mxu0 %v709_v39 }
 0x380   :  { %v837_v41 = vld [vmem:[%s10776_s1 + $0x1890] sm:$0xff]  ;;  %2892 = vmatpush.msrb.mxu1 %v773_v40 }
 0x381   :  { %v905_v42 = vld [vmem:[%s10776_s1 + $0x1ab0] sm:$0xff]  ;;  %2912 = vmatpush.msrb.mxu2 %v837_v41 }
 0x382   :  { %v705_v43 = vld [vmem:[%s10776_s1 + $0x1470] sm:$0xff]  ;;  %2931 = vmatpush.msrb.mxu3 %v905_v42 }
 0x383   :  { %v769_v44 = vld [vmem:[%s10776_s1 + $0x1670] sm:$0xff]  ;;  %2873 = vmatpush.msrb.mxu0 %v705_v43 }
 0x384   :  { %v833_v45 = vld [vmem:[%s10776_s1 + $0x1870] sm:$0xff]  ;;  %2893 = vmatpush.msrb.mxu1 %v769_v44 }
 0x385   :  { %v901_v46 = vld [vmem:[%s10776_s1 + $0x1a90] sm:$0xff]  ;;  %2913 = vmatpush.msrb.mxu2 %v833_v45 }
 0x386   :  { %v701_v47 = vld [vmem:[%s10776_s1 + $0x1450] sm:$0xff]  ;;  %2932 = vmatpush.msrb.mxu3 %v901_v46 }
 0x387   :  { %v765_v48 = vld [vmem:[%s10776_s1 + $0x1650] sm:$0xff]  ;;  %2874 = vmatpush.msrb.mxu0 %v701_v47 }
 0x388   :  { %v829_v49 = vld [vmem:[%s10776_s1 + $0x1850] sm:$0xff]  ;;  %2894 = vmatpush.msrb.mxu1 %v765_v48 }
 0x389   :  { %v897_v50 = vld [vmem:[%s10776_s1 + $0x1a70] sm:$0xff]  ;;  %2914 = vmatpush.msrb.mxu2 %v829_v49 }
 0x38a   :  { %v697_v51 = vld [vmem:[%s10776_s1 + $0x1430] sm:$0xff]  ;;  %2933 = vmatpush.msrb.mxu3 %v897_v50 }
 0x38b   :  { %v761_v52 = vld [vmem:[%s10776_s1 + $0x1630] sm:$0xff]  ;;  %2875 = vmatpush.msrb.mxu0 %v697_v51 }
 0x38c   :  { %v825_v53 = vld [vmem:[%s10776_s1 + $0x1830] sm:$0xff]  ;;  %2895 = vmatpush.msrb.mxu1 %v761_v52 }
 0x38d   :  { %v893_v54 = vld [vmem:[%s10776_s1 + $0x1a50] sm:$0xff]  ;;  %2915 = vmatpush.msrb.mxu2 %v825_v53 }
 0x38e   :  { %v693_v55 = vld [vmem:[%s10776_s1 + $0x1410] sm:$0xff]  ;;  %2934 = vmatpush.msrb.mxu3 %v893_v54 }
 0x38f   :  { %v757_v56 = vld [vmem:[%s10776_s1 + $0x1610] sm:$0xff]  ;;  %2876 = vmatpush.msrb.mxu0 %v693_v55 }
 0x390   :  { %v821_v57 = vld [vmem:[%s10776_s1 + $0x1810] sm:$0xff]  ;;  %2896 = vmatpush.msrb.mxu1 %v757_v56 }
 0x391   :  { %v889_v58 = vld [vmem:[%s10776_s1 + $0x1a30] sm:$0xff]  ;;  %2916 = vmatpush.msrb.mxu2 %v821_v57  ;;  %2897 = vmatmul.f32.vlgmr.msrb.gmra.mxu1 %v4442_v5 }
 0x392   :  { %v1009_v59 = vld [vmem:[%s10776_s1 + $0x1df0] sm:$0xff]  ;;  %2935 = vmatpush.msrb.mxu3 %v889_v58  ;;  %2917 = vmatmul.f32.vlgmr.msrb.gmra.mxu2 %v4441_v0 }
 0x393   :  { %v1073_v60 = vld [vmem:[%s10776_s1 + $0x1ff0] sm:$0xff]  ;;  %2941 = vmatpush.msra.mxu0 %v1009_v59 }
 0x394   :  { %v1137_v61 = vld [vmem:[%s10776_s1 + $0x21f0] sm:$0xff]  ;;  %2961 = vmatpush.msra.mxu1 %v1073_v60 }
 0x395   :  { %v885_v62 = vld [vmem:[%s10776_s1 + $0x1a10] sm:$0xff]  ;;  %2981 = vmatpush.msra.mxu2 %v1137_v61 }
 0x396   :  { %v4440_v63 = vld [vmem:[%s10777_s0 + $0x50] sm:$0xff]  ;;  %2936 = vmatpush.msrb.mxu3 %v885_v62 }
 0x397   :  { %2877 = vmatmul.f32.vlgmr.msrb.gmra.mxu0 %v4440_v63  ;;  %v1005_v1 = vld [vmem:[%s10776_s1 + $0x1dd0] sm:$0xff]  ;;  %2937 = vmatmul.f32.vlgmr.msrb.gmra.mxu3 %v4443_v6 }
 0x398   :  { %v1069_v2 = vld [vmem:[%s10776_s1 + $0x1fd0] sm:$0xff]  ;;  %2942 = vmatpush.msra.mxu0 %v1005_v1 }
 0x399   :  { %v1133_v3 = vld [vmem:[%s10776_s1 + $0x21d0] sm:$0xff]  ;;  %2962 = vmatpush.msra.mxu1 %v1069_v2 }
 0x39a   :  { %v1201_v4 = vld [vmem:[%s10776_s1 + $0x23f0] sm:$0xff]  ;;  %2982 = vmatpush.msra.mxu2 %v1133_v3 }
 0x39b   :  { %v1001_v7 = vld [vmem:[%s10776_s1 + $0x1db0] sm:$0xff]  ;;  %3001 = vmatpush.msra.mxu3 %v1201_v4  ;;  %v4445_v4 = vld [vmem:[%s10777_s0 + $0x80] sm:$0xff] }
 0x39c   :  { %v1065_v8 = vld [vmem:[%s10776_s1 + $0x1fb0] sm:$0xff]  ;;  %2943 = vmatpush.msra.mxu0 %v1001_v7 }
 0x39d   :  { %v1129_v9 = vld [vmem:[%s10776_s1 + $0x21b0] sm:$0xff]  ;;  %2963 = vmatpush.msra.mxu1 %v1065_v8 }
 0x39e   :  { %v1197_v10 = vld [vmem:[%s10776_s1 + $0x23d0] sm:$0xff]  ;;  %2983 = vmatpush.msra.mxu2 %v1129_v9  ;;  %v4446_v9 = vld [vmem:[%s10777_s0 + $0x78] sm:$0xff] }
 0x39f   :  { %v997_v11 = vld [vmem:[%s10776_s1 + $0x1d90] sm:$0xff]  ;;  %3002 = vmatpush.msra.mxu3 %v1197_v10  ;;  %v4447_v10 = vld [vmem:[%s10777_s0 + $0x88] sm:$0xff] }
 0x3a0   :  { %v1061_v12 = vld [vmem:[%s10776_s1 + $0x1f90] sm:$0xff]  ;;  %2944 = vmatpush.msra.mxu0 %v997_v11 }
 0x3a1   :  { %v1125_v13 = vld [vmem:[%s10776_s1 + $0x2190] sm:$0xff]  ;;  %2964 = vmatpush.msra.mxu1 %v1061_v12 }
 0x3a2   :  { %v1193_v14 = vld [vmem:[%s10776_s1 + $0x23b0] sm:$0xff]  ;;  %2984 = vmatpush.msra.mxu2 %v1125_v13 }
 0x3a3   :  { %v993_v15 = vld [vmem:[%s10776_s1 + $0x1d70] sm:$0xff]  ;;  %3003 = vmatpush.msra.mxu3 %v1193_v14 }
 0x3a4   :  { %v1057_v16 = vld [vmem:[%s10776_s1 + $0x1f70] sm:$0xff]  ;;  %2945 = vmatpush.msra.mxu0 %v993_v15 }
 0x3a5   :  { %v1121_v17 = vld [vmem:[%s10776_s1 + $0x2170] sm:$0xff]  ;;  %2965 = vmatpush.msra.mxu1 %v1057_v16 }
 0x3a6   :  { %v1189_v18 = vld [vmem:[%s10776_s1 + $0x2390] sm:$0xff]  ;;  %2985 = vmatpush.msra.mxu2 %v1121_v17 }
 0x3a7   :  { %v989_v19 = vld [vmem:[%s10776_s1 + $0x1d50] sm:$0xff]  ;;  %3004 = vmatpush.msra.mxu3 %v1189_v18 }
 0x3a8   :  { %v1053_v20 = vld [vmem:[%s10776_s1 + $0x1f50] sm:$0xff]  ;;  %2946 = vmatpush.msra.mxu0 %v989_v19 }
 0x3a9   :  { %v1117_v21 = vld [vmem:[%s10776_s1 + $0x2150] sm:$0xff]  ;;  %2966 = vmatpush.msra.mxu1 %v1053_v20 }
 0x3aa   :  { %v1185_v22 = vld [vmem:[%s10776_s1 + $0x2370] sm:$0xff]  ;;  %2986 = vmatpush.msra.mxu2 %v1117_v21 }
 0x3ab   :  { %v985_v23 = vld [vmem:[%s10776_s1 + $0x1d30] sm:$0xff]  ;;  %3005 = vmatpush.msra.mxu3 %v1185_v22 }
 0x3ac   :  { %v1049_v24 = vld [vmem:[%s10776_s1 + $0x1f30] sm:$0xff]  ;;  %2947 = vmatpush.msra.mxu0 %v985_v23 }
 0x3ad   :  { %v1113_v25 = vld [vmem:[%s10776_s1 + $0x2130] sm:$0xff]  ;;  %2967 = vmatpush.msra.mxu1 %v1049_v24 }
 0x3ae   :  { %v1181_v26 = vld [vmem:[%s10776_s1 + $0x2350] sm:$0xff]  ;;  %2987 = vmatpush.msra.mxu2 %v1113_v25 }
 0x3af   :  { %v981_v27 = vld [vmem:[%s10776_s1 + $0x1d10] sm:$0xff]  ;;  %3006 = vmatpush.msra.mxu3 %v1181_v26 }
 0x3b0   :  { %v1045_v28 = vld [vmem:[%s10776_s1 + $0x1f10] sm:$0xff]  ;;  %2948 = vmatpush.msra.mxu0 %v981_v27 }
 0x3b1   :  { %v1109_v29 = vld [vmem:[%s10776_s1 + $0x2110] sm:$0xff]  ;;  %2968 = vmatpush.msra.mxu1 %v1045_v28 }
 0x3b2   :  { %v1177_v30 = vld [vmem:[%s10776_s1 + $0x2330] sm:$0xff]  ;;  %2988 = vmatpush.msra.mxu2 %v1109_v29 }
 0x3b3   :  { %v977_v31 = vld [vmem:[%s10776_s1 + $0x1cf0] sm:$0xff]  ;;  %3007 = vmatpush.msra.mxu3 %v1177_v30 }
 0x3b4   :  { %v1041_v32 = vld [vmem:[%s10776_s1 + $0x1ef0] sm:$0xff]  ;;  %2949 = vmatpush.msra.mxu0 %v977_v31 }
 0x3b5   :  { %v1105_v33 = vld [vmem:[%s10776_s1 + $0x20f0] sm:$0xff]  ;;  %2969 = vmatpush.msra.mxu1 %v1041_v32 }
 0x3b6   :  { %v1173_v34 = vld [vmem:[%s10776_s1 + $0x2310] sm:$0xff]  ;;  %2989 = vmatpush.msra.mxu2 %v1105_v33 }
 0x3b7   :  { %v973_v35 = vld [vmem:[%s10776_s1 + $0x1cd0] sm:$0xff]  ;;  %3008 = vmatpush.msra.mxu3 %v1173_v34 }
 0x3b8   :  { %v1037_v36 = vld [vmem:[%s10776_s1 + $0x1ed0] sm:$0xff]  ;;  %2950 = vmatpush.msra.mxu0 %v973_v35 }
 0x3b9   :  { %v1101_v37 = vld [vmem:[%s10776_s1 + $0x20d0] sm:$0xff]  ;;  %2970 = vmatpush.msra.mxu1 %v1037_v36 }
 0x3ba   :  { %v1169_v38 = vld [vmem:[%s10776_s1 + $0x22f0] sm:$0xff]  ;;  %2990 = vmatpush.msra.mxu2 %v1101_v37 }
 0x3bb   :  { %v969_v39 = vld [vmem:[%s10776_s1 + $0x1cb0] sm:$0xff]  ;;  %3009 = vmatpush.msra.mxu3 %v1169_v38 }
 0x3bc   :  { %v1033_v40 = vld [vmem:[%s10776_s1 + $0x1eb0] sm:$0xff]  ;;  %2951 = vmatpush.msra.mxu0 %v969_v39 }
 0x3bd   :  { %v1097_v41 = vld [vmem:[%s10776_s1 + $0x20b0] sm:$0xff]  ;;  %2971 = vmatpush.msra.mxu1 %v1033_v40 }
 0x3be   :  { %v1165_v42 = vld [vmem:[%s10776_s1 + $0x22d0] sm:$0xff]  ;;  %2991 = vmatpush.msra.mxu2 %v1097_v41 }
 0x3bf   :  { %v965_v43 = vld [vmem:[%s10776_s1 + $0x1c90] sm:$0xff]  ;;  %3010 = vmatpush.msra.mxu3 %v1165_v42 }
 0x3c0   :  { %v1029_v44 = vld [vmem:[%s10776_s1 + $0x1e90] sm:$0xff]  ;;  %2952 = vmatpush.msra.mxu0 %v965_v43 }
 0x3c1   :  { %v1093_v45 = vld [vmem:[%s10776_s1 + $0x2090] sm:$0xff]  ;;  %2972 = vmatpush.msra.mxu1 %v1029_v44 }
 0x3c2   :  { %v1161_v46 = vld [vmem:[%s10776_s1 + $0x22b0] sm:$0xff]  ;;  %2992 = vmatpush.msra.mxu2 %v1093_v45 }
 0x3c3   :  { %v961_v47 = vld [vmem:[%s10776_s1 + $0x1c70] sm:$0xff]  ;;  %3011 = vmatpush.msra.mxu3 %v1161_v46 }
 0x3c4   :  { %v1025_v48 = vld [vmem:[%s10776_s1 + $0x1e70] sm:$0xff]  ;;  %2953 = vmatpush.msra.mxu0 %v961_v47 }
 0x3c5   :  { %v1089_v49 = vld [vmem:[%s10776_s1 + $0x2070] sm:$0xff]  ;;  %2973 = vmatpush.msra.mxu1 %v1025_v48 }
 0x3c6   :  { %v1157_v50 = vld [vmem:[%s10776_s1 + $0x2290] sm:$0xff]  ;;  %2993 = vmatpush.msra.mxu2 %v1089_v49 }
 0x3c7   :  { %v957_v51 = vld [vmem:[%s10776_s1 + $0x1c50] sm:$0xff]  ;;  %3012 = vmatpush.msra.mxu3 %v1157_v50 }
 0x3c8   :  { %v1021_v52 = vld [vmem:[%s10776_s1 + $0x1e50] sm:$0xff]  ;;  %2954 = vmatpush.msra.mxu0 %v957_v51 }
 0x3c9   :  { %v1085_v53 = vld [vmem:[%s10776_s1 + $0x2050] sm:$0xff]  ;;  %2974 = vmatpush.msra.mxu1 %v1021_v52 }
 0x3ca   :  { %v1153_v54 = vld [vmem:[%s10776_s1 + $0x2270] sm:$0xff]  ;;  %2994 = vmatpush.msra.mxu2 %v1085_v53 }
 0x3cb   :  { %v953_v55 = vld [vmem:[%s10776_s1 + $0x1c30] sm:$0xff]  ;;  %3013 = vmatpush.msra.mxu3 %v1153_v54 }
 0x3cc   :  { %v1017_v56 = vld [vmem:[%s10776_s1 + $0x1e30] sm:$0xff]  ;;  %2955 = vmatpush.msra.mxu0 %v953_v55 }
 0x3cd   :  { %v1081_v57 = vld [vmem:[%s10776_s1 + $0x2030] sm:$0xff]  ;;  %2975 = vmatpush.msra.mxu1 %v1017_v56 }
 0x3ce   :  { %v1149_v58 = vld [vmem:[%s10776_s1 + $0x2250] sm:$0xff]  ;;  %2995 = vmatpush.msra.mxu2 %v1081_v57 }
 0x3cf   :  { %v949_v59 = vld [vmem:[%s10776_s1 + $0x1c10] sm:$0xff]  ;;  %3014 = vmatpush.msra.mxu3 %v1149_v58 }
 0x3d0   :  { %v1013_v60 = vld [vmem:[%s10776_s1 + $0x1e10] sm:$0xff]  ;;  %2956 = vmatpush.msra.mxu0 %v949_v59 }
 0x3d1   :  { %v1077_v61 = vld [vmem:[%s10776_s1 + $0x2010] sm:$0xff]  ;;  %2976 = vmatpush.msra.mxu1 %v1013_v60 }
 0x3d2   :  { %v1145_v62 = vld [vmem:[%s10776_s1 + $0x2230] sm:$0xff]  ;;  %2996 = vmatpush.msra.mxu2 %v1077_v61  ;;  %2977 = vmatmul.f32.vlgmr.msra.gmra.mxu1 %v4446_v9 }
 0x3d3   :  { %v1265_v63 = vld [vmem:[%s10776_s1 + $0x25f0] sm:$0xff]  ;;  %3015 = vmatpush.msra.mxu3 %v1145_v62  ;;  %2997 = vmatmul.f32.vlgmr.msra.gmra.mxu2 %v4445_v4 }
 0x3d4   :  { %v1329_v0 = vld [vmem:[%s10776_s1 + $0x27f0] sm:$0xff]  ;;  %3021 = vmatpush.msrb.mxu0 %v1265_v63 }
 0x3d5   :  { %v1393_v1 = vld [vmem:[%s10776_s1 + $0x29f0] sm:$0xff]  ;;  %3041 = vmatpush.msrb.mxu1 %v1329_v0 }
 0x3d6   :  { %v1141_v2 = vld [vmem:[%s10776_s1 + $0x2210] sm:$0xff]  ;;  %3061 = vmatpush.msrb.mxu2 %v1393_v1 }
 0x3d7   :  { %v4444_v3 = vld [vmem:[%s10777_s0 + $0x70] sm:$0xff]  ;;  %3016 = vmatpush.msra.mxu3 %v1141_v2 }
 0x3d8   :  { %2957 = vmatmul.f32.vlgmr.msra.gmra.mxu0 %v4444_v3  ;;  %v1261_v5 = vld [vmem:[%s10776_s1 + $0x25d0] sm:$0xff]  ;;  %3017 = vmatmul.f32.vlgmr.msra.gmra.mxu3 %v4447_v10 }
 0x3d9   :  { %v1325_v6 = vld [vmem:[%s10776_s1 + $0x27d0] sm:$0xff]  ;;  %3022 = vmatpush.msrb.mxu0 %v1261_v5 }
 0x3da   :  { %v1389_v7 = vld [vmem:[%s10776_s1 + $0x29d0] sm:$0xff]  ;;  %3042 = vmatpush.msrb.mxu1 %v1325_v6 }
 0x3db   :  { %v1457_v8 = vld [vmem:[%s10776_s1 + $0x2bf0] sm:$0xff]  ;;  %3062 = vmatpush.msrb.mxu2 %v1389_v7 }
 0x3dc   :  { %v1257_v11 = vld [vmem:[%s10776_s1 + $0x25b0] sm:$0xff]  ;;  %3081 = vmatpush.msrb.mxu3 %v1457_v8  ;;  %v4449_v8 = vld [vmem:[%s10777_s0 + $0xa0] sm:$0xff] }
 0x3dd   :  { %v1321_v12 = vld [vmem:[%s10776_s1 + $0x27b0] sm:$0xff]  ;;  %3023 = vmatpush.msrb.mxu0 %v1257_v11 }
 0x3de   :  { %v1385_v13 = vld [vmem:[%s10776_s1 + $0x29b0] sm:$0xff]  ;;  %3043 = vmatpush.msrb.mxu1 %v1321_v12  ;;  %v114_v12 = vld [vmem:[%s10776_s1 + $0x1f8] sm:$0xff] }
 0x3df   :  { %v1453_v14 = vld [vmem:[%s10776_s1 + $0x2bd0] sm:$0xff]  ;;  %3063 = vmatpush.msrb.mxu2 %v1385_v13  ;;  %v4450_v13 = vld [vmem:[%s10777_s0 + $0x98] sm:$0xff] }
 0x3e0   :  { %v1253_v15 = vld [vmem:[%s10776_s1 + $0x2590] sm:$0xff]  ;;  %3082 = vmatpush.msrb.mxu3 %v1453_v14  ;;  %v4451_v14 = vld [vmem:[%s10777_s0 + $0xa8] sm:$0xff] }
 0x3e1   :  { %v1317_v16 = vld [vmem:[%s10776_s1 + $0x2790] sm:$0xff]  ;;  %3024 = vmatpush.msrb.mxu0 %v1253_v15 }
 0x3e2   :  { %v1381_v17 = vld [vmem:[%s10776_s1 + $0x2990] sm:$0xff]  ;;  %3044 = vmatpush.msrb.mxu1 %v1317_v16 }
 0x3e3   :  { %v1449_v18 = vld [vmem:[%s10776_s1 + $0x2bb0] sm:$0xff]  ;;  %3064 = vmatpush.msrb.mxu2 %v1381_v17 }
 0x3e4   :  { %v1249_v19 = vld [vmem:[%s10776_s1 + $0x2570] sm:$0xff]  ;;  %3083 = vmatpush.msrb.mxu3 %v1449_v18  ;;  %v110_v18 = vld [vmem:[%s10776_s1 + $0x1d8] sm:$0xff] }
 0x3e5   :  { %v1313_v20 = vld [vmem:[%s10776_s1 + $0x2770] sm:$0xff]  ;;  %3025 = vmatpush.msrb.mxu0 %v1249_v19 }
 0x3e6   :  { %v1377_v21 = vld [vmem:[%s10776_s1 + $0x2970] sm:$0xff]  ;;  %3045 = vmatpush.msrb.mxu1 %v1313_v20 }
 0x3e7   :  { %v1445_v22 = vld [vmem:[%s10776_s1 + $0x2b90] sm:$0xff]  ;;  %3065 = vmatpush.msrb.mxu2 %v1377_v21 }
 0x3e8   :  { %v1245_v23 = vld [vmem:[%s10776_s1 + $0x2550] sm:$0xff]  ;;  %3084 = vmatpush.msrb.mxu3 %v1445_v22  ;;  %v106_v22 = vld [vmem:[%s10776_s1 + $0x1b8] sm:$0xff] }
 0x3e9   :  { %v1309_v24 = vld [vmem:[%s10776_s1 + $0x2750] sm:$0xff]  ;;  %3026 = vmatpush.msrb.mxu0 %v1245_v23 }
 0x3ea   :  { %v1373_v25 = vld [vmem:[%s10776_s1 + $0x2950] sm:$0xff]  ;;  %3046 = vmatpush.msrb.mxu1 %v1309_v24 }
 0x3eb   :  { %v1441_v26 = vld [vmem:[%s10776_s1 + $0x2b70] sm:$0xff]  ;;  %3066 = vmatpush.msrb.mxu2 %v1373_v25 }
 0x3ec   :  { %v1241_v27 = vld [vmem:[%s10776_s1 + $0x2530] sm:$0xff]  ;;  %3085 = vmatpush.msrb.mxu3 %v1441_v26  ;;  %v102_v26 = vld [vmem:[%s10776_s1 + $0x198] sm:$0xff] }
 0x3ed   :  { %v1305_v28 = vld [vmem:[%s10776_s1 + $0x2730] sm:$0xff]  ;;  %3027 = vmatpush.msrb.mxu0 %v1241_v27 }
 0x3ee   :  { %v1369_v29 = vld [vmem:[%s10776_s1 + $0x2930] sm:$0xff]  ;;  %3047 = vmatpush.msrb.mxu1 %v1305_v28 }
 0x3ef   :  { %v1437_v30 = vld [vmem:[%s10776_s1 + $0x2b50] sm:$0xff]  ;;  %3067 = vmatpush.msrb.mxu2 %v1369_v29 }
 0x3f0   :  { %v1237_v31 = vld [vmem:[%s10776_s1 + $0x2510] sm:$0xff]  ;;  %3086 = vmatpush.msrb.mxu3 %v1437_v30  ;;  %v98_v30 = vld [vmem:[%s10776_s1 + $0x178] sm:$0xff] }
 0x3f1   :  { %v1301_v32 = vld [vmem:[%s10776_s1 + $0x2710] sm:$0xff]  ;;  %3028 = vmatpush.msrb.mxu0 %v1237_v31 }
 0x3f2   :  { %v1365_v33 = vld [vmem:[%s10776_s1 + $0x2910] sm:$0xff]  ;;  %3048 = vmatpush.msrb.mxu1 %v1301_v32 }
 0x3f3   :  { %v1433_v34 = vld [vmem:[%s10776_s1 + $0x2b30] sm:$0xff]  ;;  %3068 = vmatpush.msrb.mxu2 %v1365_v33 }
 0x3f4   :  { %v1233_v35 = vld [vmem:[%s10776_s1 + $0x24f0] sm:$0xff]  ;;  %3087 = vmatpush.msrb.mxu3 %v1433_v34  ;;  %v94_v34 = vld [vmem:[%s10776_s1 + $0x158] sm:$0xff] }
 0x3f5   :  { %v1297_v36 = vld [vmem:[%s10776_s1 + $0x26f0] sm:$0xff]  ;;  %3029 = vmatpush.msrb.mxu0 %v1233_v35 }
 0x3f6   :  { %v1361_v37 = vld [vmem:[%s10776_s1 + $0x28f0] sm:$0xff]  ;;  %3049 = vmatpush.msrb.mxu1 %v1297_v36 }
 0x3f7   :  { %v1429_v38 = vld [vmem:[%s10776_s1 + $0x2b10] sm:$0xff]  ;;  %3069 = vmatpush.msrb.mxu2 %v1361_v37 }
 0x3f8   :  { %v1229_v39 = vld [vmem:[%s10776_s1 + $0x24d0] sm:$0xff]  ;;  %3088 = vmatpush.msrb.mxu3 %v1429_v38  ;;  %v90_v38 = vld [vmem:[%s10776_s1 + $0x138] sm:$0xff] }
 0x3f9   :  { %v1293_v40 = vld [vmem:[%s10776_s1 + $0x26d0] sm:$0xff]  ;;  %3030 = vmatpush.msrb.mxu0 %v1229_v39 }
 0x3fa   :  { %v1357_v41 = vld [vmem:[%s10776_s1 + $0x28d0] sm:$0xff]  ;;  %3050 = vmatpush.msrb.mxu1 %v1293_v40 }
 0x3fb   :  { %v1425_v42 = vld [vmem:[%s10776_s1 + $0x2af0] sm:$0xff]  ;;  %3070 = vmatpush.msrb.mxu2 %v1357_v41 }
 0x3fc   :  { %v1225_v43 = vld [vmem:[%s10776_s1 + $0x24b0] sm:$0xff]  ;;  %3089 = vmatpush.msrb.mxu3 %v1425_v42  ;;  %v86_v42 = vld [vmem:[%s10776_s1 + $0x118] sm:$0xff] }
 0x3fd   :  { %v1289_v44 = vld [vmem:[%s10776_s1 + $0x26b0] sm:$0xff]  ;;  %3031 = vmatpush.msrb.mxu0 %v1225_v43 }
 0x3fe   :  { %v1353_v45 = vld [vmem:[%s10776_s1 + $0x28b0] sm:$0xff]  ;;  %3051 = vmatpush.msrb.mxu1 %v1289_v44 }
 0x3ff   :  { %v1421_v46 = vld [vmem:[%s10776_s1 + $0x2ad0] sm:$0xff]  ;;  %3071 = vmatpush.msrb.mxu2 %v1353_v45 }
 0x400   :  { %v1221_v47 = vld [vmem:[%s10776_s1 + $0x2490] sm:$0xff]  ;;  %3090 = vmatpush.msrb.mxu3 %v1421_v46  ;;  %v82_v46 = vld [vmem:[%s10776_s1 + $0xf8] sm:$0xff] }
 0x401   :  { %v1285_v48 = vld [vmem:[%s10776_s1 + $0x2690] sm:$0xff]  ;;  %3032 = vmatpush.msrb.mxu0 %v1221_v47 }
 0x402   :  { %v1349_v49 = vld [vmem:[%s10776_s1 + $0x2890] sm:$0xff]  ;;  %3052 = vmatpush.msrb.mxu1 %v1285_v48 }
 0x403   :  { %v1417_v50 = vld [vmem:[%s10776_s1 + $0x2ab0] sm:$0xff]  ;;  %3072 = vmatpush.msrb.mxu2 %v1349_v49 }
 0x404   :  { %v1217_v51 = vld [vmem:[%s10776_s1 + $0x2470] sm:$0xff]  ;;  %3091 = vmatpush.msrb.mxu3 %v1417_v50  ;;  %v78_v50 = vld [vmem:[%s10776_s1 + $0xd8] sm:$0xff] }
 0x405   :  { %v1281_v52 = vld [vmem:[%s10776_s1 + $0x2670] sm:$0xff]  ;;  %3033 = vmatpush.msrb.mxu0 %v1217_v51 }
 0x406   :  { %v1345_v53 = vld [vmem:[%s10776_s1 + $0x2870] sm:$0xff]  ;;  %3053 = vmatpush.msrb.mxu1 %v1281_v52 }
 0x407   :  { %v1413_v54 = vld [vmem:[%s10776_s1 + $0x2a90] sm:$0xff]  ;;  %3073 = vmatpush.msrb.mxu2 %v1345_v53 }
 0x408   :  { %v1213_v55 = vld [vmem:[%s10776_s1 + $0x2450] sm:$0xff]  ;;  %3092 = vmatpush.msrb.mxu3 %v1413_v54  ;;  %v74_v54 = vld [vmem:[%s10776_s1 + $0xb8] sm:$0xff] }
 0x409   :  { %v1277_v56 = vld [vmem:[%s10776_s1 + $0x2650] sm:$0xff]  ;;  %3034 = vmatpush.msrb.mxu0 %v1213_v55 }
 0x40a   :  { %v1341_v57 = vld [vmem:[%s10776_s1 + $0x2850] sm:$0xff]  ;;  %3054 = vmatpush.msrb.mxu1 %v1277_v56 }
 0x40b   :  { %v1409_v58 = vld [vmem:[%s10776_s1 + $0x2a70] sm:$0xff]  ;;  %3074 = vmatpush.msrb.mxu2 %v1341_v57 }
 0x40c   :  { %v1209_v59 = vld [vmem:[%s10776_s1 + $0x2430] sm:$0xff]  ;;  %3093 = vmatpush.msrb.mxu3 %v1409_v58  ;;  %v70_v58 = vld [vmem:[%s10776_s1 + $0x98] sm:$0xff] }
 0x40d   :  { %v1273_v60 = vld [vmem:[%s10776_s1 + $0x2630] sm:$0xff]  ;;  %3035 = vmatpush.msrb.mxu0 %v1209_v59 }
 0x40e   :  { %v1337_v61 = vld [vmem:[%s10776_s1 + $0x2830] sm:$0xff]  ;;  %3055 = vmatpush.msrb.mxu1 %v1273_v60 }
 0x40f   :  { %v1405_v62 = vld [vmem:[%s10776_s1 + $0x2a50] sm:$0xff]  ;;  %3075 = vmatpush.msrb.mxu2 %v1337_v61 }
 0x410   :  { %v1205_v63 = vld [vmem:[%s10776_s1 + $0x2410] sm:$0xff]  ;;  %3094 = vmatpush.msrb.mxu3 %v1405_v62  ;;  %v66_v62 = vld [vmem:[%s10776_s1 + $0x78] sm:$0xff] }
 0x411   :  { %v1269_v0 = vld [vmem:[%s10776_s1 + $0x2610] sm:$0xff]  ;;  %3036 = vmatpush.msrb.mxu0 %v1205_v63 }
 0x412   :  { %v1333_v1 = vld [vmem:[%s10776_s1 + $0x2810] sm:$0xff]  ;;  %3056 = vmatpush.msrb.mxu1 %v1269_v0 }
 0x413   :  { %v1401_v2 = vld [vmem:[%s10776_s1 + $0x2a30] sm:$0xff]  ;;  %3076 = vmatpush.msrb.mxu2 %v1333_v1  ;;  %3057 = vmatmul.f32.vlgmr.msrb.gmra.mxu1 %v4450_v13  ;;  %v174_v13 = vld [vmem:[%s10776_s1 + $0x3d8] sm:$0xff] }
 0x414   :  { %v1521_v3 = vld [vmem:[%s10776_s1 + $0x2df0] sm:$0xff]  ;;  %3095 = vmatpush.msrb.mxu3 %v1401_v2  ;;  %3077 = vmatmul.f32.vlgmr.msrb.gmra.mxu2 %v4449_v8  ;;  %v62_v2 = vld [vmem:[%s10776_s1 + $0x58] sm:$0xff] }
 0x415   :  { %v1585_v4 = vld [vmem:[%s10776_s1 + $0x2ff0] sm:$0xff]  ;;  %3101 = vmatpush.msra.mxu0 %v1521_v3  ;;  %v242_v8 = vld [vmem:[%s10776_s1 + $0x5f8] sm:$0xff] }
 0x416   :  { %v1649_v5 = vld [vmem:[%s10776_s1 + $0x31f0] sm:$0xff]  ;;  %3121 = vmatpush.msra.mxu1 %v1585_v4 }
 0x417   :  { %v1397_v6 = vld [vmem:[%s10776_s1 + $0x2a10] sm:$0xff]  ;;  %3141 = vmatpush.msra.mxu2 %v1649_v5 }
 0x418   :  { %v4448_v7 = vld [vmem:[%s10777_s0 + $0x90] sm:$0xff]  ;;  %3096 = vmatpush.msrb.mxu3 %v1397_v6  ;;  %v58_v6 = vld [vmem:[%s10776_s1 + $0x38] sm:$0xff] }
 0x419   :  { %3037 = vmatmul.f32.vlgmr.msrb.gmra.mxu0 %v4448_v7  ;;  %v1517_v9 = vld [vmem:[%s10776_s1 + $0x2dd0] sm:$0xff]  ;;  %3097 = vmatmul.f32.vlgmr.msrb.gmra.mxu3 %v4451_v14  ;;  %v178_v7 = vld [vmem:[%s10776_s1 + $0x3f8] sm:$0xff] }
 0x41a   :  { %v1581_v10 = vld [vmem:[%s10776_s1 + $0x2fd0] sm:$0xff]  ;;  %3102 = vmatpush.msra.mxu0 %v1517_v9  ;;  %3161 = vmatpush.msra.mxu3 %v114_v12  ;;  %v306_v9 = vld [vmem:[%s10776_s1 + $0x7f8] sm:$0xff]  ;;  %v4453_v12 = vld [vmem:[%s10777_s0 + $0xc0] sm:$0xff] }
 0x41b   :  { %v1645_v11 = vld [vmem:[%s10776_s1 + $0x31d0] sm:$0xff]  ;;  %3122 = vmatpush.msra.mxu1 %v1581_v10  ;;  %v54_v10 = vld [vmem:[%s10776_s1 + $0x18] sm:$0xff] }
 0x41c   :  { %v1513_v15 = vld [vmem:[%s10776_s1 + $0x2db0] sm:$0xff]  ;;  %3142 = vmatpush.msra.mxu2 %v1645_v11  ;;  %3162 = vmatpush.msra.mxu3 %v110_v18  ;;  %v238_v14 = vld [vmem:[%s10776_s1 + $0x5d8] sm:$0xff] }
 0x41d   :  { %v1577_v16 = vld [vmem:[%s10776_s1 + $0x2fb0] sm:$0xff]  ;;  %3103 = vmatpush.msra.mxu0 %v1513_v15  ;;  %v302_v15 = vld [vmem:[%s10776_s1 + $0x7d8] sm:$0xff] }
 0x41e   :  { %v1641_v17 = vld [vmem:[%s10776_s1 + $0x31b0] sm:$0xff]  ;;  %3123 = vmatpush.msra.mxu1 %v1577_v16  ;;  %3163 = vmatpush.msra.mxu3 %v106_v22  ;;  %v370_v16 = vld [vmem:[%s10776_s1 + $0x9f8] sm:$0xff] }
 0x41f   :  { %v1509_v19 = vld [vmem:[%s10776_s1 + $0x2d90] sm:$0xff]  ;;  %3143 = vmatpush.msra.mxu2 %v1641_v17  ;;  %v170_v17 = vld [vmem:[%s10776_s1 + $0x3b8] sm:$0xff] }
 0x420   :  { %v1573_v20 = vld [vmem:[%s10776_s1 + $0x2f90] sm:$0xff]  ;;  %3104 = vmatpush.msra.mxu0 %v1509_v19  ;;  %3164 = vmatpush.msra.mxu3 %v102_v26  ;;  %v4454_v18 = vld [vmem:[%s10777_s0 + $0xb8] sm:$0xff] }
 0x421   :  { %v1637_v21 = vld [vmem:[%s10776_s1 + $0x3190] sm:$0xff]  ;;  %3124 = vmatpush.msra.mxu1 %v1573_v20  ;;  %v234_v19 = vld [vmem:[%s10776_s1 + $0x5b8] sm:$0xff] }
 0x422   :  { %v1505_v23 = vld [vmem:[%s10776_s1 + $0x2d70] sm:$0xff]  ;;  %3144 = vmatpush.msra.mxu2 %v1637_v21  ;;  %3165 = vmatpush.msra.mxu3 %v98_v30  ;;  %v298_v20 = vld [vmem:[%s10776_s1 + $0x7b8] sm:$0xff] }
 0x423   :  { %v1569_v24 = vld [vmem:[%s10776_s1 + $0x2f70] sm:$0xff]  ;;  %3105 = vmatpush.msra.mxu0 %v1505_v23  ;;  %v366_v21 = vld [vmem:[%s10776_s1 + $0x9d8] sm:$0xff] }
 0x424   :  { %v1633_v25 = vld [vmem:[%s10776_s1 + $0x3170] sm:$0xff]  ;;  %3125 = vmatpush.msra.mxu1 %v1569_v24  ;;  %3166 = vmatpush.msra.mxu3 %v94_v34  ;;  %v166_v22 = vld [vmem:[%s10776_s1 + $0x398] sm:$0xff] }
 0x425   :  { %v1501_v27 = vld [vmem:[%s10776_s1 + $0x2d50] sm:$0xff]  ;;  %3145 = vmatpush.msra.mxu2 %v1633_v25  ;;  %v230_v23 = vld [vmem:[%s10776_s1 + $0x598] sm:$0xff] }
 0x426   :  { %v1565_v28 = vld [vmem:[%s10776_s1 + $0x2f50] sm:$0xff]  ;;  %3106 = vmatpush.msra.mxu0 %v1501_v27  ;;  %3167 = vmatpush.msra.mxu3 %v90_v38  ;;  %v294_v24 = vld [vmem:[%s10776_s1 + $0x798] sm:$0xff] }
 0x427   :  { %v1629_v29 = vld [vmem:[%s10776_s1 + $0x3150] sm:$0xff]  ;;  %3126 = vmatpush.msra.mxu1 %v1565_v28  ;;  %v362_v25 = vld [vmem:[%s10776_s1 + $0x9b8] sm:$0xff] }
 0x428   :  { %v1497_v31 = vld [vmem:[%s10776_s1 + $0x2d30] sm:$0xff]  ;;  %3146 = vmatpush.msra.mxu2 %v1629_v29  ;;  %3168 = vmatpush.msra.mxu3 %v86_v42  ;;  %v162_v26 = vld [vmem:[%s10776_s1 + $0x378] sm:$0xff] }
 0x429   :  { %v1561_v32 = vld [vmem:[%s10776_s1 + $0x2f30] sm:$0xff]  ;;  %3107 = vmatpush.msra.mxu0 %v1497_v31  ;;  %v226_v27 = vld [vmem:[%s10776_s1 + $0x578] sm:$0xff] }
 0x42a   :  { %v1625_v33 = vld [vmem:[%s10776_s1 + $0x3130] sm:$0xff]  ;;  %3127 = vmatpush.msra.mxu1 %v1561_v32  ;;  %3169 = vmatpush.msra.mxu3 %v82_v46  ;;  %v290_v28 = vld [vmem:[%s10776_s1 + $0x778] sm:$0xff] }
 0x42b   :  { %v1493_v35 = vld [vmem:[%s10776_s1 + $0x2d10] sm:$0xff]  ;;  %3147 = vmatpush.msra.mxu2 %v1625_v33  ;;  %v358_v29 = vld [vmem:[%s10776_s1 + $0x998] sm:$0xff] }
 0x42c   :  { %v1557_v36 = vld [vmem:[%s10776_s1 + $0x2f10] sm:$0xff]  ;;  %3108 = vmatpush.msra.mxu0 %v1493_v35  ;;  %3170 = vmatpush.msra.mxu3 %v78_v50  ;;  %v158_v30 = vld [vmem:[%s10776_s1 + $0x358] sm:$0xff] }
 0x42d   :  { %v1621_v37 = vld [vmem:[%s10776_s1 + $0x3110] sm:$0xff]  ;;  %3128 = vmatpush.msra.mxu1 %v1557_v36  ;;  %v222_v31 = vld [vmem:[%s10776_s1 + $0x558] sm:$0xff] }
 0x42e   :  { %v1489_v39 = vld [vmem:[%s10776_s1 + $0x2cf0] sm:$0xff]  ;;  %3148 = vmatpush.msra.mxu2 %v1621_v37  ;;  %3171 = vmatpush.msra.mxu3 %v74_v54  ;;  %v286_v32 = vld [vmem:[%s10776_s1 + $0x758] sm:$0xff] }
 0x42f   :  { %v1553_v40 = vld [vmem:[%s10776_s1 + $0x2ef0] sm:$0xff]  ;;  %3109 = vmatpush.msra.mxu0 %v1489_v39  ;;  %v354_v33 = vld [vmem:[%s10776_s1 + $0x978] sm:$0xff] }
 0x430   :  { %v1617_v41 = vld [vmem:[%s10776_s1 + $0x30f0] sm:$0xff]  ;;  %3129 = vmatpush.msra.mxu1 %v1553_v40  ;;  %3172 = vmatpush.msra.mxu3 %v70_v58  ;;  %v154_v34 = vld [vmem:[%s10776_s1 + $0x338] sm:$0xff] }
 0x431   :  { %v1485_v43 = vld [vmem:[%s10776_s1 + $0x2cd0] sm:$0xff]  ;;  %3149 = vmatpush.msra.mxu2 %v1617_v41  ;;  %v218_v35 = vld [vmem:[%s10776_s1 + $0x538] sm:$0xff] }
 0x432   :  { %v1549_v44 = vld [vmem:[%s10776_s1 + $0x2ed0] sm:$0xff]  ;;  %3110 = vmatpush.msra.mxu0 %v1485_v43  ;;  %3173 = vmatpush.msra.mxu3 %v66_v62  ;;  %v282_v36 = vld [vmem:[%s10776_s1 + $0x738] sm:$0xff] }
 0x433   :  { %v1613_v45 = vld [vmem:[%s10776_s1 + $0x30d0] sm:$0xff]  ;;  %3130 = vmatpush.msra.mxu1 %v1549_v44  ;;  %v350_v37 = vld [vmem:[%s10776_s1 + $0x958] sm:$0xff] }
 0x434   :  { %v1481_v47 = vld [vmem:[%s10776_s1 + $0x2cb0] sm:$0xff]  ;;  %3150 = vmatpush.msra.mxu2 %v1613_v45  ;;  %3174 = vmatpush.msra.mxu3 %v62_v2  ;;  %v150_v38 = vld [vmem:[%s10776_s1 + $0x318] sm:$0xff] }
 0x435   :  { %v1545_v48 = vld [vmem:[%s10776_s1 + $0x2eb0] sm:$0xff]  ;;  %3111 = vmatpush.msra.mxu0 %v1481_v47  ;;  %v214_v39 = vld [vmem:[%s10776_s1 + $0x518] sm:$0xff] }
 0x436   :  { %v1609_v49 = vld [vmem:[%s10776_s1 + $0x30b0] sm:$0xff]  ;;  %3131 = vmatpush.msra.mxu1 %v1545_v48  ;;  %3175 = vmatpush.msra.mxu3 %v58_v6  ;;  %v278_v40 = vld [vmem:[%s10776_s1 + $0x718] sm:$0xff] }
 0x437   :  { %v1477_v51 = vld [vmem:[%s10776_s1 + $0x2c90] sm:$0xff]  ;;  %3151 = vmatpush.msra.mxu2 %v1609_v49  ;;  %v346_v41 = vld [vmem:[%s10776_s1 + $0x938] sm:$0xff] }
 0x438   :  { %v1541_v52 = vld [vmem:[%s10776_s1 + $0x2e90] sm:$0xff]  ;;  %3112 = vmatpush.msra.mxu0 %v1477_v51  ;;  %3176 = vmatpush.msra.mxu3 %v54_v10  ;;  %v146_v42 = vld [vmem:[%s10776_s1 + $0x2f8] sm:$0xff] }
 0x439   :  { %v1605_v53 = vld [vmem:[%s10776_s1 + $0x3090] sm:$0xff]  ;;  %3132 = vmatpush.msra.mxu1 %v1541_v52  ;;  %v210_v43 = vld [vmem:[%s10776_s1 + $0x4f8] sm:$0xff] }
 0x43a   :  { %v1473_v55 = vld [vmem:[%s10776_s1 + $0x2c70] sm:$0xff]  ;;  %3152 = vmatpush.msra.mxu2 %v1605_v53  ;;  %3241 = vmatpush.msrb.mxu3 %v370_v16  ;;  %v274_v44 = vld [vmem:[%s10776_s1 + $0x6f8] sm:$0xff] }
 0x43b   :  { %v1537_v56 = vld [vmem:[%s10776_s1 + $0x2e70] sm:$0xff]  ;;  %3113 = vmatpush.msra.mxu0 %v1473_v55  ;;  %v342_v45 = vld [vmem:[%s10776_s1 + $0x918] sm:$0xff] }
 0x43c   :  { %v1601_v57 = vld [vmem:[%s10776_s1 + $0x3070] sm:$0xff]  ;;  %3133 = vmatpush.msra.mxu1 %v1537_v56  ;;  %3242 = vmatpush.msrb.mxu3 %v366_v21  ;;  %v142_v46 = vld [vmem:[%s10776_s1 + $0x2d8] sm:$0xff] }
 0x43d   :  { %v1469_v59 = vld [vmem:[%s10776_s1 + $0x2c50] sm:$0xff]  ;;  %3153 = vmatpush.msra.mxu2 %v1601_v57  ;;  %v206_v47 = vld [vmem:[%s10776_s1 + $0x4d8] sm:$0xff] }
 0x43e   :  { %v1533_v60 = vld [vmem:[%s10776_s1 + $0x2e50] sm:$0xff]  ;;  %3114 = vmatpush.msra.mxu0 %v1469_v59  ;;  %3243 = vmatpush.msrb.mxu3 %v362_v25  ;;  %v270_v48 = vld [vmem:[%s10776_s1 + $0x6d8] sm:$0xff] }
 0x43f   :  { %v1597_v61 = vld [vmem:[%s10776_s1 + $0x3050] sm:$0xff]  ;;  %3134 = vmatpush.msra.mxu1 %v1533_v60  ;;  %v338_v49 = vld [vmem:[%s10776_s1 + $0x8f8] sm:$0xff] }
 0x440   :  { %v1465_v63 = vld [vmem:[%s10776_s1 + $0x2c30] sm:$0xff]  ;;  %3154 = vmatpush.msra.mxu2 %v1597_v61  ;;  %3244 = vmatpush.msrb.mxu3 %v358_v29  ;;  %v138_v50 = vld [vmem:[%s10776_s1 + $0x2b8] sm:$0xff] }
 0x441   :  { %v1529_v0 = vld [vmem:[%s10776_s1 + $0x2e30] sm:$0xff]  ;;  %3115 = vmatpush.msra.mxu0 %v1465_v63  ;;  %v202_v51 = vld [vmem:[%s10776_s1 + $0x4b8] sm:$0xff] }
 0x442   :  { %v1593_v1 = vld [vmem:[%s10776_s1 + $0x3030] sm:$0xff]  ;;  %3135 = vmatpush.msra.mxu1 %v1529_v0  ;;  %3245 = vmatpush.msrb.mxu3 %v354_v33  ;;  %v266_v52 = vld [vmem:[%s10776_s1 + $0x6b8] sm:$0xff] }
 0x443   :  { %v1461_v3 = vld [vmem:[%s10776_s1 + $0x2c10] sm:$0xff]  ;;  %3155 = vmatpush.msra.mxu2 %v1593_v1  ;;  %v334_v53 = vld [vmem:[%s10776_s1 + $0x8d8] sm:$0xff] }
 0x444   :  { %v1525_v4 = vld [vmem:[%s10776_s1 + $0x2e10] sm:$0xff]  ;;  %3116 = vmatpush.msra.mxu0 %v1461_v3  ;;  %3246 = vmatpush.msrb.mxu3 %v350_v37  ;;  %v134_v54 = vld [vmem:[%s10776_s1 + $0x298] sm:$0xff]  ;;  %v4458_v37 = vld [vmem:[%s10777_s0 + $0x20] sm:$0xff] }
 0x445   :  { %v1589_v5 = vld [vmem:[%s10776_s1 + $0x3010] sm:$0xff]  ;;  %3136 = vmatpush.msra.mxu1 %v1525_v4  ;;  %v198_v55 = vld [vmem:[%s10776_s1 + $0x498] sm:$0xff] }
 0x446   :  { %3156 = vmatpush.msra.mxu2 %v1589_v5  ;;  %v4452_v11 = vld [vmem:[%s10777_s0 + $0xb0] sm:$0xff]  ;;  %3181 = vmatpush.msrb.mxu0 %v178_v7  ;;  %v262_v56 = vld [vmem:[%s10776_s1 + $0x698] sm:$0xff] }
 0x447   :  { %3117 = vmatmul.f32.vlgmr.msra.gmra.mxu0 %v4452_v11  ;;  %3157 = vmatmul.f32.vlgmr.msra.gmra.mxu2 %v4453_v12  ;;  %v330_v57 = vld [vmem:[%s10776_s1 + $0x8b8] sm:$0xff] }
 0x448   :  { %3201 = vmatpush.msrb.mxu1 %v242_v8  ;;  %3221 = vmatpush.msrb.mxu2 %v306_v9  ;;  %v130_v58 = vld [vmem:[%s10776_s1 + $0x278] sm:$0xff] }
 0x449   :  { %3137 = vmatmul.f32.vlgmr.msra.gmra.mxu1 %v4454_v18  ;;  %3182 = vmatpush.msrb.mxu0 %v174_v13  ;;  %v194_v59 = vld [vmem:[%s10776_s1 + $0x478] sm:$0xff] }
 0x44a   :  { %3202 = vmatpush.msrb.mxu1 %v238_v14  ;;  %3222 = vmatpush.msrb.mxu2 %v302_v15  ;;  %v258_v60 = vld [vmem:[%s10776_s1 + $0x678] sm:$0xff] }
 0x44b   :  { %3183 = vmatpush.msrb.mxu0 %v170_v17  ;;  %3247 = vmatpush.msrb.mxu3 %v346_v41  ;;  %v326_v61 = vld [vmem:[%s10776_s1 + $0x898] sm:$0xff] }
 0x44c   :  { %3203 = vmatpush.msrb.mxu1 %v234_v19  ;;  %3223 = vmatpush.msrb.mxu2 %v298_v20  ;;  %v126_v62 = vld [vmem:[%s10776_s1 + $0x258] sm:$0xff]  ;;  %v4455_v20 = vld [vmem:[%s10777_s0] sm:$0xff] }
 0x44d   :  { %3184 = vmatpush.msrb.mxu0 %v166_v22  ;;  %3248 = vmatpush.msrb.mxu3 %v342_v45  ;;  %v190_v63 = vld [vmem:[%s10776_s1 + $0x458] sm:$0xff] }
 0x44e   :  { %3204 = vmatpush.msrb.mxu1 %v230_v23  ;;  %3224 = vmatpush.msrb.mxu2 %v294_v24  ;;  %v254_v0 = vld [vmem:[%s10776_s1 + $0x658] sm:$0xff] }
 0x44f   :  { %3185 = vmatpush.msrb.mxu0 %v162_v26  ;;  %3249 = vmatpush.msrb.mxu3 %v338_v49  ;;  %v322_v1 = vld [vmem:[%s10776_s1 + $0x878] sm:$0xff] }
 0x450   :  { %3205 = vmatpush.msrb.mxu1 %v226_v27  ;;  %3225 = vmatpush.msrb.mxu2 %v290_v28  ;;  %v122_v2 = vld [vmem:[%s10776_s1 + $0x238] sm:$0xff] }
 0x451   :  { %3186 = vmatpush.msrb.mxu0 %v158_v30  ;;  %3250 = vmatpush.msrb.mxu3 %v334_v53  ;;  %v186_v3 = vld [vmem:[%s10776_s1 + $0x438] sm:$0xff] }
 0x452   :  { %3206 = vmatpush.msrb.mxu1 %v222_v31  ;;  %3226 = vmatpush.msrb.mxu2 %v286_v32  ;;  %v250_v4 = vld [vmem:[%s10776_s1 + $0x638] sm:$0xff] }
 0x453   :  { %3187 = vmatpush.msrb.mxu0 %v154_v34  ;;  %3251 = vmatpush.msrb.mxu3 %v330_v57  ;;  %v318_v5 = vld [vmem:[%s10776_s1 + $0x858] sm:$0xff] }
 0x454   :  { %3207 = vmatpush.msrb.mxu1 %v218_v35  ;;  %3227 = vmatpush.msrb.mxu2 %v282_v36  ;;  %v118_v6 = vld [vmem:[%s10776_s1 + $0x218] sm:$0xff]  ;;  %v4457_v35 = vld [vmem:[%s10777_s0 + $0x8] sm:$0xff] }
 0x455   :  { %3188 = vmatpush.msrb.mxu0 %v150_v38  ;;  %3252 = vmatpush.msrb.mxu3 %v326_v61  ;;  %v182_v7 = vld [vmem:[%s10776_s1 + $0x418] sm:$0xff] }
 0x456   :  { %3208 = vmatpush.msrb.mxu1 %v214_v39  ;;  %3228 = vmatpush.msrb.mxu2 %v278_v40  ;;  %v246_v8 = vld [vmem:[%s10776_s1 + $0x618] sm:$0xff] }
 0x457   :  { %3189 = vmatpush.msrb.mxu0 %v146_v42  ;;  %3253 = vmatpush.msrb.mxu3 %v322_v1  ;;  %v314_v9 = vld [vmem:[%s10776_s1 + $0x838] sm:$0xff]  ;;  %v4459_v42 = vld [vmem:[%s10777_s0 + $0x10] sm:$0xff]  ;;  %v8746_v1 = vpop.f32.mrf.mxu1 }
 0x458   :  { %3209 = vmatpush.msrb.mxu1 %v210_v43  ;;  %3229 = vmatpush.msrb.mxu2 %v274_v44  ;;  %v434_v10 = vld [vmem:[%s10776_s1 + $0xbf8] sm:$0xff] }
 0x459   :  { %3190 = vmatpush.msrb.mxu0 %v142_v46  ;;  %3254 = vmatpush.msrb.mxu3 %v318_v5  ;;  %v498_v11 = vld [vmem:[%s10776_s1 + $0xdf8] sm:$0xff] }
 0x45a   :  { %3210 = vmatpush.msrb.mxu1 %v206_v47  ;;  %3230 = vmatpush.msrb.mxu2 %v270_v48  ;;  %v562_v12 = vld [vmem:[%s10776_s1 + $0xff8] sm:$0xff] }
 0x45b   :  { %3191 = vmatpush.msrb.mxu0 %v138_v50  ;;  %v310_v13 = vld [vmem:[%s10776_s1 + $0x818] sm:$0xff]  ;;  %3255 = vmatpush.msrb.mxu3 %v314_v9 }
 0x45c   :  { %3211 = vmatpush.msrb.mxu1 %v202_v51  ;;  %3231 = vmatpush.msrb.mxu2 %v266_v52  ;;  %v430_v14 = vld [vmem:[%s10776_s1 + $0xbd8] sm:$0xff] }
 0x45d   :  { %3192 = vmatpush.msrb.mxu0 %v134_v54  ;;  %v494_v15 = vld [vmem:[%s10776_s1 + $0xdd8] sm:$0xff]  ;;  %3256 = vmatpush.msrb.mxu3 %v310_v13 }
 0x45e   :  { %3212 = vmatpush.msrb.mxu1 %v198_v55  ;;  %3232 = vmatpush.msrb.mxu2 %v262_v56  ;;  %v558_v16 = vld [vmem:[%s10776_s1 + $0xfd8] sm:$0xff]  ;;  %v8718_v55 = vpop.f32.mrf.mxu2 }
 0x45f   :  { %3193 = vmatpush.msrb.mxu0 %v130_v58  ;;  %v626_v17 = vld [vmem:[%s10776_s1 + $0x11f8] sm:$0xff]  ;;  %3177 = vmatmul.f32.vlgmr.msra.gmra.mxu3 %v4455_v20 }
 0x460   :  { %3213 = vmatpush.msrb.mxu1 %v194_v59  ;;  %3233 = vmatpush.msrb.mxu2 %v258_v60  ;;  %v426_v18 = vld [vmem:[%s10776_s1 + $0xbb8] sm:$0xff]  ;;  %v8732_v60 = vpop.f32.mrf.mxu0 }
 0x461   :  { %3194 = vmatpush.msrb.mxu0 %v126_v62  ;;  %v490_v19 = vld [vmem:[%s10776_s1 + $0xdb8] sm:$0xff]  ;;  %3321 = vmatpush.msra.mxu3 %v626_v17 }
 0x462   :  { %3214 = vmatpush.msrb.mxu1 %v190_v63  ;;  %3234 = vmatpush.msrb.mxu2 %v254_v0  ;;  %v554_v21 = vld [vmem:[%s10776_s1 + $0xfb8] sm:$0xff] }
 0x463   :  { %3195 = vmatpush.msrb.mxu0 %v122_v2  ;;  %v622_v22 = vld [vmem:[%s10776_s1 + $0x11d8] sm:$0xff]  ;;  %v8748_v2 = vpop.f32.mrf.mxu3 }
 0x464   :  { %3215 = vmatpush.msrb.mxu1 %v186_v3  ;;  %3235 = vmatpush.msrb.mxu2 %v250_v4  ;;  %v422_v23 = vld [vmem:[%s10776_s1 + $0xb98] sm:$0xff] }
 0x465   :  { %3196 = vmatpush.msrb.mxu0 %v118_v6  ;;  %v486_v24 = vld [vmem:[%s10776_s1 + $0xd98] sm:$0xff]  ;;  %3322 = vmatpush.msra.mxu3 %v622_v22 }
 0x466   :  { %3216 = vmatpush.msrb.mxu1 %v182_v7  ;;  %3236 = vmatpush.msrb.mxu2 %v246_v8  ;;  %v550_v25 = vld [vmem:[%s10776_s1 + $0xf98] sm:$0xff] }
 0x467   :  { %3261 = vmatpush.msra.mxu0 %v434_v10  ;;  %v618_v26 = vld [vmem:[%s10776_s1 + $0x11b8] sm:$0xff]  ;;  %3257 = vmatmul.f32.vlgmr.msrb.gmra.mxu3 %v4458_v37 }
 0x468   :  { %3281 = vmatpush.msra.mxu1 %v498_v11  ;;  %3301 = vmatpush.msra.mxu2 %v562_v12  ;;  %v418_v27 = vld [vmem:[%s10776_s1 + $0xb78] sm:$0xff]  ;;  %v8800_v20 = vpop.f32.mrf.mxu0 }
 0x469   :  { %3262 = vmatpush.msra.mxu0 %v430_v14  ;;  %v482_v28 = vld [vmem:[%s10776_s1 + $0xd78] sm:$0xff]  ;;  %3323 = vmatpush.msra.mxu3 %v618_v26 }
 0x46a   :  { %3282 = vmatpush.msra.mxu1 %v494_v15  ;;  %3302 = vmatpush.msra.mxu2 %v558_v16  ;;  %v546_v29 = vld [vmem:[%s10776_s1 + $0xf78] sm:$0xff]  ;;  %v8786_v15 = vpop.f32.mrf.mxu2 }
 0x46b   :  { %3263 = vmatpush.msra.mxu0 %v426_v18  ;;  %v614_v30 = vld [vmem:[%s10776_s1 + $0x1198] sm:$0xff]  ;;  %3217 = vmatmul.f32.vlgmr.msrb.gmra.mxu1 %v4459_v42 }
 0x46c   :  { %3283 = vmatpush.msra.mxu1 %v490_v19  ;;  %3303 = vmatpush.msra.mxu2 %v554_v21  ;;  %v4456_v31 = vld [vmem:[%s10777_s0 + $0x18] sm:$0xff] }
 0x46d   :  { %3264 = vmatpush.msra.mxu0 %v422_v23  ;;  %3237 = vmatmul.f32.vlgmr.msrb.gmra.mxu2 %v4456_v31  ;;  %v414_v32 = vld [vmem:[%s10776_s1 + $0xb58] sm:$0xff]  ;;  %v8808_v23 = vpop.f32.mrf.mxu1 }
 0x46e   :  { %3284 = vmatpush.msra.mxu1 %v486_v24  ;;  %3304 = vmatpush.msra.mxu2 %v550_v25  ;;  %v478_v33 = vld [vmem:[%s10776_s1 + $0xd58] sm:$0xff]  ;;  %v8810_v24 = vpop.f32.mrf.mxu3 }
 0x46f   :  { %3265 = vmatpush.msra.mxu0 %v418_v27  ;;  %v542_v34 = vld [vmem:[%s10776_s1 + $0xf58] sm:$0xff]  ;;  %3324 = vmatpush.msra.mxu3 %v614_v30  ;;  %v4460_v27 = vld [vmem:[%s10777_s0 + $0x28] sm:$0xff] }
 0x470   :  { %3285 = vmatpush.msra.mxu1 %v482_v28  ;;  %3305 = vmatpush.msra.mxu2 %v546_v29  ;;  %v610_v36 = vld [vmem:[%s10776_s1 + $0x1178] sm:$0xff] }
 0x471   :  { %3197 = vmatmul.f32.vlgmr.msrb.gmra.mxu0 %v4457_v35  ;;  %v410_v38 = vld [vmem:[%s10776_s1 + $0xb38] sm:$0xff]  ;;  %3325 = vmatpush.msra.mxu3 %v610_v36  ;;  %v4463_v35 = vld [vmem:[%s10777_s0 + $0x40] sm:$0xff] }
 0x472   :  { %3266 = vmatpush.msra.mxu0 %v414_v32  ;;  %v474_v39 = vld [vmem:[%s10776_s1 + $0xd38] sm:$0xff]  ;;  %3286 = vmatpush.msra.mxu1 %v478_v33  ;;  %v8836_v33 = vpop.f32.mrf.mxu2 }
 0x473   :  { %3306 = vmatpush.msra.mxu2 %v542_v34  ;;  %v538_v40 = vld [vmem:[%s10776_s1 + $0xf38] sm:$0xff]  ;;  %v4462_v34 = vld [vmem:[%s10777_s0 + $0x30] sm:$0xff] }
 0x474   :  { %v606_v41 = vld [vmem:[%s10776_s1 + $0x1158] sm:$0xff]  ;;  %3267 = vmatpush.msra.mxu0 %v410_v38  ;;  %3287 = vmatpush.msra.mxu1 %v474_v39 }
 0x475   :  { %v406_v43 = vld [vmem:[%s10776_s1 + $0xb18] sm:$0xff]  ;;  %3307 = vmatpush.msra.mxu2 %v538_v40  ;;  %3326 = vmatpush.msra.mxu3 %v606_v41  ;;  %v8856_v40 = vpop.f32.mrf.mxu0 }
 0x476   :  { %v470_v44 = vld [vmem:[%s10776_s1 + $0xd18] sm:$0xff]  ;;  %3268 = vmatpush.msra.mxu0 %v406_v43 }
 0x477   :  { %v534_v45 = vld [vmem:[%s10776_s1 + $0xf18] sm:$0xff]  ;;  %3288 = vmatpush.msra.mxu1 %v470_v44 }
 0x478   :  { %v602_v46 = vld [vmem:[%s10776_s1 + $0x1138] sm:$0xff]  ;;  %3308 = vmatpush.msra.mxu2 %v534_v45  ;;  %v8870_v45 = vpop.f32.mrf.mxu1 }
 0x479   :  { %v402_v47 = vld [vmem:[%s10776_s1 + $0xaf8] sm:$0xff]  ;;  %3327 = vmatpush.msra.mxu3 %v602_v46  ;;  %v8872_v46 = vpop.f32.mrf.mxu3 }
 0x47a   :  { %v466_v48 = vld [vmem:[%s10776_s1 + $0xcf8] sm:$0xff]  ;;  %3269 = vmatpush.msra.mxu0 %v402_v47 }
 0x47b   :  { %v530_v49 = vld [vmem:[%s10776_s1 + $0xef8] sm:$0xff]  ;;  %3289 = vmatpush.msra.mxu1 %v466_v48 }
 0x47c   :  { %v598_v50 = vld [vmem:[%s10776_s1 + $0x1118] sm:$0xff]  ;;  %3309 = vmatpush.msra.mxu2 %v530_v49 }
 0x47d   :  { %v398_v51 = vld [vmem:[%s10776_s1 + $0xad8] sm:$0xff]  ;;  %3328 = vmatpush.msra.mxu3 %v598_v50 }
 0x47e   :  { %v462_v52 = vld [vmem:[%s10776_s1 + $0xcd8] sm:$0xff]  ;;  %3270 = vmatpush.msra.mxu0 %v398_v51 }
 0x47f   :  { %v526_v53 = vld [vmem:[%s10776_s1 + $0xed8] sm:$0xff]  ;;  %3290 = vmatpush.msra.mxu1 %v462_v52 }
 0x480   :  { %v594_v54 = vld [vmem:[%s10776_s1 + $0x10f8] sm:$0xff]  ;;  %3310 = vmatpush.msra.mxu2 %v526_v53 }
 0x481   :  { %v394_v56 = vld [vmem:[%s10776_s1 + $0xab8] sm:$0xff]  ;;  %3329 = vmatpush.msra.mxu3 %v594_v54 }
 0x482   :  { %v458_v57 = vld [vmem:[%s10776_s1 + $0xcb8] sm:$0xff]  ;;  %3271 = vmatpush.msra.mxu0 %v394_v56  ;;  %v8898_v56 = vpop.f32.mrf.mxu2 }
 0x483   :  { %v522_v58 = vld [vmem:[%s10776_s1 + $0xeb8] sm:$0xff]  ;;  %3291 = vmatpush.msra.mxu1 %v458_v57 }
 0x484   :  { %v590_v59 = vld [vmem:[%s10776_s1 + $0x10d8] sm:$0xff]  ;;  %3311 = vmatpush.msra.mxu2 %v522_v58 }
 0x485   :  { %v390_v61 = vld [vmem:[%s10776_s1 + $0xa98] sm:$0xff]  ;;  %3330 = vmatpush.msra.mxu3 %v590_v59 }
 0x486   :  { %v454_v62 = vld [vmem:[%s10776_s1 + $0xc98] sm:$0xff]  ;;  %3272 = vmatpush.msra.mxu0 %v390_v61 }
 0x487   :  { %v518_v63 = vld [vmem:[%s10776_s1 + $0xe98] sm:$0xff]  ;;  %3292 = vmatpush.msra.mxu1 %v454_v62  ;;  %v8912_v62 = vpop.f32.mrf.mxu0 }
 0x488   :  { %v586_v0 = vld [vmem:[%s10776_s1 + $0x10b8] sm:$0xff]  ;;  %3312 = vmatpush.msra.mxu2 %v518_v63 }
 0x489   :  { %v386_v3 = vld [vmem:[%s10776_s1 + $0xa78] sm:$0xff]  ;;  %3331 = vmatpush.msra.mxu3 %v586_v0 }
 0x48a   :  { %v450_v4 = vld [vmem:[%s10776_s1 + $0xc78] sm:$0xff]  ;;  %3273 = vmatpush.msra.mxu0 %v386_v3 }
 0x48b   :  { %v514_v5 = vld [vmem:[%s10776_s1 + $0xe78] sm:$0xff]  ;;  %3293 = vmatpush.msra.mxu1 %v450_v4 }
 0x48c   :  { %v582_v6 = vld [vmem:[%s10776_s1 + $0x1098] sm:$0xff]  ;;  %3313 = vmatpush.msra.mxu2 %v514_v5  ;;  %v8926_v5 = vpop.f32.mrf.mxu1 }
 0x48d   :  { %v382_v7 = vld [vmem:[%s10776_s1 + $0xa58] sm:$0xff]  ;;  %3332 = vmatpush.msra.mxu3 %v582_v6  ;;  %v8928_v6 = vpop.f32.mrf.mxu3 }
 0x48e   :  { %v446_v8 = vld [vmem:[%s10776_s1 + $0xc58] sm:$0xff]  ;;  %3274 = vmatpush.msra.mxu0 %v382_v7 }
 0x48f   :  { %v510_v9 = vld [vmem:[%s10776_s1 + $0xe58] sm:$0xff]  ;;  %3294 = vmatpush.msra.mxu1 %v446_v8 }
 0x490   :  { %v578_v10 = vld [vmem:[%s10776_s1 + $0x1078] sm:$0xff]  ;;  %3314 = vmatpush.msra.mxu2 %v510_v9 }
 0x491   :  { %v378_v11 = vld [vmem:[%s10776_s1 + $0xa38] sm:$0xff]  ;;  %3333 = vmatpush.msra.mxu3 %v578_v10 }
 0x492   :  { %v442_v12 = vld [vmem:[%s10776_s1 + $0xc38] sm:$0xff]  ;;  %3275 = vmatpush.msra.mxu0 %v378_v11 }
 0x493   :  { %v506_v13 = vld [vmem:[%s10776_s1 + $0xe38] sm:$0xff]  ;;  %3295 = vmatpush.msra.mxu1 %v442_v12 }
 0x494   :  { %v574_v14 = vld [vmem:[%s10776_s1 + $0x1058] sm:$0xff]  ;;  %3315 = vmatpush.msra.mxu2 %v506_v13 }
 0x495   :  { %v374_v16 = vld [vmem:[%s10776_s1 + $0xa18] sm:$0xff]  ;;  %3334 = vmatpush.msra.mxu3 %v574_v14 }
 0x496   :  { %v438_v17 = vld [vmem:[%s10776_s1 + $0xc18] sm:$0xff]  ;;  %3276 = vmatpush.msra.mxu0 %v374_v16  ;;  %v8954_v16 = vpop.f32.mrf.mxu2 }
 0x497   :  { %v502_v18 = vld [vmem:[%s10776_s1 + $0xe18] sm:$0xff]  ;;  %3296 = vmatpush.msra.mxu1 %v438_v17  ;;  %3277 = vmatmul.f32.vlgmr.msra.gmra.mxu0 %v4460_v27 }
 0x498   :  { %v570_v19 = vld [vmem:[%s10776_s1 + $0x1038] sm:$0xff]  ;;  %3316 = vmatpush.msra.mxu2 %v502_v18  ;;  %3297 = vmatmul.f32.vlgmr.msra.gmra.mxu1 %v4462_v34 }
 0x499   :  { %v690_v21 = vld [vmem:[%s10776_s1 + $0x13f8] sm:$0xff]  ;;  %3335 = vmatpush.msra.mxu3 %v570_v19 }
 0x49a   :  { %v754_v22 = vld [vmem:[%s10776_s1 + $0x15f8] sm:$0xff]  ;;  %3341 = vmatpush.msrb.mxu0 %v690_v21 }
 0x49b   :  { %v818_v25 = vld [vmem:[%s10776_s1 + $0x17f8] sm:$0xff]  ;;  %3361 = vmatpush.msrb.mxu1 %v754_v22  ;;  %v8968_v22 = vpop.f32.mrf.mxu0 }
 0x49c   :  { %v566_v26 = vld [vmem:[%s10776_s1 + $0x1018] sm:$0xff]  ;;  %3381 = vmatpush.msrb.mxu2 %v818_v25 }
 0x49d   :  { %v4461_v28 = vld [vmem:[%s10777_s0 + $0x38] sm:$0xff]  ;;  %3336 = vmatpush.msra.mxu3 %v566_v26 }
 0x49e   :  { %3317 = vmatmul.f32.vlgmr.msra.gmra.mxu2 %v4461_v28  ;;  %v686_v29 = vld [vmem:[%s10776_s1 + $0x13d8] sm:$0xff]  ;;  %3337 = vmatmul.f32.vlgmr.msra.gmra.mxu3 %v4463_v35 }
 0x49f   :  { %v750_v30 = vld [vmem:[%s10776_s1 + $0x15d8] sm:$0xff]  ;;  %3342 = vmatpush.msrb.mxu0 %v686_v29  ;;  %v8982_v29 = vpop.f32.mrf.mxu1 }
 0x4a0   :  { %v814_v31 = vld [vmem:[%s10776_s1 + $0x17d8] sm:$0xff]  ;;  %3362 = vmatpush.msrb.mxu1 %v750_v30  ;;  %v8984_v30 = vpop.f32.mrf.mxu3 }
 0x4a1   :  { %v882_v32 = vld [vmem:[%s10776_s1 + $0x19f8] sm:$0xff]  ;;  %3382 = vmatpush.msrb.mxu2 %v814_v31 }
 0x4a2   :  { %v682_v36 = vld [vmem:[%s10776_s1 + $0x13b8] sm:$0xff]  ;;  %3401 = vmatpush.msrb.mxu3 %v882_v32 }
 0x4a3   :  { %v746_v37 = vld [vmem:[%s10776_s1 + $0x15b8] sm:$0xff]  ;;  %3343 = vmatpush.msrb.mxu0 %v682_v36 }
 0x4a4   :  { %v810_v38 = vld [vmem:[%s10776_s1 + $0x17b8] sm:$0xff]  ;;  %3363 = vmatpush.msrb.mxu1 %v746_v37 }
 0x4a5   :  { %v878_v39 = vld [vmem:[%s10776_s1 + $0x19d8] sm:$0xff]  ;;  %3383 = vmatpush.msrb.mxu2 %v810_v38 }
 0x4a6   :  { %v678_v41 = vld [vmem:[%s10776_s1 + $0x1398] sm:$0xff]  ;;  %3402 = vmatpush.msrb.mxu3 %v878_v39 }
 0x4a7   :  { %v742_v42 = vld [vmem:[%s10776_s1 + $0x1598] sm:$0xff]  ;;  %3344 = vmatpush.msrb.mxu0 %v678_v41  ;;  %v9010_v41 = vpop.f32.mrf.mxu2 }
 0x4a8   :  { %v806_v43 = vld [vmem:[%s10776_s1 + $0x1798] sm:$0xff]  ;;  %3364 = vmatpush.msrb.mxu1 %v742_v42 }
 0x4a9   :  { %v874_v44 = vld [vmem:[%s10776_s1 + $0x19b8] sm:$0xff]  ;;  %3384 = vmatpush.msrb.mxu2 %v806_v43 }
 0x4aa   :  { %v674_v47 = vld [vmem:[%s10776_s1 + $0x1378] sm:$0xff]  ;;  %3403 = vmatpush.msrb.mxu3 %v874_v44 }
 0x4ab   :  { %v738_v48 = vld [vmem:[%s10776_s1 + $0x1578] sm:$0xff]  ;;  %3345 = vmatpush.msrb.mxu0 %v674_v47 }
 0x4ac   :  { %v802_v49 = vld [vmem:[%s10776_s1 + $0x1778] sm:$0xff]  ;;  %3365 = vmatpush.msrb.mxu1 %v738_v48  ;;  %v9024_v48 = vpop.f32.mrf.mxu0 }
 0x4ad   :  { %v870_v50 = vld [vmem:[%s10776_s1 + $0x1998] sm:$0xff]  ;;  %3385 = vmatpush.msrb.mxu2 %v802_v49 }
 0x4ae   :  { %v670_v51 = vld [vmem:[%s10776_s1 + $0x1358] sm:$0xff]  ;;  %3404 = vmatpush.msrb.mxu3 %v870_v50 }
 0x4af   :  { %v734_v52 = vld [vmem:[%s10776_s1 + $0x1558] sm:$0xff]  ;;  %3346 = vmatpush.msrb.mxu0 %v670_v51 }
 0x4b0   :  { %v798_v53 = vld [vmem:[%s10776_s1 + $0x1758] sm:$0xff]  ;;  %3366 = vmatpush.msrb.mxu1 %v734_v52 }
 0x4b1   :  { %v866_v54 = vld [vmem:[%s10776_s1 + $0x1978] sm:$0xff]  ;;  %3386 = vmatpush.msrb.mxu2 %v798_v53  ;;  %v9038_v53 = vpop.f32.mrf.mxu1 }
 0x4b2   :  { %v666_v57 = vld [vmem:[%s10776_s1 + $0x1338] sm:$0xff]  ;;  %3405 = vmatpush.msrb.mxu3 %v866_v54  ;;  %v9040_v54 = vpop.f32.mrf.mxu3 }
 0x4b3   :  { %v730_v58 = vld [vmem:[%s10776_s1 + $0x1538] sm:$0xff]  ;;  %3347 = vmatpush.msrb.mxu0 %v666_v57 }
 0x4b4   :  { %v794_v59 = vld [vmem:[%s10776_s1 + $0x1738] sm:$0xff]  ;;  %3367 = vmatpush.msrb.mxu1 %v730_v58 }
 0x4b5   :  { %v862_v61 = vld [vmem:[%s10776_s1 + $0x1958] sm:$0xff]  ;;  %3387 = vmatpush.msrb.mxu2 %v794_v59 }
 0x4b6   :  { %v662_v63 = vld [vmem:[%s10776_s1 + $0x1318] sm:$0xff]  ;;  %3406 = vmatpush.msrb.mxu3 %v862_v61 }
 0x4b7   :  { %v726_v0 = vld [vmem:[%s10776_s1 + $0x1518] sm:$0xff]  ;;  %3348 = vmatpush.msrb.mxu0 %v662_v63  ;;  %v4464_v63 = vld [vmem:[%s10777_s0 + $0x48] sm:$0xff] }
 0x4b8   :  { %v790_v3 = vld [vmem:[%s10776_s1 + $0x1718] sm:$0xff]  ;;  %3368 = vmatpush.msrb.mxu1 %v726_v0 }
 0x4b9   :  { %v858_v4 = vld [vmem:[%s10776_s1 + $0x1938] sm:$0xff]  ;;  %3388 = vmatpush.msrb.mxu2 %v790_v3  ;;  %v9060_v3 = vpop.f32.mrf.mxu2 }
 0x4ba   :  { %v658_v7 = vld [vmem:[%s10776_s1 + $0x12f8] sm:$0xff]  ;;  %3407 = vmatpush.msrb.mxu3 %v858_v4 }
 0x4bb   :  { %v722_v8 = vld [vmem:[%s10776_s1 + $0x14f8] sm:$0xff]  ;;  %3349 = vmatpush.msrb.mxu0 %v658_v7 }
 0x4bc   :  { %v786_v9 = vld [vmem:[%s10776_s1 + $0x16f8] sm:$0xff]  ;;  %3369 = vmatpush.msrb.mxu1 %v722_v8 }
 0x4bd   :  { %v854_v10 = vld [vmem:[%s10776_s1 + $0x1918] sm:$0xff]  ;;  %3389 = vmatpush.msrb.mxu2 %v786_v9 }
 0x4be   :  { %v654_v11 = vld [vmem:[%s10776_s1 + $0x12d8] sm:$0xff]  ;;  %3408 = vmatpush.msrb.mxu3 %v854_v10  ;;  %v9074_v10 = vpop.f32.mrf.mxu0 }
 0x4bf   :  { %v718_v12 = vld [vmem:[%s10776_s1 + $0x14d8] sm:$0xff]  ;;  %3350 = vmatpush.msrb.mxu0 %v654_v11  ;;  %v4466_v11 = vld [vmem:[%s10777_s0 + $0x50] sm:$0xff] }
 0x4c0   :  { %v782_v13 = vld [vmem:[%s10776_s1 + $0x16d8] sm:$0xff]  ;;  %3370 = vmatpush.msrb.mxu1 %v718_v12  ;;  %v4467_v12 = vld [vmem:[%s10777_s0 + $0x60] sm:$0xff] }
 0x4c1   :  { %v850_v14 = vld [vmem:[%s10776_s1 + $0x18f8] sm:$0xff]  ;;  %3390 = vmatpush.msrb.mxu2 %v782_v13 }
 0x4c2   :  { %v650_v17 = vld [vmem:[%s10776_s1 + $0x12b8] sm:$0xff]  ;;  %3409 = vmatpush.msrb.mxu3 %v850_v14 }
 0x4c3   :  { %v714_v18 = vld [vmem:[%s10776_s1 + $0x14b8] sm:$0xff]  ;;  %3351 = vmatpush.msrb.mxu0 %v650_v17 }
 0x4c4   :  { %v778_v19 = vld [vmem:[%s10776_s1 + $0x16b8] sm:$0xff]  ;;  %3371 = vmatpush.msrb.mxu1 %v714_v18 }
 0x4c5   :  { %v846_v21 = vld [vmem:[%s10776_s1 + $0x18d8] sm:$0xff]  ;;  %3391 = vmatpush.msrb.mxu2 %v778_v19  ;;  %v9094_v19 = vpop.f32.mrf.mxu1 }
 0x4c6   :  { %v646_v25 = vld [vmem:[%s10776_s1 + $0x1298] sm:$0xff]  ;;  %3410 = vmatpush.msrb.mxu3 %v846_v21  ;;  %v9096_v21 = vpop.f32.mrf.mxu3 }
 0x4c7   :  { %v710_v26 = vld [vmem:[%s10776_s1 + $0x1498] sm:$0xff]  ;;  %3352 = vmatpush.msrb.mxu0 %v646_v25 }
 0x4c8   :  { %v774_v27 = vld [vmem:[%s10776_s1 + $0x1698] sm:$0xff]  ;;  %3372 = vmatpush.msrb.mxu1 %v710_v26 }
 0x4c9   :  { %v842_v28 = vld [vmem:[%s10776_s1 + $0x18b8] sm:$0xff]  ;;  %3392 = vmatpush.msrb.mxu2 %v774_v27 }
 0x4ca   :  { %v642_v31 = vld [vmem:[%s10776_s1 + $0x1278] sm:$0xff]  ;;  %3411 = vmatpush.msrb.mxu3 %v842_v28 }
 0x4cb   :  { %v706_v32 = vld [vmem:[%s10776_s1 + $0x1478] sm:$0xff]  ;;  %3353 = vmatpush.msrb.mxu0 %v642_v31 }
 0x4cc   :  { %v770_v34 = vld [vmem:[%s10776_s1 + $0x1678] sm:$0xff]  ;;  %3373 = vmatpush.msrb.mxu1 %v706_v32 }
 0x4cd   :  { %v838_v35 = vld [vmem:[%s10776_s1 + $0x1898] sm:$0xff]  ;;  %3393 = vmatpush.msrb.mxu2 %v770_v34 }
 0x4ce   :  { %v638_v36 = vld [vmem:[%s10776_s1 + $0x1258] sm:$0xff]  ;;  %3412 = vmatpush.msrb.mxu3 %v838_v35 }
 0x4cf   :  { %v702_v37 = vld [vmem:[%s10776_s1 + $0x1458] sm:$0xff]  ;;  %3354 = vmatpush.msrb.mxu0 %v638_v36 }
 0x4d0   :  { %v766_v38 = vld [vmem:[%s10776_s1 + $0x1658] sm:$0xff]  ;;  %3374 = vmatpush.msrb.mxu1 %v702_v37 }
 0x4d1   :  { %v834_v39 = vld [vmem:[%s10776_s1 + $0x1878] sm:$0xff]  ;;  %3394 = vmatpush.msrb.mxu2 %v766_v38 }
 0x4d2   :  { %v634_v42 = vld [vmem:[%s10776_s1 + $0x1238] sm:$0xff]  ;;  %3413 = vmatpush.msrb.mxu3 %v834_v39 }
 0x4d3   :  { %v698_v43 = vld [vmem:[%s10776_s1 + $0x1438] sm:$0xff]  ;;  %3355 = vmatpush.msrb.mxu0 %v634_v42  ;;  %v9134_v42 = vpop.f32.mrf.mxu0 }
 0x4d4   :  { %v762_v44 = vld [vmem:[%s10776_s1 + $0x1638] sm:$0xff]  ;;  %3375 = vmatpush.msrb.mxu1 %v698_v43  ;;  %v9136_v43 = vpop.f32.mrf.mxu2 }
 0x4d5   :  { %v830_v47 = vld [vmem:[%s10776_s1 + $0x1858] sm:$0xff]  ;;  %3395 = vmatpush.msrb.mxu2 %v762_v44 }
 0x4d6   :  { %v630_v49 = vld [vmem:[%s10776_s1 + $0x1218] sm:$0xff]  ;;  %3414 = vmatpush.msrb.mxu3 %v830_v47 }
 0x4d7   :  { %v694_v50 = vld [vmem:[%s10776_s1 + $0x1418] sm:$0xff]  ;;  %3356 = vmatpush.msrb.mxu0 %v630_v49 }
 0x4d8   :  { %v758_v51 = vld [vmem:[%s10776_s1 + $0x1618] sm:$0xff]  ;;  %3376 = vmatpush.msrb.mxu1 %v694_v50  ;;  %3357 = vmatmul.f32.vlgmr.msrb.gmra.mxu0 %v4464_v63 }
 0x4d9   :  { %v826_v52 = vld [vmem:[%s10776_s1 + $0x1838] sm:$0xff]  ;;  %3396 = vmatpush.msrb.mxu2 %v758_v51  ;;  %3377 = vmatmul.f32.vlgmr.msrb.gmra.mxu1 %v4466_v11 }
 0x4da   :  { %v946_v57 = vld [vmem:[%s10776_s1 + $0x1bf8] sm:$0xff]  ;;  %3415 = vmatpush.msrb.mxu3 %v826_v52 }
 0x4db   :  { %v1010_v58 = vld [vmem:[%s10776_s1 + $0x1df8] sm:$0xff]  ;;  %3421 = vmatpush.msra.mxu0 %v946_v57 }
 0x4dc   :  { %v1074_v59 = vld [vmem:[%s10776_s1 + $0x1ff8] sm:$0xff]  ;;  %3441 = vmatpush.msra.mxu1 %v1010_v58 }
 0x4dd   :  { %v822_v61 = vld [vmem:[%s10776_s1 + $0x1818] sm:$0xff]  ;;  %3461 = vmatpush.msra.mxu2 %v1074_v59  ;;  %v9162_v59 = vpop.f32.mrf.mxu1 }
 0x4de   :  { %v4465_v0 = vld [vmem:[%s10777_s0 + $0x58] sm:$0xff]  ;;  %3416 = vmatpush.msrb.mxu3 %v822_v61  ;;  %v9164_v61 = vpop.f32.mrf.mxu3 }
 0x4df   :  { %3397 = vmatmul.f32.vlgmr.msrb.gmra.mxu2 %v4465_v0  ;;  %v942_v4 = vld [vmem:[%s10776_s1 + $0x1bd8] sm:$0xff]  ;;  %3417 = vmatmul.f32.vlgmr.msrb.gmra.mxu3 %v4467_v12 }
 0x4e0   :  { %v1006_v7 = vld [vmem:[%s10776_s1 + $0x1dd8] sm:$0xff]  ;;  %3422 = vmatpush.msra.mxu0 %v942_v4 }
 0x4e1   :  { %v1070_v8 = vld [vmem:[%s10776_s1 + $0x1fd8] sm:$0xff]  ;;  %3442 = vmatpush.msra.mxu1 %v1006_v7 }
 0x4e2   :  { %v1138_v9 = vld [vmem:[%s10776_s1 + $0x21f8] sm:$0xff]  ;;  %3462 = vmatpush.msra.mxu2 %v1070_v8 }
 0x4e3   :  { %v938_v13 = vld [vmem:[%s10776_s1 + $0x1bb8] sm:$0xff]  ;;  %3481 = vmatpush.msra.mxu3 %v1138_v9 }
 0x4e4   :  { %v1002_v14 = vld [vmem:[%s10776_s1 + $0x1db8] sm:$0xff]  ;;  %3423 = vmatpush.msra.mxu0 %v938_v13  ;;  %v9190_v13 = vpop.f32.mrf.mxu0 }
 0x4e5   :  { %v1066_v17 = vld [vmem:[%s10776_s1 + $0x1fb8] sm:$0xff]  ;;  %3443 = vmatpush.msra.mxu1 %v1002_v14  ;;  %v9192_v14 = vpop.f32.mrf.mxu2 }
 0x4e6   :  { %v1134_v18 = vld [vmem:[%s10776_s1 + $0x21d8] sm:$0xff]  ;;  %3463 = vmatpush.msra.mxu2 %v1066_v17 }
 0x4e7   :  { %v934_v25 = vld [vmem:[%s10776_s1 + $0x1b98] sm:$0xff]  ;;  %3482 = vmatpush.msra.mxu3 %v1134_v18 }
 0x4e8   :  { %v998_v26 = vld [vmem:[%s10776_s1 + $0x1d98] sm:$0xff]  ;;  %3424 = vmatpush.msra.mxu0 %v934_v25 }
 0x4e9   :  { %v1062_v27 = vld [vmem:[%s10776_s1 + $0x1f98] sm:$0xff]  ;;  %3444 = vmatpush.msra.mxu1 %v998_v26 }
 0x4ea   :  { %v1130_v28 = vld [vmem:[%s10776_s1 + $0x21b8] sm:$0xff]  ;;  %3464 = vmatpush.msra.mxu2 %v1062_v27 }
 0x4eb   :  { %v930_v31 = vld [vmem:[%s10776_s1 + $0x1b78] sm:$0xff]  ;;  %3483 = vmatpush.msra.mxu3 %v1130_v28 }
 0x4ec   :  { %v994_v32 = vld [vmem:[%s10776_s1 + $0x1d78] sm:$0xff]  ;;  %3425 = vmatpush.msra.mxu0 %v930_v31 }
 0x4ed   :  { %v1058_v34 = vld [vmem:[%s10776_s1 + $0x1f78] sm:$0xff]  ;;  %3445 = vmatpush.msra.mxu1 %v994_v32 }
 0x4ee   :  { %v1126_v35 = vld [vmem:[%s10776_s1 + $0x2198] sm:$0xff]  ;;  %3465 = vmatpush.msra.mxu2 %v1058_v34  ;;  %v9218_v34 = vpop.f32.mrf.mxu1 }
 0x4ef   :  { %v926_v36 = vld [vmem:[%s10776_s1 + $0x1b58] sm:$0xff]  ;;  %3484 = vmatpush.msra.mxu3 %v1126_v35  ;;  %v9220_v35 = vpop.f32.mrf.mxu3 }
 0x4f0   :  { %v990_v37 = vld [vmem:[%s10776_s1 + $0x1d58] sm:$0xff]  ;;  %3426 = vmatpush.msra.mxu0 %v926_v36 }
 0x4f1   :  { %v1054_v38 = vld [vmem:[%s10776_s1 + $0x1f58] sm:$0xff]  ;;  %3446 = vmatpush.msra.mxu1 %v990_v37 }
 0x4f2   :  { %v1122_v39 = vld [vmem:[%s10776_s1 + $0x2178] sm:$0xff]  ;;  %3466 = vmatpush.msra.mxu2 %v1054_v38 }
 0x4f3   :  { %v922_v44 = vld [vmem:[%s10776_s1 + $0x1b38] sm:$0xff]  ;;  %3485 = vmatpush.msra.mxu3 %v1122_v39 }
 0x4f4   :  { %v986_v47 = vld [vmem:[%s10776_s1 + $0x1d38] sm:$0xff]  ;;  %3427 = vmatpush.msra.mxu0 %v922_v44 }
 0x4f5   :  { %v1050_v49 = vld [vmem:[%s10776_s1 + $0x1f38] sm:$0xff]  ;;  %3447 = vmatpush.msra.mxu1 %v986_v47 }
 0x4f6   :  { %v1118_v50 = vld [vmem:[%s10776_s1 + $0x2158] sm:$0xff]  ;;  %3467 = vmatpush.msra.mxu2 %v1050_v49 }
 0x4f7   :  { %v918_v51 = vld [vmem:[%s10776_s1 + $0x1b18] sm:$0xff]  ;;  %3486 = vmatpush.msra.mxu3 %v1118_v50 }
 0x4f8   :  { %v982_v52 = vld [vmem:[%s10776_s1 + $0x1d18] sm:$0xff]  ;;  %3428 = vmatpush.msra.mxu0 %v918_v51  ;;  %v9246_v51 = vpop.f32.mrf.mxu0 }
 0x4f9   :  { %v1046_v57 = vld [vmem:[%s10776_s1 + $0x1f18] sm:$0xff]  ;;  %3448 = vmatpush.msra.mxu1 %v982_v52  ;;  %v9248_v52 = vpop.f32.mrf.mxu2 }
 0x4fa   :  { %v1114_v58 = vld [vmem:[%s10776_s1 + $0x2138] sm:$0xff]  ;;  %3468 = vmatpush.msra.mxu2 %v1046_v57 }
 0x4fb   :  { %v914_v63 = vld [vmem:[%s10776_s1 + $0x1af8] sm:$0xff]  ;;  %3487 = vmatpush.msra.mxu3 %v1114_v58 }
 0x4fc   :  { %v978_v0 = vld [vmem:[%s10776_s1 + $0x1cf8] sm:$0xff]  ;;  %3429 = vmatpush.msra.mxu0 %v914_v63 }
 0x4fd   :  { %v1042_v4 = vld [vmem:[%s10776_s1 + $0x1ef8] sm:$0xff]  ;;  %3449 = vmatpush.msra.mxu1 %v978_v0 }
 0x4fe   :  { %v1110_v7 = vld [vmem:[%s10776_s1 + $0x2118] sm:$0xff]  ;;  %3469 = vmatpush.msra.mxu2 %v1042_v4 }
 0x4ff   :  { %v910_v8 = vld [vmem:[%s10776_s1 + $0x1ad8] sm:$0xff]  ;;  %3488 = vmatpush.msra.mxu3 %v1110_v7 }
 0x500   :  { %v974_v9 = vld [vmem:[%s10776_s1 + $0x1cd8] sm:$0xff]  ;;  %3430 = vmatpush.msra.mxu0 %v910_v8 }
 0x501   :  { %v1038_v11 = vld [vmem:[%s10776_s1 + $0x1ed8] sm:$0xff]  ;;  %3450 = vmatpush.msra.mxu1 %v974_v9 }
 0x502   :  { %v1106_v12 = vld [vmem:[%s10776_s1 + $0x20f8] sm:$0xff]  ;;  %3470 = vmatpush.msra.mxu2 %v1038_v11  ;;  %v9274_v11 = vpop.f32.mrf.mxu1 }
 0x503   :  { %v906_v17 = vld [vmem:[%s10776_s1 + $0x1ab8] sm:$0xff]  ;;  %3489 = vmatpush.msra.mxu3 %v1106_v12  ;;  %v9276_v12 = vpop.f32.mrf.mxu3 }
 0x504   :  { %v970_v18 = vld [vmem:[%s10776_s1 + $0x1cb8] sm:$0xff]  ;;  %3431 = vmatpush.msra.mxu0 %v906_v17 }
 0x505   :  { %v1034_v25 = vld [vmem:[%s10776_s1 + $0x1eb8] sm:$0xff]  ;;  %3451 = vmatpush.msra.mxu1 %v970_v18 }
 0x506   :  { %v1102_v26 = vld [vmem:[%s10776_s1 + $0x20d8] sm:$0xff]  ;;  %3471 = vmatpush.msra.mxu2 %v1034_v25 }
 0x507   :  { %v902_v27 = vld [vmem:[%s10776_s1 + $0x1a98] sm:$0xff]  ;;  %3490 = vmatpush.msra.mxu3 %v1102_v26 }
 0x508   :  { %v966_v28 = vld [vmem:[%s10776_s1 + $0x1c98] sm:$0xff]  ;;  %3432 = vmatpush.msra.mxu0 %v902_v27  ;;  %v4468_v27 = vld [vmem:[%s10777_s0 + $0x68] sm:$0xff] }
 0x509   :  { %v1030_v31 = vld [vmem:[%s10776_s1 + $0x1e98] sm:$0xff]  ;;  %3452 = vmatpush.msra.mxu1 %v966_v28 }
 0x50a   :  { %v1098_v32 = vld [vmem:[%s10776_s1 + $0x20b8] sm:$0xff]  ;;  %3472 = vmatpush.msra.mxu2 %v1030_v31  ;;  %v9296_v31 = vpop.f32.mrf.mxu0 }
 0x50b   :  { %v898_v36 = vld [vmem:[%s10776_s1 + $0x1a78] sm:$0xff]  ;;  %3491 = vmatpush.msra.mxu3 %v1098_v32  ;;  %v9298_v32 = vpop.f32.mrf.mxu2 }
 0x50c   :  { %v962_v37 = vld [vmem:[%s10776_s1 + $0x1c78] sm:$0xff]  ;;  %3433 = vmatpush.msra.mxu0 %v898_v36 }
 0x50d   :  { %v1026_v38 = vld [vmem:[%s10776_s1 + $0x1e78] sm:$0xff]  ;;  %3453 = vmatpush.msra.mxu1 %v962_v37 }
 0x50e   :  { %v1094_v39 = vld [vmem:[%s10776_s1 + $0x2098] sm:$0xff]  ;;  %3473 = vmatpush.msra.mxu2 %v1026_v38 }
 0x50f   :  { %v894_v44 = vld [vmem:[%s10776_s1 + $0x1a58] sm:$0xff]  ;;  %3492 = vmatpush.msra.mxu3 %v1094_v39 }
 0x510   :  { %v958_v47 = vld [vmem:[%s10776_s1 + $0x1c58] sm:$0xff]  ;;  %3434 = vmatpush.msra.mxu0 %v894_v44  ;;  %v4470_v44 = vld [vmem:[%s10777_s0 + $0x70] sm:$0xff] }
 0x511   :  { %v1022_v49 = vld [vmem:[%s10776_s1 + $0x1e58] sm:$0xff]  ;;  %3454 = vmatpush.msra.mxu1 %v958_v47  ;;  %v4471_v47 = vld [vmem:[%s10777_s0 + $0x80] sm:$0xff] }
 0x512   :  { %v1090_v50 = vld [vmem:[%s10776_s1 + $0x2078] sm:$0xff]  ;;  %3474 = vmatpush.msra.mxu2 %v1022_v49 }
 0x513   :  { %v890_v57 = vld [vmem:[%s10776_s1 + $0x1a38] sm:$0xff]  ;;  %3493 = vmatpush.msra.mxu3 %v1090_v50 }
 0x514   :  { %v954_v58 = vld [vmem:[%s10776_s1 + $0x1c38] sm:$0xff]  ;;  %3435 = vmatpush.msra.mxu0 %v890_v57 }
 0x515   :  { %v1018_v63 = vld [vmem:[%s10776_s1 + $0x1e38] sm:$0xff]  ;;  %3455 = vmatpush.msra.mxu1 %v954_v58 }
 0x516   :  { %v1086_v0 = vld [vmem:[%s10776_s1 + $0x2058] sm:$0xff]  ;;  %3475 = vmatpush.msra.mxu2 %v1018_v63  ;;  %v9330_v63 = vpop.f32.mrf.mxu1 }
 0x517   :  { %v886_v4 = vld [vmem:[%s10776_s1 + $0x1a18] sm:$0xff]  ;;  %3494 = vmatpush.msra.mxu3 %v1086_v0  ;;  %v9332_v0 = vpop.f32.mrf.mxu3 }
 0x518   :  { %v950_v7 = vld [vmem:[%s10776_s1 + $0x1c18] sm:$0xff]  ;;  %3436 = vmatpush.msra.mxu0 %v886_v4 }
 0x519   :  { %v1014_v8 = vld [vmem:[%s10776_s1 + $0x1e18] sm:$0xff]  ;;  %3456 = vmatpush.msra.mxu1 %v950_v7  ;;  %3437 = vmatmul.f32.vlgmr.msra.gmra.mxu0 %v4468_v27  ;;  %v9358_v27 = vpop.f32.mrf.mxu0 }
 0x51a   :  { %v1082_v9 = vld [vmem:[%s10776_s1 + $0x2038] sm:$0xff]  ;;  %3476 = vmatpush.msra.mxu2 %v1014_v8  ;;  %3457 = vmatmul.f32.vlgmr.msra.gmra.mxu1 %v4470_v44 }
 0x51b   :  { %v1202_v17 = vld [vmem:[%s10776_s1 + $0x23f8] sm:$0xff]  ;;  %3495 = vmatpush.msra.mxu3 %v1082_v9 }
 0x51c   :  { %v1266_v18 = vld [vmem:[%s10776_s1 + $0x25f8] sm:$0xff]  ;;  %3501 = vmatpush.msrb.mxu0 %v1202_v17 }
 0x51d   :  { %v1330_v25 = vld [vmem:[%s10776_s1 + $0x27f8] sm:$0xff]  ;;  %3521 = vmatpush.msrb.mxu1 %v1266_v18 }
 0x51e   :  { %v1078_v26 = vld [vmem:[%s10776_s1 + $0x2018] sm:$0xff]  ;;  %3541 = vmatpush.msrb.mxu2 %v1330_v25 }
 0x51f   :  { %v4469_v28 = vld [vmem:[%s10777_s0 + $0x78] sm:$0xff]  ;;  %3496 = vmatpush.msra.mxu3 %v1078_v26 }
 0x520   :  { %3477 = vmatmul.f32.vlgmr.msra.gmra.mxu2 %v4469_v28  ;;  %v1198_v36 = vld [vmem:[%s10776_s1 + $0x23d8] sm:$0xff]  ;;  %3497 = vmatmul.f32.vlgmr.msra.gmra.mxu3 %v4471_v47  ;;  %v9360_v28 = vpop.f32.mrf.mxu2 }
 0x521   :  { %v1262_v37 = vld [vmem:[%s10776_s1 + $0x25d8] sm:$0xff]  ;;  %3502 = vmatpush.msrb.mxu0 %v1198_v36 }
 0x522   :  { %v1326_v38 = vld [vmem:[%s10776_s1 + $0x27d8] sm:$0xff]  ;;  %3522 = vmatpush.msrb.mxu1 %v1262_v37 }
 0x523   :  { %v1394_v39 = vld [vmem:[%s10776_s1 + $0x29f8] sm:$0xff]  ;;  %3542 = vmatpush.msrb.mxu2 %v1326_v38  ;;  %v1651_v38 = vld [vmem:[%s10778_s2] sm:$0xf] }
 0x524   :  { %v1194_v49 = vld [vmem:[%s10776_s1 + $0x23b8] sm:$0xff]  ;;  %3561 = vmatpush.msrb.mxu3 %v1394_v39 }
 0x525   :  { %v1258_v50 = vld [vmem:[%s10776_s1 + $0x25b8] sm:$0xff]  ;;  %3503 = vmatpush.msrb.mxu0 %v1194_v49 }
 0x526   :  { %v1322_v57 = vld [vmem:[%s10776_s1 + $0x27b8] sm:$0xff]  ;;  %3523 = vmatpush.msrb.mxu1 %v1258_v50 }
 0x527   :  { %v1390_v58 = vld [vmem:[%s10776_s1 + $0x29d8] sm:$0xff]  ;;  %3543 = vmatpush.msrb.mxu2 %v1322_v57 }
 0x528   :  { %v1190_v4 = vld [vmem:[%s10776_s1 + $0x2398] sm:$0xff]  ;;  %3562 = vmatpush.msrb.mxu3 %v1390_v58  ;;  %v1653_v58 = vperm.slane %v1651_v38, 0 }
 0x529   :  { %v1254_v7 = vld [vmem:[%s10776_s1 + $0x2598] sm:$0xff]  ;;  %3504 = vmatpush.msrb.mxu0 %v1190_v4  ;;  %v9389_v4 = vpop.f32.mrf.mxu1 }
 0x52a   :  { %v1318_v8 = vld [vmem:[%s10776_s1 + $0x2798] sm:$0xff]  ;;  %3524 = vmatpush.msrb.mxu1 %v1254_v7  ;;  %v9391_v7 = vpop.f32.mrf.mxu3 }
 0x52b   :  { %v1386_v9 = vld [vmem:[%s10776_s1 + $0x29b8] sm:$0xff]  ;;  %3544 = vmatpush.msrb.mxu2 %v1318_v8 }
 0x52c   :  { %v1186_v17 = vld [vmem:[%s10776_s1 + $0x2378] sm:$0xff]  ;;  %3563 = vmatpush.msrb.mxu3 %v1386_v9 }
 0x52d   :  { %v1250_v18 = vld [vmem:[%s10776_s1 + $0x2578] sm:$0xff]  ;;  %3505 = vmatpush.msrb.mxu0 %v1186_v17  ;;  %v1654_v17 = vperm.slane %v1651_v38, 1 }
 0x52e   :  { %v1314_v25 = vld [vmem:[%s10776_s1 + $0x2778] sm:$0xff]  ;;  %3525 = vmatpush.msrb.mxu1 %v1250_v18 }
 0x52f   :  { %v1382_v26 = vld [vmem:[%s10776_s1 + $0x2998] sm:$0xff]  ;;  %3545 = vmatpush.msrb.mxu2 %v1314_v25 }
 0x530   :  { %v1182_v36 = vld [vmem:[%s10776_s1 + $0x2358] sm:$0xff]  ;;  %3564 = vmatpush.msrb.mxu3 %v1382_v26 }
 0x531   :  { %v1246_v37 = vld [vmem:[%s10776_s1 + $0x2558] sm:$0xff]  ;;  %3506 = vmatpush.msrb.mxu0 %v1182_v36 }
 0x532   :  { %v1310_v39 = vld [vmem:[%s10776_s1 + $0x2758] sm:$0xff]  ;;  %3526 = vmatpush.msrb.mxu1 %v1246_v37  ;;  %v1655_v37 = vperm.slane %v1651_v38, 2 }
 0x533   :  { %v1378_v44 = vld [vmem:[%s10776_s1 + $0x2978] sm:$0xff]  ;;  %3546 = vmatpush.msrb.mxu2 %v1310_v39 }
 0x534   :  { %v1178_v47 = vld [vmem:[%s10776_s1 + $0x2338] sm:$0xff]  ;;  %3565 = vmatpush.msrb.mxu3 %v1378_v44 }
 0x535   :  { %v1242_v49 = vld [vmem:[%s10776_s1 + $0x2538] sm:$0xff]  ;;  %3507 = vmatpush.msrb.mxu0 %v1178_v47  ;;  %v1679_v47 = vadd.f32 %v8732_v60, %v1653_v58 }
 0x536   :  { %v1306_v50 = vld [vmem:[%s10776_s1 + $0x2738] sm:$0xff]  ;;  %3527 = vmatpush.msrb.mxu1 %v1242_v49  ;;  %v9418_v49 = vpop.f32.mrf.mxu0 }
 0x537   :  { %v1374_v57 = vld [vmem:[%s10776_s1 + $0x2958] sm:$0xff]  ;;  %3547 = vmatpush.msrb.mxu2 %v1306_v50  ;;  %v2678_v50 = vpop.f32.mrf.mxu2 }
 0x538   :  { %v1174_v8 = vld [vmem:[%s10776_s1 + $0x2318] sm:$0xff]  ;;  %3566 = vmatpush.msrb.mxu3 %v1374_v57 }
 0x539   :  { %v1238_v9 = vld [vmem:[%s10776_s1 + $0x2518] sm:$0xff]  ;;  %3508 = vmatpush.msrb.mxu0 %v1174_v8  ;;  %v2179_v8 = vadd.f32 %v9094_v19, %v1654_v17  ;;  %v2679_v17 = vadd.f32 %v2678_v50, %v1655_v37 }
 0x53a   :  { %v1302_v18 = vld [vmem:[%s10776_s1 + $0x2718] sm:$0xff]  ;;  %3528 = vmatpush.msrb.mxu1 %v1238_v9 }
 0x53b   :  { %v1370_v25 = vld [vmem:[%s10776_s1 + $0x2938] sm:$0xff]  ;;  %3548 = vmatpush.msrb.mxu2 %v1302_v18  ;;  %v2199_v50 = vadd.f32 %v9060_v3, %v2179_v8 }
 0x53c   :  { %v1170_v26 = vld [vmem:[%s10776_s1 + $0x22f8] sm:$0xff]  ;;  %3567 = vmatpush.msrb.mxu3 %v1370_v25 }
 0x53d   :  { %v1234_v36 = vld [vmem:[%s10776_s1 + $0x24f8] sm:$0xff]  ;;  %3509 = vmatpush.msrb.mxu0 %v1170_v26  ;;  %v1699_v26 = vadd.f32 %v8746_v1, %v1679_v47 }
 0x53e   :  { %v1298_v39 = vld [vmem:[%s10776_s1 + $0x26f8] sm:$0xff]  ;;  %3529 = vmatpush.msrb.mxu1 %v1234_v36  ;;  %v9446_v36 = vpop.f32.mrf.mxu1 }
 0x53f   :  { %v1366_v44 = vld [vmem:[%s10776_s1 + $0x2918] sm:$0xff]  ;;  %3549 = vmatpush.msrb.mxu2 %v1298_v39  ;;  %v2698_v39 = vpop.f32.mrf.mxu3 }
 0x540   :  { %v1166_v38 = vld [vmem:[%s10776_s1 + $0x22d8] sm:$0xff]  ;;  %3568 = vmatpush.msrb.mxu3 %v1366_v44 }
 0x541   :  { %v1230_v57 = vld [vmem:[%s10776_s1 + $0x24d8] sm:$0xff]  ;;  %3510 = vmatpush.msrb.mxu0 %v1166_v38 }
 0x542   :  { %v1294_v60 = vld [vmem:[%s10776_s1 + $0x26d8] sm:$0xff]  ;;  %3530 = vmatpush.msrb.mxu1 %v1230_v57  ;;  %v2699_v57 = vadd.f32 %v2698_v39, %v2679_v17 }
 0x543   :  { %v1362_v58 = vld [vmem:[%s10776_s1 + $0x28f8] sm:$0xff]  ;;  %3550 = vmatpush.msrb.mxu2 %v1294_v60 }
 0x544   :  { %v1162_v9 = vld [vmem:[%s10776_s1 + $0x22b8] sm:$0xff]  ;;  %3569 = vmatpush.msrb.mxu3 %v1362_v58  ;;  %v1719_v58 = vadd.f32 %v8718_v55, %v1699_v26 }
 0x545   :  { %v1226_v19 = vld [vmem:[%s10776_s1 + $0x24b8] sm:$0xff]  ;;  %3511 = vmatpush.msrb.mxu0 %v1162_v9  ;;  %v2718_v9 = vpop.f32.mrf.mxu0 }
 0x546   :  { %v1290_v18 = vld [vmem:[%s10776_s1 + $0x26b8] sm:$0xff]  ;;  %3531 = vmatpush.msrb.mxu1 %v1226_v19  ;;  %v2719_v39 = vadd.f32 %v2718_v9, %v2699_v57  ;;  %v2758_v9 = vpop.f32.mrf.mxu2 }
 0x547   :  { %v1358_v25 = vld [vmem:[%s10776_s1 + $0x28d8] sm:$0xff]  ;;  %3551 = vmatpush.msrb.mxu2 %v1290_v18  ;;  %v2219_v18 = vadd.f32 %v9096_v21, %v2199_v50  ;;  %v1739_v50 = vadd.f32 %v8748_v2, %v1719_v58 }
 0x548   :  { %v1158_v37 = vld [vmem:[%s10776_s1 + $0x2298] sm:$0xff]  ;;  %3570 = vmatpush.msrb.mxu3 %v1358_v25 }
 0x549   :  { %v1222_v44 = vld [vmem:[%s10776_s1 + $0x2498] sm:$0xff]  ;;  %3512 = vmatpush.msrb.mxu0 %v1158_v37  ;;  %v1759_v58 = vadd.f32 %v8800_v20, %v1739_v50  ;;  %v4474_v50 = vld [vmem:[%s10777_s0 + $0x90] sm:$0xff] }
 0x54a   :  { %v1286_v1 = vld [vmem:[%s10776_s1 + $0x2698] sm:$0xff]  ;;  %3532 = vmatpush.msrb.mxu1 %v1222_v44 }
 0x54b   :  { %v1354_v47 = vld [vmem:[%s10776_s1 + $0x28b8] sm:$0xff]  ;;  %3552 = vmatpush.msrb.mxu2 %v1286_v1  ;;  %v2738_v1 = vpop.f32.mrf.mxu1 }
 0x54c   :  { %v1154_v38 = vld [vmem:[%s10776_s1 + $0x2278] sm:$0xff]  ;;  %3571 = vmatpush.msrb.mxu3 %v1354_v47 }
 0x54d   :  { %v1218_v3 = vld [vmem:[%s10776_s1 + $0x2478] sm:$0xff]  ;;  %3513 = vmatpush.msrb.mxu0 %v1154_v38 }
 0x54e   :  { %v1282_v8 = vld [vmem:[%s10776_s1 + $0x2678] sm:$0xff]  ;;  %3533 = vmatpush.msrb.mxu1 %v1218_v3  ;;  %v2239_v3 = vadd.f32 %v9134_v42, %v2219_v18 }
 0x54f   :  { %v1350_v60 = vld [vmem:[%s10776_s1 + $0x2898] sm:$0xff]  ;;  %3553 = vmatpush.msrb.mxu2 %v1282_v8  ;;  %v2739_v8 = vadd.f32 %v2738_v1, %v2719_v39  ;;  %v4475_v1 = vld [vmem:[%s10777_s0 + $0xa0] sm:$0xff] }
 0x550   :  { %v1150_v19 = vld [vmem:[%s10776_s1 + $0x2258] sm:$0xff]  ;;  %3572 = vmatpush.msrb.mxu3 %v1350_v60  ;;  %v2259_v18 = vadd.f32 %v9162_v59, %v2239_v3 }
 0x551   :  { %v1214_v17 = vld [vmem:[%s10776_s1 + $0x2458] sm:$0xff]  ;;  %3514 = vmatpush.msrb.mxu0 %v1150_v19 }
 0x552   :  { %v1278_v25 = vld [vmem:[%s10776_s1 + $0x2658] sm:$0xff]  ;;  %3534 = vmatpush.msrb.mxu1 %v1214_v17 }
 0x553   :  { %v1346_v55 = vld [vmem:[%s10776_s1 + $0x2878] sm:$0xff]  ;;  %3554 = vmatpush.msrb.mxu2 %v1278_v25  ;;  %v4472_v25 = vld [vmem:[%s10777_s0 + $0x88] sm:$0xff] }
 0x554   :  { %v1146_v26 = vld [vmem:[%s10776_s1 + $0x2238] sm:$0xff]  ;;  %3573 = vmatpush.msrb.mxu3 %v1346_v55 }
 0x555   :  { %v1210_v21 = vld [vmem:[%s10776_s1 + $0x2438] sm:$0xff]  ;;  %3515 = vmatpush.msrb.mxu0 %v1146_v26  ;;  %v2759_v26 = vadd.f32 %v2758_v9, %v2739_v8 }
 0x556   :  { %v1274_v37 = vld [vmem:[%s10776_s1 + $0x2638] sm:$0xff]  ;;  %3535 = vmatpush.msrb.mxu1 %v1210_v21 }
 0x557   :  { %v1342_v44 = vld [vmem:[%s10776_s1 + $0x2858] sm:$0xff]  ;;  %3555 = vmatpush.msrb.mxu2 %v1274_v37  ;;  %v1779_v37 = vadd.f32 %v8808_v23, %v1759_v58  ;;  %v2279_v23 = vadd.f32 %v9136_v43, %v2259_v18 }
 0x558   :  { %v1142_v47 = vld [vmem:[%s10776_s1 + $0x2218] sm:$0xff]  ;;  %3574 = vmatpush.msrb.mxu3 %v1342_v44  ;;  %v2778_v44 = vpop.f32.mrf.mxu3 }
 0x559   :  { %v1206_v38 = vld [vmem:[%s10776_s1 + $0x2418] sm:$0xff]  ;;  %3516 = vmatpush.msrb.mxu0 %v1142_v47  ;;  %v1799_v9 = vadd.f32 %v8786_v15, %v1779_v37  ;;  %v2299_v18 = vadd.f32 %v9164_v61, %v2279_v23 }
 0x55a   :  { %v1270_v57 = vld [vmem:[%s10776_s1 + $0x2618] sm:$0xff]  ;;  %3536 = vmatpush.msrb.mxu1 %v1206_v38  ;;  %3517 = vmatmul.f32.vlgmr.msrb.gmra.mxu0 %v4472_v25 }
 0x55b   :  { %v1338_v2 = vld [vmem:[%s10776_s1 + $0x2838] sm:$0xff]  ;;  %3556 = vmatpush.msrb.mxu2 %v1270_v57  ;;  %3537 = vmatmul.f32.vlgmr.msrb.gmra.mxu1 %v4474_v50  ;;  %v1819_v37 = vadd.f32 %v8810_v24, %v1799_v9 }
 0x55c   :  { %v1458_v60 = vld [vmem:[%s10776_s1 + $0x2bf8] sm:$0xff]  ;;  %3575 = vmatpush.msrb.mxu3 %v1338_v2  ;;  %v2798_v2 = vpop.f32.mrf.mxu0 }
 0x55d   :  { %v1522_v42 = vld [vmem:[%s10776_s1 + $0x2df8] sm:$0xff]  ;;  %3581 = vmatpush.msra.mxu0 %v1458_v60  ;;  %v2779_v60 = vadd.f32 %v2778_v44, %v2759_v26  ;;  %v2319_v26 = vadd.f32 %v9190_v13, %v2299_v18  ;;  %v2838_v44 = vpop.f32.mrf.mxu2 }
 0x55e   :  { %v1586_v19 = vld [vmem:[%s10776_s1 + $0x2ff8] sm:$0xff]  ;;  %3601 = vmatpush.msra.mxu1 %v1522_v42 }
 0x55f   :  { %v1334_v17 = vld [vmem:[%s10776_s1 + $0x2818] sm:$0xff]  ;;  %3621 = vmatpush.msra.mxu2 %v1586_v19  ;;  %v2799_v25 = vadd.f32 %v2798_v2, %v2779_v60 }
 0x560   :  { %v4473_v20 = vld [vmem:[%s10777_s0 + $0x98] sm:$0xff]  ;;  %3576 = vmatpush.msrb.mxu3 %v1334_v17 }
 0x561   :  { %3557 = vmatmul.f32.vlgmr.msrb.gmra.mxu2 %v4473_v20  ;;  %v1454_v55 = vld [vmem:[%s10776_s1 + $0x2bd8] sm:$0xff]  ;;  %3577 = vmatmul.f32.vlgmr.msrb.gmra.mxu3 %v4475_v1 }
 0x562   :  { %v1518_v59 = vld [vmem:[%s10776_s1 + $0x2dd8] sm:$0xff]  ;;  %3582 = vmatpush.msra.mxu0 %v1454_v55  ;;  %v2818_v55 = vpop.f32.mrf.mxu1 }
 0x563   :  { %v1582_v21 = vld [vmem:[%s10776_s1 + $0x2fd8] sm:$0xff]  ;;  %3602 = vmatpush.msra.mxu1 %v1518_v59  ;;  %v2819_v1 = vadd.f32 %v2818_v55, %v2799_v25 }
 0x564   :  { %v1650_v39 = vld [vmem:[%s10776_s1 + $0x31f8] sm:$0xff]  ;;  %3622 = vmatpush.msra.mxu2 %v1582_v21 }
 0x565   :  { %v1450_v47 = vld [vmem:[%s10776_s1 + $0x2bb8] sm:$0xff]  ;;  %3641 = vmatpush.msra.mxu3 %v1650_v39  ;;  %v2839_v2 = vadd.f32 %v2838_v44, %v2819_v1 }
 0x566   :  { %v1514_v38 = vld [vmem:[%s10776_s1 + $0x2db8] sm:$0xff]  ;;  %3583 = vmatpush.msra.mxu0 %v1450_v47 }
 0x567   :  { %v1578_v3 = vld [vmem:[%s10776_s1 + $0x2fb8] sm:$0xff]  ;;  %3603 = vmatpush.msra.mxu1 %v1514_v38  ;;  %v1839_v38 = vadd.f32 %v8856_v40, %v1819_v37 }
 0x568   :  { %v1646_v57 = vld [vmem:[%s10776_s1 + $0x31d8] sm:$0xff]  ;;  %3623 = vmatpush.msra.mxu2 %v1578_v3 }
 0x569   :  { %v1446_v8 = vld [vmem:[%s10776_s1 + $0x2b98] sm:$0xff]  ;;  %3642 = vmatpush.msra.mxu3 %v1646_v57  ;;  %v2339_v57 = vadd.f32 %v9218_v34, %v2319_v26 }
 0x56a   :  { %v1510_v43 = vld [vmem:[%s10776_s1 + $0x2d98] sm:$0xff]  ;;  %3584 = vmatpush.msra.mxu0 %v1446_v8 }
 0x56b   :  { %v1574_v42 = vld [vmem:[%s10776_s1 + $0x2f98] sm:$0xff]  ;;  %3604 = vmatpush.msra.mxu1 %v1510_v43  ;;  %v2858_v43 = vpop.f32.mrf.mxu3 }
 0x56c   :  { %v1642_v58 = vld [vmem:[%s10776_s1 + $0x31b8] sm:$0xff]  ;;  %3624 = vmatpush.msra.mxu2 %v1574_v42  ;;  %v2359_v42 = vadd.f32 %v9192_v14, %v2339_v57  ;;  %v2859_v25 = vadd.f32 %v2858_v43, %v2839_v2 }
 0x56d   :  { %v1442_v19 = vld [vmem:[%s10776_s1 + $0x2b78] sm:$0xff]  ;;  %3643 = vmatpush.msra.mxu3 %v1642_v58 }
 0x56e   :  { %v1506_v17 = vld [vmem:[%s10776_s1 + $0x2d78] sm:$0xff]  ;;  %3585 = vmatpush.msra.mxu0 %v1442_v19  ;;  %v1859_v19 = vadd.f32 %v8870_v45, %v1839_v38 }
 0x56f   :  { %v1570_v20 = vld [vmem:[%s10776_s1 + $0x2f78] sm:$0xff]  ;;  %3605 = vmatpush.msra.mxu1 %v1506_v17  ;;  %v2878_v17 = vpop.f32.mrf.mxu0 }
 0x570   :  { %v1638_v15 = vld [vmem:[%s10776_s1 + $0x3198] sm:$0xff]  ;;  %3625 = vmatpush.msra.mxu2 %v1570_v20  ;;  %v2879_v26 = vadd.f32 %v2878_v17, %v2859_v25 }
 0x571   :  { %v1438_v59 = vld [vmem:[%s10776_s1 + $0x2b58] sm:$0xff]  ;;  %3644 = vmatpush.msra.mxu3 %v1638_v15  ;;  %v1879_v15 = vadd.f32 %v8836_v33, %v1859_v19 }
 0x572   :  { %v1502_v61 = vld [vmem:[%s10776_s1 + $0x2d58] sm:$0xff]  ;;  %3586 = vmatpush.msra.mxu0 %v1438_v59 }
 0x573   :  { %v1566_v21 = vld [vmem:[%s10776_s1 + $0x2f58] sm:$0xff]  ;;  %3606 = vmatpush.msra.mxu1 %v1502_v61  ;;  %v2379_v61 = vadd.f32 %v9220_v35, %v2359_v42  ;;  %v1899_v1 = vadd.f32 %v8872_v46, %v1879_v15 }
 0x574   :  { %v1634_v39 = vld [vmem:[%s10776_s1 + $0x3178] sm:$0xff]  ;;  %3626 = vmatpush.msra.mxu2 %v1566_v21 }
 0x575   :  { %v1434_v50 = vld [vmem:[%s10776_s1 + $0x2b38] sm:$0xff]  ;;  %3645 = vmatpush.msra.mxu3 %v1634_v39  ;;  %v2898_v39 = vpop.f32.mrf.mxu1  ;;  %v2399_v44 = vadd.f32 %v9246_v51, %v2379_v61 }
 0x576   :  { %v1498_v13 = vld [vmem:[%s10776_s1 + $0x2d38] sm:$0xff]  ;;  %3587 = vmatpush.msra.mxu0 %v1434_v50  ;;  %v2899_v38 = vadd.f32 %v2898_v39, %v2879_v26 }
 0x577   :  { %v1562_v47 = vld [vmem:[%s10776_s1 + $0x2f38] sm:$0xff]  ;;  %3607 = vmatpush.msra.mxu1 %v1498_v13  ;;  %v2958_v17 = vpop.f32.mrf.mxu0 }
 0x578   :  { %v1630_v24 = vld [vmem:[%s10776_s1 + $0x3158] sm:$0xff]  ;;  %3627 = vmatpush.msra.mxu2 %v1562_v47  ;;  %v2918_v47 = vpop.f32.mrf.mxu2 }
 0x579   :  { %v1430_v23 = vld [vmem:[%s10776_s1 + $0x2b18] sm:$0xff]  ;;  %3646 = vmatpush.msra.mxu3 %v1630_v24 }
 0x57a   :  { %v1494_v3 = vld [vmem:[%s10776_s1 + $0x2d18] sm:$0xff]  ;;  %3588 = vmatpush.msra.mxu0 %v1430_v23 }
 0x57b   :  { %v1558_v8 = vld [vmem:[%s10776_s1 + $0x2f18] sm:$0xff]  ;;  %3608 = vmatpush.msra.mxu1 %v1494_v3  ;;  %v1919_v3 = vadd.f32 %v8912_v62, %v1899_v1  ;;  %v4479_v1 = vld [vmem:[%s10777_s0 + $0xc0] sm:$0xff] }
 0x57c   :  { %v1626_v40 = vld [vmem:[%s10776_s1 + $0x3138] sm:$0xff]  ;;  %3628 = vmatpush.msra.mxu2 %v1558_v8  ;;  %v2419_v8 = vadd.f32 %v9274_v11, %v2399_v44 }
 0x57d   :  { %v1426_v60 = vld [vmem:[%s10776_s1 + $0x2af8] sm:$0xff]  ;;  %3647 = vmatpush.msra.mxu3 %v1626_v40  ;;  %v2919_v40 = vadd.f32 %v2918_v47, %v2899_v38  ;;  %v1939_v19 = vadd.f32 %v8926_v5, %v1919_v3  ;;  %v2978_v61 = vpop.f32.mrf.mxu1  ;;  %v3717_v47 = vld [vmem:[%s10779_s3 + $0x1a0] sm:$0xff] }
 0x57e   :  { %v1490_v34 = vld [vmem:[%s10776_s1 + $0x2cf8] sm:$0xff]  ;;  %3589 = vmatpush.msra.mxu0 %v1426_v60  ;;  %v2938_v60 = vpop.f32.mrf.mxu3  ;;  %v2439_v42 = vadd.f32 %v9248_v52, %v2419_v8  ;;  %v3845_v38 = vld [vmem:[%s10779_s3 + $0x5a0] sm:$0xff] }
 0x57f   :  { %v1554_v58 = vld [vmem:[%s10776_s1 + $0x2ef8] sm:$0xff]  ;;  %3609 = vmatpush.msra.mxu1 %v1490_v34  ;;  %v3777_v3 = vld [vmem:[%s10779_s3 + $0x380] sm:$0xff]  ;;  %v3038_v8 = vpop.f32.mrf.mxu0 }
 0x580   :  { %v1622_v9 = vld [vmem:[%s10776_s1 + $0x3118] sm:$0xff]  ;;  %3629 = vmatpush.msra.mxu2 %v1554_v58 }
 0x581   :  { %v1422_v18 = vld [vmem:[%s10776_s1 + $0x2ad8] sm:$0xff]  ;;  %3648 = vmatpush.msra.mxu3 %v1622_v9 }
 0x582   :  { %v1486_v14 = vld [vmem:[%s10776_s1 + $0x2cd8] sm:$0xff]  ;;  %3590 = vmatpush.msra.mxu0 %v1422_v18 }
 0x583   :  { %v1550_v20 = vld [vmem:[%s10776_s1 + $0x2ed8] sm:$0xff]  ;;  %3610 = vmatpush.msra.mxu1 %v1486_v14  ;;  %v2939_v14 = vadd.f32 %v2938_v60, %v2919_v40  ;;  %v3709_v40 = vld [vmem:[%s10779_s3 + $0x160] sm:$0xff] }
 0x584   :  { %v1618_v45 = vld [vmem:[%s10776_s1 + $0x30f8] sm:$0xff]  ;;  %3630 = vmatpush.msra.mxu2 %v1550_v20  ;;  %v1959_v20 = vadd.f32 %v8898_v56, %v1939_v19  ;;  %v3853_v56 = vld [vmem:[%s10779_s3 + $0x5e0] sm:$0xff] }
 0x585   :  { %v1418_v55 = vld [vmem:[%s10776_s1 + $0x2ab8] sm:$0xff]  ;;  %3649 = vmatpush.msra.mxu3 %v1618_v45  ;;  %v2459_v45 = vadd.f32 %v9276_v12, %v2439_v42  ;;  %v2959_v15 = vadd.f32 %v2958_v17, %v2939_v14  ;;  %v3765_v19 = vld [vmem:[%s10779_s3 + $0x320] sm:$0xff] }
 0x586   :  { %v1482_v59 = vld [vmem:[%s10776_s1 + $0x2cb8] sm:$0xff]  ;;  %3591 = vmatpush.msra.mxu0 %v1418_v55  ;;  %v3725_v55 = vld [vmem:[%s10779_s3 + $0x1e0] sm:$0xff]  ;;  %v1979_v39 = vadd.f32 %v8928_v6, %v1959_v20 }
 0x587   :  { %v1546_v21 = vld [vmem:[%s10776_s1 + $0x2eb8] sm:$0xff]  ;;  %3611 = vmatpush.msra.mxu1 %v1482_v59  ;;  %v3789_v59 = vld [vmem:[%s10779_s3 + $0x3e0] sm:$0xff]  ;;  %v2479_v26 = vadd.f32 %v9296_v31, %v2459_v45  ;;  %v2979_v44 = vadd.f32 %v2978_v61, %v2959_v15 }
 0x588   :  { %v1614_v33 = vld [vmem:[%s10776_s1 + $0x30d8] sm:$0xff]  ;;  %3631 = vmatpush.msra.mxu2 %v1546_v21  ;;  %v4476_v21 = vld [vmem:[%s10777_s0 + $0xa8] sm:$0xff]  ;;  %v3785_v31 = vld [vmem:[%s10779_s3 + $0x3c0] sm:$0xff]  ;;  %v1999_v6 = vadd.f32 %v8968_v22, %v1979_v39 }
 0x589   :  { %v1414_v37 = vld [vmem:[%s10776_s1 + $0x2a98] sm:$0xff]  ;;  %3650 = vmatpush.msra.mxu3 %v1614_v33  ;;  %v2499_v22 = vadd.f32 %v9330_v63, %v2479_v26  ;;  %v3841_v63 = vld [vmem:[%s10779_s3 + $0x580] sm:$0xff] }
 0x58a   :  { %v1478_v35 = vld [vmem:[%s10776_s1 + $0x2c98] sm:$0xff]  ;;  %3592 = vmatpush.msra.mxu0 %v1414_v37  ;;  %v2998_v37 = vpop.f32.mrf.mxu2  ;;  %v3697_v14 = vld [vmem:[%s10779_s3 + $0x100] sm:$0xff] }
 0x58b   :  { %v1542_v50 = vld [vmem:[%s10776_s1 + $0x2e98] sm:$0xff]  ;;  %3612 = vmatpush.msra.mxu1 %v1478_v35  ;;  %v3721_v35 = vld [vmem:[%s10779_s3 + $0x1c0] sm:$0xff] }
 0x58c   :  { %v1610_v13 = vld [vmem:[%s10776_s1 + $0x30b8] sm:$0xff]  ;;  %3632 = vmatpush.msra.mxu2 %v1542_v50  ;;  %v3849_v50 = vld [vmem:[%s10779_s3 + $0x5c0] sm:$0xff] }
 0x58d   :  { %v1410_v24 = vld [vmem:[%s10776_s1 + $0x2a78] sm:$0xff]  ;;  %3651 = vmatpush.msra.mxu3 %v1610_v13  ;;  %v4478_v13 = vld [vmem:[%s10777_s0 + $0xb0] sm:$0xff]  ;;  %v3757_v45 = vld [vmem:[%s10779_s3 + $0x2e0] sm:$0xff] }
 0x58e   :  { %v1474_v51 = vld [vmem:[%s10776_s1 + $0x2c78] sm:$0xff]  ;;  %3593 = vmatpush.msra.mxu0 %v1410_v24  ;;  %v3781_v24 = vld [vmem:[%s10779_s3 + $0x3a0] sm:$0xff] }
 0x58f   :  { %v1538_v23 = vld [vmem:[%s10776_s1 + $0x2e78] sm:$0xff]  ;;  %3613 = vmatpush.msra.mxu1 %v1474_v51  ;;  %v2999_v51 = vadd.f32 %v2998_v37, %v2979_v44  ;;  %v3749_v39 = vld [vmem:[%s10779_s3 + $0x2a0] sm:$0xff] }
 0x590   :  { %v1606_v46 = vld [vmem:[%s10776_s1 + $0x3098] sm:$0xff]  ;;  %3633 = vmatpush.msra.mxu2 %v1538_v23  ;;  %v3018_v23 = vpop.f32.mrf.mxu3 }
 0x591   :  { %v1406_v57 = vld [vmem:[%s10776_s1 + $0x2a58] sm:$0xff]  ;;  %3652 = vmatpush.msra.mxu3 %v1606_v46  ;;  %v3713_v46 = vld [vmem:[%s10779_s3 + $0x180] sm:$0xff] }
 0x592   :  { %v1470_v2 = vld [vmem:[%s10776_s1 + $0x2c58] sm:$0xff]  ;;  %3594 = vmatpush.msra.mxu0 %v1406_v57  ;;  %v2519_v57 = vadd.f32 %v9298_v32, %v2499_v22  ;;  %v3837_v32 = vld [vmem:[%s10779_s3 + $0x560] sm:$0xff] }
 0x593   :  { %v1534_v43 = vld [vmem:[%s10776_s1 + $0x2e58] sm:$0xff]  ;;  %3614 = vmatpush.msra.mxu1 %v1470_v2  ;;  %v2019_v2 = vadd.f32 %v8982_v29, %v1999_v6  ;;  %v3705_v29 = vld [vmem:[%s10779_s3 + $0x140] sm:$0xff] }
 0x594   :  { %v1602_v62 = vld [vmem:[%s10776_s1 + $0x3078] sm:$0xff]  ;;  %3634 = vmatpush.msra.mxu2 %v1534_v43  ;;  %v3773_v43 = vld [vmem:[%s10779_s3 + $0x360] sm:$0xff] }
 0x595   :  { %v1402_v34 = vld [vmem:[%s10776_s1 + $0x2a38] sm:$0xff]  ;;  %3653 = vmatpush.msra.mxu3 %v1602_v62  ;;  %v3019_v62 = vadd.f32 %v3018_v23, %v2999_v51  ;;  %v2039_v60 = vadd.f32 %v8954_v16, %v2019_v2  ;;  %v3701_v16 = vld [vmem:[%s10779_s3 + $0x120] sm:$0xff] }
 0x596   :  { %v1466_v11 = vld [vmem:[%s10776_s1 + $0x2c38] sm:$0xff]  ;;  %3595 = vmatpush.msra.mxu0 %v1402_v34  ;;  %v3769_v34 = vld [vmem:[%s10779_s3 + $0x340] sm:$0xff] }
 0x597   :  { %v1530_v58 = vld [vmem:[%s10776_s1 + $0x2e38] sm:$0xff]  ;;  %3615 = vmatpush.msra.mxu1 %v1466_v11  ;;  %v2539_v11 = vadd.f32 %v9332_v0, %v2519_v57  ;;  %v3039_v42 = vadd.f32 %v3038_v8, %v3019_v62  ;;  %v3829_v0 = vld [vmem:[%s10779_s3 + $0x520] sm:$0xff] }
 0x598   :  { %v1598_v9 = vld [vmem:[%s10776_s1 + $0x3058] sm:$0xff]  ;;  %3635 = vmatpush.msra.mxu2 %v1530_v58  ;;  %v3833_v58 = vld [vmem:[%s10779_s3 + $0x540] sm:$0xff]  ;;  %v3098_v61 = vpop.f32.mrf.mxu3 }
 0x599   :  { %v1398_v18 = vld [vmem:[%s10776_s1 + $0x2a18] sm:$0xff]  ;;  %3654 = vmatpush.msra.mxu3 %v1598_v9  ;;  %v3058_v9 = vpop.f32.mrf.mxu1  ;;  %v2559_v17 = vadd.f32 %v9358_v27, %v2539_v11  ;;  %v3825_v27 = vld [vmem:[%s10779_s3 + $0x500] sm:$0xff]  ;;  %v3786_v11 = vld [vmem:[%s10779_s3 + $0x3c8] sm:$0xff] }
 0x59a   :  { %v1462_v52 = vld [vmem:[%s10776_s1 + $0x2c18] sm:$0xff]  ;;  %3596 = vmatpush.msra.mxu0 %v1398_v18  ;;  %v2059_v18 = vadd.f32 %v8984_v30, %v2039_v60  ;;  %v3693_v30 = vld [vmem:[%s10779_s3 + $0xe0] sm:$0xff]  ;;  %v3790_v60 = vld [vmem:[%s10779_s3 + $0x3e8] sm:$0xff] }
 0x59b   :  { %v1526_v25 = vld [vmem:[%s10776_s1 + $0x2e18] sm:$0xff]  ;;  %3616 = vmatpush.msra.mxu1 %v1462_v52  ;;  %3597 = vmatmul.f32.vlgmr.msra.gmra.mxu0 %v4476_v21  ;;  %v3078_v52 = vpop.f32.mrf.mxu2  ;;  %v2579_v15 = vadd.f32 %v9389_v4, %v2559_v17  ;;  %v3817_v4 = vld [vmem:[%s10779_s3 + $0x4c0] sm:$0xff]  ;;  %v3118_v21 = vpop.f32.mrf.mxu0  ;;  %v3778_v17 = vld [vmem:[%s10779_s3 + $0x388] sm:$0xff] }
 0x59c   :  { %v1594_v5 = vld [vmem:[%s10776_s1 + $0x3038] sm:$0xff]  ;;  %3636 = vmatpush.msra.mxu2 %v1526_v25  ;;  %3931 = vmatpush.msrb.mxu0 %v3725_v55  ;;  %v3761_v25 = vld [vmem:[%s10779_s3 + $0x300] sm:$0xff]  ;;  %v2079_v20 = vadd.f32 %v9024_v48, %v2059_v18  ;;  %v3710_v18 = vld [vmem:[%s10779_s3 + $0x168] sm:$0xff] }
 0x59d   :  { %3655 = vmatpush.msra.mxu3 %v1594_v5  ;;  %v1590_v12 = vld [vmem:[%s10776_s1 + $0x3018] sm:$0xff]  ;;  %3951 = vmatpush.msrb.mxu1 %v3789_v59  ;;  %v3059_v5 = vadd.f32 %v3058_v9, %v3039_v42  ;;  %v3821_v59 = vld [vmem:[%s10779_s3 + $0x4e0] sm:$0xff]  ;;  %v3850_v42 = vld [vmem:[%s10779_s3 + $0x5c8] sm:$0xff] }
 0x59e   :  { %v4477_v33 = vld [vmem:[%s10777_s0 + $0xb8] sm:$0xff]  ;;  %3971 = vmatpush.msrb.mxu2 %v3853_v56  ;;  %3617 = vmatmul.f32.vlgmr.msra.gmra.mxu1 %v4478_v13  ;;  %v3689_v48 = vld [vmem:[%s10779_s3 + $0xc0] sm:$0xff]  ;;  %v2099_v26 = vadd.f32 %v9038_v53, %v2079_v20  ;;  %v3782_v9 = vld [vmem:[%s10779_s3 + $0x3a8] sm:$0xff] }
 0x59f   :  { %3637 = vmatmul.f32.vlgmr.msra.gmra.mxu2 %v4477_v33  ;;  %3656 = vmatpush.msra.mxu3 %v1590_v12  ;;  %v3079_v55 = vadd.f32 %v3078_v52, %v3059_v5  ;;  %v3753_v56 = vld [vmem:[%s10779_s3 + $0x2c0] sm:$0xff]  ;;  %v2599_v12 = vadd.f32 %v9360_v28, %v2579_v15  ;;  %v3774_v52 = vld [vmem:[%s10779_s3 + $0x368] sm:$0xff] }
 0x5a0   :  { %3657 = vmatmul.f32.vlgmr.msra.gmra.mxu3 %v4479_v1  ;;  %3932 = vmatpush.msrb.mxu0 %v3721_v35  ;;  %v3685_v33 = vld [vmem:[%s10779_s3 + $0xa0] sm:$0xff]  ;;  %v2119_v35 = vadd.f32 %v9010_v41, %v2099_v26  ;;  %v3770_v5 = vld [vmem:[%s10779_s3 + $0x348] sm:$0xff] }
 0x5a1   :  { %3952 = vmatpush.msrb.mxu1 %v3785_v31  ;;  %3972 = vmatpush.msrb.mxu2 %v3849_v50  ;;  %v3099_v37 = vadd.f32 %v3098_v61, %v3079_v55  ;;  %v3813_v28 = vld [vmem:[%s10779_s3 + $0x4a0] sm:$0xff]  ;;  %v2619_v44 = vadd.f32 %v9391_v7, %v2599_v12  ;;  %v3138_v13 = vpop.f32.mrf.mxu1  ;;  %v3702_v20 = vld [vmem:[%s10779_s3 + $0x128] sm:$0xff] }
 0x5a2   :  { %3933 = vmatpush.msrb.mxu0 %v3717_v47  ;;  %v3681_v53 = vld [vmem:[%s10779_s3 + $0x80] sm:$0xff]  ;;  %v3698_v15 = vld [vmem:[%s10779_s3 + $0x108] sm:$0xff] }
 0x5a3   :  { %3953 = vmatpush.msrb.mxu1 %v3781_v24  ;;  %3973 = vmatpush.msrb.mxu2 %v3845_v38  ;;  %v3745_v31 = vld [vmem:[%s10779_s3 + $0x280] sm:$0xff]  ;;  %v3119_v50 = vadd.f32 %v3118_v21, %v3099_v37  ;;  %v2639_v47 = vadd.f32 %v9418_v49, %v2619_v44  ;;  %v2139_v24 = vadd.f32 %v9040_v54, %v2119_v35  ;;  %v3158_v22 = vpop.f32.mrf.mxu2  ;;  %v3762_v55 = vld [vmem:[%s10779_s3 + $0x308] sm:$0xff] }
 0x5a4   :  { %3934 = vmatpush.msrb.mxu0 %v3713_v46  ;;  %v3809_v6 = vld [vmem:[%s10779_s3 + $0x480] sm:$0xff]  ;;  %v3694_v61 = vld [vmem:[%s10779_s3 + $0xe8] sm:$0xff] }
 0x5a5   :  { %3954 = vmatpush.msrb.mxu1 %v3777_v3  ;;  %3974 = vmatpush.msrb.mxu2 %v3841_v63  ;;  %v3677_v41 = vld [vmem:[%s10779_s3 + $0x60] sm:$0xff]  ;;  %v3139_v23 = vadd.f32 %v3138_v13, %v3119_v50  ;;  %v2159_v46 = vadd.f32 %v9074_v10, %v2139_v24  ;;  %v2659_v57 = vadd.f32 %v9446_v36, %v2639_v47  ;;  %v3754_v26 = vld [vmem:[%s10779_s3 + $0x2c8] sm:$0xff]  ;;  %v3178_v47 = vpop.f32.mrf.mxu3 }
 0x5a6   :  { %3935 = vmatpush.msrb.mxu0 %v3709_v40  ;;  %v3741_v1 = vld [vmem:[%s10779_s3 + $0x260] sm:$0xff]  ;;  %v3818_v21 = vld [vmem:[%s10779_s3 + $0x4c8] sm:$0xff] }
 0x5a7   :  { %3955 = vmatpush.msrb.mxu1 %v3773_v43  ;;  %3975 = vmatpush.msrb.mxu2 %v3837_v32  ;;  %v3805_v7 = vld [vmem:[%s10779_s3 + $0x460] sm:$0xff]  ;;  %v3159_v63 = vadd.f32 %v3158_v22, %v3139_v23  ;;  %v9918_v40 = vmax.f32 %v2159_v46, 0.0  ;;  %v9920_v43 = vmax.f32 %v2659_v57, 0.0  ;;  %v3726_v32 = vld [vmem:[%s10779_s3 + $0x1e8] sm:$0xff] }
 0x5a8   :  { %3936 = vmatpush.msrb.mxu0 %v3705_v29  ;;  %v3673_v51 = vld [vmem:[%s10779_s3 + $0x40] sm:$0xff]  ;;  %v3854_v29 = vld [vmem:[%s10779_s3 + $0x5e8] sm:$0xff] }
 0x5a9   :  { %3956 = vmatpush.msrb.mxu1 %v3769_v34  ;;  %3976 = vmatpush.msrb.mxu2 %v3833_v58  ;;  %v3737_v38 = vld [vmem:[%s10779_s3 + $0x240] sm:$0xff]  ;;  %v9922_v62 = vmax.f32 %v3159_v63, 0.0  ;;  %v3722_v34 = vld [vmem:[%s10779_s3 + $0x1c8] sm:$0xff] }
 0x5aa   :  { %3937 = vmatpush.msrb.mxu0 %v3701_v16  ;;  %v3801_v49 = vld [vmem:[%s10779_s3 + $0x440] sm:$0xff]  ;;  %v3718_v58 = vld [vmem:[%s10779_s3 + $0x1a8] sm:$0xff] }
 0x5ab   :  { %3957 = vmatpush.msrb.mxu1 %v3765_v19  ;;  %3977 = vmatpush.msrb.mxu2 %v3829_v0  ;;  %v3669_v54 = vld [vmem:[%s10779_s3 + $0x20] sm:$0xff]  ;;  %v3846_v16 = vld [vmem:[%s10779_s3 + $0x5a8] sm:$0xff] }
 0x5ac   :  { %3938 = vmatpush.msrb.mxu0 %v3697_v14  ;;  %v3733_v3 = vld [vmem:[%s10779_s3 + $0x220] sm:$0xff]  ;;  %v3714_v19 = vld [vmem:[%s10779_s3 + $0x188] sm:$0xff] }
 0x5ad   :  { %3958 = vmatpush.msrb.mxu1 %v3761_v25  ;;  %3978 = vmatpush.msrb.mxu2 %v3825_v27  ;;  %v3797_v2 = vld [vmem:[%s10779_s3 + $0x420] sm:$0xff]  ;;  %v3842_v0 = vld [vmem:[%s10779_s3 + $0x588] sm:$0xff] }
 0x5ae   :  { %3939 = vmatpush.msrb.mxu0 %v3693_v30  ;;  %v3665_v10 = vld [vmem:[%s10779_s3] sm:$0xff]  ;;  %v3838_v14 = vld [vmem:[%s10779_s3 + $0x568] sm:$0xff] }
 0x5af   :  { %3959 = vmatpush.msrb.mxu1 %v3757_v45  ;;  %3979 = vmatpush.msrb.mxu2 %v3821_v59  ;;  %v3729_v8 = vld [vmem:[%s10779_s3 + $0x200] sm:$0xff]  ;;  %v3706_v25 = vld [vmem:[%s10779_s3 + $0x148] sm:$0xff] }
 0x5b0   :  { %3940 = vmatpush.msrb.mxu0 %v3689_v48  ;;  %v3793_v36 = vld [vmem:[%s10779_s3 + $0x400] sm:$0xff]  ;;  %v3834_v27 = vld [vmem:[%s10779_s3 + $0x548] sm:$0xff] }
 0x5b1   :  { %3960 = vmatpush.msrb.mxu1 %v3753_v56  ;;  %3980 = vmatpush.msrb.mxu2 %v3817_v4  ;;  %v3766_v30 = vld [vmem:[%s10779_s3 + $0x328] sm:$0xff]  ;;  %v3917_v12 = vld [vmem:[%s10779_s3 + $0x7e0] sm:$0xff] }
 0x5b2   :  { %3941 = vmatpush.msrb.mxu0 %v3685_v33  ;;  %v3830_v45 = vld [vmem:[%s10779_s3 + $0x528] sm:$0xff]  ;;  %3991 = vmatpush.msrb.mxu3 %v3917_v12  ;;  %v3913_v33 = vld [vmem:[%s10779_s3 + $0x7c0] sm:$0xff]  ;;  %v3771_v12 = vld [vmem:[%s10779_s3 + $0x350] sm:$0xff] }
 0x5b3   :  { %3961 = vmatpush.msrb.mxu1 %v3749_v39  ;;  %3981 = vmatpush.msrb.mxu2 %v3813_v28  ;;  %v3826_v59 = vld [vmem:[%s10779_s3 + $0x508] sm:$0xff]  ;;  %v3909_v35 = vld [vmem:[%s10779_s3 + $0x7a0] sm:$0xff] }
 0x5b4   :  { %3942 = vmatpush.msrb.mxu0 %v3681_v53  ;;  %v3758_v48 = vld [vmem:[%s10779_s3 + $0x2e8] sm:$0xff]  ;;  %3992 = vmatpush.msrb.mxu3 %v3913_v33  ;;  %v3905_v50 = vld [vmem:[%s10779_s3 + $0x780] sm:$0xff]  ;;  %v3703_v33 = vld [vmem:[%s10779_s3 + $0x130] sm:$0xff] }
 0x5b5   :  { %3962 = vmatpush.msrb.mxu1 %v3745_v31  ;;  %3982 = vmatpush.msrb.mxu2 %v3809_v6  ;;  %v3822_v56 = vld [vmem:[%s10779_s3 + $0x4e8] sm:$0xff]  ;;  %v4480_v6 = vld [vmem:[%s10778_s2] sm:$0xf] }
 0x5b6   :  { %3943 = vmatpush.msrb.mxu0 %v3677_v41  ;;  %v3690_v4 = vld [vmem:[%s10779_s3 + $0xc8] sm:$0xff]  ;;  %3993 = vmatpush.msrb.mxu3 %v3909_v35  ;;  %v1656_v13 = vperm.slane %v4480_v6, 3  ;;  %v3901_v24 = vld [vmem:[%s10779_s3 + $0x760] sm:$0xff] }
 0x5b7   :  { %3963 = vmatpush.msrb.mxu1 %v3741_v1  ;;  %3983 = vmatpush.msrb.mxu2 %v3805_v7  ;;  %v3686_v39 = vld [vmem:[%s10779_s3 + $0xa8] sm:$0xff]  ;;  %v3897_v23 = vld [vmem:[%s10779_s3 + $0x740] sm:$0xff] }
 0x5b8   :  { %3944 = vmatpush.msrb.mxu0 %v3673_v51  ;;  %v3750_v37 = vld [vmem:[%s10779_s3 + $0x2a8] sm:$0xff]  ;;  %3994 = vmatpush.msrb.mxu3 %v3905_v50  ;;  %v3893_v63 = vld [vmem:[%s10779_s3 + $0x720] sm:$0xff]  ;;  %v3827_v50 = vld [vmem:[%s10779_s3 + $0x510] sm:$0xff] }
 0x5b9   :  { %3964 = vmatpush.msrb.mxu1 %v3737_v38  ;;  %3984 = vmatpush.msrb.mxu2 %v3801_v49  ;;  %v3814_v28 = vld [vmem:[%s10779_s3 + $0x4a8] sm:$0xff]  ;;  %v3179_v49 = vadd.f32 %v3178_v47, %v1656_v13  ;;  %v3865_v35 = vld [vmem:[%s10779_s3 + $0x640] sm:$0xff] }
 0x5ba   :  { %3945 = vmatpush.msrb.mxu0 %v3669_v54  ;;  %v3682_v53 = vld [vmem:[%s10779_s3 + $0x88] sm:$0xff]  ;;  %3995 = vmatpush.msrb.mxu3 %v3901_v24  ;;  %v3861_v6 = vld [vmem:[%s10779_s3 + $0x620] sm:$0xff] }
 0x5bb   :  { %3965 = vmatpush.msrb.mxu1 %v3733_v3  ;;  %3985 = vmatpush.msrb.mxu2 %v3797_v2  ;;  %v3746_v31 = vld [vmem:[%s10779_s3 + $0x288] sm:$0xff]  ;;  %v3198_v3 = vpop.f32.mrf.mxu0  ;;  %v3857_v24 = vld [vmem:[%s10779_s3 + $0x600] sm:$0xff] }
 0x5bc   :  { %3946 = vmatpush.msrb.mxu0 %v3665_v10  ;;  %v3810_v44 = vld [vmem:[%s10779_s3 + $0x488] sm:$0xff]  ;;  %3996 = vmatpush.msrb.mxu3 %v3897_v23 }
 0x5bd   :  { %3966 = vmatpush.msrb.mxu1 %v3729_v8  ;;  %3986 = vmatpush.msrb.mxu2 %v3793_v36  ;;  %v3678_v41 = vld [vmem:[%s10779_s3 + $0x68] sm:$0xff]  ;;  %v3889_v36 = vld [vmem:[%s10779_s3 + $0x700] sm:$0xff] }
 0x5be   :  { %3947 = vmatmul.f32.vlgmr.msrb.gmra.mxu0 %v9918_v40  ;;  %3967 = vmatmul.f32.vlgmr.msrb.gmra.mxu1 %v9920_v43  ;;  %v3742_v1 = vld [vmem:[%s10779_s3 + $0x268] sm:$0xff] }
 0x5bf   :  { %3987 = vmatmul.f32.vlgmr.msrb.gmra.mxu2 %v9922_v62  ;;  %4011 = vmatpush.msra.mxu0 %v3726_v32  ;;  %v3806_v7 = vld [vmem:[%s10779_s3 + $0x468] sm:$0xff]  ;;  %v3199_v32 = vadd.f32 %v3198_v3, %v3179_v49  ;;  %v3819_v49 = vld [vmem:[%s10779_s3 + $0x4d0] sm:$0xff] }
 0x5c0   :  { %4031 = vmatpush.msra.mxu1 %v3790_v60  ;;  %4051 = vmatpush.msra.mxu2 %v3854_v29  ;;  %v3674_v22 = vld [vmem:[%s10779_s3 + $0x48] sm:$0xff]  ;;  %v3218_v60 = vpop.f32.mrf.mxu1  ;;  %v3727_v29 = vld [vmem:[%s10779_s3 + $0x1f0] sm:$0xff] }
 0x5c1   :  { %4012 = vmatpush.msra.mxu0 %v3722_v34  ;;  %v3738_v51 = vld [vmem:[%s10779_s3 + $0x248] sm:$0xff]  ;;  %3997 = vmatpush.msrb.mxu3 %v3893_v63  ;;  %v3791_v34 = vld [vmem:[%s10779_s3 + $0x3f0] sm:$0xff] }
 0x5c2   :  { %4032 = vmatpush.msra.mxu1 %v3786_v11  ;;  %4052 = vmatpush.msra.mxu2 %v3850_v42  ;;  %v3802_v38 = vld [vmem:[%s10779_s3 + $0x448] sm:$0xff]  ;;  %v3855_v11 = vld [vmem:[%s10779_s3 + $0x5f0] sm:$0xff]  ;;  %v3885_v42 = vld [vmem:[%s10779_s3 + $0x6e0] sm:$0xff] }
 0x5c3   :  { %4013 = vmatpush.msra.mxu0 %v3718_v58  ;;  %v3670_v46 = vld [vmem:[%s10779_s3 + $0x28] sm:$0xff]  ;;  %3998 = vmatpush.msrb.mxu3 %v3889_v36  ;;  %v3723_v58 = vld [vmem:[%s10779_s3 + $0x1d0] sm:$0xff] }
 0x5c4   :  { %4033 = vmatpush.msra.mxu1 %v3782_v9  ;;  %4053 = vmatpush.msra.mxu2 %v3846_v16  ;;  %v3734_v54 = vld [vmem:[%s10779_s3 + $0x228] sm:$0xff]  ;;  %v3787_v9 = vld [vmem:[%s10779_s3 + $0x3d0] sm:$0xff]  ;;  %v3219_v16 = vadd.f32 %v3218_v60, %v3199_v32 }
 0x5c5   :  { %4014 = vmatpush.msra.mxu0 %v3714_v19  ;;  %v3798_v57 = vld [vmem:[%s10779_s3 + $0x428] sm:$0xff]  ;;  %v3851_v19 = vld [vmem:[%s10779_s3 + $0x5d0] sm:$0xff]  ;;  %3999 = vmatpush.msrb.mxu3 %v3885_v42 }
 0x5c6   :  { %4034 = vmatpush.msra.mxu1 %v3778_v17  ;;  %4054 = vmatpush.msra.mxu2 %v3842_v0  ;;  %v3666_v2 = vld [vmem:[%s10779_s3 + $0x8] sm:$0xff]  ;;  %v3238_v17 = vpop.f32.mrf.mxu2  ;;  %v3719_v0 = vld [vmem:[%s10779_s3 + $0x1b0] sm:$0xff] }
 0x5c7   :  { %4015 = vmatpush.msra.mxu0 %v3710_v18  ;;  %v3730_v10 = vld [vmem:[%s10779_s3 + $0x208] sm:$0xff]  ;;  %v3783_v18 = vld [vmem:[%s10779_s3 + $0x3b0] sm:$0xff] }
 0x5c8   :  { %4035 = vmatpush.msra.mxu1 %v3774_v52  ;;  %4055 = vmatpush.msra.mxu2 %v3838_v14  ;;  %v3794_v8 = vld [vmem:[%s10779_s3 + $0x408] sm:$0xff]  ;;  %v3847_v52 = vld [vmem:[%s10779_s3 + $0x5b0] sm:$0xff]  ;;  %v3881_v14 = vld [vmem:[%s10779_s3 + $0x6c0] sm:$0xff] }
 0x5c9   :  { %4016 = vmatpush.msra.mxu0 %v3706_v25  ;;  %v3715_v25 = vld [vmem:[%s10779_s3 + $0x190] sm:$0xff]  ;;  %4000 = vmatpush.msrb.mxu3 %v3881_v14 }
 0x5ca   :  { %4036 = vmatpush.msra.mxu1 %v3770_v5  ;;  %4056 = vmatpush.msra.mxu2 %v3834_v27  ;;  %v3779_v5 = vld [vmem:[%s10779_s3 + $0x390] sm:$0xff]  ;;  %v3239_v27 = vadd.f32 %v3238_v17, %v3219_v16 }
 0x5cb   :  { %4017 = vmatpush.msra.mxu0 %v3702_v20  ;;  %v3843_v20 = vld [vmem:[%s10779_s3 + $0x590] sm:$0xff] }
 0x5cc   :  { %4037 = vmatpush.msra.mxu1 %v3766_v30  ;;  %4057 = vmatpush.msra.mxu2 %v3830_v45  ;;  %v3877_v30 = vld [vmem:[%s10779_s3 + $0x6a0] sm:$0xff]  ;;  %v3258_v45 = vpop.f32.mrf.mxu3  ;;  %v3687_v3 = vld [vmem:[%s10779_s3 + $0xb0] sm:$0xff] }
 0x5cd   :  { %4018 = vmatpush.msra.mxu0 %v3698_v15  ;;  %v3711_v15 = vld [vmem:[%s10779_s3 + $0x170] sm:$0xff]  ;;  %4001 = vmatpush.msrb.mxu3 %v3877_v30 }
 0x5ce   :  { %4038 = vmatpush.msra.mxu1 %v3762_v55  ;;  %4058 = vmatpush.msra.mxu2 %v3826_v59  ;;  %v3775_v55 = vld [vmem:[%s10779_s3 + $0x370] sm:$0xff]  ;;  %v3318_v13 = vpop.f32.mrf.mxu2 }
 0x5cf   :  { %4019 = vmatpush.msra.mxu0 %v3694_v61  ;;  %v3839_v59 = vld [vmem:[%s10779_s3 + $0x570] sm:$0xff]  ;;  %v3873_v61 = vld [vmem:[%s10779_s3 + $0x680] sm:$0xff] }
 0x5d0   :  { %4039 = vmatpush.msra.mxu1 %v3758_v48  ;;  %4059 = vmatpush.msra.mxu2 %v3822_v56  ;;  %v3278_v48 = vpop.f32.mrf.mxu0  ;;  %v3707_v56 = vld [vmem:[%s10779_s3 + $0x150] sm:$0xff] }
 0x5d1   :  { %4020 = vmatpush.msra.mxu0 %v3690_v4  ;;  %4002 = vmatpush.msrb.mxu3 %v3873_v61  ;;  %v3259_v4 = vadd.f32 %v3258_v45, %v3239_v27  ;;  %v3815_v63 = vld [vmem:[%s10779_s3 + $0x4b0] sm:$0xff]  ;;  %v3728_v61 = vld [vmem:[%s10779_s3 + $0x1f8] sm:$0xff] }
 0x5d2   :  { %4040 = vmatpush.msra.mxu1 %v3754_v26  ;;  %4060 = vmatpush.msra.mxu2 %v3818_v21  ;;  %v3835_v26 = vld [vmem:[%s10779_s3 + $0x550] sm:$0xff]  ;;  %v3869_v21 = vld [vmem:[%s10779_s3 + $0x660] sm:$0xff] }
 0x5d3   :  { %4021 = vmatpush.msra.mxu0 %v3686_v39  ;;  %v3767_v39 = vld [vmem:[%s10779_s3 + $0x330] sm:$0xff]  ;;  %4003 = vmatpush.msrb.mxu3 %v3869_v21  ;;  %v3724_v21 = vld [vmem:[%s10779_s3 + $0x1d8] sm:$0xff] }
 0x5d4   :  { %4041 = vmatpush.msra.mxu1 %v3750_v37  ;;  %4061 = vmatpush.msra.mxu2 %v3814_v28  ;;  %v3279_v37 = vadd.f32 %v3278_v48, %v3259_v4  ;;  %v3831_v28 = vld [vmem:[%s10779_s3 + $0x530] sm:$0xff]  ;;  %v3792_v48 = vld [vmem:[%s10779_s3 + $0x3f8] sm:$0xff]  ;;  %v3890_v4 = vld [vmem:[%s10779_s3 + $0x708] sm:$0xff] }
 0x5d5   :  { %4022 = vmatpush.msra.mxu0 %v3682_v53  ;;  %v3298_v53 = vpop.f32.mrf.mxu1  ;;  %4004 = vmatpush.msrb.mxu3 %v3865_v35  ;;  %v3747_v36 = vld [vmem:[%s10779_s3 + $0x290] sm:$0xff]  ;;  %v3720_v35 = vld [vmem:[%s10779_s3 + $0x1b8] sm:$0xff] }
 0x5d6   :  { %4042 = vmatpush.msra.mxu1 %v3746_v31  ;;  %4062 = vmatpush.msra.mxu2 %v3810_v44  ;;  %v3699_v31 = vld [vmem:[%s10779_s3 + $0x110] sm:$0xff]  ;;  %v3299_v47 = vadd.f32 %v3298_v53, %v3279_v37  ;;  %v3886_v37 = vld [vmem:[%s10779_s3 + $0x6e8] sm:$0xff]  ;;  %v3784_v53 = vld [vmem:[%s10779_s3 + $0x3b8] sm:$0xff] }
 0x5d7   :  { %4023 = vmatpush.msra.mxu0 %v3678_v41  ;;  %v3763_v44 = vld [vmem:[%s10779_s3 + $0x310] sm:$0xff]  ;;  %4005 = vmatpush.msrb.mxu3 %v3861_v6  ;;  %v3716_v6 = vld [vmem:[%s10779_s3 + $0x198] sm:$0xff] }
 0x5d8   :  { %4043 = vmatpush.msra.mxu1 %v3742_v1  ;;  %4063 = vmatpush.msra.mxu2 %v3806_v7  ;;  %v3695_v41 = vld [vmem:[%s10779_s3 + $0xf0] sm:$0xff]  ;;  %v3319_v23 = vadd.f32 %v3318_v13, %v3299_v47  ;;  %v3780_v13 = vld [vmem:[%s10779_s3 + $0x398] sm:$0xff]  ;;  %v3878_v47 = vld [vmem:[%s10779_s3 + $0x6a8] sm:$0xff] }
 0x5d9   :  { %4024 = vmatpush.msra.mxu0 %v3674_v22  ;;  %v3759_v1 = vld [vmem:[%s10779_s3 + $0x2f0] sm:$0xff]  ;;  %v3918_v22 = vld [vmem:[%s10779_s3 + $0x7e8] sm:$0xff]  ;;  %4006 = vmatpush.msrb.mxu3 %v3857_v24  ;;  %v3712_v24 = vld [vmem:[%s10779_s3 + $0x178] sm:$0xff] }
 0x5da   :  { %4044 = vmatpush.msra.mxu1 %v3738_v51  ;;  %4064 = vmatpush.msra.mxu2 %v3802_v38  ;;  %v3823_v7 = vld [vmem:[%s10779_s3 + $0x4f0] sm:$0xff] }
 0x5db   :  { %4025 = vmatpush.msra.mxu0 %v3670_v46  ;;  %v3691_v51 = vld [vmem:[%s10779_s3 + $0xd0] sm:$0xff]  ;;  %v3914_v46 = vld [vmem:[%s10779_s3 + $0x7c8] sm:$0xff]  ;;  %4071 = vmatpush.msra.mxu3 %v3918_v22  ;;  %v3776_v22 = vld [vmem:[%s10779_s3 + $0x378] sm:$0xff] }
 0x5dc   :  { %4045 = vmatpush.msra.mxu1 %v3734_v54  ;;  %4065 = vmatpush.msra.mxu2 %v3798_v57  ;;  %v3755_v38 = vld [vmem:[%s10779_s3 + $0x2d0] sm:$0xff]  ;;  %v3338_v54 = vpop.f32.mrf.mxu3 }
 0x5dd   :  { %4026 = vmatpush.msra.mxu0 %v3666_v2  ;;  %v3751_v57 = vld [vmem:[%s10779_s3 + $0x2b0] sm:$0xff]  ;;  %v3910_v2 = vld [vmem:[%s10779_s3 + $0x7a8] sm:$0xff]  ;;  %4072 = vmatpush.msra.mxu3 %v3914_v46  ;;  %v3339_v32 = vadd.f32 %v3338_v54, %v3319_v23  ;;  %v3378_v16 = vpop.f32.mrf.mxu1  ;;  %v3772_v46 = vld [vmem:[%s10779_s3 + $0x358] sm:$0xff] }
 0x5de   :  { %4046 = vmatpush.msra.mxu1 %v3730_v10  ;;  %4066 = vmatpush.msra.mxu2 %v3794_v8  ;;  %v3358_v10 = vpop.f32.mrf.mxu0  ;;  %v3683_v8 = vld [vmem:[%s10779_s3 + $0x90] sm:$0xff] }
 0x5df   :  { %4027 = vmatmul.f32.vlgmr.msra.gmra.mxu0 %v9918_v40  ;;  %4047 = vmatmul.f32.vlgmr.msra.gmra.mxu1 %v9920_v43  ;;  %v3811_v60 = vld [vmem:[%s10779_s3 + $0x490] sm:$0xff]  ;;  %v3359_v42 = vadd.f32 %v3358_v10, %v3339_v32 }
 0x5e0   :  { %4067 = vmatmul.f32.vlgmr.msra.gmra.mxu2 %v9922_v62  ;;  %4091 = vmatpush.msrb.mxu0 %v3727_v29  ;;  %v3906_v29 = vld [vmem:[%s10779_s3 + $0x788] sm:$0xff]  ;;  %v3739_v17 = vld [vmem:[%s10779_s3 + $0x250] sm:$0xff] }
 0x5e1   :  { %4111 = vmatpush.msrb.mxu1 %v3791_v34  ;;  %4131 = vmatpush.msrb.mxu2 %v3855_v11  ;;  %v3679_v34 = vld [vmem:[%s10779_s3 + $0x70] sm:$0xff] }
 0x5e2   :  { %4092 = vmatpush.msrb.mxu0 %v3723_v58  ;;  %v3743_v11 = vld [vmem:[%s10779_s3 + $0x270] sm:$0xff]  ;;  %4073 = vmatpush.msra.mxu3 %v3910_v2  ;;  %v3768_v2 = vld [vmem:[%s10779_s3 + $0x338] sm:$0xff] }
 0x5e3   :  { %4112 = vmatpush.msrb.mxu1 %v3787_v9  ;;  %4132 = vmatpush.msrb.mxu2 %v3851_v19  ;;  %v3807_v58 = vld [vmem:[%s10779_s3 + $0x470] sm:$0xff]  ;;  %v3902_v9 = vld [vmem:[%s10779_s3 + $0x768] sm:$0xff] }
 0x5e4   :  { %4093 = vmatpush.msrb.mxu0 %v3719_v0  ;;  %v3675_v19 = vld [vmem:[%s10779_s3 + $0x50] sm:$0xff]  ;;  %4074 = vmatpush.msra.mxu3 %v3906_v29  ;;  %v3764_v29 = vld [vmem:[%s10779_s3 + $0x318] sm:$0xff] }
 0x5e5   :  { %4113 = vmatpush.msrb.mxu1 %v3783_v18  ;;  %4133 = vmatpush.msrb.mxu2 %v3847_v52  ;;  %v3803_v0 = vld [vmem:[%s10779_s3 + $0x450] sm:$0xff]  ;;  %v3898_v18 = vld [vmem:[%s10779_s3 + $0x748] sm:$0xff]  ;;  %v3398_v52 = vpop.f32.mrf.mxu2 }
 0x5e6   :  { %4094 = vmatpush.msrb.mxu0 %v3715_v25  ;;  %v3671_v14 = vld [vmem:[%s10779_s3 + $0x30] sm:$0xff]  ;;  %4075 = vmatpush.msra.mxu3 %v3902_v9  ;;  %v3760_v9 = vld [vmem:[%s10779_s3 + $0x2f8] sm:$0xff] }
 0x5e7   :  { %4114 = vmatpush.msrb.mxu1 %v3779_v5  ;;  %4134 = vmatpush.msrb.mxu2 %v3843_v20  ;;  %v3735_v25 = vld [vmem:[%s10779_s3 + $0x230] sm:$0xff]  ;;  %v3379_v5 = vadd.f32 %v3378_v16, %v3359_v42  ;;  %v3894_v20 = vld [vmem:[%s10779_s3 + $0x728] sm:$0xff] }
 0x5e8   :  { %4095 = vmatpush.msrb.mxu0 %v3711_v15  ;;  %v3799_v27 = vld [vmem:[%s10779_s3 + $0x430] sm:$0xff]  ;;  %4076 = vmatpush.msra.mxu3 %v3898_v18  ;;  %v3756_v18 = vld [vmem:[%s10779_s3 + $0x2d8] sm:$0xff] }
 0x5e9   :  { %4115 = vmatpush.msrb.mxu1 %v3775_v55  ;;  %4135 = vmatpush.msrb.mxu2 %v3839_v59  ;;  %v3667_v30 = vld [vmem:[%s10779_s3 + $0x10] sm:$0xff]  ;;  %v3399_v15 = vadd.f32 %v3398_v52, %v3379_v5  ;;  %v3418_v59 = vpop.f32.mrf.mxu3  ;;  %v3688_v5 = vld [vmem:[%s10779_s3 + $0xb8] sm:$0xff] }
 0x5ea   :  { %4096 = vmatpush.msrb.mxu0 %v3707_v56  ;;  %v3731_v45 = vld [vmem:[%s10779_s3 + $0x210] sm:$0xff]  ;;  %4077 = vmatpush.msra.mxu3 %v3894_v20  ;;  %v3438_v56 = vpop.f32.mrf.mxu0  ;;  %v3816_v20 = vld [vmem:[%s10779_s3 + $0x4b8] sm:$0xff] }
 0x5eb   :  { %4116 = vmatpush.msrb.mxu1 %v3771_v12  ;;  %4136 = vmatpush.msrb.mxu2 %v3835_v26  ;;  %v3795_v55 = vld [vmem:[%s10779_s3 + $0x410] sm:$0xff]  ;;  %v3856_v12 = vld [vmem:[%s10779_s3 + $0x5f8] sm:$0xff]  ;;  %v3419_v26 = vadd.f32 %v3418_v59, %v3399_v15 }
 0x5ec   :  { %4097 = vmatpush.msrb.mxu0 %v3703_v33  ;;  %v3788_v33 = vld [vmem:[%s10779_s3 + $0x3d8] sm:$0xff]  ;;  %4078 = vmatpush.msra.mxu3 %v3890_v4 }
 0x5ed   :  { %4117 = vmatpush.msrb.mxu1 %v3767_v39  ;;  %4137 = vmatpush.msrb.mxu2 %v3831_v28  ;;  %v3852_v39 = vld [vmem:[%s10779_s3 + $0x5d8] sm:$0xff]  ;;  %v3439_v28 = vadd.f32 %v3438_v56, %v3419_v26 }
 0x5ee   :  { %4098 = vmatpush.msrb.mxu0 %v3699_v31  ;;  %v3458_v31 = vpop.f32.mrf.mxu1  ;;  %4079 = vmatpush.msra.mxu3 %v3886_v37  ;;  %v3748_v15 = vld [vmem:[%s10779_s3 + $0x298] sm:$0xff] }
 0x5ef   :  { %4118 = vmatpush.msrb.mxu1 %v3763_v44  ;;  %4138 = vmatpush.msrb.mxu2 %v3827_v50  ;;  %v3848_v44 = vld [vmem:[%s10779_s3 + $0x5b8] sm:$0xff]  ;;  %v3882_v50 = vld [vmem:[%s10779_s3 + $0x6c8] sm:$0xff] }
 0x5f0   :  { %4099 = vmatpush.msrb.mxu0 %v3695_v41  ;;  %v3478_v41 = vpop.f32.mrf.mxu2  ;;  %4080 = vmatpush.msra.mxu3 %v3882_v50  ;;  %v3812_v59 = vld [vmem:[%s10779_s3 + $0x498] sm:$0xff] }
 0x5f1   :  { %4119 = vmatpush.msrb.mxu1 %v3759_v1  ;;  %4139 = vmatpush.msrb.mxu2 %v3823_v7  ;;  %v3844_v1 = vld [vmem:[%s10779_s3 + $0x598] sm:$0xff]  ;;  %v3459_v7 = vadd.f32 %v3458_v31, %v3439_v28  ;;  %v3498_v54 = vpop.f32.mrf.mxu3 }
 0x5f2   :  { %4100 = vmatpush.msrb.mxu0 %v3691_v51  ;;  %v3840_v51 = vld [vmem:[%s10779_s3 + $0x578] sm:$0xff]  ;;  %4081 = vmatpush.msra.mxu3 %v3878_v47  ;;  %v3518_v10 = vpop.f32.mrf.mxu0 }
 0x5f3   :  { %4120 = vmatpush.msrb.mxu1 %v3755_v38  ;;  %4140 = vmatpush.msrb.mxu2 %v3819_v49  ;;  %v3874_v38 = vld [vmem:[%s10779_s3 + $0x688] sm:$0xff]  ;;  %v3479_v23 = vadd.f32 %v3478_v41, %v3459_v7  ;;  %v3708_v49 = vld [vmem:[%s10779_s3 + $0x158] sm:$0xff] }
 0x5f4   :  { %4101 = vmatpush.msrb.mxu0 %v3687_v3  ;;  %v3836_v3 = vld [vmem:[%s10779_s3 + $0x558] sm:$0xff]  ;;  %4082 = vmatpush.msra.mxu3 %v3874_v38  ;;  %v3895_v38 = vld [vmem:[%s10779_s3 + $0x730] sm:$0xff] }
 0x5f5   :  { %4121 = vmatpush.msrb.mxu1 %v3751_v57  ;;  %4141 = vmatpush.msrb.mxu2 %v3815_v63  ;;  %v3870_v57 = vld [vmem:[%s10779_s3 + $0x668] sm:$0xff]  ;;  %v3704_v63 = vld [vmem:[%s10779_s3 + $0x138] sm:$0xff]  ;;  %v3499_v32 = vadd.f32 %v3498_v54, %v3479_v23  ;;  %v3891_v23 = vld [vmem:[%s10779_s3 + $0x710] sm:$0xff] }
 0x5f6   :  { %4102 = vmatpush.msrb.mxu0 %v3683_v8  ;;  %v3832_v8 = vld [vmem:[%s10779_s3 + $0x538] sm:$0xff]  ;;  %4083 = vmatpush.msra.mxu3 %v3870_v57  ;;  %v3538_v16 = vpop.f32.mrf.mxu1  ;;  %v3879_v54 = vld [vmem:[%s10779_s3 + $0x6b0] sm:$0xff] }
 0x5f7   :  { %4122 = vmatpush.msrb.mxu1 %v3747_v36  ;;  %4142 = vmatpush.msrb.mxu2 %v3811_v60  ;;  %v3866_v36 = vld [vmem:[%s10779_s3 + $0x648] sm:$0xff]  ;;  %v3700_v60 = vld [vmem:[%s10779_s3 + $0x118] sm:$0xff]  ;;  %v3519_v42 = vadd.f32 %v3518_v10, %v3499_v32  ;;  %v3871_v57 = vld [vmem:[%s10779_s3 + $0x670] sm:$0xff] }
 0x5f8   :  { %4103 = vmatpush.msrb.mxu0 %v3679_v34  ;;  %v3828_v34 = vld [vmem:[%s10779_s3 + $0x518] sm:$0xff]  ;;  %4084 = vmatpush.msra.mxu3 %v3866_v36  ;;  %v3558_v52 = vpop.f32.mrf.mxu2  ;;  %v3859_v10 = vld [vmem:[%s10779_s3 + $0x610] sm:$0xff] }
 0x5f9   :  { %4123 = vmatpush.msrb.mxu1 %v3743_v11  ;;  %4143 = vmatpush.msrb.mxu2 %v3807_v58  ;;  %v3862_v11 = vld [vmem:[%s10779_s3 + $0x628] sm:$0xff]  ;;  %v3696_v58 = vld [vmem:[%s10779_s3 + $0xf8] sm:$0xff] }
 0x5fa   :  { %4104 = vmatpush.msrb.mxu0 %v3675_v19  ;;  %v3824_v19 = vld [vmem:[%s10779_s3 + $0x4f8] sm:$0xff]  ;;  %4085 = vmatpush.msra.mxu3 %v3862_v11 }
 0x5fb   :  { %4124 = vmatpush.msrb.mxu1 %v3739_v17  ;;  %4144 = vmatpush.msrb.mxu2 %v3803_v0  ;;  %v3858_v17 = vld [vmem:[%s10779_s3 + $0x608] sm:$0xff]  ;;  %v3692_v0 = vld [vmem:[%s10779_s3 + $0xd8] sm:$0xff] }
 0x5fc   :  { %4105 = vmatpush.msrb.mxu0 %v3671_v14  ;;  %v3820_v14 = vld [vmem:[%s10779_s3 + $0x4d8] sm:$0xff]  ;;  %4086 = vmatpush.msra.mxu3 %v3858_v17 }
 0x5fd   :  { %4125 = vmatpush.msrb.mxu1 %v3735_v25  ;;  %4145 = vmatpush.msrb.mxu2 %v3799_v27  ;;  %v3539_v25 = vadd.f32 %v3538_v16, %v3519_v42  ;;  %v3752_v27 = vld [vmem:[%s10779_s3 + $0x2b8] sm:$0xff] }
 0x5fe   :  { %4106 = vmatpush.msrb.mxu0 %v3667_v30  ;;  %v3808_v56 = vld [vmem:[%s10779_s3 + $0x478] sm:$0xff] }
 0x5ff   :  { %4126 = vmatpush.msrb.mxu1 %v3731_v45  ;;  %4146 = vmatpush.msrb.mxu2 %v3795_v55  ;;  %v3559_v30 = vadd.f32 %v3558_v52, %v3539_v25  ;;  %v3684_v45 = vld [vmem:[%s10779_s3 + $0x98] sm:$0xff]  ;;  %v3578_v55 = vpop.f32.mrf.mxu3  ;;  %v4265_v25 = vld [vmem:[%s10780_s5 + $0x70] sm:$0xff] }
 0x600   :  { %4107 = vmatmul.f32.vlgmr.msrb.gmra.mxu0 %v9918_v40  ;;  %4127 = vmatmul.f32.vlgmr.msrb.gmra.mxu1 %v9920_v43  ;;  %v3676_v4 = vld [vmem:[%s10779_s3 + $0x58] sm:$0xff] }
 0x601   :  { %4147 = vmatmul.f32.vlgmr.msrb.gmra.mxu2 %v9922_v62  ;;  %4171 = vmatpush.msra.mxu0 %v3728_v61  ;;  %v3680_v61 = vld [vmem:[%s10779_s3 + $0x78] sm:$0xff] }
 0x602   :  { %4191 = vmatpush.msra.mxu1 %v3792_v48  ;;  %4211 = vmatpush.msra.mxu2 %v3856_v12  ;;  %v3744_v48 = vld [vmem:[%s10779_s3 + $0x278] sm:$0xff]  ;;  %v3579_v12 = vadd.f32 %v3578_v55, %v3559_v30  ;;  %v4260_v55 = vld [vmem:[%s10780_s5 + $0x48] sm:$0xff] }
 0x603   :  { %4172 = vmatpush.msra.mxu0 %v3724_v21  ;;  %v3740_v26 = vld [vmem:[%s10779_s3 + $0x258] sm:$0xff] }
 0x604   :  { %4192 = vmatpush.msra.mxu1 %v3788_v33  ;;  %4212 = vmatpush.msra.mxu2 %v3852_v39  ;;  %v3804_v21 = vld [vmem:[%s10779_s3 + $0x458] sm:$0xff] }
 0x605   :  { %4173 = vmatpush.msra.mxu0 %v3720_v35  ;;  %v3672_v39 = vld [vmem:[%s10779_s3 + $0x38] sm:$0xff] }
 0x606   :  { %4193 = vmatpush.msra.mxu1 %v3784_v53  ;;  %4213 = vmatpush.msra.mxu2 %v3848_v44  ;;  %v3736_v37 = vld [vmem:[%s10779_s3 + $0x238] sm:$0xff] }
 0x607   :  { %4174 = vmatpush.msra.mxu0 %v3716_v6  ;;  %v3800_v35 = vld [vmem:[%s10779_s3 + $0x438] sm:$0xff] }
 0x608   :  { %4194 = vmatpush.msra.mxu1 %v3780_v13  ;;  %4214 = vmatpush.msra.mxu2 %v3844_v1  ;;  %v3668_v53 = vld [vmem:[%s10779_s3 + $0x18] sm:$0xff] }
 0x609   :  { %4175 = vmatpush.msra.mxu0 %v3712_v24  ;;  %v3732_v31 = vld [vmem:[%s10779_s3 + $0x218] sm:$0xff]  ;;  %v3919_v24 = vld [vmem:[%s10779_s3 + $0x7f0] sm:$0xff] }
 0x60a   :  { %4195 = vmatpush.msra.mxu1 %v3776_v22  ;;  %4215 = vmatpush.msra.mxu2 %v3840_v51  ;;  %v3796_v50 = vld [vmem:[%s10779_s3 + $0x418] sm:$0xff]  ;;  %v3915_v22 = vld [vmem:[%s10779_s3 + $0x7d0] sm:$0xff] }
 0x60b   :  { %4176 = vmatpush.msra.mxu0 %v3708_v49  ;;  %v3899_v51 = vld [vmem:[%s10779_s3 + $0x750] sm:$0xff]  ;;  %v3916_v36 = vld [vmem:[%s10779_s3 + $0x7d8] sm:$0xff] }
 0x60c   :  { %4196 = vmatpush.msra.mxu1 %v3772_v46  ;;  %4216 = vmatpush.msra.mxu2 %v3836_v3  ;;  %v3887_v49 = vld [vmem:[%s10779_s3 + $0x6f0] sm:$0xff]  ;;  %v3912_v32 = vld [vmem:[%s10779_s3 + $0x7b8] sm:$0xff] }
 0x60d   :  { %4177 = vmatpush.msra.mxu0 %v3704_v63  ;;  %v3883_v46 = vld [vmem:[%s10779_s3 + $0x6d0] sm:$0xff]  ;;  %v3896_v11 = vld [vmem:[%s10779_s3 + $0x738] sm:$0xff] }
 0x60e   :  { %4197 = vmatpush.msra.mxu1 %v3768_v2  ;;  %4217 = vmatpush.msra.mxu2 %v3832_v8  ;;  %v3875_v3 = vld [vmem:[%s10779_s3 + $0x690] sm:$0xff]  ;;  %v3920_v8 = vld [vmem:[%s10779_s3 + $0x7f8] sm:$0xff] }
 0x60f   :  { %4178 = vmatpush.msra.mxu0 %v3700_v60  ;;  %v3867_v63 = vld [vmem:[%s10779_s3 + $0x650] sm:$0xff]  ;;  %v3908_v60 = vld [vmem:[%s10779_s3 + $0x798] sm:$0xff] }
 0x610   :  { %4198 = vmatpush.msra.mxu1 %v3764_v29  ;;  %4218 = vmatpush.msra.mxu2 %v3828_v34  ;;  %v3863_v2 = vld [vmem:[%s10779_s3 + $0x630] sm:$0xff]  ;;  %v3904_v29 = vld [vmem:[%s10779_s3 + $0x778] sm:$0xff] }
 0x611   :  { %4179 = vmatpush.msra.mxu0 %v3696_v58  ;;  %v3900_v34 = vld [vmem:[%s10779_s3 + $0x758] sm:$0xff] }
 0x612   :  { %4199 = vmatpush.msra.mxu1 %v3760_v9  ;;  %4219 = vmatpush.msra.mxu2 %v3824_v19  ;;  %v3892_v42 = vld [vmem:[%s10779_s3 + $0x718] sm:$0xff] }
 0x613   :  { %4180 = vmatpush.msra.mxu0 %v3692_v0  ;;  %v3888_v58 = vld [vmem:[%s10779_s3 + $0x6f8] sm:$0xff] }
 0x614   :  { %4200 = vmatpush.msra.mxu1 %v3756_v18  ;;  %4220 = vmatpush.msra.mxu2 %v3820_v14  ;;  %v3884_v9 = vld [vmem:[%s10779_s3 + $0x6d8] sm:$0xff] }
 0x615   :  { %4181 = vmatpush.msra.mxu0 %v3688_v5  ;;  %v3880_v16 = vld [vmem:[%s10779_s3 + $0x6b8] sm:$0xff]  ;;  %v4264_v5 = vld [vmem:[%s10780_s5 + $0x68] sm:$0xff] }
 0x616   :  { %4201 = vmatpush.msra.mxu1 %v3752_v27  ;;  %4221 = vmatpush.msra.mxu2 %v3816_v20  ;;  %v3876_v19 = vld [vmem:[%s10779_s3 + $0x698] sm:$0xff]  ;;  %v4263_v27 = vld [vmem:[%s10780_s5 + $0x60] sm:$0xff] }
 0x617   :  { %4182 = vmatpush.msra.mxu0 %v3684_v45  ;;  %v3872_v17 = vld [vmem:[%s10779_s3 + $0x678] sm:$0xff]  ;;  %v4261_v45 = vld [vmem:[%s10780_s5 + $0x50] sm:$0xff] }
 0x618   :  { %4202 = vmatpush.msra.mxu1 %v3748_v15  ;;  %4222 = vmatpush.msra.mxu2 %v3812_v59  ;;  %v3598_v33 = vpop.f32.mrf.mxu0  ;;  %v3868_v0 = vld [vmem:[%s10779_s3 + $0x658] sm:$0xff]  ;;  %v4281_v15 = vld [vmem:[%s10780_s5 + $0xf0] sm:$0xff]  ;;  %v4280_v59 = vld [vmem:[%s10780_s5 + $0xe8] sm:$0xff] }
 0x619   :  { %4183 = vmatpush.msra.mxu0 %v3680_v61  ;;  %v3599_v28 = vadd.f32 %v3598_v33, %v3579_v12  ;;  %v3864_v18 = vld [vmem:[%s10779_s3 + $0x638] sm:$0xff]  ;;  %v4259_v61 = vld [vmem:[%s10780_s5 + $0x40] sm:$0xff]  ;;  %v4276_v33 = vld [vmem:[%s10780_s5 + $0xc8] sm:$0xff] }
 0x61a   :  { %4203 = vmatpush.msra.mxu1 %v3744_v48  ;;  %4223 = vmatpush.msra.mxu2 %v3808_v56  ;;  %v3860_v52 = vld [vmem:[%s10779_s3 + $0x618] sm:$0xff]  ;;  %v4279_v48 = vld [vmem:[%s10780_s5 + $0xe0] sm:$0xff] }
 0x61b   :  { %4184 = vmatpush.msra.mxu0 %v3676_v4  ;;  %v3618_v44 = vpop.f32.mrf.mxu1  ;;  %v4266_v14 = vld [vmem:[%s10780_s5 + $0x78] sm:$0xff]  ;;  %v4257_v4 = vld [vmem:[%s10780_s5 + $0x30] sm:$0xff] }
 0x61c   :  { %4204 = vmatpush.msra.mxu1 %v3740_v26  ;;  %4224 = vmatpush.msra.mxu2 %v3804_v21  ;;  %v3619_v6 = vadd.f32 %v3618_v44, %v3599_v28  ;;  %v4262_v20 = vld [vmem:[%s10780_s5 + $0x58] sm:$0xff]  ;;  %v4277_v26 = vld [vmem:[%s10780_s5 + $0xd0] sm:$0xff]  ;;  %v4256_v21 = vld [vmem:[%s10780_s5 + $0x28] sm:$0xff] }
 0x61d   :  { %4185 = vmatpush.msra.mxu0 %v3672_v39  ;;  %v4282_v30 = vld [vmem:[%s10780_s5 + $0xf8] sm:$0xff]  ;;  %v4255_v39 = vld [vmem:[%s10780_s5 + $0x20] sm:$0xff] }
 0x61e   :  { %4205 = vmatpush.msra.mxu1 %v3736_v37  ;;  %4225 = vmatpush.msra.mxu2 %v3800_v35  ;;  %v4258_v56 = vld [vmem:[%s10780_s5 + $0x38] sm:$0xff]  ;;  %v4275_v37 = vld [vmem:[%s10780_s5 + $0xc0] sm:$0xff] }
 0x61f   :  { %4186 = vmatpush.msra.mxu0 %v3668_v53  ;;  %v4278_v12 = vld [vmem:[%s10780_s5 + $0xd8] sm:$0xff]  ;;  %v4253_v53 = vld [vmem:[%s10780_s5 + $0x10] sm:$0xff] }
 0x620   :  { %4206 = vmatpush.msra.mxu1 %v3732_v31  ;;  %4226 = vmatpush.msra.mxu2 %v3796_v50  ;;  %v4254_v28 = vld [vmem:[%s10780_s5 + $0x18] sm:$0xff]  ;;  %v4273_v31 = vld [vmem:[%s10780_s5 + $0xb0] sm:$0xff] }
 0x621   :  { %4187 = vmatmul.f32.vlgmr.msra.gmra.mxu0 %v9918_v40  ;;  %4207 = vmatmul.f32.vlgmr.msra.gmra.mxu1 %v9920_v43  ;;  %v3911_v40 = vld [vmem:[%s10779_s3 + $0x7b0] sm:$0xff]  ;;  %v4274_v35 = vld [vmem:[%s10780_s5 + $0xb8] sm:$0xff] }
 0x622   :  { %v3638_v13 = vpop.f32.mrf.mxu2  ;;  %4227 = vmatmul.f32.vlgmr.msra.gmra.mxu2 %v9922_v62  ;;  %v3907_v43 = vld [vmem:[%s10779_s3 + $0x790] sm:$0xff]  ;;  %4319 = vmatpush.msrb.mxu0 %v4266_v14  ;;  %v4298_v44 = vld [vmem:[%s10780_s5 + $0x178] sm:$0xff] }
 0x623   :  { %v3639_v41 = vadd.f32 %v3638_v13, %v3619_v6  ;;  %v3658_v1 = vpop.f32.mrf.mxu3  ;;  %v3903_v62 = vld [vmem:[%s10779_s3 + $0x770] sm:$0xff]  ;;  %4339 = vmatpush.msrb.mxu1 %v4282_v30  ;;  %v4252_v6 = vld [vmem:[%s10780_s5 + $0x8] sm:$0xff]  ;;  %4359 = vmatpush.msrb.mxu2 %v4298_v44 }
 0x624   :  { %4320 = vmatpush.msrb.mxu0 %v4265_v25  ;;  %v4297_v50 = vld [vmem:[%s10780_s5 + $0x170] sm:$0xff]  ;;  %v4272_v13 = vld [vmem:[%s10780_s5 + $0xa8] sm:$0xff] }
 0x625   :  { %v3659_v47 = vadd.f32 %v3658_v1, %v3639_v41  ;;  %4340 = vmatpush.msrb.mxu1 %v4281_v15  ;;  %v4296_v41 = vld [vmem:[%s10780_s5 + $0x168] sm:$0xff]  ;;  %v4251_v1 = vld [vmem:[%s10780_s5] sm:$0xff]  ;;  %4360 = vmatpush.msrb.mxu2 %v4297_v50  ;;  %v4310_v15 = vld [vmem:[%s10780_s5 + $0x1d8] sm:$0xff] }
 0x626   :  { %4321 = vmatpush.msrb.mxu0 %v4264_v5  ;;  %v4312_v5 = vld [vmem:[%s10780_s5 + $0x1e8] sm:$0xff] }
 0x627   :  { %v10467_v7 = vmax.f32 %v3659_v47, 0.0  ;;  %4341 = vmatpush.msrb.mxu1 %v4280_v59  ;;  %v4271_v47 = vld [vmem:[%s10780_s5 + $0xa0] sm:$0xff]  ;;  %4361 = vmatpush.msrb.mxu2 %v4296_v41  ;;  %v4308_v59 = vld [vmem:[%s10780_s5 + $0x1c8] sm:$0xff] }
 0x628   :  { %4322 = vmatpush.msrb.mxu0 %v4263_v27 }
 0x629   :  { %4007 = vmatmul.f32.vlgmr.msrb.gmra.mxu3 %v10467_v7  ;;  %4342 = vmatpush.msrb.mxu1 %v4279_v48  ;;  %v4306_v48 = vld [vmem:[%s10780_s5 + $0x1b8] sm:$0xff] }
 0x62a   :  { %4151 = vmatpush.msrb.mxu3 %v3919_v24  ;;  %4323 = vmatpush.msrb.mxu0 %v4262_v20  ;;  %v4295_v24 = vld [vmem:[%s10780_s5 + $0x160] sm:$0xff] }
 0x62b   :  { %4343 = vmatpush.msrb.mxu1 %v4278_v12  ;;  %4362 = vmatpush.msrb.mxu2 %v4295_v24  ;;  %v4311_v20 = vld [vmem:[%s10780_s5 + $0x1e0] sm:$0xff] }
 0x62c   :  { %4152 = vmatpush.msrb.mxu3 %v3915_v22  ;;  %4324 = vmatpush.msrb.mxu0 %v4261_v45  ;;  %v4269_v22 = vld [vmem:[%s10780_s5 + $0x90] sm:$0xff] }
 0x62d   :  { %4344 = vmatpush.msrb.mxu1 %v4277_v26 }
 0x62e   :  { %4153 = vmatpush.msrb.mxu3 %v3911_v40  ;;  %4325 = vmatpush.msrb.mxu0 %v4260_v55  ;;  %v4294_v40 = vld [vmem:[%s10780_s5 + $0x158] sm:$0xff]  ;;  %v4309_v55 = vld [vmem:[%s10780_s5 + $0x1d0] sm:$0xff] }
 0x62f   :  { %4345 = vmatpush.msrb.mxu1 %v4276_v33  ;;  %4363 = vmatpush.msrb.mxu2 %v4294_v40 }
 0x630   :  { %4154 = vmatpush.msrb.mxu3 %v3907_v43  ;;  %4326 = vmatpush.msrb.mxu0 %v4259_v61  ;;  %v4293_v43 = vld [vmem:[%s10780_s5 + $0x150] sm:$0xff]  ;;  %v4307_v61 = vld [vmem:[%s10780_s5 + $0x1c0] sm:$0xff] }
 0x631   :  { %4087 = vmatmul.f32.vlgmr.msra.gmra.mxu3 %v10467_v7  ;;  %4346 = vmatpush.msrb.mxu1 %v4275_v37  ;;  %v4301_v37 = vld [vmem:[%s10780_s5 + $0x190] sm:$0xff] }
 0x632   :  { %4155 = vmatpush.msrb.mxu3 %v3903_v62  ;;  %4327 = vmatpush.msrb.mxu0 %v4258_v56  ;;  %v4268_v62 = vld [vmem:[%s10780_s5 + $0x88] sm:$0xff]  ;;  %v4305_v56 = vld [vmem:[%s10780_s5 + $0x1b0] sm:$0xff] }
 0x633   :  { %4347 = vmatpush.msrb.mxu1 %v4274_v35  ;;  %4364 = vmatpush.msrb.mxu2 %v4293_v43 }
 0x634   :  { %4156 = vmatpush.msrb.mxu3 %v3899_v51  ;;  %4328 = vmatpush.msrb.mxu0 %v4257_v4  ;;  %v4292_v51 = vld [vmem:[%s10780_s5 + $0x148] sm:$0xff] }
 0x635   :  { %4348 = vmatpush.msrb.mxu1 %v4273_v31  ;;  %4365 = vmatpush.msrb.mxu2 %v4292_v51  ;;  %v4304_v4 = vld [vmem:[%s10780_s5 + $0x1a8] sm:$0xff]  ;;  %v4404_v51 = vld [vmem:[%s10781_s6] ss:$0 sm:$0xff] }
 0x636   :  { %4157 = vmatpush.msrb.mxu3 %v3895_v38  ;;  %4329 = vmatpush.msrb.mxu0 %v4256_v21  ;;  %v4267_v38 = vld [vmem:[%s10780_s5 + $0x80] sm:$0xff] }
 0x637   :  { %4349 = vmatpush.msrb.mxu1 %v4272_v13  ;;  %v4303_v21 = vld [vmem:[%s10780_s5 + $0x1a0] sm:$0xff] }
 0x638   :  { %4158 = vmatpush.msrb.mxu3 %v3891_v23  ;;  %4330 = vmatpush.msrb.mxu0 %v4255_v39  ;;  %v4291_v23 = vld [vmem:[%s10780_s5 + $0x140] sm:$0xff]  ;;  %v4302_v39 = vld [vmem:[%s10780_s5 + $0x198] sm:$0xff] }
 0x639   :  { %4350 = vmatpush.msrb.mxu1 %v4271_v47  ;;  %4366 = vmatpush.msrb.mxu2 %v4291_v23  ;;  %v4299_v13 = vld [vmem:[%s10780_s5 + $0x180] sm:$0xff] }
 0x63a   :  { %4159 = vmatpush.msrb.mxu3 %v3887_v49  ;;  %4331 = vmatpush.msrb.mxu0 %v4254_v28  ;;  %v10692_v49 = vld [vmem:[%s10782_s4] sm:$0xf] }
 0x63b   :  { %v3925_v12 = vperm.slane %v10692_v49, 2  ;;  %v3926_v41 = vperm.slane %v10692_v49, 3 }
 0x63c   :  { %4160 = vmatpush.msrb.mxu3 %v3883_v46  ;;  %4332 = vmatpush.msrb.mxu0 %v4253_v53  ;;  %v4290_v46 = vld [vmem:[%s10780_s5 + $0x138] sm:$0xff] }
 0x63d   :  { %4367 = vmatpush.msrb.mxu2 %v4290_v46 }
 0x63e   :  { %4161 = vmatpush.msrb.mxu3 %v3879_v54  ;;  %4333 = vmatpush.msrb.mxu0 %v4252_v6  ;;  %v4289_v54 = vld [vmem:[%s10780_s5 + $0x130] sm:$0xff]  ;;  %v4300_v6 = vld [vmem:[%s10780_s5 + $0x188] sm:$0xff] }
 0x63f   :  { %4368 = vmatpush.msrb.mxu2 %v4289_v54 }
 0x640   :  { %4162 = vmatpush.msrb.mxu3 %v3875_v3  ;;  %4334 = vmatpush.msrb.mxu0 %v4251_v1  ;;  %v3923_v3 = vperm.slane %v10692_v49, 0 }
 0x642   :  { %4163 = vmatpush.msrb.mxu3 %v3871_v57  ;;  %v3948_v57 = vpop.f32.mrf.mxu0 }
 0x644   :  { %4164 = vmatpush.msrb.mxu3 %v3867_v63  ;;  %v4288_v63 = vld [vmem:[%s10780_s5 + $0x128] sm:$0xff] }
 0x645   :  { %4369 = vmatpush.msrb.mxu2 %v4288_v63 }
 0x646   :  { %4165 = vmatpush.msrb.mxu3 %v3863_v2  ;;  %v4287_v2 = vld [vmem:[%s10780_s5 + $0x120] sm:$0xff] }
 0x647   :  { %4370 = vmatpush.msrb.mxu2 %v4287_v2 }
 0x648   :  { %4166 = vmatpush.msrb.mxu3 %v3859_v10  ;;  %v3949_v10 = vadd.f32 %v3948_v57, %v3923_v3 }
 0x649   :  { %4167 = vmatmul.f32.vlgmr.msrb.gmra.mxu3 %v10467_v7 }
 0x64a   :  { %4231 = vmatpush.msra.mxu3 %v3920_v8  ;;  %v4286_v8 = vld [vmem:[%s10780_s5 + $0x118] sm:$0xff] }
 0x64b   :  { %4371 = vmatpush.msrb.mxu2 %v4286_v8 }
 0x64c   :  { %4232 = vmatpush.msra.mxu3 %v3916_v36  ;;  %v3968_v36 = vpop.f32.mrf.mxu1 }
 0x64e   :  { %4233 = vmatpush.msra.mxu3 %v3912_v32  ;;  %v3988_v32 = vpop.f32.mrf.mxu2 }
 0x650   :  { %4234 = vmatpush.msra.mxu3 %v3908_v60  ;;  %v4285_v60 = vld [vmem:[%s10780_s5 + $0x110] sm:$0xff] }
 0x651   :  { %4372 = vmatpush.msrb.mxu2 %v4285_v60 }
 0x652   :  { %4235 = vmatpush.msra.mxu3 %v3904_v29  ;;  %v3969_v29 = vadd.f32 %v3968_v36, %v3949_v10 }
 0x654   :  { %4236 = vmatpush.msra.mxu3 %v3900_v34  ;;  %v3924_v34 = vperm.slane %v10692_v49, 1 }
 0x656   :  { %4237 = vmatpush.msra.mxu3 %v3896_v11 }
 0x658   :  { %4238 = vmatpush.msra.mxu3 %v3892_v42  ;;  %v3989_v42 = vadd.f32 %v3988_v32, %v3969_v29 }
 0x65a   :  { %4239 = vmatpush.msra.mxu3 %v3888_v58 }
 0x65c   :  { %4240 = vmatpush.msra.mxu3 %v3884_v9  ;;  %v4028_v11 = vpop.f32.mrf.mxu0 }
 0x65d   :  { %v4029_v9 = vadd.f32 %v4028_v11, %v3924_v34 }
 0x65e   :  { %4241 = vmatpush.msra.mxu3 %v3880_v16 }
 0x660   :  { %4242 = vmatpush.msra.mxu3 %v3876_v19  ;;  %v4284_v19 = vld [vmem:[%s10780_s5 + $0x108] sm:$0xff] }
 0x661   :  { %4373 = vmatpush.msrb.mxu2 %v4284_v19 }
 0x662   :  { %4243 = vmatpush.msra.mxu3 %v3872_v17  ;;  %v4283_v17 = vld [vmem:[%s10780_s5 + $0x100] sm:$0xff] }
 0x663   :  { %v4068_v14 = vpop.f32.mrf.mxu2  ;;  %4374 = vmatpush.msrb.mxu2 %v4283_v17 }
 0x664   :  { %4244 = vmatpush.msra.mxu3 %v3868_v0  ;;  %v4314_v0 = vld [vmem:[%s10780_s5 + $0x1f8] sm:$0xff] }
 0x666   :  { %4245 = vmatpush.msra.mxu3 %v3864_v18  ;;  %v4313_v18 = vld [vmem:[%s10780_s5 + $0x1f0] sm:$0xff] }
 0x668   :  { %4246 = vmatpush.msra.mxu3 %v3860_v52  ;;  %v4048_v52 = vpop.f32.mrf.mxu1 }
 0x669   :  { %4247 = vmatmul.f32.vlgmr.msra.gmra.mxu3 %v10467_v7  ;;  %v4270_v7 = vld [vmem:[%s10780_s5 + $0x98] sm:$0xff]  ;;  %v4049_v25 = vadd.f32 %v4048_v52, %v4029_v9 }
 0x66a   :  { %4351 = vmatpush.msrb.mxu1 %v4270_v7  ;;  %4379 = vmatpush.msrb.mxu3 %v4314_v0 }
 0x66b   :  { %v4069_v27 = vadd.f32 %v4068_v14, %v4049_v25 }
 0x66c   :  { %4352 = vmatpush.msrb.mxu1 %v4269_v22  ;;  %4380 = vmatpush.msrb.mxu3 %v4313_v18 }
 0x66e   :  { %4353 = vmatpush.msrb.mxu1 %v4268_v62  ;;  %4381 = vmatpush.msrb.mxu3 %v4312_v5 }
 0x670   :  { %4354 = vmatpush.msrb.mxu1 %v4267_v38  ;;  %4382 = vmatpush.msrb.mxu3 %v4311_v20 }
 0x672   :  { %4383 = vmatpush.msrb.mxu3 %v4310_v15 }
 0x674   :  { %4384 = vmatpush.msrb.mxu3 %v4309_v55 }
 0x676   :  { %4385 = vmatpush.msrb.mxu3 %v4308_v59 }
 0x678   :  { %4386 = vmatpush.msrb.mxu3 %v4307_v61 }
 0x67a   :  { %4387 = vmatpush.msrb.mxu3 %v4306_v48 }
 0x67c   :  { %4388 = vmatpush.msrb.mxu3 %v4305_v56 }
 0x67d   :  { %v4108_v26 = vpop.f32.mrf.mxu0  ;;  %v4128_v28 = vpop.f32.mrf.mxu1 }
 0x67e   :  { %4389 = vmatpush.msrb.mxu3 %v4304_v4  ;;  %v4109_v33 = vadd.f32 %v4108_v26, %v3925_v12 }
 0x680   :  { %4390 = vmatpush.msrb.mxu3 %v4303_v21  ;;  %v4129_v53 = vadd.f32 %v4128_v28, %v4109_v33 }
 0x682   :  { %4391 = vmatpush.msrb.mxu3 %v4302_v39 }
 0x684   :  { %v4148_v35 = vpop.f32.mrf.mxu2  ;;  %4392 = vmatpush.msrb.mxu3 %v4301_v37 }
 0x685   :  { %v4149_v31 = vadd.f32 %v4148_v35, %v4129_v53 }
 0x686   :  { %4393 = vmatpush.msrb.mxu3 %v4300_v6 }
 0x688   :  { %4394 = vmatpush.msrb.mxu3 %v4299_v13 }
 0x69e   :  { %v4188_v1 = vpop.f32.mrf.mxu0  ;;  %v4208_v7 = vpop.f32.mrf.mxu1 }
 0x69f   :  { %v4189_v47 = vadd.f32 %v4188_v1, %v3926_v41 }
 0x6a1   :  { %v4209_v22 = vadd.f32 %v4208_v7, %v4189_v47 }
 0x6a5   :  { %v4228_v24 = vpop.f32.mrf.mxu2 }
 0x6a6   :  { %v4229_v40 = vadd.f32 %v4228_v24, %v4209_v22 }
 0x6ac   :  { %v4008_v58 = vpop.f32.mrf.mxu3 }
 0x6ad   :  { %v4009_v16 = vadd.f32 %v4008_v58, %v3989_v42 }
 0x6af   :  { %4335 = vmatmul.f32.vlgmr.msrb.gmra.mxu0 %v4009_v16 }
 0x6b4   :  { %v4088_v30 = vpop.f32.mrf.mxu3 }
 0x6b5   :  { %v4089_v45 = vadd.f32 %v4088_v30, %v4069_v27 }
 0x6b7   :  { %4355 = vmatmul.f32.vlgmr.msrb.gmra.mxu1 %v4089_v45 }
 0x6cc   :  { %v4168_v44 = vpop.f32.mrf.mxu3 }
 0x6cd   :  { %v4169_v50 = vadd.f32 %v4168_v44, %v4149_v31 }
 0x6cf   :  { %4375 = vmatmul.f32.vlgmr.msrb.gmra.mxu2 %v4169_v50 }
 0x6ec   :  { %v4248_v43 = vpop.f32.mrf.mxu3 }
 0x6ed   :  { %v4249_v62 = vadd.f32 %v4248_v43, %v4229_v40 }
 0x6ef   :  { %4395 = vmatmul.f32.vlgmr.msrb.gmra.mxu3 %v4249_v62 }
 0x72c   :  { %v4336_v38 = vpop.f32.mrf.mxu0 }
 0x72d   :  { %v4337_v46 = vadd.f32 %v4404_v51, %v4336_v38 }
 0x734   :  { %v4356_v23 = vpop.f32.mrf.mxu1 }
 0x735   :  { %v4357_v3 = vadd.f32 %v4356_v23, %v4337_v46 }
 0x752   :  { %v4376_v54 = vpop.f32.mrf.mxu2 }
 0x753   :  { %v4377_v57 = vadd.f32 %v4376_v54, %v4357_v3 }
 0x772   :  { %v4396_v49 = vpop.f32.mrf.mxu3 }
 0x773   :  { %v4397_v63 = vadd.f32 %v4396_v49, %v4377_v57 }
 0x775   :  { %4399 = vst [vmem:[%s10783_s7] sm:$0xff] %v4397_v63 }

</bundles_post_ra>
